<compile_context>
chip_gen: v7x
topology: tpu7x:2x2x1
jax: 0.10.0
libtpu: 0.0.40
codegen_flags: <defaults>
</compile_context>

<pallas_src>
import math
import numpy as np

import jax
import jax.numpy as jnp
from jax import lax
from jax.experimental import pallas as pl
from jax.experimental.pallas import tpu as pltpu

_HI = lax.Precision.HIGHEST


# ----------------------------------------------------------------------------
# Pallas kernel
# ----------------------------------------------------------------------------
def _bottleneck_kernel(x_ref, wr_ref, wc_ref, we_ref, weca_ref, wspb_ref,
                       bsp_ref, out_ref, pad1, slab, pad_sp):
    # x_ref:    (1, H, W, Cin)
    # wr_ref:   (Cin, D)            conv_reduce
    # wc_ref:   (9*D, D)            grouped 3x3 conv, taps stacked along K
    # we_ref:   (D, Cout)           conv_expand
    # weca_ref: (Cout, Cout)        ECA banded conv1d matrix
    # wspb_ref: (2*W, 7*W)          spatial 7x7 conv as W-axis band matrix
    # bsp_ref:  (1,) SMEM           spatial conv bias
    H, W, Cin = x_ref.shape[1], x_ref.shape[2], x_ref.shape[3]
    D = wr_ref.shape[1]
    Cout = we_ref.shape[1]
    HW = H * W

    x = x_ref[0]                                                    # (H, W, Cin)
    xf = x.reshape(HW, Cin)

    # ---- conv_reduce: 1x1, no bias ------------------------------------------
    b1 = jnp.dot(xf, wr_ref[...],
                 preferred_element_type=jnp.float32, precision=_HI)       # (HW, D)

    # ---- conv_conv: grouped 3x3, padding=1, no bias -------------------------
    # Zero only the halo of the padded buffer (interior is overwritten every
    # step; reads touch rows 0..H+1 and columns 7..W+8 only).
    pad1[0:1, 7:W + 9, :] = jnp.zeros((1, W + 2, D), jnp.float32)
    pad1[H + 1:H + 2, 7:W + 9, :] = jnp.zeros((1, W + 2, D), jnp.float32)
    pad1[1:H + 1, 7:8, :] = jnp.zeros((H, 1, D), jnp.float32)
    pad1[1:H + 1, W + 8:W + 9, :] = jnp.zeros((H, 1, D), jnp.float32)
    pad1[1:1 + H, 8:8 + W, :] = b1.reshape(H, W, D)

    # Build the im2col slab (HW, 9*D): one shifted window per tap.
    for ky in range(3):
        for kx in range(3):
            t = ky * 3 + kx
            slab[:, t * D:(t + 1) * D] = (
                pad1[ky:ky + H, 7 + kx:7 + kx + W, :].reshape(HW, D))

    # Single K=9*D matmul against the stacked block-diagonal weight.
    b2 = jnp.dot(slab[...], wc_ref[...],
                 preferred_element_type=jnp.float32, precision=_HI)       # (HW, D)

    # ---- leaky_relu(0.2) -----------------------------------------------------
    b2 = jnp.where(b2 >= 0, b2, 0.2 * b2)

    # ---- conv_expand: 1x1, no bias -------------------------------------------
    b3 = jnp.dot(b2, we_ref[...],
                 preferred_element_type=jnp.float32, precision=_HI)       # (HW, Cout)

    # ---- CBAM: ECA channel gate ----------------------------------------------
    y = jnp.mean(b3, axis=0, keepdims=True)                               # (1, Cout)
    z = jnp.dot(y, weca_ref[...],
                preferred_element_type=jnp.float32, precision=_HI)        # (1, Cout)
    x1 = b3 * jax.nn.sigmoid(z)                                           # (HW, Cout)

    # ---- CBAM: spatial gate (ChannelPool + 7x7 conv + sigmoid) ---------------
    # Lane-dense plane: max plane in lanes [0, W), mean plane in lanes [W, 2W).
    x1_hw = x1.reshape(H, W, Cout)
    cmax = jnp.max(x1_hw, axis=2)                                         # (H, W)
    cmean = jnp.mean(x1_hw, axis=2)                                       # (H, W)
    pad_sp[0:3, :] = jnp.zeros((3, 2 * W), jnp.float32)                   # H halo only
    pad_sp[H + 3:H + 6, :] = jnp.zeros((3, 2 * W), jnp.float32)
    pad_sp[3:3 + H, 0:W] = cmax
    pad_sp[3:3 + H, W:2 * W] = cmean

    # 7x7 conv: one band matmul over the W axis (W-boundary zero padding is
    # baked into the band matrix), then 7 row-shifted adds over ky.
    r = jnp.dot(pad_sp[...], wspb_ref[...],
                preferred_element_type=jnp.float32, precision=_HI)        # (H+6, 7W)
    s = jnp.full((H, W), bsp_ref[0], jnp.float32)
    for ky in range(7):
        s = s + r[ky:ky + H, ky * W:(ky + 1) * W]
    gated = x1_hw * jax.nn.sigmoid(s)[:, :, None]                         # (H, W, Cout)

    # ---- identity shortcut (stride == 1) + residual add ----------------------
    out_ref[0] = (x + gated).astype(out_ref.dtype)


# ----------------------------------------------------------------------------
# Wrapper (NCHW in / NCHW out, like the PyTorch module)
# ----------------------------------------------------------------------------
def resnext_bottleneck_pallas(x_nchw, p):
    N, Cin, H, W = x_nchw.shape
    D = p["w_reduce"].shape[1]
    Cout = p["w_expand"].shape[1]
    x_nhwc = jnp.transpose(x_nchw, (0, 2, 3, 1))

    out_nhwc = pl.pallas_call(
        _bottleneck_kernel,
        out_shape=jax.ShapeDtypeStruct((N, H, W, Cout), jnp.float32),
        grid=(N,),
        in_specs=[
            pl.BlockSpec((1, H, W, Cin), lambda n: (n, 0, 0, 0)),
            pl.BlockSpec((Cin, D), lambda n: (0, 0)),
            pl.BlockSpec((9 * D, D), lambda n: (0, 0)),
            pl.BlockSpec((D, Cout), lambda n: (0, 0)),
            pl.BlockSpec((Cout, Cout), lambda n: (0, 0)),
            pl.BlockSpec((2 * W, 7 * W), lambda n: (0, 0)),
            pl.BlockSpec(memory_space=pltpu.MemorySpace.SMEM),
        ],
        out_specs=pl.BlockSpec((1, H, W, Cout), lambda n: (n, 0, 0, 0)),
        scratch_shapes=[
            pltpu.VMEM((H + 2, W + 16, D), jnp.float32),   # padded conv_conv input
            pltpu.VMEM((H * W, 9 * D), jnp.float32),       # im2col patch slab
            pltpu.VMEM((H + 6, 2 * W), jnp.float32),       # padded channel-pool planes
        ],
        compiler_params=pltpu.CompilerParams(
            dimension_semantics=("parallel",)),            # megacore batch split (v7x)
    )(x_nhwc, p["w_reduce"], p["w_conv_stacked"], p["w_expand"],
      p["w_eca_band"], p["w_sp_band"], p["b_spatial"])

    return jnp.transpose(out_nhwc, (0, 3, 1, 2))


# ----------------------------------------------------------------------------
# Deterministic parameter construction (host-side glue)
# ----------------------------------------------------------------------------
def make_params(key, in_channels, out_channels, cardinality, H, W):
    D = out_channels // 2
    gs = D // cardinality            # in/out channels per group
    C = out_channels
    ks = int(abs(math.log(C, 2) + 1.0 / 2.0))     # eca_layer(gamma=2, b=1)
    ks += ks % 2 - 1
    pad = (ks - 1) // 2

    k = jax.random.split(key, 6)
    # PyTorch-layout weights (single source of truth)
    w_reduce_oihw = 0.2 * jax.random.normal(k[0], (D, in_channels, 1, 1), jnp.float32)
    w_group_oihw = 0.2 * jax.random.normal(k[1], (D, gs, 3, 3), jnp.float32)
    w_expand_oihw = 0.2 * jax.random.normal(k[2], (C, D, 1, 1), jnp.float32)
    w_eca_taps = 0.3 * jax.random.normal(k[3], (ks,), jnp.float32)
    w_spatial_oihw = 0.1 * jax.random.normal(k[4], (1, 2, 7, 7), jnp.float32)
    b_spatial = 0.1 * jax.random.normal(k[5], (1,), jnp.float32)

    # kernel-layout derivations
    w_reduce = jnp.transpose(w_reduce_oihw[:, :, 0, 0], (1, 0))       # (Cin, D)
    w_expand = jnp.transpose(w_expand_oihw[:, :, 0, 0], (1, 0))       # (D, Cout)

    # grouped 3x3 conv: stacked block-diagonal weight (9*D, D), tap t = ky*3+kx
    w_grp_np = np.asarray(w_group_oihw)
    w_conv_stacked = np.zeros((9 * D, D), np.float32)
    for ky in range(3):
        for kx in range(3):
            t = ky * 3 + kx
            for oc in range(D):
                g = oc // gs
                for j in range(gs):
                    w_conv_stacked[t * D + g * gs + j, oc] = w_grp_np[oc, j, ky, kx]

    # ECA conv1d as banded (C, C) matrix
    taps = np.asarray(w_eca_taps)
    w_eca_band = np.zeros((C, C), np.float32)
    for c in range(C):
        for t in range(ks):
            i = c + t - pad
            if 0 <= i < C:
                w_eca_band[i, c] = taps[t]

    # spatial 7x7 conv as band matrix over the W axis: (2W, 7W)
    # rows: [max plane lanes | mean plane lanes]; column block ky holds the
    # x-direction conv for kernel row ky (W zero-padding baked into the band).
    wsp = np.asarray(w_spatial_oihw)[0]                                # (2, 7, 7)
    w_sp_band = np.zeros((2 * W, 7 * W), np.float32)
    for c in range(2):
        for wi in range(W):
            for ky in range(7):
                for wo in range(W):
                    kx = wi - wo + 3
                    if 0 <= kx < 7:
                        w_sp_band[c * W + wi, ky * W + wo] = wsp[c, ky, kx]

    kernel_params = dict(
        w_reduce=w_reduce,
        w_conv_stacked=jnp.asarray(w_conv_stacked),
        w_expand=w_expand,
        w_eca_band=jnp.asarray(w_eca_band),
        w_sp_band=jnp.asarray(w_sp_band),
        b_spatial=jnp.asarray(np.asarray(b_spatial, np.float32)),     # (1,) SMEM
    )
    torch_layout = dict(
        w_reduce_oihw=w_reduce_oihw, w_group_oihw=w_group_oihw,
        w_expand_oihw=w_expand_oihw, w_eca_taps=w_eca_taps,
        w_spatial_oihw=w_spatial_oihw, b_spatial=b_spatial,
        cardinality=cardinality, eca_k=ks,
    )
    return kernel_params, torch_layout


# ----------------------------------------------------------------------------
# Pure-JAX reference (mirrors the PyTorch forward, NCHW)
# ----------------------------------------------------------------------------
def resnext_bottleneck_reference(x, tp):
    dn = ("NCHW", "OIHW", "NCHW")
    G = tp["cardinality"]
    b1 = lax.conv_general_dilated(x, tp["w_reduce_oihw"], (1, 1), "VALID",
                                  dimension_numbers=dn, precision=_HI)
    b2 = lax.conv_general_dilated(b1, tp["w_group_oihw"], (1, 1), [(1, 1), (1, 1)],
                                  dimension_numbers=dn, feature_group_count=G,
                                  precision=_HI)
    b2 = jnp.where(b2 >= 0, b2, 0.2 * b2)
    b3 = lax.conv_general_dilated(b2, tp["w_expand_oihw"], (1, 1), "VALID",
                                  dimension_numbers=dn, precision=_HI)
    # ECA channel gate
    C = b3.shape[1]
    ks = tp["eca_k"]
    pad = (ks - 1) // 2
    y = jnp.mean(b3, axis=(2, 3))                                     # (N, C)
    ypad = jnp.pad(y, ((0, 0), (pad, pad)))
    z = sum(tp["w_eca_taps"][t] * ypad[:, t:t + C] for t in range(ks))
    x1 = b3 * jax.nn.sigmoid(z)[:, :, None, None]
    # spatial gate
    comp = jnp.concatenate([jnp.max(x1, axis=1, keepdims=True),
                            jnp.mean(x1, axis=1, keepdims=True)], axis=1)
    s = lax.conv_general_dilated(comp, tp["w_spatial_oihw"], (1, 1), [(3, 3), (3, 3)],
                                 dimension_numbers=dn, precision=_HI)
    s = s + tp["b_spatial"][0]
    return x + x1 * jax.nn.sigmoid(s)


# ----------------------------------------------------------------------------
if __name__ == "__main__":
    # small config consistent with the module: in=out=64 channels, D=32,
    # cardinality=8 (divides D), stride=1, dilate=1, use_Adain=False.
    N, C, H, W = 2, 64, 16, 16
    cardinality = 8

    key = jax.random.PRNGKey(0)
    kx_, kp = jax.random.split(key)
    x = jax.random.normal(kx_, (N, C, H, W), jnp.float32)             # NCHW, like PyTorch

    params, torch_params = make_params(kp, C, C, cardinality, H, W)

    out = jax.block_until_ready(resnext_bottleneck_pallas(x, params))

    ref = jax.block_until_ready(resnext_bottleneck_reference(x, torch_params))
    assert out.shape == (N, C, H, W)
    np.testing.assert_allclose(np.asarray(out), np.asarray(ref), rtol=2e-3, atol=2e-3)

    print("KERNEL_OK")
</pallas_src>

<mosaic_0001>
module attributes {stable_mosaic.version = 11 : i64} {
  func.func @_bottleneck_kernel(%arg0: i32, %arg1: memref<1x16x16x64xf32, #tpu.memory_space<vmem>>, %arg2: memref<64x32xf32, #tpu.memory_space<vmem>>, %arg3: memref<288x32xf32, #tpu.memory_space<vmem>>, %arg4: memref<32x64xf32, #tpu.memory_space<vmem>>, %arg5: memref<64x64xf32, #tpu.memory_space<vmem>>, %arg6: memref<32x112xf32, #tpu.memory_space<vmem>>, %arg7: memref<1xf32, #tpu.memory_space<smem>>, %arg8: memref<1x16x16x64xf32, #tpu.memory_space<vmem>>, %arg9: memref<18x32x32xf32, #tpu.memory_space<vmem>>, %arg10: memref<256x288xf32, #tpu.memory_space<vmem>>, %arg11: memref<22x32xf32, #tpu.memory_space<vmem>>) attributes {dimension_semantics = [#tpu.dimension_semantics<parallel>], iteration_bounds = array<i64: 2>, scalar_prefetch = 0 : i64, scratch_operands = 3 : i64, tpu.core_type = #tpu.core_type<tc>, window_params = [{transform_indices = @transform_0, window_bounds = array<i64: 1, 16, 16, 64>}, {pipeline_mode = #tpu.pipeline_mode<synchronous>, transform_indices = @transform_1, window_bounds = array<i64: 64, 32>}, {pipeline_mode = #tpu.pipeline_mode<synchronous>, transform_indices = @transform_2, window_bounds = array<i64: 288, 32>}, {pipeline_mode = #tpu.pipeline_mode<synchronous>, transform_indices = @transform_3, window_bounds = array<i64: 32, 64>}, {pipeline_mode = #tpu.pipeline_mode<synchronous>, transform_indices = @transform_4, window_bounds = array<i64: 64, 64>}, {pipeline_mode = #tpu.pipeline_mode<synchronous>, transform_indices = @transform_5, window_bounds = array<i64: 32, 112>}, {transform_indices = @transform_6, window_bounds = array<i64: 1>}, {transform_indices = @transform_7, window_bounds = array<i64: 1, 16, 16, 64>}]} {
    %c0 = arith.constant 0 : index
    %c0_0 = arith.constant 0 : index
    %c0_1 = arith.constant 0 : index
    %c0_2 = arith.constant 0 : index
    %0 = vector.load %arg1[%c0, %c0_0, %c0_1, %c0_2] : memref<1x16x16x64xf32, #tpu.memory_space<vmem>>, vector<1x16x16x64xf32>
    %1 = vector.shape_cast %0 : vector<1x16x16x64xf32> to vector<16x16x64xf32>
    %2 = vector.shape_cast %1 : vector<16x16x64xf32> to vector<256x64xf32>
    %c0_3 = arith.constant 0 : index
    %c0_4 = arith.constant 0 : index
    %3 = vector.load %arg2[%c0_3, %c0_4] : memref<64x32xf32, #tpu.memory_space<vmem>>, vector<64x32xf32>
    %cst = arith.constant dense<0.000000e+00> : vector<256x32xf32>
    %4 = tpu.matmul %2, %3, %cst {dimension_numbers = #tpu.dot_dimension_numbers<[1], [0], [0], [1], [0, 0, 1, 1], [], []>, precision = #tpu.contract_precision<fp32>} : vector<256x64xf32>, vector<64x32xf32>, vector<256x32xf32> -> vector<256x32xf32>
    %cst_5 = arith.constant 0.000000e+00 : f32
    %5 = vector.broadcast %cst_5 : f32 to vector<1x18x32xf32>
    %c0_6 = arith.constant 0 : index
    %c7 = arith.constant 7 : index
    %c0_7 = arith.constant 0 : index
    %6 = vector.load %arg9[%c0_6, %c7, %c0_7] : memref<18x32x32xf32, #tpu.memory_space<vmem>>, vector<1x18x32xf32>
    tpu.vector_store %arg9[%c0_6, %c7, %c0_7], %5 {strides = array<i32>} : memref<18x32x32xf32, #tpu.memory_space<vmem>>, vector<1x18x32xf32>,
    %cst_8 = arith.constant 0.000000e+00 : f32
    %7 = vector.broadcast %cst_8 : f32 to vector<1x18x32xf32>
    %c17 = arith.constant 17 : index
    %c7_9 = arith.constant 7 : index
    %c0_10 = arith.constant 0 : index
    %8 = vector.load %arg9[%c17, %c7_9, %c0_10] : memref<18x32x32xf32, #tpu.memory_space<vmem>>, vector<1x18x32xf32>
    tpu.vector_store %arg9[%c17, %c7_9, %c0_10], %7 {strides = array<i32>} : memref<18x32x32xf32, #tpu.memory_space<vmem>>, vector<1x18x32xf32>,
    %cst_11 = arith.constant 0.000000e+00 : f32
    %9 = vector.broadcast %cst_11 : f32 to vector<16x1x32xf32>
    %c1 = arith.constant 1 : index
    %c7_12 = arith.constant 7 : index
    %c0_13 = arith.constant 0 : index
    %10 = vector.load %arg9[%c1, %c7_12, %c0_13] : memref<18x32x32xf32, #tpu.memory_space<vmem>>, vector<16x1x32xf32>
    tpu.vector_store %arg9[%c1, %c7_12, %c0_13], %9 {strides = array<i32>} : memref<18x32x32xf32, #tpu.memory_space<vmem>>, vector<16x1x32xf32>,
    %cst_14 = arith.constant 0.000000e+00 : f32
    %11 = vector.broadcast %cst_14 : f32 to vector<16x1x32xf32>
    %c1_15 = arith.constant 1 : index
    %c24 = arith.constant 24 : index
    %c0_16 = arith.constant 0 : index
    %12 = vector.load %arg9[%c1_15, %c24, %c0_16] : memref<18x32x32xf32, #tpu.memory_space<vmem>>, vector<16x1x32xf32>
    tpu.vector_store %arg9[%c1_15, %c24, %c0_16], %11 {strides = array<i32>} : memref<18x32x32xf32, #tpu.memory_space<vmem>>, vector<16x1x32xf32>,
    %13 = vector.shape_cast %4 : vector<256x32xf32> to vector<16x16x32xf32>
    %c1_17 = arith.constant 1 : index
    %c8 = arith.constant 8 : index
    %c0_18 = arith.constant 0 : index
    %14 = vector.load %arg9[%c1_17, %c8, %c0_18] : memref<18x32x32xf32, #tpu.memory_space<vmem>>, vector<16x16x32xf32>
    tpu.vector_store %arg9[%c1_17, %c8, %c0_18], %13 {strides = array<i32>} : memref<18x32x32xf32, #tpu.memory_space<vmem>>, vector<16x16x32xf32>,
    %c0_19 = arith.constant 0 : index
    %c7_20 = arith.constant 7 : index
    %c0_21 = arith.constant 0 : index
    %15 = vector.load %arg9[%c0_19, %c7_20, %c0_21] : memref<18x32x32xf32, #tpu.memory_space<vmem>>, vector<16x16x32xf32>
    %16 = vector.shape_cast %15 : vector<16x16x32xf32> to vector<256x32xf32>
    %c0_22 = arith.constant 0 : index
    %c0_23 = arith.constant 0 : index
    %17 = vector.load %arg10[%c0_22, %c0_23] : memref<256x288xf32, #tpu.memory_space<vmem>>, vector<256x32xf32>
    tpu.vector_store %arg10[%c0_22, %c0_23], %16 {strides = array<i32>} : memref<256x288xf32, #tpu.memory_space<vmem>>, vector<256x32xf32>,
    %c0_24 = arith.constant 0 : index
    %c8_25 = arith.constant 8 : index
    %c0_26 = arith.constant 0 : index
    %18 = vector.load %arg9[%c0_24, %c8_25, %c0_26] : memref<18x32x32xf32, #tpu.memory_space<vmem>>, vector<16x16x32xf32>
    %19 = vector.shape_cast %18 : vector<16x16x32xf32> to vector<256x32xf32>
    %c0_27 = arith.constant 0 : index
    %c32 = arith.constant 32 : index
    %20 = vector.load %arg10[%c0_27, %c32] : memref<256x288xf32, #tpu.memory_space<vmem>>, vector<256x32xf32>
    tpu.vector_store %arg10[%c0_27, %c32], %19 {strides = array<i32>} : memref<256x288xf32, #tpu.memory_space<vmem>>, vector<256x32xf32>,
    %c0_28 = arith.constant 0 : index
    %c9 = arith.constant 9 : index
    %c0_29 = arith.constant 0 : index
    %21 = vector.load %arg9[%c0_28, %c9, %c0_29] : memref<18x32x32xf32, #tpu.memory_space<vmem>>, vector<16x16x32xf32>
    %22 = vector.shape_cast %21 : vector<16x16x32xf32> to vector<256x32xf32>
    %c0_30 = arith.constant 0 : index
    %c64 = arith.constant 64 : index
    %23 = vector.load %arg10[%c0_30, %c64] : memref<256x288xf32, #tpu.memory_space<vmem>>, vector<256x32xf32>
    tpu.vector_store %arg10[%c0_30, %c64], %22 {strides = array<i32>} : memref<256x288xf32, #tpu.memory_space<vmem>>, vector<256x32xf32>,
    %c1_31 = arith.constant 1 : index
    %c7_32 = arith.constant 7 : index
    %c0_33 = arith.constant 0 : index
    %24 = vector.load %arg9[%c1_31, %c7_32, %c0_33] : memref<18x32x32xf32, #tpu.memory_space<vmem>>, vector<16x16x32xf32>
    %25 = vector.shape_cast %24 : vector<16x16x32xf32> to vector<256x32xf32>
    %c0_34 = arith.constant 0 : index
    %c96 = arith.constant 96 : index
    %26 = vector.load %arg10[%c0_34, %c96] : memref<256x288xf32, #tpu.memory_space<vmem>>, vector<256x32xf32>
    tpu.vector_store %arg10[%c0_34, %c96], %25 {strides = array<i32>} : memref<256x288xf32, #tpu.memory_space<vmem>>, vector<256x32xf32>,
    %c1_35 = arith.constant 1 : index
    %c8_36 = arith.constant 8 : index
    %c0_37 = arith.constant 0 : index
    %27 = vector.load %arg9[%c1_35, %c8_36, %c0_37] : memref<18x32x32xf32, #tpu.memory_space<vmem>>, vector<16x16x32xf32>
    %28 = vector.shape_cast %27 : vector<16x16x32xf32> to vector<256x32xf32>
    %c0_38 = arith.constant 0 : index
    %c128 = arith.constant 128 : index
    %29 = vector.load %arg10[%c0_38, %c128] : memref<256x288xf32, #tpu.memory_space<vmem>>, vector<256x32xf32>
    tpu.vector_store %arg10[%c0_38, %c128], %28 {strides = array<i32>} : memref<256x288xf32, #tpu.memory_space<vmem>>, vector<256x32xf32>,
    %c1_39 = arith.constant 1 : index
    %c9_40 = arith.constant 9 : index
    %c0_41 = arith.constant 0 : index
    %30 = vector.load %arg9[%c1_39, %c9_40, %c0_41] : memref<18x32x32xf32, #tpu.memory_space<vmem>>, vector<16x16x32xf32>
    %31 = vector.shape_cast %30 : vector<16x16x32xf32> to vector<256x32xf32>
    %c0_42 = arith.constant 0 : index
    %c160 = arith.constant 160 : index
    %32 = vector.load %arg10[%c0_42, %c160] : memref<256x288xf32, #tpu.memory_space<vmem>>, vector<256x32xf32>
    tpu.vector_store %arg10[%c0_42, %c160], %31 {strides = array<i32>} : memref<256x288xf32, #tpu.memory_space<vmem>>, vector<256x32xf32>,
    %c2 = arith.constant 2 : index
    %c7_43 = arith.constant 7 : index
    %c0_44 = arith.constant 0 : index
    %33 = vector.load %arg9[%c2, %c7_43, %c0_44] : memref<18x32x32xf32, #tpu.memory_space<vmem>>, vector<16x16x32xf32>
    %34 = vector.shape_cast %33 : vector<16x16x32xf32> to vector<256x32xf32>
    %c0_45 = arith.constant 0 : index
    %c192 = arith.constant 192 : index
    %35 = vector.load %arg10[%c0_45, %c192] : memref<256x288xf32, #tpu.memory_space<vmem>>, vector<256x32xf32>
    tpu.vector_store %arg10[%c0_45, %c192], %34 {strides = array<i32>} : memref<256x288xf32, #tpu.memory_space<vmem>>, vector<256x32xf32>,
    %c2_46 = arith.constant 2 : index
    %c8_47 = arith.constant 8 : index
    %c0_48 = arith.constant 0 : index
    %36 = vector.load %arg9[%c2_46, %c8_47, %c0_48] : memref<18x32x32xf32, #tpu.memory_space<vmem>>, vector<16x16x32xf32>
    %37 = vector.shape_cast %36 : vector<16x16x32xf32> to vector<256x32xf32>
    %c0_49 = arith.constant 0 : index
    %c224 = arith.constant 224 : index
    %38 = vector.load %arg10[%c0_49, %c224] : memref<256x288xf32, #tpu.memory_space<vmem>>, vector<256x32xf32>
    tpu.vector_store %arg10[%c0_49, %c224], %37 {strides = array<i32>} : memref<256x288xf32, #tpu.memory_space<vmem>>, vector<256x32xf32>,
    %c2_50 = arith.constant 2 : index
    %c9_51 = arith.constant 9 : index
    %c0_52 = arith.constant 0 : index
    %39 = vector.load %arg9[%c2_50, %c9_51, %c0_52] : memref<18x32x32xf32, #tpu.memory_space<vmem>>, vector<16x16x32xf32>
    %40 = vector.shape_cast %39 : vector<16x16x32xf32> to vector<256x32xf32>
    %c0_53 = arith.constant 0 : index
    %c256 = arith.constant 256 : index
    %41 = vector.load %arg10[%c0_53, %c256] : memref<256x288xf32, #tpu.memory_space<vmem>>, vector<256x32xf32>
    tpu.vector_store %arg10[%c0_53, %c256], %40 {strides = array<i32>} : memref<256x288xf32, #tpu.memory_space<vmem>>, vector<256x32xf32>,
    %c0_54 = arith.constant 0 : index
    %c0_55 = arith.constant 0 : index
    %42 = vector.load %arg10[%c0_54, %c0_55] : memref<256x288xf32, #tpu.memory_space<vmem>>, vector<256x288xf32>
    %c0_56 = arith.constant 0 : index
    %c0_57 = arith.constant 0 : index
    %43 = vector.load %arg3[%c0_56, %c0_57] : memref<288x32xf32, #tpu.memory_space<vmem>>, vector<288x32xf32>
    %cst_58 = arith.constant dense<0.000000e+00> : vector<256x32xf32>
    %44 = tpu.matmul %42, %43, %cst_58 {dimension_numbers = #tpu.dot_dimension_numbers<[1], [0], [0], [1], [0, 0, 1, 1], [], []>, precision = #tpu.contract_precision<fp32>} : vector<256x288xf32>, vector<288x32xf32>, vector<256x32xf32> -> vector<256x32xf32>
    %cst_59 = arith.constant 0.000000e+00 : f32
    %45 = vector.broadcast %cst_59 : f32 to vector<256x32xf32>
    %46 = arith.cmpf oge, %44, %45 : vector<256x32xf32>
    %cst_60 = arith.constant 2.000000e-01 : f32
    %47 = vector.broadcast %cst_60 : f32 to vector<256x32xf32>
    %48 = arith.mulf %47, %44 : vector<256x32xf32>
    %49 = arith.select %46, %44, %48 : vector<256x32xi1>, vector<256x32xf32>
    %c0_61 = arith.constant 0 : index
    %c0_62 = arith.constant 0 : index
    %50 = vector.load %arg4[%c0_61, %c0_62] : memref<32x64xf32, #tpu.memory_space<vmem>>, vector<32x64xf32>
    %cst_63 = arith.constant dense<0.000000e+00> : vector<256x64xf32>
    %51 = tpu.matmul %49, %50, %cst_63 {dimension_numbers = #tpu.dot_dimension_numbers<[1], [0], [0], [1], [0, 0, 1, 1], [], []>, precision = #tpu.contract_precision<fp32>} : vector<256x32xf32>, vector<32x64xf32>, vector<256x64xf32> -> vector<256x64xf32>
    %cst_64 = arith.constant dense<0.000000e+00> : vector<64xf32>
    %52 = vector.multi_reduction <add>, %51, %cst_64 [0] : vector<256x64xf32> to vector<64xf32>
    %53 = vector.shape_cast %52 : vector<64xf32> to vector<1x64xf32>
    %cst_65 = arith.constant 2.560000e+02 : f32
    %54 = vector.broadcast %cst_65 : f32 to vector<1x64xf32>
    %55 = arith.divf %53, %54 : vector<1x64xf32>
    %c0_66 = arith.constant 0 : index
    %c0_67 = arith.constant 0 : index
    %56 = vector.load %arg5[%c0_66, %c0_67] : memref<64x64xf32, #tpu.memory_space<vmem>>, vector<64x64xf32>
    %cst_68 = arith.constant dense<0.000000e+00> : vector<1x64xf32>
    %57 = tpu.matmul %55, %56, %cst_68 {dimension_numbers = #tpu.dot_dimension_numbers<[1], [0], [0], [1], [0, 0, 1, 1], [], []>, precision = #tpu.contract_precision<fp32>} : vector<1x64xf32>, vector<64x64xf32>, vector<1x64xf32> -> vector<1x64xf32>
    %58 = arith.negf %57 : vector<1x64xf32>
    %59 = math.exp %58 : vector<1x64xf32>
    %cst_69 = arith.constant 1.000000e+00 : f32
    %60 = vector.broadcast %cst_69 : f32 to vector<1x64xf32>
    %61 = arith.addf %60, %59 : vector<1x64xf32>
    %62 = arith.divf %60, %61 : vector<1x64xf32>
    %63 = vector.broadcast %62 : vector<1x64xf32> to vector<256x64xf32>
    %64 = arith.mulf %51, %63 : vector<256x64xf32>
    %65 = vector.shape_cast %64 : vector<256x64xf32> to vector<16x16x64xf32>
    %cst_70 = arith.constant dense<0xFF800000> : vector<16x16xf32>
    %66 = vector.multi_reduction <maximumf>, %65, %cst_70 [2] : vector<16x16x64xf32> to vector<16x16xf32>
    %cst_71 = arith.constant dense<0.000000e+00> : vector<16x16xf32>
    %67 = vector.multi_reduction <add>, %65, %cst_71 [2] : vector<16x16x64xf32> to vector<16x16xf32>
    %cst_72 = arith.constant 6.400000e+01 : f32
    %68 = vector.broadcast %cst_72 : f32 to vector<16x16xf32>
    %69 = arith.divf %67, %68 : vector<16x16xf32>
    %cst_73 = arith.constant 0.000000e+00 : f32
    %70 = vector.broadcast %cst_73 : f32 to vector<3x32xf32>
    %c0_74 = arith.constant 0 : index
    %c0_75 = arith.constant 0 : index
    %71 = vector.load %arg11[%c0_74, %c0_75] : memref<22x32xf32, #tpu.memory_space<vmem>>, vector<3x32xf32>
    tpu.vector_store %arg11[%c0_74, %c0_75], %70 {strides = array<i32>} : memref<22x32xf32, #tpu.memory_space<vmem>>, vector<3x32xf32>,
    %cst_76 = arith.constant 0.000000e+00 : f32
    %72 = vector.broadcast %cst_76 : f32 to vector<3x32xf32>
    %c19 = arith.constant 19 : index
    %c0_77 = arith.constant 0 : index
    %73 = vector.load %arg11[%c19, %c0_77] : memref<22x32xf32, #tpu.memory_space<vmem>>, vector<3x32xf32>
    tpu.vector_store %arg11[%c19, %c0_77], %72 {strides = array<i32>} : memref<22x32xf32, #tpu.memory_space<vmem>>, vector<3x32xf32>,
    %c3 = arith.constant 3 : index
    %c0_78 = arith.constant 0 : index
    %74 = vector.load %arg11[%c3, %c0_78] : memref<22x32xf32, #tpu.memory_space<vmem>>, vector<16x16xf32>
    tpu.vector_store %arg11[%c3, %c0_78], %66 {strides = array<i32>} : memref<22x32xf32, #tpu.memory_space<vmem>>, vector<16x16xf32>,
    %c3_79 = arith.constant 3 : index
    %c16 = arith.constant 16 : index
    %75 = vector.load %arg11[%c3_79, %c16] : memref<22x32xf32, #tpu.memory_space<vmem>>, vector<16x16xf32>
    tpu.vector_store %arg11[%c3_79, %c16], %69 {strides = array<i32>} : memref<22x32xf32, #tpu.memory_space<vmem>>, vector<16x16xf32>,
    %c0_80 = arith.constant 0 : index
    %c0_81 = arith.constant 0 : index
    %76 = vector.load %arg11[%c0_80, %c0_81] : memref<22x32xf32, #tpu.memory_space<vmem>>, vector<22x32xf32>
    %c0_82 = arith.constant 0 : index
    %c0_83 = arith.constant 0 : index
    %77 = vector.load %arg6[%c0_82, %c0_83] : memref<32x112xf32, #tpu.memory_space<vmem>>, vector<32x112xf32>
    %cst_84 = arith.constant dense<0.000000e+00> : vector<22x112xf32>
    %78 = tpu.matmul %76, %77, %cst_84 {dimension_numbers = #tpu.dot_dimension_numbers<[1], [0], [0], [1], [0, 0, 1, 1], [], []>, precision = #tpu.contract_precision<fp32>} : vector<22x32xf32>, vector<32x112xf32>, vector<22x112xf32> -> vector<22x112xf32>
    %c0_85 = arith.constant 0 : index
    %79 = memref.load %arg7[%c0_85] : memref<1xf32, #tpu.memory_space<smem>>
    %80 = vector.broadcast %79 : f32 to vector<16x16xf32>
    %81 = vector.extract_strided_slice %78 {offsets = [0, 0], sizes = [16, 16], strides = [1, 1]} : vector<22x112xf32> to vector<16x16xf32>
    %82 = arith.addf %80, %81 : vector<16x16xf32>
    %83 = vector.extract_strided_slice %78 {offsets = [1, 16], sizes = [16, 16], strides = [1, 1]} : vector<22x112xf32> to vector<16x16xf32>
    %84 = arith.addf %82, %83 : vector<16x16xf32>
    %85 = vector.extract_strided_slice %78 {offsets = [2, 32], sizes = [16, 16], strides = [1, 1]} : vector<22x112xf32> to vector<16x16xf32>
    %86 = arith.addf %84, %85 : vector<16x16xf32>
    %87 = vector.extract_strided_slice %78 {offsets = [3, 48], sizes = [16, 16], strides = [1, 1]} : vector<22x112xf32> to vector<16x16xf32>
    %88 = arith.addf %86, %87 : vector<16x16xf32>
    %89 = vector.extract_strided_slice %78 {offsets = [4, 64], sizes = [16, 16], strides = [1, 1]} : vector<22x112xf32> to vector<16x16xf32>
    %90 = arith.addf %88, %89 : vector<16x16xf32>
    %91 = vector.extract_strided_slice %78 {offsets = [5, 80], sizes = [16, 16], strides = [1, 1]} : vector<22x112xf32> to vector<16x16xf32>
    %92 = arith.addf %90, %91 : vector<16x16xf32>
    %93 = vector.extract_strided_slice %78 {offsets = [6, 96], sizes = [16, 16], strides = [1, 1]} : vector<22x112xf32> to vector<16x16xf32>
    %94 = arith.addf %92, %93 : vector<16x16xf32>
    %95 = arith.negf %94 : vector<16x16xf32>
    %96 = math.exp %95 : vector<16x16xf32>
    %cst_86 = arith.constant 1.000000e+00 : f32
    %97 = vector.broadcast %cst_86 : f32 to vector<16x16xf32>
    %98 = arith.addf %97, %96 : vector<16x16xf32>
    %99 = arith.divf %97, %98 : vector<16x16xf32>
    %100 = vector.shape_cast %99 : vector<16x16xf32> to vector<16x16x1xf32>
    %101 = vector.broadcast %100 : vector<16x16x1xf32> to vector<16x16x64xf32>
    %102 = arith.mulf %65, %101 : vector<16x16x64xf32>
    %103 = arith.addf %1, %102 : vector<16x16x64xf32>
    %c0_87 = arith.constant 0 : index
    %c0_88 = arith.constant 0 : index
    %c0_89 = arith.constant 0 : index
    %c0_90 = arith.constant 0 : index
    %104 = vector.load %arg8[%c0_87, %c0_88, %c0_89, %c0_90] : memref<1x16x16x64xf32, #tpu.memory_space<vmem>>, vector<1x16x16x64xf32>
    %105 = vector.shape_cast %104 : vector<1x16x16x64xf32> to vector<16x16x64xf32>
    %106 = vector.shape_cast %103 : vector<16x16x64xf32> to vector<1x16x16x64xf32>
    tpu.vector_store %arg8[%c0_87, %c0_88, %c0_89, %c0_90], %106 {strides = array<i32>} : memref<1x16x16x64xf32, #tpu.memory_space<vmem>>, vector<1x16x16x64xf32>,
    return
  }
  func.func @transform_0(%arg0: i32) -> (i32, i32, i32, i32) {
    %c0_i32 = arith.constant 0 : i32
    %c0_i32_0 = arith.constant 0 : i32
    %c0_i32_1 = arith.constant 0 : i32
    %c0_i32_2 = arith.constant 0 : i32
    return %arg0, %c0_i32, %c0_i32_0, %c0_i32_1 : i32, i32, i32, i32
  }
  func.func @transform_1(%arg0: i32) -> (i32, i32) {
    %c0_i32 = arith.constant 0 : i32
    %c0_i32_0 = arith.constant 0 : i32
    %c0_i32_1 = arith.constant 0 : i32
    return %c0_i32, %c0_i32_0 : i32, i32
  }
  func.func @transform_2(%arg0: i32) -> (i32, i32) {
    %c0_i32 = arith.constant 0 : i32
    %c0_i32_0 = arith.constant 0 : i32
    %c0_i32_1 = arith.constant 0 : i32
    return %c0_i32, %c0_i32_0 : i32, i32
  }
  func.func @transform_3(%arg0: i32) -> (i32, i32) {
    %c0_i32 = arith.constant 0 : i32
    %c0_i32_0 = arith.constant 0 : i32
    %c0_i32_1 = arith.constant 0 : i32
    return %c0_i32, %c0_i32_0 : i32, i32
  }
  func.func @transform_4(%arg0: i32) -> (i32, i32) {
    %c0_i32 = arith.constant 0 : i32
    %c0_i32_0 = arith.constant 0 : i32
    %c0_i32_1 = arith.constant 0 : i32
    return %c0_i32, %c0_i32_0 : i32, i32
  }
  func.func @transform_5(%arg0: i32) -> (i32, i32) {
    %c0_i32 = arith.constant 0 : i32
    %c0_i32_0 = arith.constant 0 : i32
    %c0_i32_1 = arith.constant 0 : i32
    return %c0_i32, %c0_i32_0 : i32, i32
  }
  func.func @transform_6(%arg0: i32) -> i32 {
    %c0_i32 = arith.constant 0 : i32
    %c0_i32_0 = arith.constant 0 : i32
    return %c0_i32 : i32
  }
  func.func @transform_7(%arg0: i32) -> (i32, i32, i32, i32) {
    %c0_i32 = arith.constant 0 : i32
    %c0_i32_0 = arith.constant 0 : i32
    %c0_i32_1 = arith.constant 0 : i32
    %c0_i32_2 = arith.constant 0 : i32
    return %arg0, %c0_i32, %c0_i32_0, %c0_i32_1 : i32, i32, i32, i32
  }
}

</mosaic_0001>

<bundles_post_ra>
// kernel: tpu_custom_call.1
= control target key start
LH: loop header
LB: loop body
LE: loop exit
PB: predicated region body
PF: predicated region fallthrough
CT: control target
= control target key end

     0   :  { %s22895_s0 = inlined_call_operand.hbm [shape: f32[2,16,16,64], index: 0, kind: input, shape index: {}]   ;;  %s22896_s1 = inlined_call_operand.vmem [shape: f32[64,32], index: 1, kind: input, shape index: {}]   ;;  %s22897_s2 = inlined_call_operand.vmem [shape: f32[288,32], index: 2, kind: input, shape index: {}]   ;;  %s22898_s3 = inlined_call_operand.vmem [shape: f32[32,64], index: 3, kind: input, shape index: {}]   ;;  %s22899_s4 = inlined_call_operand.vmem [shape: f32[64,64], index: 4, kind: input, shape index: {}]   ;;  %s22900_s5 = inlined_call_operand.vmem [shape: f32[32,112], index: 5, kind: input, shape index: {}]   ;;  %s22901_s6 = inlined_call_operand.<no memory space> [shape: f32[1], index: 6, kind: input, shape index: {}]   ;;  %s22902_s7 = inlined_call_operand.hbm [shape: f32[2,16,16,64], index: 7, kind: output, shape index: {}]  }
   0x1   :  { %12 = sst [smem:[#allocation5]] %s22901_s6 }
   0x2   :  { %13 = vsyncpa [#allocation7], 0 }
   0x3   :  { %15 = vsyncpa [#allocation7 + $0x1], 0 }
   0x4   :  { %16 = vsyncpa [#allocation8], 0 }
   0x5   :  { %18 = vsyncpa [#allocation8 + $0x1], 0  ;;  %s16318_s26 = smov 0   ;;  %s16320_s27 = smov 0  }
   0x6   :  { %s16322_s28 = smov 0   ;;  %s16324_s29 = smov 0  }
   0x7 LB: > { %s16339_s6 = sadd.s32 4294967295, %s16258_s29   ;;  %s12728_s30 = sadd.s32 4294967294, %s16258_s29   ;;  %s16258_s29 = sphi %s16324_s29, %s25023_s29   ;;  %s16254_s28 = sphi %s16322_s28, %s25022_s28   ;;  %s16250_s27 = sphi %s16320_s27, %s25021_s27   ;;  %s16246_s26 = sphi %s16318_s26, %s25020_s26  }
   0x8   : > { %s16343_s8 = sadd.s32 1, %s16258_s29   ;;  %s31_s9 = sadd.s32 1, %s16254_s28 }
   0x9   : > { %s28_s10 = ssub.s32 %s16258_s29, %s16343_s8  ;;  %p38_p0 = scmp.ne.s32.totalorder %s16254_s28, %s16250_s27 }
   0xa   : > { %p29_p1 = scmp.eq.s32.totalorder %s28_s10, 0  ;;  %p39_p2 = scmp.eq.s32.totalorder %s16258_s29, 0 }
   0xb   : > { %p44_p3 = scmp.ne.s32.totalorder %s16250_s27, %s16246_s26  ;;  %p45_p4 = scmp.eq.s32.totalorder %s16339_s6, 0 }
   0xc   : > { %s16355_s11 = scalar_select %p29_p1, %s16254_s28, %s31_s9  }
   0xd   : > { %p16357_p5 = por %p39_p2, %p38_p0  ;;  %p16361_p6 = por %p45_p4, %p44_p3 }
   0xe   : > { %p194_p7 = scmp.eq.s32.totalorder %s16339_s6, 1  ;;  %p200_p8 = scmp.eq.s32.totalorder %s12728_s30, 1 }
   0xf   : > { %p16071_p10 = scmp.lt.s32.totalorder %s16258_s29, 2  ;;  %s238_s16 = sand.u32 1, %s16254_s28  }
  0x10   : > { %p16368_p11 = por %p194_p7, %p38_p0  ;;  %p16372_p12 = por %p200_p8, %p44_p3 }
  0x11   : > { %s12745_s17 = sshll.u32 %s16258_s29, 12  ;;  %s12731_s18 = sshll.u32 %s238_s16, 8 }
  0x12   : > { %s23665_s14 = scalar_select %p16368_p11, 1, 0 }
  0x13   : > { %s23666_s15 = scalar_select %p16372_p12, 1, 0 }
  0x14   : > { %s16381_s21 = scalar_lea.hbm %s22895_s0, %s12745_s17  ;;  %s242_s22 = scalar_lea.vmem [#allocation6], %s12731_s18 }
  0x15   : > { %s249_s23 = sshll.u32 %s242_s22, 4  ;;  %p16385_p13 = pnand %p16071_p10, %p16357_p5  ;;  %s16389_s23 = int_to_ptr.vmem [resolvable:$true] %s249_s23 }
  0x16   : > { %s16391_s25 = scalar_lea.sflag [#allocation7], %s238_s16  ;;  %s16162_s30 = scalar_lea.hbm %s16381_s21, 4096 }
  0x17   : > { %p16163_p0 = scmp.ne.s32.totalorder %s16381_s21, %s16162_s30  ;;  %p16164_p1 = pneg %p16385_p13 }
  0x18   : > { %s16167_s12 = scalar_lea.hbm %s22895_s0, 8192  ;;  %p16168_p4 = scmp.lt.u32.totalorder %s16381_s21, %s22895_s0 }
  0x19   : > { %p16165_p2 = pnand %p16164_p1, %p16163_p0  ;;  %p16169_p5 = scmp.lt.u32.totalorder %s16167_s12, %s16162_s30 }
  0x1a   : > { %p16171_p8 = scmp.lt.u32.totalorder %s16162_s30, %s16381_s21 }
  0x1b   : > { %p16166_p3 = pneg %p16165_p2  ;;  %p16170_p7 = por %p16169_p5, %p16168_p4 }
  0x1d   : > { %p16172_p10 = por %p16171_p8, %p16170_p7 }
  0x1f   : > { %p16173_p9 = pnand %p16172_p10, %p16166_p3 }
  0x21   : > { %16176 = shalt.err (!%p16173_p9)
}
  0x22   : > { %s16177_s16 = scalar_lea.vmem %s16389_s23, 4096  ;;  %s16260_s19 = smov [#allocation6]  }
  0x23   : > { %p16178_p0 = scmp.ne.s32.totalorder %s16389_s23, %s16177_s16  ;;  %s16182_s20 = sshll.u32 %s16260_s19, 4  ;;  %s16183_s20 = int_to_ptr.vmem [resolvable:$false] %s16182_s20 }
  0x24   : > { %s16184_s22 = scalar_lea.vmem %s16183_s20, 8192  ;;  %p16185_p11 = scmp.lt.s32.totalorder %s16389_s23, %s16183_s20 }
  0x25   : > { %p16180_p2 = pnand %p16178_p0, %p16164_p1  ;;  %p16186_p4 = scmp.lt.s32.totalorder %s16184_s22, %s16177_s16 }
  0x27   : > { %p16181_p12 = pneg %p16180_p2  ;;  %p16187_p5 = por %p16186_p4, %p16185_p11 }
  0x29   : > { %p16188_p7 = pnand %p16187_p5, %p16181_p12 }
  0x2b   : > { %16191 = shalt.err (!%p16188_p7)
}
  0x2c   : > { %s16261_s30 = smov 128   ;;  %s16262_s9 = smov 8  }
  0x2d   : > { %16066 = dma.hbm_to_vmem [thread:$0]  (!%p16385_p13), %s16381_s21, 4096, %s16389_s23, %s16391_s25, %s16261_s30, %s16261_s30, %s16262_s9  }
  0x2e   : > { %p12734_p9 = scmp.ge.s32.totalorder %s16258_s29, 1  ;;  %p257_p1 = scmp.lt.s32.totalorder %s16258_s29, 3 }
  0x30   : > { %p258_p3 = pnand %p12734_p9, %p257_p1 }
  0x32   : > { %261 = sbr.rel (%p258_p3) target bundleno = 3855 (0xf0f), region = 48 }
  0x39   : > { %s16422_s10 = sand.u32 1, %s16250_s27  }
  0x3a   : > { %s12735_s12 = sshll.u32 %s16422_s10, 8  ;;  %s264_s17 = scalar_lea.sflag [#allocation7], %s16422_s10 }
  0x3b   : > { %s16428_s18 = scalar_lea.vmem [#allocation6], %s12735_s12 }
  0x3c   : > { %16237 = dma.done.wait (%p16361_p6), %s264_s17, 4096  }
  0x3d   : > { %16239 = vsyncadd (%p16361_p6), %s264_s17, 4294963200  ;;  %v330_v0 = vld [vmem:[%s22896_s1] sm:$0xff]  ;;  %v331_v1 = vld [vmem:[%s22896_s1 + $0x8] sm:$0xff]  ;;  %vm338_vm0 = vcmask 523264   ;;  %vm2305_vm1 = vcmask 261120   ;;  %s16264_s16 = smov 64  }
  0x3e   : > { %v332_v2 = vld [vmem:[%s22896_s1 + $0x10] sm:$0xff]  ;;  %v436_v3 = vand.u32 4294901760, %v330_v0  ;;  %v439_v4 = vand.u32 4294901760, %v331_v1  ;;  %v333_v5 = vld [vmem:[%s22896_s1 + $0x18] sm:$0xff]  ;;  %v334_v7 = vld [vmem:[%s22896_s1 + $0x20] sm:$0xff]  ;;  %s16265_s19 = smov 32  }
  0x3f   : > { %v442_v6 = vand.u32 4294901760, %v332_v2  ;;  %v335_v8 = vld [vmem:[%s22896_s1 + $0x28] sm:$0xff]  ;;  %v445_v9 = vand.u32 4294901760, %v333_v5  ;;  %v448_v10 = vand.u32 4294901760, %v334_v7  ;;  %v336_v16 = vld [vmem:[%s22896_s1 + $0x30] sm:$0xff]  ;;  %v337_v17 = vld [vmem:[%s22896_s1 + $0x38] sm:$0xff] }
  0x40   : > { %v451_v11 = vand.u32 4294901760, %v335_v8  ;;  %v16452_v12 = vpack.c.bf16 %v439_v4, %v436_v3  ;;  %v16454_v13 = vsub.f32 %v330_v0, %v436_v3  ;;  %v16456_v14 = vsub.f32 %v331_v1, %v439_v4  ;;  %v298_v37 = vld [vmem:[%s16428_s18] sm:$0xff]  ;;  %v299_v59 = vld [vmem:[%s16428_s18 + $0x8] sm:$0xff]  ;;  %v300_v60 = vld [vmem:[%s16428_s18 + $0x10] sm:$0xff]  ;;  %s16266_s20 = smov 96   ;;  %s16269_s21 = smov 80  }
  0x41   : > { %v16458_v15 = vsub.f32 %v332_v2, %v442_v6  ;;  %v16466_v18 = vpack.c.bf16 %v445_v9, %v442_v6  ;;  %v16468_v19 = vsub.f32 %v333_v5, %v445_v9  ;;  %v16470_v20 = vsub.f32 %v334_v7, %v448_v10  ;;  %v301_v0 = vld [vmem:[%s16428_s18 + $0x18] sm:$0xff]  ;;  %v302_v1 = vld [vmem:[%s16428_s18 + $0x20] sm:$0xff]  ;;  %v303_v6 = vld [vmem:[%s16428_s18 + $0x28] sm:$0xff]  ;;  %s16270_s23 = smov 112   ;;  %s16271_s24 = smov 48  }
  0x42   : > { %v831_v21 = vand.u32 4294901760, %v16454_v13  ;;  %v838_v22 = vand.u32 4294901760, %v16456_v14  ;;  %v16475_v24 = vsub.f32 %v335_v8, %v451_v11  ;;  %14788 = vmatprep.subr.bf16.mxu1 %v16452_v12  ;;  %v454_v27 = vand.u32 4294901760, %v336_v16  ;;  %v304_v8 = vld [vmem:[%s16428_s18 + $0x30] sm:$0xff]  ;;  %s12266_s25 = sld [smem:[#allocation5]]  ;;  %p25017_p11 = scmp.ne.s32.totalorder %s23665_s14, 0 }
  0x43   : > { %v845_v23 = vand.u32 4294901760, %v16458_v15  ;;  %v852_v25 = vand.u32 4294901760, %v16468_v19  ;;  %v859_v26 = vand.u32 4294901760, %v16470_v20  ;;  %v457_v28 = vand.u32 4294901760, %v337_v17  ;;  %14790 = vmatpush3.bf16.msra.mxu1 %v16452_v12  ;;  %s16272_s9 = smov [#allocation9]  }
  0x44   : > { %v832_v29 = vsub.f32 %v16454_v13, %v831_v21  ;;  %v839_v30 = vsub.f32 %v16456_v14, %v838_v22  ;;  %v866_v32 = vand.u32 4294901760, %v16475_v24  ;;  %14792 = vmatprep.subr.bf16.mxu1 %v16466_v18  ;;  %v16495_v34 = vpack.c.bf16 %v451_v11, %v448_v10  ;;  %s16196_s17 = sshll.u32 %s16272_s9, 4  ;;  %s16197_s17 = int_to_ptr.vmem [resolvable:$false] %s16196_s17 }
  0x45   : > { %v846_v31 = vsub.f32 %v16458_v15, %v845_v23  ;;  %v853_v33 = vsub.f32 %v16468_v19, %v852_v25  ;;  %v860_v35 = vsub.f32 %v16470_v20, %v859_v26  ;;  %v16500_v36 = vsub.f32 %v336_v16, %v454_v27 }
  0x46   : > { %v833_v38 = vand.u32 4294901760, %v832_v29  ;;  %v840_v39 = vand.u32 4294901760, %v839_v30  ;;  %v867_v41 = vsub.f32 %v16475_v24, %v866_v32  ;;  %v16507_v44 = vsub.f32 %v337_v17, %v457_v28  ;;  %v305_v17 = vld [vmem:[%s16428_s18 + $0x38] sm:$0xff] }
  0x47   : > { %23668 = vst [vmem:[#allocation12_spill] sm:$0xff] %v16500_v36  ;;  %v847_v40 = vand.u32 4294901760, %v846_v31  ;;  %v854_v42 = vand.u32 4294901760, %v853_v33  ;;  %v22905_v43 = vand.u32 4294901760, %v16500_v36  ;;  %14794 = vmatpush3.bf16.msra.mxu1 %v16466_v18  ;;  %v861_v46 = vand.u32 4294901760, %v860_v35  ;;  %v307_v35 = vld [vmem:[%s16428_s18 + $0x48] sm:$0xff] }
  0x48   : > { %23669 = vst [vmem:[#allocation13_spill] sm:$0xff] %v16507_v44  ;;  %v14803_v45 = vpack.c.bf16 %v840_v39, %v833_v38  ;;  %v868_v47 = vand.u32 4294901760, %v867_v41  ;;  %v16511_v48 = vsel %vm338_vm0, %v298_v37, 0  ;;  %14796 = vmatprep.subr.bf16.mxu1 %v16495_v34  ;;  %v22904_v51 = vand.u32 4294901760, %v16507_v44  ;;  %v308_v38 = vld [vmem:[%s16428_s18 + $0x50] sm:$0xff] }
  0x49   : > { %v14807_v49 = vpack.c.bf16 %v854_v42, %v847_v40  ;;  %v874_v50 = vsub.f32 %v16500_v36, %v22905_v43  ;;  %v16519_v52 = vand.u32 4294901760, %v16511_v48  ;;  %v16521_v53 = vpack.c.bf16 %v457_v28, %v454_v27  ;;  %v306_v28 = vld [vmem:[%s16428_s18 + $0x40] sm:$0xff]  ;;  %v325_v43 = vld [vmem:[%s16428_s18 + $0xd8] sm:$0xff] }
  0x4a   : > { %14804 = vmatprep.subr.bf16.mxu0 %v14803_v45  ;;  %v881_v54 = vsub.f32 %v16507_v44, %v22904_v51  ;;  %v14811_v55 = vpack.c.bf16 %v868_v47, %v861_v46  ;;  %v16533_v61 = vsel %vm338_vm0, %v299_v59, 0  ;;  %v14819_v62 = vpack.c.bf16 %v16456_v14, %v16454_v13  ;;  %v310_v47 = vld [vmem:[%s16428_s18 + $0x60] sm:$0xff]  ;;  %v311_v14 = vld [vmem:[%s16428_s18 + $0x68] sm:$0xff]  ;;  %v313_v59 = vld [vmem:[%s16428_s18 + $0x78] sm:$0xff] }
  0x4b   : > { %14806 = vmatpush3.bf16.msra.mxu0 %v14803_v45  ;;  %13595 = vmatprep.mubr.f32.mxu0 %v16519_v52  ;;  %v875_v56 = vand.u32 4294901760, %v874_v50  ;;  %v16538_v63 = vsel %vm338_vm0, %v300_v60, 0  ;;  %v16543_v2 = vand.u32 4294901760, %v16533_v61  ;;  %v16549_v4 = vsel %vm338_vm0, %v301_v0, 0  ;;  %v309_v45 = vld [vmem:[%s16428_s18 + $0x58] sm:$0xff]  ;;  %v314_v60 = vld [vmem:[%s16428_s18 + $0x80] sm:$0xff] }
  0x4c   : > { %14808 = vmatprep.subr.bf16.mxu0 %v14807_v49  ;;  %14798 = vmatpush3.bf16.msra.mxu1 %v16495_v34  ;;  %v882_v57 = vand.u32 4294901760, %v881_v54  ;;  %v16546_v3 = vand.u32 4294901760, %v16538_v63  ;;  %v16552_v5 = vsel %vm338_vm0, %v302_v1, 0  ;;  %v14823_v7 = vpack.c.bf16 %v16468_v19, %v16458_v15  ;;  %v316_v0 = vld [vmem:[%s16428_s18 + $0x90] sm:$0xff] }
  0x4d   : > { %14800 = vmatprep.subr.bf16.mxu1 %v16521_v53  ;;  %v16560_v9 = vand.u32 4294901760, %v16549_v4  ;;  %v16564_v10 = vand.u32 4294901760, %v16552_v5  ;;  %v16567_v11 = vsel %vm338_vm0, %v303_v6, 0  ;;  %v16570_v16 = vsel %vm338_vm0, %v304_v8, 0 }
  0x4e   : > { %v14815_v58 = vpack.c.bf16 %v882_v57, %v875_v56  ;;  %v14827_v27 = vpack.c.bf16 %v16475_v24, %v16470_v20  ;;  %v16578_v29 = vand.u32 4294901760, %v16567_v11  ;;  %v16582_v30 = vand.u32 4294901760, %v16570_v16 }
  0x4f   : > { %14810 = vmatpush3.bf16.msra.mxu0 %v14807_v49  ;;  %v16585_v31 = vsel %vm338_vm0, %v305_v17, 0  ;;  %v16588_v33 = vsel %vm338_vm0, %v306_v28, 0  ;;  %v14831_v37 = vpack.c.bf16 %v16507_v44, %v16500_v36  ;;  %v16603_v41 = vsel %vm338_vm0, %v307_v35, 0  ;;  %v317_v17 = vld [vmem:[%s16428_s18 + $0x98] sm:$0xff]  ;;  %v326_v44 = vld [vmem:[%s16428_s18 + $0xe0] sm:$0xff] }
  0x50   : > { %14812 = vmatprep.subr.bf16.mxu0 %v14811_v55  ;;  %14802 = vmatpush3.bf16.msra.mxu1 %v16521_v53  ;;  %v16596_v39 = vand.u32 4294901760, %v16585_v31  ;;  %v16600_v40 = vand.u32 4294901760, %v16588_v33  ;;  %v16606_v42 = vsel %vm338_vm0, %v308_v38, 0  ;;  %v16613_v46 = vpack.c.bf16 %v838_v22, %v831_v21  ;;  %v312_v21 = vld [vmem:[%s16428_s18 + $0x70] sm:$0xff] }
  0x51   : > { %v16618_v49 = vand.u32 4294901760, %v16603_v41  ;;  %v16622_v50 = vand.u32 4294901760, %v16606_v42  ;;  %v16625_v54 = vsel %vm338_vm0, %v309_v45, 0  ;;  %v16628_v13 = vsel %vm338_vm0, %v310_v47, 0  ;;  %v319_v45 = vld [vmem:[%s16428_s18 + $0xa8] sm:$0xff]  ;;  %v320_v47 = vld [vmem:[%s16428_s18 + $0xb0] sm:$0xff] }
  0x52   : > { %v16635_v22 = vand.u32 4294901760, %v16625_v54  ;;  %v16645_v56 = vand.u32 4294901760, %v16628_v13  ;;  %v16648_v57 = vsel %vm338_vm0, %v311_v14, 0  ;;  %v16683_v8 = vsel %vm338_vm0, %v316_v0, 0  ;;  %v321_v0 = vld [vmem:[%s16428_s18 + $0xb8] sm:$0xff] }
  0x53   : > { %14814 = vmatpush3.bf16.msra.mxu0 %v14811_v55  ;;  %v16641_v55 = vpack.c.bf16 %v852_v25, %v845_v23  ;;  %v16657_v15 = vand.u32 4294901760, %v16648_v57  ;;  %v16664_v23 = vsel %vm338_vm0, %v313_v59, 0  ;;  %v16667_v25 = vsel %vm338_vm0, %v314_v60, 0 }
  0x54   : > { %14816 = vmatprep.subr.bf16.mxu0 %v14815_v58  ;;  %v16673_v1 = vand.u32 4294901760, %v16664_v23  ;;  %v16677_v6 = vand.u32 4294901760, %v16667_v25  ;;  %v16693_v35 = vand.u32 4294901760, %v16683_v8  ;;  %v16718_v60 = vsel %vm338_vm0, %v319_v45, 0  ;;  %v324_v45 = vld [vmem:[%s16428_s18 + $0xd0] sm:$0xff] }
  0x55   : > { %23670 = vst [vmem:[#allocation14_spill] sm:$0xff] %v16641_v55  ;;  %v16727_v20 = vand.u32 4294901760, %v16718_v60  ;;  %v16766_v55 = vsel %vm338_vm0, %v325_v43, 0  ;;  %vm2308_vm2 = vcmask 254976   ;;  %vm2315_vm3 = vcmask 253952  }
  0x56   : > { %23671 = vst [vmem:[#allocation15_spill] sm:$0xff] %v16677_v6  ;;  %23673 = vst [vmem:[#allocation17_spill] sm:$0xff] %v16693_v35  ;;  %vm2604_vm4 = vcmask 523520   ;;  %vm2797_vm5 = vcmask 785920   ;;  %vm2990_vm6 = vcmask 1048320  }
  0x57   : > { %14818 = vmatpush3.bf16.msra.mxu0 %v14815_v58  ;;  %v16651_v58 = vsel %vm338_vm0, %v312_v21, 0  ;;  %v16711_v21 = vpack.c.bf16 %v866_v32, %v859_v26  ;;  %23677 = vst [vmem:[#allocation21_spill] sm:$0xff] %v16727_v20  ;;  %v16734_v26 = vsel %vm338_vm0, %v321_v0, 0  ;;  %23687 = vst [vmem:[#allocation31_spill] sm:$0xff] %v16766_v55 }
  0x58   : > { %14820 = vmatprep.subr.bf16.mxu0 %v14819_v62  ;;  %v16661_v19 = vand.u32 4294901760, %v16651_v58  ;;  %23679 = vst [vmem:[#allocation23_spill] sm:$0xff] %v16734_v26 }
  0x59   : > { %23675 = vst [vmem:[#allocation19_spill] sm:$0xff] %v16711_v21 }
  0x5a   : > { %13596 = vmatmul.mubr.f32.vlgmr.msra.gmra.mrb[0].mxu0 %v16543_v2 }
  0x5b   : > { %14822 = vmatpush3.bf16.msra.mxu0 %v14819_v62  ;;  %13598 = vmatprep.mubr.f32.mxu0 %v16546_v3  ;;  %v315_v62 = vld [vmem:[%s16428_s18 + $0x88] sm:$0xff] }
  0x5c   : > { %14824 = vmatprep.subr.bf16.mxu0 %v14823_v7 }
  0x5e   : > { %13599 = vmatmul.mubr.f32.gmra.mrb[2].mxu0 %v16560_v9 }
  0x5f   : > { %13601 = vmatprep.mubr.f32.mxu0 %v16564_v10  ;;  %14826 = vmatpush3.bf16.msra.mxu0 %v14823_v7  ;;  %v16680_v7 = vsel %vm338_vm0, %v315_v62, 0  ;;  %v16721_v62 = vsel %vm338_vm0, %v320_v47, 0  ;;  %v16743_v47 = vand.u32 4294901760, %v16734_v26  ;;  %v16775_v26 = vand.u32 4294901760, %v16766_v55 }
  0x60   : > { %14828 = vmatprep.subr.bf16.mxu0 %v14827_v27  ;;  %v16689_v28 = vand.u32 4294901760, %v16680_v7  ;;  %v16731_v24 = vand.u32 4294901760, %v16721_v62 }
  0x61   : > { %23681 = vst [vmem:[#allocation25_spill] sm:$0xff] %v16743_v47  ;;  %23689 = vst [vmem:[#allocation33_spill] sm:$0xff] %v16775_v26 }
  0x62   : > { %13602 = vmatmul.mubr.f32.gmra.mrb[4].mxu0 %v16578_v29  ;;  %23672 = vst [vmem:[#allocation16_spill] sm:$0xff] %v16689_v28  ;;  %23678 = vst [vmem:[#allocation22_spill] sm:$0xff] %v16731_v24 }
  0x63   : > { %13604 = vmatprep.mubr.f32.mxu0 %v16582_v30  ;;  %14830 = vmatpush3.bf16.msra.mxu0 %v14827_v27  ;;  %v318_v27 = vld [vmem:[%s16428_s18 + $0xa0] sm:$0xff] }
  0x64   : > { %14832 = vmatprep.subr.bf16.mxu0 %v14831_v37  ;;  %v16699_v38 = vsel %vm338_vm0, %v318_v27, 0  ;;  %v323_v27 = vld [vmem:[%s16428_s18 + $0xc8] sm:$0xff] }
  0x65   : > { %v16715_v59 = vand.u32 4294901760, %v16699_v38  ;;  %v16750_v0 = vsel %vm338_vm0, %v323_v27, 0  ;;  %v16769_v27 = vsel %vm338_vm0, %v326_v44, 0  ;;  %v329_v44 = vld [vmem:[%s16428_s18 + $0xf8] sm:$0xff] }
  0x66   : > { %13605 = vmatmul.mubr.f32.gmra.mrb[6].mxu0 %v16596_v39  ;;  %23683 = vst [vmem:[#allocation27_spill] sm:$0xff] %v16750_v0  ;;  %v16759_v36 = vand.u32 4294901760, %v16750_v0  ;;  %23688 = vst [vmem:[#allocation32_spill] sm:$0xff] %v16769_v27  ;;  %v16779_v0 = vand.u32 4294901760, %v16769_v27  ;;  %v16797_v27 = vsel %vm338_vm0, %v329_v44, 0  ;;  %v16816_v44 = vsub.f32 %v16538_v63, %v16546_v3 }
  0x67   : > { %13607 = vmatprep.mubr.f32.mxu0 %v16600_v40  ;;  %14834 = vmatpush3.bf16.msra.mxu0 %v14831_v37  ;;  %v16696_v37 = vsel %vm338_vm0, %v317_v17, 0  ;;  %23676 = vst [vmem:[#allocation20_spill] sm:$0xff] %v16715_v59  ;;  %v322_v17 = vld [vmem:[%s16428_s18 + $0xc0] sm:$0xff]  ;;  %23694 = vst [vmem:[#allocation38_spill] sm:$0xff] %v16797_v27  ;;  %v16838_v63 = vsub.f32 %v16570_v16, %v16582_v30  ;;  %v16862_v16 = vsub.f32 %v16606_v42, %v16622_v50 }
  0x68   : > { %14836 = vmatprep.subr.bf16.mxu0 %v16452_v12  ;;  %v16705_v14 = vand.u32 4294901760, %v16696_v37  ;;  %v16737_v32 = vsel %vm338_vm0, %v322_v17, 0  ;;  %v16753_v17 = vsel %vm338_vm0, %v324_v45, 0  ;;  %23685 = vst [vmem:[#allocation29_spill] sm:$0xff] %v16759_v36  ;;  %v327_v45 = vld [vmem:[%s16428_s18 + $0xe8] sm:$0xff]  ;;  %23690 = vst [vmem:[#allocation34_spill] sm:$0xff] %v16779_v0  ;;  %v16884_v42 = vsub.f32 %v16651_v58, %v16661_v19 }
  0x69   : > { %23680 = vst [vmem:[#allocation24_spill] sm:$0xff] %v16737_v32  ;;  %v16747_v51 = vand.u32 4294901760, %v16737_v32  ;;  %23684 = vst [vmem:[#allocation28_spill] sm:$0xff] %v16753_v17  ;;  %v16763_v21 = vand.u32 4294901760, %v16753_v17  ;;  %v328_v32 = vld [vmem:[%s16428_s18 + $0xf0] sm:$0xff]  ;;  %v16782_v17 = vsel %vm338_vm0, %v327_v45, 0  ;;  %v16904_v58 = vsub.f32 %v16683_v8, %v16693_v35 }
  0x6a   : > { %13608 = vmatmul.mubr.f32.gmra.mrb[8].mxu0 %v16618_v49  ;;  %23674 = vst [vmem:[#allocation18_spill] sm:$0xff] %v16705_v14  ;;  %23691 = vst [vmem:[#allocation35_spill] sm:$0xff] %v16782_v17  ;;  %v16785_v43 = vsel %vm338_vm0, %v328_v32, 0  ;;  %v16801_v45 = vand.u32 4294901760, %v16797_v27  ;;  %v16806_v32 = vsub.f32 %v16511_v48, %v16519_v52  ;;  %v16821_v27 = vsub.f32 %v16549_v4, %v16560_v9 }
  0x6b   : > { %13610 = vmatprep.mubr.f32.mxu0 %v16622_v50  ;;  %23682 = vst [vmem:[#allocation26_spill] sm:$0xff] %v16747_v51  ;;  %23686 = vst [vmem:[#allocation30_spill] sm:$0xff] %v16763_v21  ;;  %v16794_v55 = vand.u32 4294901760, %v16785_v43  ;;  %v16827_v48 = vsub.f32 %v16552_v5, %v16564_v10  ;;  %v16845_v4 = vsub.f32 %v16585_v31, %v16596_v39 }
  0x6c   : > { %23695 = vst [vmem:[#allocation39_spill] sm:$0xff] %v16801_v45  ;;  %v16850_v5 = vsub.f32 %v16588_v33, %v16600_v40  ;;  %v16869_v31 = vsub.f32 %v16625_v54, %v16635_v22  ;;  %v16874_v33 = vsub.f32 %v16628_v13, %v16645_v56  ;;  %v16889_v54 = vsub.f32 %v16664_v23, %v16673_v1 }
  0x6d   : > { %23693 = vst [vmem:[#allocation37_spill] sm:$0xff] %v16794_v55  ;;  %v16894_v13 = vsub.f32 %v16667_v25, %v16677_v6  ;;  %v16909_v23 = vsub.f32 %v16696_v37, %v16705_v14  ;;  %v16914_v25 = vsub.f32 %v16699_v38, %v16715_v59  ;;  %v16924_v8 = vsub.f32 %v16721_v62, %v16731_v24  ;;  %v23696_v37 = vld [vmem:[#allocation23_spill] sm:$0xff] }
  0x6e   : > { %13611 = vmatmul.mubr.f32.gmra.mrb[10].mxu0 %v16635_v22 }
  0x6f   : > { %13613 = vmatprep.mubr.f32.mxu0 %v16645_v56 }
  0x70   : > { %v23700_v62 = vld [vmem:[#allocation28_spill] sm:$0xff] }
  0x72   : > { %13614 = vmatmul.mubr.f32.gmra.mrb[12].mxu0 %v16657_v15  ;;  %v23697_v38 = vld [vmem:[#allocation26_spill] sm:$0xff] }
  0x73   : > { %13616 = vmatprep.mubr.f32.mxu0 %v16661_v19 }
  0x76   : > { %13617 = vmatmul.mubr.f32.gmra.mrb[14].mxu0 %v16673_v1 }
  0x77   : > { %13619 = vmatprep.mubr.f32.mxu0 %v16677_v6 }
  0x7a   : > { %13620 = vmatmul.mubr.f32.gmra.mrb[16].mxu0 %v16689_v28 }
  0x7b   : > { %13622 = vmatprep.mubr.f32.mxu0 %v16693_v35 }
  0x7e   : > { %13623 = vmatmul.mubr.f32.gmra.mrb[18].mxu0 %v16705_v14  ;;  %v16929_v14 = vsub.f32 %v23696_v37, %v16743_v47  ;;  %v23701_v37 = vld [vmem:[#allocation31_spill] sm:$0xff] }
  0x7f   : > { %13625 = vmatprep.mubr.f32.mxu0 %v16715_v59  ;;  %v23698_v59 = vld [vmem:[#allocation24_spill] sm:$0xff] }
  0x80   : > { %v16934_v35 = vsub.f32 %v23698_v59, %v23697_v38  ;;  %v23702_v59 = vld [vmem:[#allocation32_spill] sm:$0xff] }
  0x81   : > { %v16954_v38 = vsub.f32 %v23702_v59, %v16779_v0  ;;  %v510_v59 = vand.u32 4294901760, %v16806_v32 }
  0x82   : > { %13626 = vmatmul.mubr.f32.gmra.mrb[20].mxu0 %v16727_v20 }
  0x83   : > { %13628 = vmatprep.mubr.f32.mxu0 %v16731_v24  ;;  %v16944_v24 = vsub.f32 %v23700_v62, %v16763_v21  ;;  %v16964_v62 = vsub.f32 %v16785_v43, %v16794_v55 }
  0x86   : > { %13629 = vmatmul.mubr.f32.gmra.mrb[22].mxu0 %v16743_v47  ;;  %v16949_v47 = vsub.f32 %v23701_v37, %v16775_v26  ;;  %v23704_v37 = vld [vmem:[#allocation38_spill] sm:$0xff] }
  0x87   : > { %13631 = vmatprep.mubr.f32.mxu0 %v16747_v51  ;;  %v16790_v51 = vand.u32 4294901760, %v16782_v17  ;;  %v16810_v17 = vsub.f32 %v16533_v61, %v16543_v2  ;;  %v16833_v61 = vsub.f32 %v16567_v11, %v16578_v29  ;;  %v16857_v11 = vsub.f32 %v16603_v41, %v16618_v49 }
  0x88   : > { %v16879_v41 = vsub.f32 %v16648_v57, %v16657_v15  ;;  %v16899_v57 = vsub.f32 %v16680_v7, %v16689_v28  ;;  %v16919_v7 = vsub.f32 %v16718_v60, %v16727_v20  ;;  %v23699_v60 = vld [vmem:[#allocation27_spill] sm:$0xff] }
  0x89   : > { %23692 = vst [vmem:[#allocation36_spill] sm:$0xff] %v16790_v51  ;;  %v16939_v20 = vsub.f32 %v23699_v60, %v16759_v36  ;;  %v23703_v60 = vld [vmem:[#allocation35_spill] sm:$0xff] }
  0x8a   : > { %13632 = vmatmul.mubr.f32.gmra.mrb[24].mxu0 %v16759_v36  ;;  %v16959_v36 = vsub.f32 %v23703_v60, %v16790_v51  ;;  %v511_v60 = vsub.f32 %v16806_v32, %v510_v59 }
  0x8b   : > { %13634 = vmatprep.mubr.f32.mxu0 %v16763_v21 }
  0x8c   : > { %v512_v43 = vand.u32 4294901760, %v511_v60  ;;  %v23705_v60 = vld [vmem:[#allocation14_spill] sm:$0xff] }
  0x8e   : > { %13635 = vmatmul.mubr.f32.gmra.mrb[26].mxu0 %v16775_v26  ;;  %v16969_v26 = vsub.f32 %v23704_v37, %v16801_v45  ;;  %v540_v37 = vand.u32 4294901760, %v16821_v27  ;;  %13531 = vmatprep.mubr.f32.mxu1 %v512_v43 }
  0x8f   : > { %13637 = vmatprep.mubr.f32.mxu0 %v16779_v0  ;;  %v520_v0 = vand.u32 4294901760, %v16810_v17 }
  0x90   : > { %v541_v28 = vsub.f32 %v16821_v27, %v540_v37 }
  0x92   : > { %13638 = vmatmul.mubr.f32.gmra.mrb[28].mxu0 %v16790_v51  ;;  %v521_v51 = vsub.f32 %v16810_v17, %v520_v0 }
  0x93   : > { %13640 = vmatprep.mubr.f32.mxu0 %v16794_v55  ;;  %v530_v55 = vand.u32 4294901760, %v16816_v44 }
  0x94   : > { %v522_v21 = vand.u32 4294901760, %v521_v51  ;;  %v542_v51 = vand.u32 4294901760, %v541_v28  ;;  %v23709_v28 = vld [vmem:[#allocation13_spill] sm:$0xff] }
  0x96   : > { %13641 = vmatmul.mubr.f32.gmra.mrb[30].mxu0 %v16801_v45  ;;  %13532 = vmatmul.mubr.f32.vlgmr.msra.gmra.mrb[0].mxu1 %v522_v21  ;;  %v531_v45 = vsub.f32 %v16816_v44, %v530_v55 }
  0x97   : > { %13659 = vmatprep.mubr.f32.mxu0 %v16806_v32 }
  0x98   : > { %v532_v32 = vand.u32 4294901760, %v531_v45  ;;  %v23707_v45 = vld [vmem:[#allocation12_spill] sm:$0xff] }
  0x9a   : > { %13660 = vmatmul.mubr.f32.vlgmr.msra.gmra.mrb[0].mxu0 %v16810_v17  ;;  %v550_v17 = vand.u32 4294901760, %v16827_v48  ;;  %13534 = vmatprep.mubr.f32.mxu1 %v532_v32  ;;  %v23710_v32 = vand.u32 4294901760, %v23709_v28 }
  0x9b   : > { %14838 = vmatpush3.bf16.msra.mxu0 %v16452_v12  ;;  %13662 = vmatprep.mubr.f32.mxu0 %v16816_v44  ;;  %v23708_v44 = vand.u32 4294901760, %v23707_v45  ;;  %v640_v45 = vand.u32 4294901760, %v16879_v41 }
  0x9c   : > { %14840 = vmatprep.subr.bf16.mxu0 %v16466_v18  ;;  %v551_v43 = vsub.f32 %v16827_v48, %v550_v17  ;;  %13535 = vmatmul.mubr.f32.gmra.mrb[2].mxu1 %v542_v51  ;;  %v600_v51 = vand.u32 4294901760, %v16857_v11 }
  0x9d   : > { %v14863_v6 = vpack.c.bf16 %v23710_v32, %v23708_v44  ;;  %v641_v28 = vsub.f32 %v16879_v41, %v640_v45 }
  0x9e   : > { %13663 = vmatmul.mubr.f32.gmra.mrb[2].mxu0 %v16821_v27  ;;  %v23706_v27 = vld [vmem:[#allocation19_spill] sm:$0xff] }
  0x9f   : > { %13665 = vmatprep.mubr.f32.mxu0 %v16827_v48  ;;  %14842 = vmatpush3.bf16.msra.mxu0 %v16466_v18 }
  0xa0   : > { %14844 = vmatprep.subr.bf16.mxu0 %v16495_v34 }
  0xa2   : > { %13666 = vmatmul.mubr.f32.gmra.mrb[4].mxu0 %v16833_v61 }
  0xa3   : > { %13668 = vmatprep.mubr.f32.mxu0 %v16838_v63  ;;  %14846 = vmatpush3.bf16.msra.mxu0 %v16495_v34 }
  0xa4   : > { %14848 = vmatprep.subr.bf16.mxu0 %v16521_v53 }
  0xa6   : > { %13669 = vmatmul.mubr.f32.gmra.mrb[6].mxu0 %v16845_v4 }
  0xa7   : > { %13671 = vmatprep.mubr.f32.mxu0 %v16850_v5  ;;  %14850 = vmatpush3.bf16.msra.mxu0 %v16521_v53 }
  0xa8   : > { %14852 = vmatprep.subr.bf16.mxu0 %v16613_v46 }
  0xaa   : > { %13672 = vmatmul.mubr.f32.gmra.mrb[8].mxu0 %v16857_v11 }
  0xab   : > { %13674 = vmatprep.mubr.f32.mxu0 %v16862_v16 }
  0xae   : > { %13675 = vmatmul.mubr.f32.gmra.mrb[10].mxu0 %v16869_v31 }
  0xaf   : > { %13677 = vmatprep.mubr.f32.mxu0 %v16874_v33 }
  0xb2   : > { %13678 = vmatmul.mubr.f32.gmra.mrb[12].mxu0 %v16879_v41  ;;  %v680_v41 = vand.u32 4294901760, %v16899_v57 }
  0xb3   : > { %13680 = vmatprep.mubr.f32.mxu0 %v16884_v42 }
  0xb6   : > { %13681 = vmatmul.mubr.f32.gmra.mrb[14].mxu0 %v16889_v54 }
  0xb7   : > { %13683 = vmatprep.mubr.f32.mxu0 %v16894_v13 }
  0xba   : > { %13684 = vmatmul.mubr.f32.gmra.mrb[16].mxu0 %v16899_v57 }
  0xbb   : > { %13686 = vmatprep.mubr.f32.mxu0 %v16904_v58 }
  0xbe   : > { %13687 = vmatmul.mubr.f32.gmra.mrb[18].mxu0 %v16909_v23 }
  0xbf   : > { %13689 = vmatprep.mubr.f32.mxu0 %v16914_v25 }
  0xc2   : > { %13690 = vmatmul.mubr.f32.gmra.mrb[20].mxu0 %v16919_v7 }
  0xc3   : > { %13692 = vmatprep.mubr.f32.mxu0 %v16924_v8 }
  0xc6   : > { %13693 = vmatmul.mubr.f32.gmra.mrb[22].mxu0 %v16929_v14 }
  0xc7   : > { %13695 = vmatprep.mubr.f32.mxu0 %v16934_v35 }
  0xca   : > { %13696 = vmatmul.mubr.f32.gmra.mrb[24].mxu0 %v16939_v20 }
  0xcb   : > { %13698 = vmatprep.mubr.f32.mxu0 %v16944_v24 }
  0xce   : > { %13699 = vmatmul.mubr.f32.gmra.mrb[26].mxu0 %v16949_v47 }
  0xcf   : > { %13701 = vmatprep.mubr.f32.mxu0 %v16954_v38 }
  0xd2   : > { %13702 = vmatmul.mubr.f32.gmra.mrb[28].mxu0 %v16959_v36 }
  0xd3   : > { %13704 = vmatprep.mubr.f32.mxu0 %v16964_v62 }
  0xd6   : > { %13705 = vmatmul.mubr.f32.gmra.mrb[30].mxu0 %v16969_v26 }
  0xd7   : > { %13723 = vmatprep.mubr.f32.mxu0 %v510_v59  ;;  %v560_v59 = vand.u32 4294901760, %v16833_v61 }
  0xd9   : > { %v561_v21 = vsub.f32 %v16833_v61, %v560_v59 }
  0xda   : > { %13724 = vmatmul.mubr.f32.vlgmr.msra.gmra.mrb[0].mxu0 %v520_v0  ;;  %v570_v0 = vand.u32 4294901760, %v16838_v63 }
  0xdb   : > { %14854 = vmatpush3.bf16.msra.mxu0 %v16613_v46  ;;  %13726 = vmatprep.mubr.f32.mxu0 %v530_v55  ;;  %v552_v46 = vand.u32 4294901760, %v551_v43  ;;  %v580_v55 = vand.u32 4294901760, %v16845_v4  ;;  %v562_v48 = vand.u32 4294901760, %v561_v21 }
  0xdc   : > { %14856 = vmatprep.subr.bf16.mxu0 %v23705_v60 }
  0xdd   : > { %13537 = vmatprep.mubr.f32.mxu1 %v552_v46  ;;  %v581_v61 = vsub.f32 %v16845_v4, %v580_v55  ;;  %v610_v4 = vand.u32 4294901760, %v16862_v16 }
  0xde   : > { %13727 = vmatmul.mubr.f32.gmra.mrb[2].mxu0 %v540_v37  ;;  %v571_v37 = vsub.f32 %v16838_v63, %v570_v0  ;;  %13538 = vmatmul.mubr.f32.gmra.mrb[4].mxu1 %v562_v48  ;;  %v601_v63 = vsub.f32 %v16857_v11, %v600_v51  ;;  %v630_v11 = vand.u32 4294901760, %v16874_v33  ;;  %v642_v48 = vand.u32 4294901760, %v641_v28 }
  0xdf   : > { %13729 = vmatprep.mubr.f32.mxu0 %v550_v17  ;;  %14858 = vmatpush3.bf16.msra.mxu0 %v23705_v60  ;;  %v590_v17 = vand.u32 4294901760, %v16850_v5  ;;  %v582_v43 = vand.u32 4294901760, %v581_v61 }
  0xe0   : > { %14860 = vmatprep.subr.bf16.mxu0 %v23706_v27  ;;  %v572_v60 = vand.u32 4294901760, %v571_v37  ;;  %v602_v46 = vand.u32 4294901760, %v601_v63  ;;  %v631_v44 = vsub.f32 %v16874_v33, %v630_v11  ;;  %v670_v33 = vand.u32 4294901760, %v16894_v13 }
  0xe1   : > { %v591_v21 = vsub.f32 %v16850_v5, %v590_v17 }
  0xe2   : > { %13730 = vmatmul.mubr.f32.gmra.mrb[4].mxu0 %v560_v59  ;;  %13540 = vmatprep.mubr.f32.mxu1 %v572_v60  ;;  %v632_v32 = vand.u32 4294901760, %v631_v44 }
  0xe3   : > { %13732 = vmatprep.mubr.f32.mxu0 %v570_v0  ;;  %14862 = vmatpush3.bf16.msra.mxu0 %v23706_v27  ;;  %v592_v59 = vand.u32 4294901760, %v591_v21  ;;  %v620_v0 = vand.u32 4294901760, %v16869_v31  ;;  %v611_v27 = vsub.f32 %v16862_v16, %v610_v4  ;;  %v650_v16 = vand.u32 4294901760, %v16884_v42 }
  0xe4   : > { %14864 = vmatprep.subr.bf16.mxu0 %v14863_v6  ;;  %13541 = vmatmul.mubr.f32.gmra.mrb[6].mxu1 %v582_v43  ;;  %v681_v43 = vsub.f32 %v16899_v57, %v680_v41  ;;  %v720_v57 = vand.u32 4294901760, %v16919_v7 }
  0xe5   : > { %13543 = vmatprep.mubr.f32.mxu1 %v592_v59  ;;  %v621_v5 = vsub.f32 %v16869_v31, %v620_v0  ;;  %v660_v31 = vand.u32 4294901760, %v16889_v54  ;;  %v651_v37 = vsub.f32 %v16884_v42, %v650_v16  ;;  %v690_v42 = vand.u32 4294901760, %v16904_v58 }
  0xe6   : > { %13733 = vmatmul.mubr.f32.gmra.mrb[6].mxu0 %v580_v55  ;;  %v612_v55 = vand.u32 4294901760, %v611_v27  ;;  %v682_v63 = vand.u32 4294901760, %v681_v43 }
  0xe7   : > { %13735 = vmatprep.mubr.f32.mxu0 %v590_v17  ;;  %14866 = vmatpush3.bf16.msra.mxu0 %v14863_v6  ;;  %v622_v6 = vand.u32 4294901760, %v621_v5  ;;  %v661_v61 = vsub.f32 %v16889_v54, %v660_v31  ;;  %v652_v17 = vand.u32 4294901760, %v651_v37  ;;  %v700_v54 = vand.u32 4294901760, %v16909_v23 }
  0xe8   : > { %14868 = vmatprep.subr.bf16.mxu0 %v16452_v12  ;;  %13544 = vmatmul.mubr.f32.gmra.mrb[8].mxu1 %v602_v46  ;;  %v721_v5 = vsub.f32 %v16919_v7, %v720_v57  ;;  %v760_v7 = vand.u32 4294901760, %v16939_v20 }
  0xe9   : > { %13546 = vmatprep.mubr.f32.mxu1 %v612_v55  ;;  %v662_v60 = vand.u32 4294901760, %v661_v61  ;;  %v701_v59 = vsub.f32 %v16909_v23, %v700_v54  ;;  %v740_v23 = vand.u32 4294901760, %v16929_v14 }
  0xea   : > { %13736 = vmatmul.mubr.f32.gmra.mrb[8].mxu0 %v600_v51  ;;  %v671_v51 = vsub.f32 %v16894_v13, %v670_v33  ;;  %v710_v13 = vand.u32 4294901760, %v16914_v25  ;;  %v722_v55 = vand.u32 4294901760, %v721_v5  ;;  %v23723_v5 = vld [vmem:[#allocation34_spill] sm:$0xff] }
  0xeb   : > { %13738 = vmatprep.mubr.f32.mxu0 %v610_v4  ;;  %v691_v4 = vsub.f32 %v16904_v58, %v690_v42  ;;  %v702_v46 = vand.u32 4294901760, %v701_v59  ;;  %v730_v58 = vand.u32 4294901760, %v16924_v8  ;;  %v23717_v59 = vld [vmem:[#allocation22_spill] sm:$0xff] }
  0xec   : > { %13547 = vmatmul.mubr.f32.gmra.mrb[10].mxu1 %v622_v6  ;;  %v672_v21 = vand.u32 4294901760, %v671_v51  ;;  %v711_v27 = vsub.f32 %v16914_v25, %v710_v13  ;;  %v741_v6 = vsub.f32 %v16929_v14, %v740_v23  ;;  %v750_v25 = vand.u32 4294901760, %v16934_v35 }
  0xed   : > { %13549 = vmatprep.mubr.f32.mxu1 %v632_v32  ;;  %v761_v32 = vsub.f32 %v16939_v20, %v760_v7  ;;  %v780_v14 = vand.u32 4294901760, %v16949_v47  ;;  %v800_v20 = vand.u32 4294901760, %v16959_v36 }
  0xee   : > { %13739 = vmatmul.mubr.f32.gmra.mrb[10].mxu0 %v620_v0  ;;  %v692_v0 = vand.u32 4294901760, %v691_v4  ;;  %v742_v28 = vand.u32 4294901760, %v741_v6  ;;  %v23716_v4 = vld [vmem:[#allocation21_spill] sm:$0xff]  ;;  %v3857_v6 = vld [vmem:[%s22897_s2 + $0x108] sm:$0xff] }
  0xef   : > { %13741 = vmatprep.mubr.f32.mxu0 %v630_v11  ;;  %v712_v11 = vand.u32 4294901760, %v711_v27  ;;  %v781_v61 = vsub.f32 %v16949_v47, %v780_v14  ;;  %v820_v47 = vand.u32 4294901760, %v16969_v26  ;;  %v23722_v27 = vld [vmem:[#allocation33_spill] sm:$0xff] }
  0xf0   : > { %13550 = vmatmul.mubr.f32.gmra.mrb[12].mxu1 %v642_v48  ;;  %v762_v48 = vand.u32 4294901760, %v761_v32  ;;  %v3859_v32 = vld [vmem:[%s22897_s2 + $0x118] sm:$0xff] }
  0xf1   : > { %13552 = vmatprep.mubr.f32.mxu1 %v652_v17  ;;  %v782_v17 = vand.u32 4294901760, %v781_v61 }
  0xf2   : > { %13742 = vmatmul.mubr.f32.gmra.mrb[12].mxu0 %v640_v45  ;;  %v731_v45 = vsub.f32 %v16924_v8, %v730_v58  ;;  %v770_v8 = vand.u32 4294901760, %v16944_v24 }
  0xf3   : > { %13744 = vmatprep.mubr.f32.mxu0 %v650_v16  ;;  %v751_v16 = vsub.f32 %v16934_v35, %v750_v25  ;;  %v790_v35 = vand.u32 4294901760, %v16954_v38 }
  0xf4   : > { %13553 = vmatmul.mubr.f32.gmra.mrb[14].mxu1 %v662_v60  ;;  %v732_v44 = vand.u32 4294901760, %v731_v45  ;;  %v771_v37 = vsub.f32 %v16944_v24, %v770_v8  ;;  %v801_v60 = vsub.f32 %v16959_v36, %v800_v20  ;;  %v810_v24 = vand.u32 4294901760, %v16964_v62  ;;  %v3856_v45 = vld [vmem:[%s22897_s2 + $0x100] sm:$0xff] }
  0xf5   : > { %13555 = vmatprep.mubr.f32.mxu1 %v672_v21  ;;  %v821_v21 = vsub.f32 %v16969_v26, %v820_v47  ;;  %v22950_v36 = vmov 0.0  }
  0xf6   : > { %13745 = vmatmul.mubr.f32.gmra.mrb[14].mxu0 %v660_v31  ;;  %v752_v31 = vand.u32 4294901760, %v751_v16  ;;  %v802_v43 = vand.u32 4294901760, %v801_v60  ;;  %2306 = vst.msk [vmem:[#allocation2 + $0x7] sm:$0xff] %vm2305_vm1, %v22950_v36  ;;  %2307 = vst.msk [vmem:[#allocation2 + $0xf] sm:$0xff] %vm2305_vm1, %v22950_v36  ;;  %v3858_v16 = vld [vmem:[%s22897_s2 + $0x110] sm:$0xff] }
  0xf7   : > { %13747 = vmatprep.mubr.f32.mxu0 %v670_v33  ;;  %v772_v33 = vand.u32 4294901760, %v771_v37  ;;  %2311 = vst.msk [vmem:[#allocation2 + $0x227] sm:$0xff] %vm2305_vm1, %v22950_v36  ;;  %2312 = vst.msk [vmem:[#allocation2 + $0x22f] sm:$0xff] %vm2305_vm1, %v22950_v36 }
  0xf8   : > { %13556 = vmatmul.mubr.f32.gmra.mrb[16].mxu1 %v682_v63  ;;  %v23715_v63 = vld [vmem:[#allocation20_spill] sm:$0xff]  ;;  %2309 = vst.msk [vmem:[#allocation2 + $0x17] sm:$0x3] %vm2308_vm2, %v22950_v36  ;;  %2313 = vst.msk [vmem:[#allocation2 + $0x237] sm:$0x3] %vm2308_vm2, %v22950_v36 }
  0xf9   : > { %13558 = vmatprep.mubr.f32.mxu1 %v692_v0  ;;  %v23719_v0 = vld [vmem:[#allocation26_spill] sm:$0xff]  ;;  %2334 = vst.msk [vmem:[#allocation2 + $0x78] sm:$0x1] %vm2315_vm3, %v22950_v36  ;;  %2316 = vst.msk [vmem:[#allocation2 + $0x27] sm:$0x1] %vm2315_vm3, %v22950_v36 }
  0xfa   : > { %13748 = vmatmul.mubr.f32.gmra.mrb[16].mxu0 %v680_v41  ;;  %v791_v41 = vsub.f32 %v16954_v38, %v790_v35  ;;  %2317 = vst.msk [vmem:[#allocation2 + $0x47] sm:$0x1] %vm2315_vm3, %v22950_v36  ;;  %2318 = vst.msk [vmem:[#allocation2 + $0x67] sm:$0x1] %vm2315_vm3, %v22950_v36 }
  0xfb   : > { %13750 = vmatprep.mubr.f32.mxu0 %v690_v42  ;;  %v811_v42 = vsub.f32 %v16964_v62, %v810_v24  ;;  %2319 = vst.msk [vmem:[#allocation2 + $0x87] sm:$0x1] %vm2315_vm3, %v22950_v36  ;;  %2320 = vst.msk [vmem:[#allocation2 + $0xa7] sm:$0x1] %vm2315_vm3, %v22950_v36 }
  0xfc   : > { %13559 = vmatmul.mubr.f32.gmra.mrb[18].mxu1 %v702_v46  ;;  %v792_v51 = vand.u32 4294901760, %v791_v41  ;;  %v23721_v46 = vld [vmem:[#allocation30_spill] sm:$0xff]  ;;  %2321 = vst.msk [vmem:[#allocation2 + $0xc7] sm:$0x1] %vm2315_vm3, %v22950_v36  ;;  %2322 = vst.msk [vmem:[#allocation2 + $0xe7] sm:$0x1] %vm2315_vm3, %v22950_v36 }
  0xfd   : > { %13561 = vmatprep.mubr.f32.mxu1 %v712_v11  ;;  %v812_v38 = vand.u32 4294901760, %v811_v42  ;;  %v2637_v26 = vld [vmem:[#allocation2 + $0x9] sm:$0xff]  ;;  %v23725_v11 = vld [vmem:[#allocation37_spill] sm:$0xff]  ;;  %2323 = vst.msk [vmem:[#allocation2 + $0x107] sm:$0x1] %vm2315_vm3, %v22950_v36 }
  0xfe   : > { %13751 = vmatmul.mubr.f32.gmra.mrb[18].mxu0 %v700_v54  ;;  %v822_v54 = vand.u32 4294901760, %v821_v21  ;;  %v2444_v62 = vld [vmem:[#allocation2 + $0x8] sm:$0xff]  ;;  %2701 = vrot.lane.b32.xlu1 %v2637_v26, %s16264_s16  ;;  %2324 = vst.msk [vmem:[#allocation2 + $0x127] sm:$0x1] %vm2315_vm3, %v22950_v36  ;;  %2325 = vst.msk [vmem:[#allocation2 + $0x147] sm:$0x1] %vm2315_vm3, %v22950_v36 }
  0xff   : > { %13753 = vmatprep.mubr.f32.mxu0 %v710_v13  ;;  %2508 = vrot.lane.b32.xlu0 %v2444_v62, %s16265_s19  ;;  %v23718_v13 = vld [vmem:[#allocation25_spill] sm:$0xff]  ;;  %2326 = vst.msk [vmem:[#allocation2 + $0x167] sm:$0x1] %vm2315_vm3, %v22950_v36  ;;  %2327 = vst.msk [vmem:[#allocation2 + $0x187] sm:$0x1] %vm2315_vm3, %v22950_v36 }
 0x100   : > { %13562 = vmatmul.mubr.f32.gmra.mrb[20].mxu1 %v722_v55  ;;  %2328 = vst.msk [vmem:[#allocation2 + $0x1a7] sm:$0x1] %vm2315_vm3, %v22950_v36  ;;  %2329 = vst.msk [vmem:[#allocation2 + $0x1c7] sm:$0x1] %vm2315_vm3, %v22950_v36 }
 0x101   : > { %13564 = vmatprep.mubr.f32.mxu1 %v732_v44  ;;  %2330 = vst.msk [vmem:[#allocation2 + $0x1e7] sm:$0x1] %vm2315_vm3, %v22950_v36  ;;  %2331 = vst.msk [vmem:[#allocation2 + $0x207] sm:$0x1] %vm2315_vm3, %v22950_v36  ;;  %v6555_v44 = vand.u32 4294901760, %v3856_v45 }
 0x102   : > { %13754 = vmatmul.mubr.f32.gmra.mrb[20].mxu0 %v720_v57  ;;  %v23720_v57 = vld [vmem:[#allocation29_spill] sm:$0xff]  ;;  %2332 = vst.msk [vmem:[#allocation2 + $0x38] sm:$0x1] %vm2315_vm3, %v22950_v36  ;;  %2333 = vst.msk [vmem:[#allocation2 + $0x58] sm:$0x1] %vm2315_vm3, %v22950_v36 }
 0x103   : > { %13756 = vmatprep.mubr.f32.mxu0 %v730_v58  ;;  %v23724_v58 = vld [vmem:[#allocation36_spill] sm:$0xff]  ;;  %2335 = vst.msk [vmem:[#allocation2 + $0x98] sm:$0x1] %vm2315_vm3, %v22950_v36  ;;  %2336 = vst.msk [vmem:[#allocation2 + $0xb8] sm:$0x1] %vm2315_vm3, %v22950_v36 }
 0x104   : > { %13565 = vmatmul.mubr.f32.gmra.mrb[22].mxu1 %v742_v28  ;;  %2337 = vst.msk [vmem:[#allocation2 + $0xd8] sm:$0x1] %vm2315_vm3, %v22950_v36  ;;  %2338 = vst.msk [vmem:[#allocation2 + $0xf8] sm:$0x1] %vm2315_vm3, %v22950_v36 }
 0x105   : > { %13567 = vmatprep.mubr.f32.mxu1 %v752_v31  ;;  %2339 = vst.msk [vmem:[#allocation2 + $0x118] sm:$0x1] %vm2315_vm3, %v22950_v36  ;;  %2340 = vst.msk [vmem:[#allocation2 + $0x138] sm:$0x1] %vm2315_vm3, %v22950_v36  ;;  %v6561_v31 = vand.u32 4294901760, %v3858_v16 }
 0x106   : > { %13757 = vmatmul.mubr.f32.gmra.mrb[22].mxu0 %v740_v23  ;;  %v23726_v23 = vld [vmem:[#allocation39_spill] sm:$0xff]  ;;  %2341 = vst.msk [vmem:[#allocation2 + $0x158] sm:$0x1] %vm2315_vm3, %v22950_v36  ;;  %2342 = vst.msk [vmem:[#allocation2 + $0x178] sm:$0x1] %vm2315_vm3, %v22950_v36 }
 0x107   : > { %13759 = vmatprep.mubr.f32.mxu0 %v750_v25  ;;  %2343 = vst.msk [vmem:[#allocation2 + $0x198] sm:$0x1] %vm2315_vm3, %v22950_v36  ;;  %2344 = vst.msk [vmem:[#allocation2 + $0x1b8] sm:$0x1] %vm2315_vm3, %v22950_v36 }
 0x108   : > { %13568 = vmatmul.mubr.f32.gmra.mrb[24].mxu1 %v762_v48  ;;  %2345 = vst.msk [vmem:[#allocation2 + $0x1d8] sm:$0x1] %vm2315_vm3, %v22950_v36  ;;  %2346 = vst.msk [vmem:[#allocation2 + $0x1f8] sm:$0x1] %vm2315_vm3, %v22950_v36 }
 0x109   : > { %13570 = vmatprep.mubr.f32.mxu1 %v772_v33  ;;  %2347 = vst.msk [vmem:[#allocation2 + $0x218] sm:$0x1] %vm2315_vm3, %v22950_v36  ;;  %v17254_v33 = vsub.f32 %v3856_v45, %v6555_v44  ;;  %v3824_v45 = vld [vmem:[%s22897_s2] sm:$0xff] }
 0x10a   : > { %13760 = vmatmul.mubr.f32.gmra.mrb[24].mxu0 %v760_v7  ;;  %v6558_v7 = vand.u32 4294901760, %v3857_v6 }
 0x10b   : > { %13762 = vmatprep.mubr.f32.mxu0 %v770_v8  ;;  %23729 = vst [vmem:[#allocation27_spill] sm:$0xff] %v17254_v33  ;;  %v22955_v41 = vand.u32 4294901760, %v17254_v33 }
 0x10c   : > { %13571 = vmatmul.mubr.f32.gmra.mrb[26].mxu1 %v782_v17  ;;  %v17232_v28 = vpack.c.bf16 %v6558_v7, %v6555_v44 }
 0x10d   : > { %13573 = vmatprep.mubr.f32.mxu1 %v792_v51  ;;  %v6947_v51 = vsub.f32 %v17254_v33, %v22955_v41 }
 0x10e   : > { %13763 = vmatmul.mubr.f32.gmra.mrb[26].mxu0 %v780_v14  ;;  %23727 = vst [vmem:[#allocation23_spill] sm:$0xff] %v17232_v28  ;;  %v6564_v14 = vand.u32 4294901760, %v3859_v32 }
 0x10f   : > { %13765 = vmatprep.mubr.f32.mxu0 %v790_v35 }
 0x110   : > { %13574 = vmatmul.mubr.f32.gmra.mrb[28].mxu1 %v802_v43  ;;  %v17246_v37 = vpack.c.bf16 %v6564_v14, %v6561_v31  ;;  %v17270_v43 = vsub.f32 %v3858_v16, %v6561_v31  ;;  %v17272_v42 = vsub.f32 %v3859_v32, %v6564_v14  ;;  %v2380_v16 = vld [vmem:[#allocation2 + $0x7] sm:$0xff]  ;;  %v3957_v32 = vand.u32 4294901760, %v3824_v45 }
 0x111   : > { %13576 = vmatprep.mubr.f32.mxu1 %v812_v38  ;;  %v6948_v38 = vand.u32 4294901760, %v6947_v51  ;;  %2412 = vst.msk [vmem:[#allocation3] sm:$0xff] %vm2305_vm1, %v2380_v16  ;;  %v22960_v14 = vmov 0.0|0.0  }
 0x112   : > { %13766 = vmatmul.mubr.f32.gmra.mrb[28].mxu0 %v800_v20  ;;  %23728 = vst [vmem:[#allocation24_spill] sm:$0xff] %v17246_v37  ;;  %v17256_v20 = vsub.f32 %v3857_v6, %v6558_v7  ;;  %23731 = vst [vmem:[#allocation31_spill] sm:$0xff] %v17270_v43  ;;  %v22953_v26 = vand.u32 4294901760, %v17270_v43  ;;  %v22952_v62 = vand.u32 4294901760, %v17272_v42  ;;  %v3825_v6 = vld [vmem:[%s22897_s2 + $0x8] sm:$0xff]  ;;  %14883 = vmatprep.subr.bf16.mxu1 %v22960_v14 }
 0x113   : > { %13768 = vmatprep.mubr.f32.mxu0 %v810_v24  ;;  %23732 = vst [vmem:[#allocation32_spill] sm:$0xff] %v17272_v42  ;;  %v3960_v31 = vand.u32 4294901760, %v3825_v6 }
 0x114   : > { %13577 = vmatmul.mubr.f32.gmra.mrb[30].mxu1 %v822_v54  ;;  %23730 = vst [vmem:[#allocation28_spill] sm:$0xff] %v17256_v20  ;;  %v22954_v60 = vand.u32 4294901760, %v17256_v20 }
 0x115   : > { %v17326_v51 = vpack.c.bf16 %v3960_v31, %v3957_v32 }
 0x116   : > { %13769 = vmatmul.mubr.f32.gmra.mrb[30].mxu0 %v820_v47  ;;  %v6954_v47 = vsub.f32 %v17256_v20, %v22954_v60 }
 0x117   : > { %13787 = vmatprep.mubr.f32.mxu0 %v16519_v52  ;;  %23733 = vst [vmem:[#allocation35_spill] sm:$0xff] %v17326_v51  ;;  %14885 = vmatpush1.bf16.msra.mxu1 %v17326_v51 }
 0x118   : > { %v6955_v54 = vand.u32 4294901760, %v6954_v47  ;;  %v17328_v47 = vsub.f32 %v3824_v45, %v3957_v32  ;;  %14886 = vmatprep.subr.bf16.mxu1 %v22960_v14 }
 0x11a   : > { %13788 = vmatmul.mubr.f32.vlgmr.msra.gmra.mrb[0].mxu0 %v16543_v2  ;;  %23734 = vst [vmem:[#allocation38_spill] sm:$0xff] %v17328_v47 }
 0x11b   : > { %14870 = vmatpush3.bf16.msra.mxu0 %v16452_v12  ;;  %13790 = vmatprep.mubr.f32.mxu0 %v16546_v3  ;;  %v23711_v12 = vld [vmem:[#allocation15_spill] sm:$0xff] }
 0x11c   : > { %14872 = vmatprep.subr.bf16.mxu0 %v16466_v18 }
 0x11e   : > { %13791 = vmatmul.mubr.f32.gmra.mrb[2].mxu0 %v16560_v9 }
 0x11f   : > { %13793 = vmatprep.mubr.f32.mxu0 %v16564_v10  ;;  %14874 = vmatpush3.bf16.msra.mxu0 %v16466_v18  ;;  %v23712_v18 = vld [vmem:[#allocation16_spill] sm:$0xff] }
 0x120   : > { %14876 = vmatprep.subr.bf16.mxu0 %v16495_v34 }
 0x122   : > { %13794 = vmatmul.mubr.f32.gmra.mrb[4].mxu0 %v16578_v29 }
 0x123   : > { %13796 = vmatprep.mubr.f32.mxu0 %v16582_v30  ;;  %14878 = vmatpush3.bf16.msra.mxu0 %v16495_v34  ;;  %v23713_v34 = vld [vmem:[#allocation17_spill] sm:$0xff] }
 0x124   : > { %14880 = vmatprep.subr.bf16.mxu0 %v16521_v53 }
 0x126   : > { %13797 = vmatmul.mubr.f32.gmra.mrb[6].mxu0 %v16596_v39 }
 0x127   : > { %13799 = vmatprep.mubr.f32.mxu0 %v16600_v40  ;;  %14882 = vmatpush3.bf16.msra.mxu0 %v16521_v53  ;;  %v23714_v53 = vld [vmem:[#allocation18_spill] sm:$0xff] }
 0x128   : > { %15172 = vmatprep.subr.bf16.mxu0 %v17232_v28 }
 0x12a   : > { %13800 = vmatmul.mubr.f32.gmra.mrb[8].mxu0 %v16618_v49 }
 0x12b   : > { %13802 = vmatprep.mubr.f32.mxu0 %v16622_v50 }
 0x12e   : > { %13803 = vmatmul.mubr.f32.gmra.mrb[10].mxu0 %v16635_v22 }
 0x12f   : > { %13805 = vmatprep.mubr.f32.mxu0 %v16645_v56 }
 0x132   : > { %13806 = vmatmul.mubr.f32.gmra.mrb[12].mxu0 %v16657_v15 }
 0x133   : > { %13808 = vmatprep.mubr.f32.mxu0 %v16661_v19 }
 0x136   : > { %13809 = vmatmul.mubr.f32.gmra.mrb[14].mxu0 %v16673_v1 }
 0x137   : > { %13811 = vmatprep.mubr.f32.mxu0 %v23711_v12 }
 0x13a   : > { %13812 = vmatmul.mubr.f32.gmra.mrb[16].mxu0 %v23712_v18 }
 0x13b   : > { %13814 = vmatprep.mubr.f32.mxu0 %v23713_v34 }
 0x13e   : > { %13815 = vmatmul.mubr.f32.gmra.mrb[18].mxu0 %v23714_v53 }
 0x13f   : > { %13817 = vmatprep.mubr.f32.mxu0 %v23715_v63 }
 0x142   : > { %13818 = vmatmul.mubr.f32.gmra.mrb[20].mxu0 %v23716_v4 }
 0x143   : > { %13820 = vmatprep.mubr.f32.mxu0 %v23717_v59 }
 0x146   : > { %13821 = vmatmul.mubr.f32.gmra.mrb[22].mxu0 %v23718_v13 }
 0x147   : > { %13823 = vmatprep.mubr.f32.mxu0 %v23719_v0 }
 0x14a   : > { %13824 = vmatmul.mubr.f32.gmra.mrb[24].mxu0 %v23720_v57 }
 0x14b   : > { %13826 = vmatprep.mubr.f32.mxu0 %v23721_v46 }
 0x14e   : > { %13827 = vmatmul.mubr.f32.gmra.mrb[26].mxu0 %v23722_v27 }
 0x14f   : > { %13829 = vmatprep.mubr.f32.mxu0 %v23723_v5 }
 0x152   : > { %13830 = vmatmul.mubr.f32.gmra.mrb[28].mxu0 %v23724_v58 }
 0x153   : > { %13832 = vmatprep.mubr.f32.mxu0 %v23725_v11 }
 0x156   : > { %13833 = vmatmul.mubr.f32.gmra.mrb[30].mxu0 %v23726_v23 }
 0x157   : > { %13851 = vmatprep.mubr.f32.mxu0 %v16519_v52 }
 0x15a   : > { %13852 = vmatmul.mubr.f32.vlgmr.msra.gmra.mrb[0].mxu0 %v16543_v2 }
 0x15b   : > { %13854 = vmatprep.mubr.f32.mxu0 %v16546_v3  ;;  %v2445_v3 = vld [vmem:[#allocation2 + $0x10] sm:$0xff]  ;;  %15174 = vmatpush3.bf16.msra.mxu0 %v17232_v28 }
 0x15c   : > { %2510 = vrot.lane.b32.xlu1 %v2445_v3, %s16265_s19  ;;  %15176 = vmatprep.subr.bf16.mxu0 %v17246_v37 }
 0x15e   : > { %13855 = vmatmul.mubr.f32.gmra.mrb[2].mxu0 %v16560_v9  ;;  %v3310_v9 = vld [vmem:[#allocation2 + $0x227] sm:$0xff] }
 0x15f   : > { %13857 = vmatprep.mubr.f32.mxu0 %v16564_v10  ;;  %3404 = vrot.lane.b32.xlu0 %v3310_v9, %s16264_s16  ;;  %v3694_v9 = vld [vmem:[#allocation2 + $0x229] sm:$0xff] }
 0x160   : > { %15178 = vmatpush3.bf16.msra.mxu0 %v17246_v37  ;;  %3726 = vst.msk [vmem:[#allocation3 + $0x2e0] sm:$0xff] %vm2305_vm1, %v3694_v9 }
 0x162   : > { %13858 = vmatmul.mubr.f32.gmra.mrb[4].mxu0 %v16578_v29 }
 0x163   : > { %13860 = vmatprep.mubr.f32.mxu0 %v16582_v30  ;;  %v2638_v30 = vld [vmem:[#allocation2 + $0x11] sm:$0xff] }
 0x164   : > { %2703 = vrot.lane.b32.xlu1 %v2638_v30, %s16264_s16  ;;  %v3695_v30 = vld [vmem:[#allocation2 + $0x231] sm:$0xff] }
 0x165   : > { %3727 = vst.msk [vmem:[#allocation3 + $0x2f8] sm:$0xff] %vm2305_vm1, %v3695_v30 }
 0x166   : > { %13861 = vmatmul.mubr.f32.gmra.mrb[6].mxu0 %v16596_v39  ;;  %v3502_v39 = vld [vmem:[#allocation2 + $0x228] sm:$0xff] }
 0x167   : > { %13863 = vmatprep.mubr.f32.mxu0 %v16600_v40  ;;  %3596 = vrot.lane.b32.xlu0 %v3502_v39, %s16266_s20  ;;  %v17315_v39 = vpack.c.bf16 %v17272_v42, %v17270_v43 }
 0x169   : > { %v17130_v52 = vpop.f32.mrb[0].mxu1 }
 0x16a   : > { %13864 = vmatmul.mubr.f32.gmra.mrb[8].mxu0 %v16618_v49  ;;  %v17132_v2 = vpop.f32.mrb[1].mxu1 }
 0x16b   : > { %13866 = vmatprep.mubr.f32.mxu0 %v16622_v50 }
 0x16e   : > { %13867 = vmatmul.mubr.f32.gmra.mrb[10].mxu0 %v16635_v22 }
 0x16f   : > { %13869 = vmatprep.mubr.f32.mxu0 %v16645_v56  ;;  %v17200_v10 = vpop.f32.mrb[2].mxu1 }
 0x170   : > { %v17202_v29 = vpop.f32.mrb[3].mxu1  ;;  %v2702_v44 = vpop.permute.xlu1 %2701 }
 0x171   : > { %v2509_v7 = vpop.permute.xlu0 %2508 }
 0x172   : > { %13870 = vmatmul.mubr.f32.gmra.mrb[12].mxu0 %v16657_v15  ;;  %2605 = vst.msk [vmem:[#allocation3] sm:$0xff] %vm2604_vm4, %v2509_v7  ;;  %v3828_v7 = vld [vmem:[%s22897_s2 + $0x20] sm:$0xff] }
 0x173   : > { %13872 = vmatprep.mubr.f32.mxu0 %v16661_v19  ;;  %2798 = vst.msk [vmem:[#allocation3] sm:$0xff] %vm2797_vm5, %v2702_v44  ;;  %v3829_v44 = vld [vmem:[%s22897_s2 + $0x28] sm:$0xff]  ;;  %v3969_v16 = vand.u32 4294901760, %v3828_v7 }
 0x174   : > { %v3972_v32 = vand.u32 4294901760, %v3829_v44 }
 0x176   : > { %13873 = vmatmul.mubr.f32.gmra.mrb[14].mxu0 %v16673_v1 }
 0x177   : > { %13875 = vmatprep.mubr.f32.mxu0 %v23711_v12 }
 0x17a   : > { %13876 = vmatmul.mubr.f32.gmra.mrb[16].mxu0 %v23712_v18  ;;  %v17280_v18 = vpack.c.bf16 %v6955_v54, %v6948_v38  ;;  %v17330_v38 = vsub.f32 %v3825_v6, %v3960_v31  ;;  %v3826_v54 = vld [vmem:[%s22897_s2 + $0x10] sm:$0xff] }
 0x17b   : > { %13878 = vmatprep.mubr.f32.mxu0 %v23713_v34  ;;  %v6961_v34 = vsub.f32 %v17270_v43, %v22953_v26 }
 0x17c   : > { %15180 = vmatprep.subr.bf16.mxu0 %v17280_v18  ;;  %23735 = vst [vmem:[#allocation14_spill] sm:$0xff] %v17330_v38 }
 0x17e   : > { %13879 = vmatmul.mubr.f32.gmra.mrb[18].mxu0 %v23714_v53  ;;  %v6968_v53 = vsub.f32 %v17272_v42, %v22952_v62  ;;  %v3833_v62 = vld [vmem:[%s22897_s2 + $0x48] sm:$0xff] }
 0x17f   : > { %13881 = vmatprep.mubr.f32.mxu0 %v23715_v63 }
 0x182   : > { %13882 = vmatmul.mubr.f32.gmra.mrb[20].mxu0 %v23716_v4  ;;  %v6962_v4 = vand.u32 4294901760, %v6961_v34  ;;  %v3827_v34 = vld [vmem:[%s22897_s2 + $0x18] sm:$0xff] }
 0x183   : > { %13884 = vmatprep.mubr.f32.mxu0 %v23717_v59  ;;  %v6969_v59 = vand.u32 4294901760, %v6968_v53  ;;  %v2381_v53 = vld [vmem:[#allocation2 + $0xf] sm:$0xff] }
 0x184   : > { %2413 = vst.msk [vmem:[#allocation3 + $0x18] sm:$0xff] %vm2305_vm1, %v2381_v53  ;;  %v17362_v53 = vsub.f32 %v3829_v44, %v3972_v32 }
 0x186   : > { %13885 = vmatmul.mubr.f32.gmra.mrb[22].mxu0 %v23718_v13  ;;  %23741 = vst [vmem:[#allocation17_spill] sm:$0xff] %v17362_v53 }
 0x187   : > { %13887 = vmatprep.mubr.f32.mxu0 %v23719_v0  ;;  %v17293_v0 = vpack.c.bf16 %v6969_v59, %v6962_v4  ;;  %v3963_v4 = vand.u32 4294901760, %v3826_v54  ;;  %v3966_v59 = vand.u32 4294901760, %v3827_v34 }
 0x189   : > { %v17343_v30 = vpack.c.bf16 %v3966_v59, %v3963_v4  ;;  %v17345_v45 = vsub.f32 %v3826_v54, %v3963_v4  ;;  %v17347_v6 = vsub.f32 %v3827_v34, %v3966_v59  ;;  %v17358_v54 = vpack.c.bf16 %v3972_v32, %v3969_v16  ;;  %v3830_v4 = vld [vmem:[%s22897_s2 + $0x30] sm:$0xff]  ;;  %v3831_v59 = vld [vmem:[%s22897_s2 + $0x38] sm:$0xff]  ;;  %v3832_v32 = vld [vmem:[%s22897_s2 + $0x40] sm:$0xff] }
 0x18a   : > { %13888 = vmatmul.mubr.f32.gmra.mrb[24].mxu0 %v23720_v57  ;;  %v17360_v34 = vsub.f32 %v3828_v7, %v3969_v16  ;;  %v3978_v36 = vand.u32 4294901760, %v3831_v59 }
 0x18b   : > { %13890 = vmatprep.mubr.f32.mxu0 %v23721_v46  ;;  %23736 = vst [vmem:[#allocation19_spill] sm:$0xff] %v17343_v30  ;;  %23737 = vst [vmem:[#allocation12_spill] sm:$0xff] %v17345_v45  ;;  %14888 = vmatpush1.bf16.msra.mxu1 %v17343_v30 }
 0x18c   : > { %23738 = vst [vmem:[#allocation13_spill] sm:$0xff] %v17347_v6  ;;  %14889 = vmatprep.subr.bf16.mxu1 %v22960_v14  ;;  %23739 = vst [vmem:[#allocation15_spill] sm:$0xff] %v17358_v54  ;;  %v17376_v44 = vsub.f32 %v3831_v59, %v3978_v36 }
 0x18d   : > { %23740 = vst [vmem:[#allocation16_spill] sm:$0xff] %v17360_v34 }
 0x18e   : > { %13891 = vmatmul.mubr.f32.gmra.mrb[26].mxu0 %v23722_v27  ;;  %23744 = vst [vmem:[#allocation21_spill] sm:$0xff] %v17376_v44 }
 0x18f   : > { %13893 = vmatprep.mubr.f32.mxu0 %v23723_v5  ;;  %14891 = vmatpush1.bf16.msra.mxu1 %v17358_v54 }
 0x190   : > { %14892 = vmatprep.subr.bf16.mxu1 %v22960_v14 }
 0x192   : > { %13894 = vmatmul.mubr.f32.gmra.mrb[28].mxu0 %v23724_v58 }
 0x193   : > { %13896 = vmatprep.mubr.f32.mxu0 %v23725_v11 }
 0x196   : > { %13897 = vmatmul.mubr.f32.gmra.mrb[30].mxu0 %v23726_v23 }
 0x1b1   : > { %v17206_v40 = vpop.f32.mrb[4].mxu1 }
 0x1b2   : > { %v17208_v49 = vpop.f32.mrb[5].mxu1 }
 0x1b7   : > { %v17210_v50 = vpop.f32.mrb[6].mxu1 }
 0x1b8   : > { %v17212_v22 = vpop.f32.mrb[7].mxu1 }
 0x1bb   : > { %v17214_v56 = vpop.f32.mrb[8].mxu1 }
 0x1bc   : > { %v17216_v15 = vpop.f32.mrb[9].mxu1 }
 0x1bf   : > { %v17218_v19 = vpop.f32.mrb[10].mxu1 }
 0x1c0   : > { %v17220_v1 = vpop.f32.mrb[11].mxu1 }
 0x1c3   : > { %v17222_v55 = vpop.f32.mrb[12].mxu1 }
 0x1c4   : > { %v17230_v25 = vpop.f32.mrb[13].mxu1 }
 0x1c7   : > { %v17240_v8 = vpop.f32.mrb[14].mxu1 }
 0x1c8   : > { %v17243_v48 = vpop.f32.mrb[15].mxu1 }
 0x1cb   : > { %v17248_v61 = vpop.f32.mrb[16].mxu1 }
 0x1cc   : > { %v17251_v35 = vpop.f32.mrb[17].mxu1 }
 0x1ce   : > { %v2511_v9 = vpop.permute.xlu1 %2510 }
 0x1cf   : > { %v17258_v17 = vpop.f32.mrb[18].mxu1  ;;  %2606 = vst.msk [vmem:[#allocation3 + $0x18] sm:$0xff] %vm2604_vm4, %v2511_v9  ;;  %v3975_v9 = vand.u32 4294901760, %v3830_v4 }
 0x1d0   : > { %v17262_v24 = vpop.f32.mrb[19].mxu1 }
 0x1d1   : > { %v17374_v7 = vsub.f32 %v3830_v4, %v3975_v9  ;;  %v3981_v4 = vand.u32 4294901760, %v3832_v32 }
 0x1d3   : > { %v17274_v21 = vpop.f32.mrb[20].mxu1  ;;  %23743 = vst [vmem:[#allocation20_spill] sm:$0xff] %v17374_v7  ;;  %v17391_v41 = vsub.f32 %v3832_v32, %v3981_v4 }
 0x1d4   : > { %v17278_v12 = vpop.f32.mrb[21].mxu1 }
 0x1d5   : > { %23746 = vst [vmem:[#allocation25_spill] sm:$0xff] %v17391_v41 }
 0x1d6   : > { %v2704_v31 = vpop.permute.xlu1 %2703 }
 0x1d7   : > { %v17288_v63 = vpop.f32.mrb[22].mxu1  ;;  %2799 = vst.msk [vmem:[#allocation3 + $0x18] sm:$0xff] %vm2797_vm5, %v2704_v31  ;;  %v17372_v31 = vpack.c.bf16 %v3978_v36, %v3975_v9  ;;  %v3984_v9 = vand.u32 4294901760, %v3833_v62 }
 0x1d8   : > { %v17291_v13 = vpop.f32.mrb[23].mxu1 }
 0x1d9   : > { %23742 = vst [vmem:[#allocation18_spill] sm:$0xff] %v17372_v31  ;;  %14894 = vmatpush1.bf16.msra.mxu1 %v17372_v31  ;;  %v17389_v59 = vpack.c.bf16 %v3984_v9, %v3981_v4  ;;  %v17393_v31 = vsub.f32 %v3833_v62, %v3984_v9 }
 0x1da   : > { %14895 = vmatprep.subr.bf16.mxu1 %v22960_v14 }
 0x1db   : > { %v17295_v57 = vpop.f32.mrb[24].mxu1  ;;  %23745 = vst [vmem:[#allocation22_spill] sm:$0xff] %v17389_v59  ;;  %23747 = vst [vmem:[#allocation26_spill] sm:$0xff] %v17393_v31 }
 0x1dc   : > { %v17297_v46 = vpop.f32.mrb[25].mxu1 }
 0x1dd   : > { %14897 = vmatpush1.bf16.msra.mxu1 %v17389_v59  ;;  %v23751_v59 = vmov 0.0|0.0  }
 0x1de   : > { %14898 = vmatprep.subr.bf16.mxu1 %v22960_v14 }
 0x1df   : > { %v17299_v27 = vpop.f32.mrb[26].mxu1 }
 0x1e0   : > { %v17301_v5 = vpop.f32.mrb[27].mxu1 }
 0x1e3   : > { %v17303_v58 = vpop.f32.mrb[28].mxu1 }
 0x1e4   : > { %v17305_v11 = vpop.f32.mrb[29].mxu1 }
 0x1e7   : > { %v17307_v23 = vpop.f32.mrb[30].mxu1 }
 0x1e8   : > { %v17309_v3 = vpop.f32.mrb[31].mxu1 }
 0x22d   : > { %v13853_v16 = vpop.f32.mrb[0].mxu0 }
 0x22e   : > { %v15379_v26 = vadd.f32 %v13853_v16, %v17130_v52  ;;  %v2115_v60 = vpop.f32.mrb[1].mxu0  ;;  %v3834_v52 = vld [vmem:[%s22897_s2 + $0x50] sm:$0xff]  ;;  %v3835_v16 = vld [vmem:[%s22897_s2 + $0x58] sm:$0xff] }
 0x22f   : > { %v15380_v36 = vadd.f32 %v2115_v60, %v17132_v2  ;;  %v3990_v32 = vand.u32 4294901760, %v3835_v16 }
 0x230   : > { %2349 = vst.msk [vmem:[#allocation2 + $0x30] sm:$0xff] %vm2305_vm1, %v15379_v26  ;;  %v3987_v26 = vand.u32 4294901760, %v3834_v52 }
 0x231   : > { %2348 = vst.msk [vmem:[#allocation2 + $0x28] sm:$0xff] %vm2305_vm1, %v15380_v36  ;;  %v13856_v54 = vpop.f32.mrb[2].mxu0  ;;  %v17411_v36 = vsub.f32 %v3835_v16, %v3990_v32 }
 0x232   : > { %v15381_v2 = vadd.f32 %v13856_v54, %v17200_v10  ;;  %v2127_v60 = vpop.f32.mrb[3].mxu0  ;;  %v17407_v4 = vpack.c.bf16 %v3990_v32, %v3987_v26  ;;  %v17409_v9 = vsub.f32 %v3834_v52, %v3987_v26  ;;  %v3836_v54 = vld [vmem:[%s22897_s2 + $0x60] sm:$0xff] }
 0x233   : > { %v15382_v62 = vadd.f32 %v2127_v60, %v17202_v29  ;;  %23750 = vst [vmem:[#allocation33_spill] sm:$0xff] %v17411_v36  ;;  %v3837_v29 = vld [vmem:[%s22897_s2 + $0x68] sm:$0xff]  ;;  %v3993_v52 = vand.u32 4294901760, %v3836_v54 }
 0x234   : > { %2351 = vst.msk [vmem:[#allocation2 + $0x50] sm:$0xff] %vm2305_vm1, %v15381_v2  ;;  %23748 = vst [vmem:[#allocation29_spill] sm:$0xff] %v17407_v4  ;;  %14900 = vmatpush1.bf16.msra.mxu1 %v17407_v4  ;;  %v3996_v26 = vand.u32 4294901760, %v3837_v29 }
 0x235   : > { %23749 = vst [vmem:[#allocation30_spill] sm:$0xff] %v17409_v9  ;;  %2350 = vst.msk [vmem:[#allocation2 + $0x48] sm:$0xff] %vm2305_vm1, %v15382_v62  ;;  %v13859_v10 = vpop.f32.mrb[4].mxu0  ;;  %14901 = vmatprep.subr.bf16.mxu1 %v23751_v59 }
 0x236   : > { %v15383_v60 = vadd.f32 %v13859_v10, %v17206_v40  ;;  %v2139_v2 = vpop.f32.mrb[5].mxu0  ;;  %v17430_v40 = vpack.c.bf16 %v3996_v26, %v3993_v52  ;;  %v17432_v10 = vsub.f32 %v3836_v54, %v3993_v52 }
 0x237   : > { %v15384_v16 = vadd.f32 %v2139_v2, %v17208_v49  ;;  %v3088_v32 = vld [vmem:[#allocation2 + $0x31] sm:$0xff]  ;;  %v17434_v49 = vsub.f32 %v3837_v29, %v3996_v26 }
 0x238   : > { %v2447_v62 = vld [vmem:[#allocation2 + $0x30] sm:$0xff]  ;;  %2353 = vst.msk [vmem:[#allocation2 + $0x70] sm:$0xff] %vm2305_vm1, %v15383_v60  ;;  %3153 = vrot.lane.b32.xlu0 %v3088_v32, %s16265_s19  ;;  %23752 = vst [vmem:[#allocation34_spill] sm:$0xff] %v17430_v40  ;;  %v17437_v4 = vld [vmem:[#allocation2 + $0x28] sm:$0xff]  ;;  %14903 = vmatpush1.bf16.msra.mxu1 %v17430_v40 }
 0x239   : > { %v3024_v14 = vld [vmem:[#allocation2 + $0x30] sm:$0xff]  ;;  %2514 = vrot.lane.b32.xlu1 %v2447_v62, %s16265_s19  ;;  %23753 = vst [vmem:[#allocation36_spill] sm:$0xff] %v17432_v10  ;;  %23754 = vst [vmem:[#allocation37_spill] sm:$0xff] %v17434_v49  ;;  %v13862_v2 = vpop.f32.mrb[6].mxu0  ;;  %v2382_v60 = vld [vmem:[#allocation2 + $0x27] sm:$0xff]  ;;  %14904 = vmatprep.subr.bf16.mxu1 %v23751_v59 }
 0x23a   : > { %v17427_v30 = vld [vmem:[#allocation2 + $0x2f] sm:$0xff]  ;;  %3056 = vst.msk [vmem:[#allocation3 + $0x20] sm:$0xff] %vm2305_vm1, %v3024_v14  ;;  %2352 = vst.msk [vmem:[#allocation2 + $0x68] sm:$0xff] %vm2305_vm1, %v15384_v16  ;;  %v15385_v62 = vadd.f32 %v13862_v2, %v17210_v50  ;;  %v2151_v51 = vpop.f32.mrb[7].mxu0  ;;  %v3839_v16 = vld [vmem:[%s22897_s2 + $0x78] sm:$0xff] }
 0x23b   : > { %2415 = vst.msk [vmem:[#allocation3 + $0x48] sm:$0xff] %vm2305_vm1, %v17427_v30  ;;  %3055 = vst.msk [vmem:[#allocation3 + $0x8] sm:$0xff] %vm2305_vm1, %v17437_v4  ;;  %v15386_v14 = vadd.f32 %v2151_v51, %v17212_v22  ;;  %v17447_v54 = vld [vmem:[#allocation2 + $0x29] sm:$0xff]  ;;  %v17449_v29 = vld [vmem:[#allocation2 + $0x51] sm:$0xff] }
 0x23c   : > { %2414 = vst.msk [vmem:[#allocation3 + $0x30] sm:$0xff] %vm2305_vm1, %v2382_v60  ;;  %v3026_v52 = vld [vmem:[#allocation2 + $0x50] sm:$0xff]  ;;  %2355 = vst.msk [vmem:[#allocation2 + $0x90] sm:$0xff] %vm2305_vm1, %v15385_v62  ;;  %3151 = vrot.lane.b32.xlu0 %v17447_v54, %s16265_s19  ;;  %v2830_v22 = vld [vmem:[#allocation2 + $0x27] sm:$0xff]  ;;  %v4002_v62 = vand.u32 4294901760, %v3839_v16 }
 0x23d   : > { %v17452_v26 = vld [vmem:[#allocation2 + $0x49] sm:$0xff]  ;;  %2707 = vrot.lane.b32.xlu1 %v3088_v32, %s16264_s16  ;;  %3697 = vst.msk [vmem:[#allocation3 + $0x28] sm:$0xff] %vm2305_vm1, %v17449_v29  ;;  %3058 = vst.msk [vmem:[#allocation3 + $0x50] sm:$0xff] %vm2305_vm1, %v3026_v52  ;;  %v13865_v50 = vpop.f32.mrb[8].mxu0 }
 0x23e   : > { %3696 = vst.msk [vmem:[#allocation3 + $0x10] sm:$0xff] %vm2305_vm1, %v17452_v26  ;;  %2354 = vst.msk [vmem:[#allocation2 + $0x88] sm:$0xff] %vm2305_vm1, %v15386_v14  ;;  %v3838_v51 = vld [vmem:[%s22897_s2 + $0x70] sm:$0xff]  ;;  %v15387_v32 = vadd.f32 %v13865_v50, %v17214_v56  ;;  %v2163_v2 = vpop.f32.mrb[9].mxu0  ;;  %v3025_v40 = vld [vmem:[#allocation2 + $0x48] sm:$0xff] }
 0x23f   : > { %v3999_v60 = vand.u32 4294901760, %v3838_v51  ;;  %v2385_v52 = vld [vmem:[#allocation2 + $0x4f] sm:$0xff]  ;;  %v2384_v49 = vld [vmem:[#allocation2 + $0x47] sm:$0xff]  ;;  %v15388_v14 = vadd.f32 %v2163_v2, %v17216_v15  ;;  %3057 = vst.msk [vmem:[#allocation3 + $0x38] sm:$0xff] %vm2305_vm1, %v3025_v40  ;;  %v17491_v40 = vsub.f32 %v3839_v16, %v4002_v62 }
 0x240   : > { %v17471_v10 = vld [vmem:[#allocation2 + $0x71] sm:$0xff]  ;;  %2417 = vst.msk [vmem:[#allocation3 + $0x78] sm:$0xff] %vm2305_vm1, %v2385_v52  ;;  %2416 = vst.msk [vmem:[#allocation3 + $0x60] sm:$0xff] %vm2305_vm1, %v2384_v49  ;;  %v17547_v31 = vld [vmem:[#allocation2 + $0x48] sm:$0xff] }
 0x241   : > { %v17474_v36 = vld [vmem:[#allocation2 + $0x50] sm:$0xff]  ;;  %3699 = vst.msk [vmem:[#allocation3 + $0x58] sm:$0xff] %vm2305_vm1, %v17471_v10  ;;  %2357 = vst.msk [vmem:[#allocation2 + $0xb0] sm:$0xff] %vm2305_vm1, %v15387_v32  ;;  %2894 = vrot.lane.b32.xlu1 %v2830_v22, %s16266_s20  ;;  %v17487_v15 = vpack.c.bf16 %v4002_v62, %v3999_v60  ;;  %v17489_v50 = vsub.f32 %v3838_v51, %v3999_v60  ;;  %v13868_v49 = vpop.f32.mrb[10].mxu0  ;;  %v3840_v22 = vld [vmem:[%s22897_s2 + $0x80] sm:$0xff] }
 0x242   : > { %v3028_v9 = vld [vmem:[#allocation2 + $0x70] sm:$0xff]  ;;  %3538 = vrot.lane.b32.xlu0 %v17474_v36, %s16266_s20  ;;  %23757 = vst [vmem:[#allocation41_spill] sm:$0xff] %v17491_v40  ;;  %2356 = vst.msk [vmem:[#allocation2 + $0xa8] sm:$0xff] %vm2305_vm1, %v15388_v14  ;;  %v3841_v32 = vld [vmem:[%s22897_s2 + $0x88] sm:$0xff]  ;;  %v15389_v51 = vadd.f32 %v13868_v49, %v17218_v19  ;;  %v2175_v16 = vpop.f32.mrb[11].mxu0 }
 0x243   : > { %v17481_v56 = vld [vmem:[#allocation2 + $0x69] sm:$0xff]  ;;  %23755 = vst [vmem:[#allocation39_spill] sm:$0xff] %v17487_v15  ;;  %23756 = vst [vmem:[#allocation40_spill] sm:$0xff] %v17489_v50  ;;  %14906 = vmatpush1.bf16.msra.mxu1 %v17487_v15  ;;  %v4008_v2 = vand.u32 4294901760, %v3841_v32  ;;  %v17505_v14 = vld [vmem:[#allocation2 + $0x91] sm:$0xff]  ;;  %v15390_v40 = vadd.f32 %v2175_v16, %v17220_v1 }
 0x244   : > { %3060 = vst.msk [vmem:[#allocation3 + $0x80] sm:$0xff] %vm2305_vm1, %v3028_v9  ;;  %3698 = vst.msk [vmem:[#allocation3 + $0x40] sm:$0xff] %vm2305_vm1, %v17481_v56  ;;  %v4005_v9 = vand.u32 4294901760, %v3840_v22  ;;  %v3027_v60 = vld [vmem:[#allocation2 + $0x68] sm:$0xff]  ;;  %14907 = vmatprep.subr.bf16.mxu1 %v23751_v59 }
 0x245   : > { %v2387_v62 = vld [vmem:[#allocation2 + $0x6f] sm:$0xff]  ;;  %v2386_v52 = vld [vmem:[#allocation2 + $0x67] sm:$0xff]  ;;  %3059 = vst.msk [vmem:[#allocation3 + $0x68] sm:$0xff] %vm2305_vm1, %v3027_v60  ;;  %3701 = vst.msk [vmem:[#allocation3 + $0x88] sm:$0xff] %vm2305_vm1, %v17505_v14  ;;  %2896 = vrot.lane.b32.xlu1 %v17427_v30, %s16266_s20 }
 0x246   : > { %v3733_v50 = vld [vmem:[#allocation3 + $0x28] sm:$0xff]  ;;  %2419 = vst.msk [vmem:[#allocation3 + $0xa8] sm:$0xff] %vm2305_vm1, %v2387_v62  ;;  %2418 = vst.msk [vmem:[#allocation3 + $0x90] sm:$0xff] %vm2305_vm1, %v2386_v52  ;;  %3157 = vrot.lane.b32.xlu0 %v17449_v29, %s16265_s19  ;;  %v3730_v1 = vld [vmem:[#allocation3 + $0x10] sm:$0xff]  ;;  %v17522_v16 = vpack.c.bf16 %v4008_v2, %v4005_v9  ;;  %v17524_v60 = vsub.f32 %v3840_v22, %v4005_v9  ;;  %v17526_v62 = vsub.f32 %v3841_v32, %v4008_v2 }
 0x247   : > { %v17514_v19 = vld [vmem:[#allocation2 + $0x89] sm:$0xff]  ;;  %2359 = vst.msk [vmem:[#allocation2 + $0xd0] sm:$0xff] %vm2305_vm1, %v15389_v51  ;;  %v3864_v49 = vsel %vm2305_vm1, %v3733_v50, 0  ;;  %2358 = vst.msk [vmem:[#allocation2 + $0xc8] sm:$0xff] %vm2305_vm1, %v15390_v40  ;;  %v13871_v51 = vpop.f32.mrb[12].mxu0  ;;  %v3861_v30 = vsel %vm2305_vm1, %v3730_v1, 0 }
 0x248   : > { %23758 = vst [vmem:[#allocation42_spill] sm:$0xff] %v17522_v16  ;;  %23759 = vst [vmem:[#allocation43_spill] sm:$0xff] %v17524_v60  ;;  %v17532_v52 = vand.u32 4294901760, %v3864_v49  ;;  %v3842_v50 = vld [vmem:[%s22897_s2 + $0x90] sm:$0xff]  ;;  %v15391_v15 = vadd.f32 %v13871_v51, %v17222_v55  ;;  %v2187_v22 = vpop.f32.mrb[13].mxu0  ;;  %v17538_v9 = vand.u32 4294901760, %v3861_v30  ;;  %14909 = vmatpush1.bf16.msra.mxu1 %v17522_v16 }
 0x249   : > { %23760 = vst [vmem:[#allocation44_spill] sm:$0xff] %v17526_v62  ;;  %3700 = vst.msk [vmem:[#allocation3 + $0x70] sm:$0xff] %vm2305_vm1, %v17514_v19  ;;  %v3843_v40 = vld [vmem:[%s22897_s2 + $0x98] sm:$0xff]  ;;  %v4011_v32 = vand.u32 4294901760, %v3842_v50  ;;  %v3030_v2 = vld [vmem:[#allocation2 + $0x90] sm:$0xff]  ;;  %v15392_v60 = vadd.f32 %v2187_v22, %v17230_v25  ;;  %14910 = vmatprep.subr.bf16.mxu1 %v23751_v59  ;;  %2512 = vrot.lane.b32.xlu1 %v17437_v4, %s16265_s19  ;;  %v13874_v4 = vpop.f32.mrb[14].mxu0 }
 0x24a   : > { %23761 = vst [vmem:[#allocation45_spill] sm:$0xff] %v17532_v52  ;;  %23762 = vst [vmem:[#allocation46_spill] sm:$0xff] %v17538_v9  ;;  %v3029_v1 = vld [vmem:[#allocation2 + $0x88] sm:$0xff]  ;;  %v17544_v62 = vld [vmem:[#allocation2 + $0xb1] sm:$0xff]  ;;  %v17550_v55 = vsub.f32 %v3864_v49, %v17532_v52  ;;  %v4014_v16 = vand.u32 4294901760, %v3843_v40  ;;  %3536 = vrot.lane.b32.xlu0 %v17547_v31, %s16266_s20  ;;  %v17565_v25 = vsub.f32 %v3861_v30, %v17538_v9  ;;  %v2199_v53 = vpop.f32.mrb[15].mxu0 }
 0x24b   : > { %v3739_v51 = vld [vmem:[#allocation3 + $0x58] sm:$0xff]  ;;  %3062 = vst.msk [vmem:[#allocation3 + $0xb0] sm:$0xff] %vm2305_vm1, %v3030_v2  ;;  %3061 = vst.msk [vmem:[#allocation3 + $0x98] sm:$0xff] %vm2305_vm1, %v3029_v1  ;;  %v17557_v41 = vld [vmem:[#allocation2 + $0xa9] sm:$0xff]  ;;  %v17570_v2 = vpack.c.bf16 %v17256_v20, %v17254_v33  ;;  %v17572_v1 = vsub.f32 %v3842_v50, %v4011_v32 }
 0x24c   : > { %3703 = vst.msk [vmem:[#allocation3 + $0xb8] sm:$0xff] %vm2305_vm1, %v17544_v62  ;;  %2361 = vst.msk [vmem:[#allocation2 + $0xf0] sm:$0xff] %vm2305_vm1, %v15391_v15  ;;  %v3736_v49 = vld [vmem:[#allocation3 + $0x40] sm:$0xff]  ;;  %v3870_v22 = vsel %vm2305_vm1, %v3739_v51, 0  ;;  %v22993_v15 = vand.u32 4294901760, %v17550_v55  ;;  %v17581_v7 = vpack.c.bf16 %v4014_v16, %v4011_v32  ;;  %v15393_v51 = vadd.f32 %v13874_v4, %v17240_v8  ;;  %v17600_v4 = vld [vmem:[#allocation2 + $0x4f] sm:$0xff] }
 0x24d   : > { %23763 = vst [vmem:[#allocation47_spill] sm:$0xff] %v17565_v25  ;;  %23764 = vst [vmem:[#allocation48_spill] sm:$0xff] %v17572_v1  ;;  %v3867_v30 = vsel %vm2305_vm1, %v3736_v49, 0  ;;  %v17579_v44 = vand.u32 4294901760, %v3870_v22  ;;  %v17587_v34 = vsub.f32 %v3843_v40, %v4014_v16  ;;  %v17595_v49 = vld [vmem:[%s22897_s2 + $0xa8] sm:$0xff]  ;;  %v15394_v8 = vadd.f32 %v2199_v53, %v17243_v48  ;;  %2705 = vrot.lane.b32.xlu1 %v17447_v54, %s16264_s16  ;;  %v13877_v54 = vpop.f32.mrb[16].mxu0 }
 0x24e   : > { %3702 = vst.msk [vmem:[#allocation3 + $0xa0] sm:$0xff] %vm2305_vm1, %v17557_v41  ;;  %2360 = vst.msk [vmem:[#allocation2 + $0xe8] sm:$0xff] %vm2305_vm1, %v15392_v60  ;;  %v17585_v1 = vand.u32 4294901760, %v3867_v30  ;;  %v3844_v60 = vld [vmem:[%s22897_s2 + $0xa0] sm:$0xff]  ;;  %v17597_v32 = vld [vmem:[#allocation2 + $0xd1] sm:$0xff]  ;;  %v6636_v16 = vsub.f32 %v17550_v55, %v22993_v15  ;;  %14912 = vmatpush1.bf16.msra.mxu1 %v17581_v7  ;;  %3346 = vrot.lane.b32.xlu0 %v17600_v4, %s16264_s16  ;;  %v23769_v48 = vand.u32 4294901760, %v17565_v25 }
 0x24f   : > { %23765 = vst [vmem:[#allocation49_spill] sm:$0xff] %v17579_v44  ;;  %23766 = vst [vmem:[#allocation50_spill] sm:$0xff] %v17581_v7  ;;  %v17606_v40 = vsub.f32 %v3870_v22, %v17579_v44  ;;  %v3745_v50 = vld [vmem:[#allocation3 + $0x88] sm:$0xff]  ;;  %v4020_v45 = vand.u32 4294901760, %v17595_v49  ;;  %14913 = vmatprep.subr.bf16.mxu1 %v23751_v59 }
 0x250   : > { %23767 = vst [vmem:[#allocation51_spill] sm:$0xff] %v17585_v1  ;;  %23768 = vst [vmem:[#allocation52_spill] sm:$0xff] %v17587_v34  ;;  %v4017_v34 = vand.u32 4294901760, %v3844_v60  ;;  %v3672_v6 = vld [vmem:[#allocation2 + $0xc9] sm:$0xff]  ;;  %v6626_v53 = vsub.f32 %v17565_v25, %v23769_v48  ;;  %v17620_v22 = vsub.f32 %v3867_v30, %v17585_v1  ;;  %v3876_v7 = vsel %vm2305_vm1, %v3745_v50, 0  ;;  %v2211_v48 = vpop.f32.mrb[17].mxu0 }
 0x251   : > { %3705 = vst.msk [vmem:[#allocation3 + $0xe8] sm:$0xff] %vm2305_vm1, %v17597_v32  ;;  %2363 = vst.msk [vmem:[#allocation2 + $0x110] sm:$0xff] %vm2305_vm1, %v15393_v51  ;;  %v3742_v15 = vld [vmem:[#allocation3 + $0x70] sm:$0xff]  ;;  %v6637_v51 = vand.u32 4294901760, %v6636_v16  ;;  %v23005_v38 = vand.u32 4294901760, %v17606_v40  ;;  %v17628_v42 = vand.u32 4294901760, %v3876_v7  ;;  %v15395_v30 = vadd.f32 %v13877_v54, %v17248_v61  ;;  %2518 = vrot.lane.b32.xlu1 %v17474_v36, %s16265_s19 }
 0x252   : > { %3704 = vst.msk [vmem:[#allocation3 + $0xd0] sm:$0xff] %vm2305_vm1, %v3672_v6  ;;  %2362 = vst.msk [vmem:[#allocation2 + $0x108] sm:$0xff] %vm2305_vm1, %v15394_v8  ;;  %v3873_v47 = vsel %vm2305_vm1, %v3742_v15, 0  ;;  %v6627_v50 = vand.u32 4294901760, %v6626_v53  ;;  %v23010_v43 = vand.u32 4294901760, %v17620_v22  ;;  %v15396_v8 = vadd.f32 %v2211_v48, %v17251_v35  ;;  %3155 = vrot.lane.b32.xlu0 %v17452_v26, %s16265_s19  ;;  %v13880_v36 = vpop.f32.mrb[18].mxu0 }
 0x253   : > { %23770 = vst [vmem:[#allocation53_spill] sm:$0xff] %v17628_v42  ;;  %v17633_v20 = vand.u32 4294901760, %v3873_v47  ;;  %v3675_v6 = vld [vmem:[#allocation2 + $0xf1] sm:$0xff]  ;;  %v6656_v16 = vsub.f32 %v17606_v40, %v23005_v38  ;;  %v17640_v15 = vsub.f32 %v3876_v7, %v17628_v42  ;;  %v17642_v37 = vpack.c.bf16 %v4020_v45, %v4017_v34  ;;  %2365 = vst.msk [vmem:[#allocation2 + $0x130] sm:$0xff] %vm2305_vm1, %v15395_v30 }
 0x254   : > { %v3751_v33 = vld [vmem:[#allocation3 + $0xb8] sm:$0xff]  ;;  %3707 = vst.msk [vmem:[#allocation3 + $0x118] sm:$0xff] %vm2305_vm1, %v3675_v6  ;;  %13907 = vmatprep.mubr.f32.mxu0 %v6627_v50  ;;  %v6646_v35 = vsub.f32 %v17620_v22, %v23010_v43  ;;  %v17655_v48 = vsub.f32 %v3844_v60, %v4017_v34  ;;  %2364 = vst.msk [vmem:[#allocation2 + $0x128] sm:$0xff] %vm2305_vm1, %v15396_v8  ;;  %v2223_v34 = vpop.f32.mrb[19].mxu0 }
 0x255   : > { %23771 = vst [vmem:[#allocation54_spill] sm:$0xff] %v17633_v20  ;;  %23772 = vst [vmem:[#allocation55_spill] sm:$0xff] %v17642_v37  ;;  %v3674_v61 = vld [vmem:[#allocation2 + $0xe9] sm:$0xff]  ;;  %v17652_v53 = vsub.f32 %v3873_v47, %v17633_v20  ;;  %v3748_v7 = vld [vmem:[#allocation3 + $0xa0] sm:$0xff]  ;;  %v3882_v54 = vsel %vm2305_vm1, %v3751_v33, 0  ;;  %13908 = vmatmul.mubr.f32.vlgmr.msra.gmra.mrb[32].mxu0 %v6637_v51  ;;  %v6657_v30 = vand.u32 4294901760, %v6656_v16  ;;  %v15397_v33 = vadd.f32 %v13880_v36, %v17258_v17 }
 0x256   : > { %23773 = vst [vmem:[#allocation56_spill] sm:$0xff] %v17655_v48  ;;  %3706 = vst.msk [vmem:[#allocation3 + $0x100] sm:$0xff] %vm2305_vm1, %v3674_v61  ;;  %v23008_v50 = vand.u32 4294901760, %v17640_v15  ;;  %v3879_v47 = vsel %vm2305_vm1, %v3748_v7, 0  ;;  %v17663_v6 = vand.u32 4294901760, %v3882_v54  ;;  %v6647_v60 = vand.u32 4294901760, %v6646_v35  ;;  %15182 = vmatpush3.bf16.msra.mxu0 %v17280_v18  ;;  %14915 = vmatpush1.bf16.msra.mxu1 %v17642_v37 }
 0x257   : > { %v23009_v61 = vand.u32 4294901760, %v17652_v53  ;;  %v17668_v8 = vand.u32 4294901760, %v3879_v47  ;;  %v15398_v16 = vadd.f32 %v2223_v34, %v17262_v24  ;;  %15184 = vmatprep.subr.bf16.mxu0 %v17293_v0  ;;  %v17680_v17 = vsub.f32 %v17595_v49, %v4020_v45  ;;  %2367 = vst.msk [vmem:[#allocation2 + $0x150] sm:$0xff] %vm2305_vm1, %v15397_v33  ;;  %2711 = vrot.lane.b32.xlu1 %v17449_v29, %s16264_s16  ;;  %v17686_v24 = vld [vmem:[#allocation2 + $0x70] sm:$0xff]  ;;  %v13883_v45 = vpop.f32.mrb[20].mxu0  ;;  %v3851_v37 = vld [vmem:[%s22897_s2 + $0xd8] sm:$0xff] }
 0x258   : > { %23774 = vst [vmem:[#allocation57_spill] sm:$0xff] %v17663_v6  ;;  %v3677_v51 = vld [vmem:[#allocation2 + $0x111] sm:$0xff]  ;;  %v6676_v7 = vsub.f32 %v17640_v15, %v23008_v50  ;;  %v17676_v38 = vsub.f32 %v3882_v54, %v17663_v6  ;;  %13910 = vmatprep.mubr.f32.mxu0 %v6647_v60  ;;  %3542 = vrot.lane.b32.xlu0 %v17686_v24, %s16266_s20  ;;  %v2235_v33 = vpop.f32.mrb[21].mxu0 }
 0x259   : > { %23775 = vst [vmem:[#allocation58_spill] sm:$0xff] %v17668_v8  ;;  %23776 = vst [vmem:[#allocation59_spill] sm:$0xff] %v17680_v17  ;;  %v3676_v18 = vld [vmem:[#allocation2 + $0x109] sm:$0xff]  ;;  %v6666_v35 = vsub.f32 %v17652_v53, %v23009_v61  ;;  %v17692_v54 = vsub.f32 %v3879_v47, %v17668_v8  ;;  %13911 = vmatmul.mubr.f32.gmra.mrb[34].mxu0 %v6657_v30  ;;  %v15399_v36 = vadd.f32 %v13883_v45, %v17274_v21  ;;  %v3847_v30 = vld [vmem:[%s22897_s2 + $0xb8] sm:$0xff] }
 0x25a   : > { %3709 = vst.msk [vmem:[#allocation3 + $0x148] sm:$0xff] %vm2305_vm1, %v3677_v51  ;;  %3708 = vst.msk [vmem:[#allocation3 + $0x130] sm:$0xff] %vm2305_vm1, %v3676_v18  ;;  %v23006_v29 = vand.u32 4294901760, %v17676_v38  ;;  %v3846_v49 = vld [vmem:[%s22897_s2 + $0xb0] sm:$0xff]  ;;  %15186 = vmatpush3.bf16.msra.mxu0 %v17293_v0  ;;  %14916 = vmatprep.subr.bf16.mxu1 %v23751_v59  ;;  %v15400_v51 = vadd.f32 %v2235_v33, %v17278_v12  ;;  %v6677_v18 = vand.u32 4294901760, %v6676_v7  ;;  %v4026_v7 = vand.u32 4294901760, %v3847_v30 }
 0x25b   : > { %2366 = vst.msk [vmem:[#allocation2 + $0x148] sm:$0xff] %vm2305_vm1, %v15398_v16  ;;  %v6667_v47 = vand.u32 4294901760, %v6666_v35  ;;  %v23007_v34 = vand.u32 4294901760, %v17692_v54  ;;  %v3679_v60 = vld [vmem:[#allocation2 + $0x131] sm:$0xff]  ;;  %v3280_v16 = vld [vmem:[#allocation2 + $0x47] sm:$0xff]  ;;  %15188 = vmatprep.subr.bf16.mxu0 %v17570_v2  ;;  %v4023_v35 = vand.u32 4294901760, %v3846_v49 }
 0x25c   : > { %v6696_v21 = vsub.f32 %v17676_v38, %v23006_v29  ;;  %3711 = vst.msk [vmem:[#allocation3 + $0x178] sm:$0xff] %vm2305_vm1, %v3679_v60  ;;  %v3678_v0 = vld [vmem:[#allocation2 + $0x129] sm:$0xff]  ;;  %2369 = vst.msk [vmem:[#allocation2 + $0x170] sm:$0xff] %vm2305_vm1, %v15399_v36  ;;  %3344 = vrot.lane.b32.xlu1 %v3280_v16, %s16264_s16  ;;  %v3848_v45 = vld [vmem:[%s22897_s2 + $0xc0] sm:$0xff]  ;;  %3161 = vrot.lane.b32.xlu0 %v17471_v10, %s16265_s19  ;;  %v13886_v36 = vpop.f32.mrb[22].mxu0 }
 0x25d   : > { %13913 = vmatprep.mubr.f32.mxu0 %v6667_v47  ;;  %v6686_v12 = vsub.f32 %v17692_v54, %v23007_v34  ;;  %3710 = vst.msk [vmem:[#allocation3 + $0x160] sm:$0xff] %vm2305_vm1, %v3678_v0  ;;  %2368 = vst.msk [vmem:[#allocation2 + $0x168] sm:$0xff] %vm2305_vm1, %v15400_v51  ;;  %v17727_v33 = vsub.f32 %v3846_v49, %v4023_v35  ;;  %v3849_v47 = vld [vmem:[%s22897_s2 + $0xc8] sm:$0xff]  ;;  %v15401_v60 = vadd.f32 %v13886_v36, %v17288_v63  ;;  %v2247_v29 = vpop.f32.mrb[23].mxu0  ;;  %v3850_v51 = vld [vmem:[%s22897_s2 + $0xd0] sm:$0xff] }
 0x25e   : > { %13914 = vmatmul.mubr.f32.gmra.mrb[36].mxu0 %v6677_v18  ;;  %v17733_v50 = vpack.c.bf16 %v4026_v7, %v4023_v35  ;;  %v3681_v0 = vld [vmem:[#allocation2 + $0x151] sm:$0xff]  ;;  %v15402_v61 = vadd.f32 %v2247_v29, %v17291_v13  ;;  %v6697_v18 = vand.u32 4294901760, %v6696_v21  ;;  %v17739_v49 = vsub.f32 %v3847_v30, %v4026_v7  ;;  %v17747_v35 = vld [vmem:[#allocation2 + $0x67] sm:$0xff]  ;;  %v13889_v13 = vpop.f32.mrb[24].mxu0 }
 0x25f   : > { %23777 = vst [vmem:[#allocation60_spill] sm:$0xff] %v17727_v33  ;;  %v6687_v34 = vand.u32 4294901760, %v6686_v12  ;;  %v4029_v43 = vand.u32 4294901760, %v3848_v45  ;;  %3713 = vst.msk [vmem:[#allocation3 + $0x1a8] sm:$0xff] %vm2305_vm1, %v3681_v0  ;;  %v4032_v12 = vand.u32 4294901760, %v3849_v47  ;;  %v4035_v30 = vand.u32 4294901760, %v3850_v51 }
 0x260   : > { %23778 = vst [vmem:[#allocation61_spill] sm:$0xff] %v17733_v50  ;;  %23779 = vst [vmem:[#allocation62_spill] sm:$0xff] %v17739_v49  ;;  %2898 = vrot.lane.b32.xlu1 %v3280_v16, %s16266_s20  ;;  %3348 = vrot.lane.b32.xlu0 %v17747_v35, %s16264_s16  ;;  %v17758_v16 = vld [vmem:[%s22897_s2 + $0xe0] sm:$0xff]  ;;  %v2259_v21 = vpop.f32.mrb[25].mxu0  ;;  %v4038_v7 = vand.u32 4294901760, %v3851_v37 }
 0x261   : > { %2371 = vst.msk [vmem:[#allocation2 + $0x190] sm:$0xff] %vm2305_vm1, %v15401_v60  ;;  %13916 = vmatprep.mubr.f32.mxu0 %v6687_v34  ;;  %2370 = vst.msk [vmem:[#allocation2 + $0x188] sm:$0xff] %vm2305_vm1, %v15402_v61  ;;  %v17753_v29 = vsub.f32 %v3848_v45, %v4029_v43  ;;  %v15403_v34 = vadd.f32 %v13889_v13, %v17295_v57  ;;  %14918 = vmatpush1.bf16.msra.mxu1 %v17733_v50  ;;  %v17766_v60 = vld [vmem:[#allocation2 + $0x68] sm:$0xff] }
 0x262   : > { %v3680_v63 = vld [vmem:[#allocation2 + $0x149] sm:$0xff]  ;;  %13917 = vmatmul.mubr.f32.gmra.mrb[38].mxu0 %v6697_v18  ;;  %v17763_v61 = vsub.f32 %v3849_v47, %v4032_v12  ;;  %v15404_v45 = vadd.f32 %v2259_v21, %v17297_v46  ;;  %14919 = vmatprep.subr.bf16.mxu1 %v23751_v59  ;;  %v17769_v0 = vpack.c.bf16 %v4032_v12, %v4029_v43 }
 0x263   : > { %3712 = vst.msk [vmem:[#allocation3 + $0x190] sm:$0xff] %vm2305_vm1, %v3680_v63  ;;  %23780 = vst [vmem:[#allocation63_spill] sm:$0xff] %v17753_v29  ;;  %13963 = vmatprep.mubr.f32.mxu0 %v17538_v9  ;;  %v3683_v36 = vld [vmem:[#allocation2 + $0x171] sm:$0xff]  ;;  %v17771_v18 = vsub.f32 %v3850_v51, %v4035_v30  ;;  %v3853_v57 = vld [vmem:[%s22897_s2 + $0xe8] sm:$0xff]  ;;  %v17780_v46 = vsub.f32 %v3851_v37, %v4038_v7  ;;  %v4041_v63 = vand.u32 4294901760, %v17758_v16  ;;  %v13892_v37 = vpop.f32.mrb[26].mxu0 }
 0x264   : > { %23781 = vst [vmem:[#allocation64_spill] sm:$0xff] %v17763_v61  ;;  %23782 = vst [vmem:[#allocation65_spill] sm:$0xff] %v17769_v0  ;;  %v3682_v47 = vld [vmem:[#allocation2 + $0x169] sm:$0xff]  ;;  %2900 = vrot.lane.b32.xlu1 %v17600_v4, %s16266_s20  ;;  %v17791_v51 = vld [vmem:[%s22897_s2 + $0xf8] sm:$0xff]  ;;  %3540 = vrot.lane.b32.xlu0 %v17766_v60, %s16266_s20  ;;  %v15405_v4 = vadd.f32 %v13892_v37, %v17299_v27  ;;  %v2271_v12 = vpop.f32.mrb[27].mxu0  ;;  %v4044_v13 = vand.u32 4294901760, %v3853_v57 }
 0x265   : > { %23783 = vst [vmem:[#allocation66_spill] sm:$0xff] %v17771_v18  ;;  %3715 = vst.msk [vmem:[#allocation3 + $0x1d8] sm:$0xff] %vm2305_vm1, %v3683_v36  ;;  %v17786_v43 = vld [vmem:[%s22897_s2 + $0xf0] sm:$0xff]  ;;  %14921 = vmatpush1.bf16.msra.mxu1 %v17769_v0  ;;  %v4050_v37 = vand.u32 4294901760, %v17791_v51  ;;  %v2396_v50 = vld [vmem:[#allocation2 + $0x107] sm:$0xff] }
 0x266   : > { %2373 = vst.msk [vmem:[#allocation2 + $0x1b0] sm:$0xff] %vm2305_vm1, %v15403_v34  ;;  %23784 = vst [vmem:[#allocation67_spill] sm:$0xff] %v17780_v46  ;;  %13964 = vmatmul.mubr.f32.vlgmr.msra.gmra.mrb[40].mxu0 %v17532_v52  ;;  %v17802_v34 = vsub.f32 %v17758_v16, %v4041_v63  ;;  %v2389_v21 = vld [vmem:[#allocation2 + $0x8f] sm:$0xff]  ;;  %v4047_v27 = vand.u32 4294901760, %v17786_v43  ;;  %14922 = vmatprep.subr.bf16.mxu1 %v23751_v59  ;;  %v2398_v61 = vld [vmem:[#allocation2 + $0x127] sm:$0xff] }
 0x267   : > { %3714 = vst.msk [vmem:[#allocation3 + $0x1c0] sm:$0xff] %vm2305_vm1, %v3682_v47  ;;  %2372 = vst.msk [vmem:[#allocation2 + $0x1a8] sm:$0xff] %vm2305_vm1, %v15404_v45  ;;  %13966 = vmatprep.mubr.f32.mxu0 %v17585_v1  ;;  %15190 = vmatpush3.bf16.msra.mxu0 %v17570_v2  ;;  %v15406_v45 = vadd.f32 %v2271_v12, %v17301_v5  ;;  %v17807_v47 = vpack.c.bf16 %v4038_v7, %v4035_v30  ;;  %v3032_v2 = vld [vmem:[#allocation2 + $0xb0] sm:$0xff]  ;;  %v13895_v7 = vpop.f32.mrb[28].mxu0  ;;  %v3823_v9 = vld [vmem:[#allocation3 + $0x2f8] sm:$0xff] }
 0x268   : > { %23785 = vst [vmem:[#allocation68_spill] sm:$0xff] %v17802_v34  ;;  %v3685_v36 = vld [vmem:[#allocation2 + $0x191] sm:$0xff]  ;;  %15192 = vmatprep.subr.bf16.mxu0 %v17315_v39  ;;  %2421 = vst.msk [vmem:[#allocation3 + $0xd8] sm:$0xff] %vm2305_vm1, %v2389_v21  ;;  %v3684_v16 = vld [vmem:[#allocation2 + $0x189] sm:$0xff]  ;;  %2516 = vrot.lane.b32.xlu1 %v17547_v31, %s16265_s19  ;;  %v17819_v30 = vsub.f32 %v3853_v57, %v4044_v13  ;;  %v17828_v31 = vsub.f32 %v17786_v43, %v4047_v27  ;;  %v2283_v21 = vpop.f32.mrb[29].mxu0 }
 0x269   : > { %23786 = vst [vmem:[#allocation69_spill] sm:$0xff] %v17807_v47  ;;  %3717 = vst.msk [vmem:[#allocation3 + $0x208] sm:$0xff] %vm2305_vm1, %v3685_v36  ;;  %v17816_v5 = vld [vmem:[#allocation2 + $0x6f] sm:$0xff]  ;;  %v2388_v57 = vld [vmem:[#allocation2 + $0x87] sm:$0xff]  ;;  %v15407_v12 = vadd.f32 %v13895_v7, %v17303_v58  ;;  %14924 = vmatpush1.bf16.msra.mxu1 %v17807_v47  ;;  %v17839_v43 = vpack.c.bf16 %v4044_v13, %v4041_v63 }
 0x26a   : > { %2375 = vst.msk [vmem:[#allocation2 + $0x1d0] sm:$0xff] %vm2305_vm1, %v15405_v4  ;;  %23787 = vst [vmem:[#allocation70_spill] sm:$0xff] %v17819_v30  ;;  %3350 = vrot.lane.b32.xlu0 %v17816_v5, %s16264_s16  ;;  %13967 = vmatmul.mubr.f32.gmra.mrb[42].mxu0 %v17579_v44  ;;  %v17831_v4 = vsub.f32 %v17791_v51, %v4050_v37  ;;  %v3754_v36 = vld [vmem:[#allocation3 + $0xd0] sm:$0xff]  ;;  %v3757_v63 = vld [vmem:[#allocation3 + $0xe8] sm:$0xff] }
 0x26b   : > { %3064 = vst.msk [vmem:[#allocation3 + $0xe0] sm:$0xff] %vm2305_vm1, %v3032_v2  ;;  %3716 = vst.msk [vmem:[#allocation3 + $0x1f0] sm:$0xff] %vm2305_vm1, %v3684_v16  ;;  %13969 = vmatprep.mubr.f32.mxu0 %v17633_v20  ;;  %15194 = vmatpush3.bf16.msra.mxu0 %v17315_v39  ;;  %v15408_v16 = vadd.f32 %v2283_v21, %v17305_v11  ;;  %v2391_v58 = vld [vmem:[#allocation2 + $0xaf] sm:$0xff]  ;;  %v13898_v11 = vpop.f32.mrb[30].mxu0  ;;  %v17855_v39 = vsel %vm2305_vm1, %v3754_v36, 0  ;;  %v3820_v44 = vld [vmem:[#allocation3 + $0x2e0] sm:$0xff] }
 0x26c   : > { %2374 = vst.msk [vmem:[#allocation2 + $0x1c8] sm:$0xff] %vm2305_vm1, %v15406_v45  ;;  %23788 = vst [vmem:[#allocation71_spill] sm:$0xff] %v17828_v31  ;;  %v3031_v45 = vld [vmem:[#allocation2 + $0xa8] sm:$0xff]  ;;  %15196 = vmatprep.subr.bf16.mxu0 %v17232_v28  ;;  %2709 = vrot.lane.b32.xlu1 %v17452_v26, %s16264_s16  ;;  %v3034_v13 = vld [vmem:[#allocation2 + $0xd0] sm:$0xff]  ;;  %v15409_v26 = vadd.f32 %v13898_v11, %v17307_v23  ;;  %v2295_v7 = vpop.f32.mrb[31].mxu0  ;;  %v18130_v52 = vsel %vm2305_vm1, %v3820_v44, 0 }
 0x26d   : > { %23789 = vst [vmem:[#allocation72_spill] sm:$0xff] %v17831_v4  ;;  %2420 = vst.msk [vmem:[#allocation3 + $0xc0] sm:$0xff] %vm2305_vm1, %v2388_v57  ;;  %v3687_v2 = vld [vmem:[#allocation2 + $0x1b1] sm:$0xff]  ;;  %14925 = vmatprep.subr.bf16.mxu1 %v23751_v59  ;;  %v3760_v57 = vld [vmem:[#allocation3 + $0x100] sm:$0xff]  ;;  %v15410_v21 = vadd.f32 %v2295_v7, %v17309_v3  ;;  %v17874_v3 = vsel %vm2305_vm1, %v3757_v63, 0  ;;  %v18144_v44 = vand.u32 4294901760, %v18130_v52 }
 0x26e   : > { %23790 = vst [vmem:[#allocation73_spill] sm:$0xff] %v17839_v43  ;;  %3063 = vst.msk [vmem:[#allocation3 + $0xc8] sm:$0xff] %vm2305_vm1, %v3031_v45  ;;  %v3686_v51 = vld [vmem:[#allocation2 + $0x1a9] sm:$0xff]  ;;  %3159 = vrot.lane.b32.xlu0 %v17481_v56, %s16265_s19  ;;  %13970 = vmatmul.mubr.f32.gmra.mrb[44].mxu0 %v17628_v42  ;;  %v17862_v45 = vpack.c.bf16 %v4050_v37, %v4047_v27  ;;  %v3763_v27 = vld [vmem:[#allocation3 + $0x118] sm:$0xff] }
 0x26f   : > { %3719 = vst.msk [vmem:[#allocation3 + $0x238] sm:$0xff] %vm2305_vm1, %v3687_v2  ;;  %2377 = vst.msk [vmem:[#allocation2 + $0x1f0] sm:$0xff] %vm2305_vm1, %v15407_v12  ;;  %13972 = vmatprep.mubr.f32.mxu0 %v17668_v8  ;;  %14927 = vmatpush1.bf16.msra.mxu1 %v17839_v43  ;;  %v2390_v2 = vld [vmem:[#allocation2 + $0xa7] sm:$0xff]  ;;  %v17868_v23 = vld [vmem:[#allocation2 + $0x90] sm:$0xff] }
 0x270   : > { %2423 = vst.msk [vmem:[#allocation3 + $0x108] sm:$0xff] %vm2305_vm1, %v2391_v58  ;;  %3718 = vst.msk [vmem:[#allocation3 + $0x220] sm:$0xff] %vm2305_vm1, %v3686_v51  ;;  %2522 = vrot.lane.b32.xlu1 %v17686_v24, %s16265_s19  ;;  %14928 = vmatprep.subr.bf16.mxu1 %v23751_v59  ;;  %v17884_v24 = vsel %vm2305_vm1, %v3760_v57, 0  ;;  %v3033_v37 = vld [vmem:[#allocation2 + $0xc8] sm:$0xff]  ;;  %v3766_v51 = vld [vmem:[#allocation3 + $0x130] sm:$0xff]  ;;  %v17901_v57 = vsel %vm2305_vm1, %v3763_v27, 0 }
 0x271   : > { %2376 = vst.msk [vmem:[#allocation2 + $0x1e8] sm:$0xff] %vm2305_vm1, %v15408_v16  ;;  %3066 = vst.msk [vmem:[#allocation3 + $0x110] sm:$0xff] %vm2305_vm1, %v3034_v13  ;;  %v3689_v12 = vld [vmem:[#allocation2 + $0x1d1] sm:$0xff]  ;;  %v17871_v16 = vand.u32 4294901760, %v17855_v39  ;;  %v17890_v13 = vand.u32 4294901760, %v17874_v3  ;;  %v17898_v7 = vand.u32 4294901760, %v17884_v24 }
 0x272   : > { %23791 = vst [vmem:[#allocation74_spill] sm:$0xff] %v17862_v45  ;;  %3721 = vst.msk [vmem:[#allocation3 + $0x268] sm:$0xff] %vm2305_vm1, %v3689_v12  ;;  %3546 = vrot.lane.b32.xlu0 %v17868_v23, %s16266_s20  ;;  %13973 = vmatmul.mubr.f32.gmra.mrb[46].mxu0 %v17663_v6  ;;  %v2393_v58 = vld [vmem:[#allocation2 + $0xcf] sm:$0xff]  ;;  %v17909_v12 = vsel %vm2305_vm1, %v3766_v51, 0  ;;  %v3784_v0 = vld [vmem:[#allocation3 + $0x1c0] sm:$0xff] }
 0x273   : > { %v3688_v36 = vld [vmem:[#allocation2 + $0x1c9] sm:$0xff]  ;;  %2379 = vst.msk [vmem:[#allocation2 + $0x210] sm:$0xff] %vm2305_vm1, %v15409_v26  ;;  %2422 = vst.msk [vmem:[#allocation3 + $0xf0] sm:$0xff] %vm2305_vm1, %v2390_v2  ;;  %13975 = vmatprep.mubr.f32.mxu0 %v17871_v16  ;;  %14930 = vmatpush1.bf16.msra.mxu1 %v17862_v45  ;;  %v3787_v46 = vld [vmem:[#allocation3 + $0x1d8] sm:$0xff] }
 0x274   : > { %3720 = vst.msk [vmem:[#allocation3 + $0x250] sm:$0xff] %vm2305_vm1, %v3688_v36  ;;  %2378 = vst.msk [vmem:[#allocation2 + $0x208] sm:$0xff] %vm2305_vm1, %v15410_v21  ;;  %v3036_v11 = vld [vmem:[#allocation2 + $0xf0] sm:$0xff]  ;;  %2715 = vrot.lane.b32.xlu1 %v17471_v10, %s16264_s16  ;;  %14931 = vmatprep.subr.bf16.mxu1 %v23751_v59  ;;  %v3769_v21 = vld [vmem:[#allocation3 + $0x148] sm:$0xff]  ;;  %v18021_v33 = vsel %vm2305_vm1, %v3787_v46, 0 }
 0x275   : > { %3065 = vst.msk [vmem:[#allocation3 + $0xf8] sm:$0xff] %vm2305_vm1, %v3033_v37  ;;  %2425 = vst.msk [vmem:[#allocation3 + $0x138] sm:$0xff] %vm2305_vm1, %v2393_v58  ;;  %v2392_v10 = vld [vmem:[#allocation2 + $0xc7] sm:$0xff]  ;;  %v2395_v27 = vld [vmem:[#allocation2 + $0xef] sm:$0xff]  ;;  %v17915_v58 = vand.u32 4294901760, %v17901_v57 }
 0x276   : > { %v3691_v63 = vld [vmem:[#allocation2 + $0x1f1] sm:$0xff]  ;;  %3068 = vst.msk [vmem:[#allocation3 + $0x140] sm:$0xff] %vm2305_vm1, %v3036_v11  ;;  %23792 = vst [vmem:[#allocation75_spill] sm:$0xff] %v17898_v7  ;;  %3165 = vrot.lane.b32.xlu0 %v17505_v14, %s16265_s19  ;;  %13976 = vmatmul.mubr.f32.gmra.mrb[48].mxu0 %v17890_v13  ;;  %v3035_v2 = vld [vmem:[#allocation2 + $0xe8] sm:$0xff] }
 0x277   : > { %3723 = vst.msk [vmem:[#allocation3 + $0x298] sm:$0xff] %vm2305_vm1, %v3691_v63  ;;  %13978 = vmatprep.mubr.f32.mxu0 %v17898_v7  ;;  %v3772_v36 = vld [vmem:[#allocation3 + $0x160] sm:$0xff]  ;;  %2424 = vst.msk [vmem:[#allocation3 + $0x120] sm:$0xff] %vm2305_vm1, %v2392_v10  ;;  %v3038_v11 = vld [vmem:[#allocation2 + $0x110] sm:$0xff]  ;;  %v17927_v10 = vsel %vm2305_vm1, %v3769_v21, 0 }
 0x278   : > { %v3690_v26 = vld [vmem:[#allocation2 + $0x1e9] sm:$0xff]  ;;  %3067 = vst.msk [vmem:[#allocation3 + $0x128] sm:$0xff] %vm2305_vm1, %v3035_v2  ;;  %2427 = vst.msk [vmem:[#allocation3 + $0x168] sm:$0xff] %vm2305_vm1, %v2395_v27  ;;  %2902 = vrot.lane.b32.xlu1 %v17747_v35, %s16266_s20  ;;  %v17935_v2 = vsel %vm2305_vm1, %v3772_v36, 0  ;;  %v3775_v35 = vld [vmem:[#allocation3 + $0x178] sm:$0xff] }
 0x279   : > { %3722 = vst.msk [vmem:[#allocation3 + $0x280] sm:$0xff] %vm2305_vm1, %v3690_v26  ;;  %v17921_v63 = vld [vmem:[#allocation2 + $0x87] sm:$0xff]  ;;  %v17924_v26 = vand.u32 4294901760, %v17909_v12  ;;  %3070 = vst.msk [vmem:[#allocation3 + $0x170] sm:$0xff] %vm2305_vm1, %v3038_v11  ;;  %v17940_v11 = vand.u32 4294901760, %v17927_v10  ;;  %v17948_v36 = vand.u32 4294901760, %v17935_v2 }
 0x27a   : > { %v3693_v37 = vld [vmem:[#allocation2 + $0x211] sm:$0xff]  ;;  %3352 = vrot.lane.b32.xlu0 %v17921_v63, %s16264_s16  ;;  %13979 = vmatmul.mubr.f32.gmra.mrb[50].mxu0 %v17915_v58  ;;  %v2394_v27 = vld [vmem:[#allocation2 + $0xe7] sm:$0xff]  ;;  %v17951_v43 = vsel %vm2305_vm1, %v3775_v35, 0  ;;  %2428 = vst.msk [vmem:[#allocation3 + $0x180] sm:$0xff] %vm2305_vm1, %v2396_v50  ;;  %2430 = vst.msk [vmem:[#allocation3 + $0x1b0] sm:$0xff] %vm2305_vm1, %v2398_v61 }
 0x27b   : > { %3725 = vst.msk [vmem:[#allocation3 + $0x2c8] sm:$0xff] %vm2305_vm1, %v3693_v37  ;;  %v3692_v51 = vld [vmem:[#allocation2 + $0x209] sm:$0xff]  ;;  %13981 = vmatprep.mubr.f32.mxu0 %v17924_v26  ;;  %2426 = vst.msk [vmem:[#allocation3 + $0x150] sm:$0xff] %vm2305_vm1, %v2394_v27 }
 0x27c   : > { %3724 = vst.msk [vmem:[#allocation3 + $0x2b0] sm:$0xff] %vm2305_vm1, %v3692_v51  ;;  %v3778_v37 = vld [vmem:[#allocation3 + $0x190] sm:$0xff]  ;;  %v3037_v21 = vld [vmem:[#allocation2 + $0x108] sm:$0xff]  ;;  %23793 = vst [vmem:[#allocation76_spill] sm:$0xff] %v17940_v11  ;;  %2904 = vrot.lane.b32.xlu1 %v17816_v5, %s16266_s20 }
 0x27d   : > { %3069 = vst.msk [vmem:[#allocation3 + $0x158] sm:$0xff] %vm2305_vm1, %v3037_v21  ;;  %v2397_v51 = vld [vmem:[#allocation2 + $0x10f] sm:$0xff]  ;;  %23794 = vst [vmem:[#allocation77_spill] sm:$0xff] %v17948_v36  ;;  %v17960_v5 = vsel %vm2305_vm1, %v3778_v37, 0  ;;  %v17972_v37 = vand.u32 4294901760, %v17951_v43  ;;  %v2410_v59 = vld [vmem:[#allocation2 + $0x1e7] sm:$0xff] }
 0x27e   : > { %v17945_v45 = vld [vmem:[#allocation2 + $0x88] sm:$0xff]  ;;  %2429 = vst.msk [vmem:[#allocation3 + $0x198] sm:$0xff] %vm2305_vm1, %v2397_v51  ;;  %v3040_v27 = vld [vmem:[#allocation2 + $0x130] sm:$0xff]  ;;  %13982 = vmatmul.mubr.f32.gmra.mrb[52].mxu0 %v17940_v11  ;;  %2442 = vst.msk [vmem:[#allocation3 + $0x2d0] sm:$0xff] %vm2305_vm1, %v2410_v59 }
 0x27f   : > { %v17954_v47 = vld [vmem:[#allocation2 + $0x1d0] sm:$0xff]  ;;  %3544 = vrot.lane.b32.xlu0 %v17945_v45, %s16266_s20  ;;  %v3781_v21 = vld [vmem:[#allocation3 + $0x1a8] sm:$0xff]  ;;  %3072 = vst.msk [vmem:[#allocation3 + $0x1a0] sm:$0xff] %vm2305_vm1, %v3040_v27  ;;  %13984 = vmatprep.mubr.f32.mxu0 %v17948_v36  ;;  %23798 = vst [vmem:[#allocation81_spill] sm:$0xff] %v17972_v37  ;;  %v17984_v27 = vand.u32 4294901760, %v17960_v5 }
 0x280   : > { %23795 = vst [vmem:[#allocation78_spill] sm:$0xff] %v17954_v47  ;;  %3082 = vst.msk [vmem:[#allocation3 + $0x290] sm:$0xff] %vm2305_vm1, %v17954_v47  ;;  %v17967_v35 = vld [vmem:[#allocation2 + $0x1c8] sm:$0xff]  ;;  %2520 = vrot.lane.b32.xlu1 %v17766_v60, %s16265_s19  ;;  %v17987_v30 = vsel %vm2305_vm1, %v3781_v21, 0  ;;  %v17990_v34 = vld [vmem:[#allocation2 + $0x1f0] sm:$0xff]  ;;  %v17996_v60 = vsel %vm2305_vm1, %v3784_v0, 0 }
 0x281   : > { %23796 = vst [vmem:[#allocation79_spill] sm:$0xff] %v17967_v35  ;;  %v3039_v51 = vld [vmem:[#allocation2 + $0x128] sm:$0xff]  ;;  %3081 = vst.msk [vmem:[#allocation3 + $0x278] sm:$0xff] %vm2305_vm1, %v17967_v35  ;;  %v3790_v18 = vld [vmem:[#allocation3 + $0x1f0] sm:$0xff]  ;;  %v18008_v0 = vand.u32 4294901760, %v17987_v30  ;;  %v18018_v61 = vand.u32 4294901760, %v17996_v60 }
 0x282   : > { %v17969_v4 = vld [vmem:[#allocation2 + $0x1cf] sm:$0xff]  ;;  %3071 = vst.msk [vmem:[#allocation3 + $0x188] sm:$0xff] %vm2305_vm1, %v3039_v51  ;;  %23799 = vst [vmem:[#allocation82_spill] sm:$0xff] %v17984_v27  ;;  %13985 = vmatmul.mubr.f32.gmra.mrb[54].mxu0 %v17972_v37  ;;  %v2404_v47 = vld [vmem:[#allocation2 + $0x187] sm:$0xff] }
 0x283   : > { %23797 = vst [vmem:[#allocation80_spill] sm:$0xff] %v17969_v4  ;;  %v2399_v31 = vld [vmem:[#allocation2 + $0x12f] sm:$0xff]  ;;  %2441 = vst.msk [vmem:[#allocation3 + $0x2b8] sm:$0xff] %vm2305_vm1, %v17969_v4  ;;  %13987 = vmatprep.mubr.f32.mxu0 %v17984_v27  ;;  %v2402_v4 = vld [vmem:[#allocation2 + $0x167] sm:$0xff] }
 0x284   : > { %v17981_v50 = vld [vmem:[#allocation2 + $0x8f] sm:$0xff]  ;;  %2431 = vst.msk [vmem:[#allocation3 + $0x1c8] sm:$0xff] %vm2305_vm1, %v2399_v31  ;;  %23800 = vst [vmem:[#allocation83_spill] sm:$0xff] %v17990_v34  ;;  %2713 = vrot.lane.b32.xlu1 %v17481_v56, %s16264_s16  ;;  %v18031_v56 = vsel %vm2305_vm1, %v3790_v18, 0  ;;  %v18045_v18 = vand.u32 4294901760, %v18021_v33  ;;  %v3808_v59 = vld [vmem:[#allocation3 + $0x280] sm:$0xff] }
 0x285   : > { %v3042_v51 = vld [vmem:[#allocation2 + $0x150] sm:$0xff]  ;;  %3354 = vrot.lane.b32.xlu0 %v17981_v50, %s16264_s16  ;;  %3084 = vst.msk [vmem:[#allocation3 + $0x2c0] sm:$0xff] %vm2305_vm1, %v17990_v34  ;;  %v18003_v31 = vld [vmem:[#allocation2 + $0x1e8] sm:$0xff]  ;;  %23803 = vst [vmem:[#allocation86_spill] sm:$0xff] %v18008_v0 }
 0x286   : > { %3074 = vst.msk [vmem:[#allocation3 + $0x1d0] sm:$0xff] %vm2305_vm1, %v3042_v51  ;;  %23801 = vst [vmem:[#allocation84_spill] sm:$0xff] %v18003_v31  ;;  %v3041_v21 = vld [vmem:[#allocation2 + $0x148] sm:$0xff]  ;;  %v3044_v51 = vld [vmem:[#allocation2 + $0x170] sm:$0xff]  ;;  %13988 = vmatmul.mubr.f32.gmra.mrb[56].mxu0 %v18008_v0 }
 0x287   : > { %v18005_v29 = vld [vmem:[#allocation2 + $0x1ef] sm:$0xff]  ;;  %3073 = vst.msk [vmem:[#allocation3 + $0x1b8] sm:$0xff] %vm2305_vm1, %v3041_v21  ;;  %3083 = vst.msk [vmem:[#allocation3 + $0x2a8] sm:$0xff] %vm2305_vm1, %v18003_v31  ;;  %13990 = vmatprep.mubr.f32.mxu0 %v18018_v61  ;;  %v3799_v34 = vld [vmem:[#allocation3 + $0x238] sm:$0xff] }
 0x288   : > { %23802 = vst [vmem:[#allocation85_spill] sm:$0xff] %v18005_v29  ;;  %v2401_v49 = vld [vmem:[#allocation2 + $0x14f] sm:$0xff]  ;;  %2443 = vst.msk [vmem:[#allocation3 + $0x2e8] sm:$0xff] %vm2305_vm1, %v18005_v29  ;;  %v2400_v29 = vld [vmem:[#allocation2 + $0x147] sm:$0xff]  ;;  %2526 = vrot.lane.b32.xlu1 %v17868_v23, %s16265_s19 }
 0x289   : > { %23804 = vst [vmem:[#allocation87_spill] sm:$0xff] %v18018_v61  ;;  %v3793_v17 = vld [vmem:[#allocation3 + $0x208] sm:$0xff]  ;;  %2433 = vst.msk [vmem:[#allocation3 + $0x1f8] sm:$0xff] %vm2305_vm1, %v2401_v49  ;;  %v18025_v21 = vld [vmem:[#allocation2 + $0x210] sm:$0xff]  ;;  %3163 = vrot.lane.b32.xlu0 %v17514_v19, %s16265_s19 }
 0x28a   : > { %3076 = vst.msk [vmem:[#allocation3 + $0x200] sm:$0xff] %vm2305_vm1, %v3044_v51  ;;  %23805 = vst [vmem:[#allocation88_spill] sm:$0xff] %v18025_v21  ;;  %v18033_v48 = vld [vmem:[#allocation2 + $0x208] sm:$0xff]  ;;  %v18038_v49 = vld [vmem:[#allocation2 + $0xb0] sm:$0xff]  ;;  %13991 = vmatmul.mubr.f32.gmra.mrb[58].mxu0 %v18045_v18 }
 0x28b   : > { %23806 = vst [vmem:[#allocation89_spill] sm:$0xff] %v18033_v48  ;;  %v3043_v46 = vld [vmem:[#allocation2 + $0x168] sm:$0xff]  ;;  %3086 = vst.msk [vmem:[#allocation3 + $0x2f0] sm:$0xff] %vm2305_vm1, %v18025_v21  ;;  %v3796_v51 = vld [vmem:[#allocation3 + $0x220] sm:$0xff] }
 0x28c   : > { %2432 = vst.msk [vmem:[#allocation3 + $0x1e0] sm:$0xff] %vm2305_vm1, %v2400_v29  ;;  %3075 = vst.msk [vmem:[#allocation3 + $0x1e8] sm:$0xff] %vm2305_vm1, %v3043_v46  ;;  %v2403_v31 = vld [vmem:[#allocation2 + $0x16f] sm:$0xff]  ;;  %v18051_v29 = vand.u32 4294901760, %v18031_v56  ;;  %v18054_v46 = vsel %vm2305_vm1, %v3793_v17, 0  ;;  %v18063_v23 = vsel %vm2305_vm1, %v3796_v51, 0  ;;  %2719 = vrot.lane.b32.xlu1 %v17505_v14, %s16264_s16 }
 0x28d   : > { %3085 = vst.msk [vmem:[#allocation3 + $0x2d8] sm:$0xff] %vm2305_vm1, %v18033_v48  ;;  %23807 = vst [vmem:[#allocation90_spill] sm:$0xff] %v18045_v18  ;;  %v3046_v21 = vld [vmem:[#allocation2 + $0x190] sm:$0xff]  ;;  %v3045_v35 = vld [vmem:[#allocation2 + $0x188] sm:$0xff]  ;;  %3550 = vrot.lane.b32.xlu0 %v18038_v49, %s16266_s20 }
 0x28e   : > { %2435 = vst.msk [vmem:[#allocation3 + $0x228] sm:$0xff] %vm2305_vm1, %v2403_v31  ;;  %23808 = vst [vmem:[#allocation91_spill] sm:$0xff] %v18051_v29  ;;  %v2405_v48 = vld [vmem:[#allocation2 + $0x18f] sm:$0xff]  ;;  %13993 = vmatprep.mubr.f32.mxu0 %v18051_v29  ;;  %v2408_v51 = vld [vmem:[#allocation2 + $0x1c7] sm:$0xff] }
 0x28f   : > { %3078 = vst.msk [vmem:[#allocation3 + $0x230] sm:$0xff] %vm2305_vm1, %v3046_v21  ;;  %2434 = vst.msk [vmem:[#allocation3 + $0x210] sm:$0xff] %vm2305_vm1, %v2402_v4  ;;  %v3048_v31 = vld [vmem:[#allocation2 + $0x1b0] sm:$0xff]  ;;  %v3047_v17 = vld [vmem:[#allocation2 + $0x1a8] sm:$0xff] }
 0x290   : > { %3077 = vst.msk [vmem:[#allocation3 + $0x218] sm:$0xff] %vm2305_vm1, %v3045_v35  ;;  %2437 = vst.msk [vmem:[#allocation3 + $0x258] sm:$0xff] %vm2305_vm1, %v2405_v48  ;;  %v2407_v4 = vld [vmem:[#allocation2 + $0x1af] sm:$0xff]  ;;  %v2406_v35 = vld [vmem:[#allocation2 + $0x1a7] sm:$0xff]  ;;  %v18073_v48 = vand.u32 4294901760, %v18054_v46  ;;  %2906 = vrot.lane.b32.xlu1 %v17921_v63, %s16266_s20 }
 0x291   : > { %3080 = vst.msk [vmem:[#allocation3 + $0x260] sm:$0xff] %vm2305_vm1, %v3048_v31  ;;  %2436 = vst.msk [vmem:[#allocation3 + $0x240] sm:$0xff] %vm2305_vm1, %v2404_v47  ;;  %v3802_v21 = vld [vmem:[#allocation3 + $0x250] sm:$0xff]  ;;  %v18080_v47 = vand.u32 4294901760, %v18063_v23  ;;  %v18083_v31 = vsel %vm2305_vm1, %v3799_v34, 0  ;;  %3169 = vrot.lane.b32.xlu0 %v17544_v62, %s16265_s19  ;;  %v3286_v34 = vld [vmem:[#allocation2 + $0xa7] sm:$0xff] }
 0x292   : > { %3079 = vst.msk [vmem:[#allocation3 + $0x248] sm:$0xff] %vm2305_vm1, %v3047_v17  ;;  %2439 = vst.msk [vmem:[#allocation3 + $0x288] sm:$0xff] %vm2305_vm1, %v2407_v4  ;;  %13994 = vmatmul.mubr.f32.gmra.mrb[60].mxu0 %v18073_v48  ;;  %v18089_v17 = vsel %vm2305_vm1, %v3802_v21, 0  ;;  %v3805_v4 = vld [vmem:[#allocation3 + $0x268] sm:$0xff]  ;;  %v18093_v14 = vand.u32 4294901760, %v18083_v31  ;;  %v18106_v21 = vsel %vm2305_vm1, %v3808_v59, 0 }
 0x293   : > { %2438 = vst.msk [vmem:[#allocation3 + $0x270] sm:$0xff] %vm2305_vm1, %v2406_v35  ;;  %23809 = vst [vmem:[#allocation92_spill] sm:$0xff] %v18073_v48  ;;  %13996 = vmatprep.mubr.f32.mxu0 %v18080_v47  ;;  %v18098_v35 = vand.u32 4294901760, %v18089_v17  ;;  %v3811_v6 = vld [vmem:[#allocation3 + $0x298] sm:$0xff]  ;;  %v3814_v8 = vld [vmem:[#allocation3 + $0x2b0] sm:$0xff] }
 0x294   : > { %2440 = vst.msk [vmem:[#allocation3 + $0x2a0] sm:$0xff] %vm2305_vm1, %v2408_v51  ;;  %23810 = vst [vmem:[#allocation93_spill] sm:$0xff] %v18080_v47  ;;  %v18101_v51 = vsel %vm2305_vm1, %v3805_v4, 0  ;;  %2908 = vrot.lane.b32.xlu1 %v17981_v50, %s16266_s20  ;;  %v3478_v42 = vld [vmem:[#allocation2 + $0xa8] sm:$0xff]  ;;  %v18115_v4 = vand.u32 4294901760, %v18106_v21  ;;  %v18118_v20 = vsel %vm2305_vm1, %v3811_v6, 0 }
 0x295   : > { %23811 = vst [vmem:[#allocation94_spill] sm:$0xff] %v18093_v14  ;;  %23812 = vst [vmem:[#allocation95_spill] sm:$0xff] %v18098_v35  ;;  %3356 = vrot.lane.b32.xlu0 %v3286_v34, %s16264_s16  ;;  %v18110_v63 = vand.u32 4294901760, %v18101_v51  ;;  %v18123_v59 = vsel %vm2305_vm1, %v3814_v8, 0  ;;  %v3817_v1 = vld [vmem:[#allocation3 + $0x2c8] sm:$0xff]  ;;  %v18127_v50 = vand.u32 4294901760, %v18118_v20 }
 0x296   : > { %13997 = vmatmul.mubr.f32.gmra.mrb[62].mxu0 %v18093_v14  ;;  %23813 = vst [vmem:[#allocation96_spill] sm:$0xff] %v18106_v21  ;;  %23815 = vst [vmem:[#allocation98_spill] sm:$0xff] %v18115_v4  ;;  %v3287_v6 = vld [vmem:[#allocation2 + $0xaf] sm:$0xff]  ;;  %v18135_v21 = vand.u32 4294901760, %v18123_v59  ;;  %v18138_v8 = vsel %vm2305_vm1, %v3817_v1, 0 }
 0x297   : > { %13999 = vmatprep.mubr.f32.mxu0 %v18098_v35  ;;  %23814 = vst [vmem:[#allocation97_spill] sm:$0xff] %v18110_v63  ;;  %23816 = vst [vmem:[#allocation99_spill] sm:$0xff] %v18118_v20  ;;  %v18147_v20 = vsel %vm2305_vm1, %v3823_v9, 0  ;;  %v3481_v9 = vld [vmem:[#allocation2 + $0xd0] sm:$0xff] }
 0x298   : > { %23817 = vst [vmem:[#allocation100_spill] sm:$0xff] %v18127_v50  ;;  %2524 = vrot.lane.b32.xlu1 %v17945_v45, %s16265_s19  ;;  %23818 = vst [vmem:[#allocation101_spill] sm:$0xff] %v18135_v21  ;;  %v18150_v45 = vand.u32 4294901760, %v18138_v8  ;;  %v18158_v1 = vand.u32 4294901760, %v18147_v20 }
 0x299   : > { %3548 = vrot.lane.b32.xlu0 %v3478_v42, %s16266_s20  ;;  %23819 = vst [vmem:[#allocation102_spill] sm:$0xff] %v18138_v8  ;;  %23820 = vst [vmem:[#allocation103_spill] sm:$0xff] %v18144_v44 }
 0x29a   : > { %14000 = vmatmul.mubr.f32.gmra.mrb[64].mxu0 %v18110_v63  ;;  %23821 = vst [vmem:[#allocation104_spill] sm:$0xff] %v18147_v20  ;;  %23822 = vst [vmem:[#allocation105_spill] sm:$0xff] %v18150_v45 }
 0x29b   : > { %14002 = vmatprep.mubr.f32.mxu0 %v18115_v4  ;;  %23823 = vst [vmem:[#allocation106_spill] sm:$0xff] %v18158_v1 }
 0x29c   : > { %2717 = vrot.lane.b32.xlu1 %v17514_v19, %s16264_s16  ;;  %v18166_v19 = vpop.permute.xlu0 %3404 }
 0x29d   : > { %3358 = vrot.lane.b32.xlu0 %v3287_v6, %s16264_s16  ;;  %23824 = vst [vmem:[#allocation107_spill] sm:$0xff] %v18166_v19 }
 0x29e   : > { %14003 = vmatmul.mubr.f32.gmra.mrb[66].mxu0 %v18127_v50 }
 0x29f   : > { %14005 = vmatprep.mubr.f32.mxu0 %v18135_v21 }
 0x2a0   : > { %2530 = vrot.lane.b32.xlu1 %v18038_v49, %s16265_s19  ;;  %v23826_v49 = vld [vmem:[#allocation27_spill] sm:$0xff]  ;;  %v18183_v19 = vpop.permute.xlu0 %3596 }
 0x2a1   : > { %3167 = vrot.lane.b32.xlu0 %v17557_v41, %s16265_s19  ;;  %v23825_v41 = vld [vmem:[#allocation24_spill] sm:$0xff]  ;;  %v23827_v20 = vand.u32 4294901760, %v23826_v49  ;;  %23830 = vst [vmem:[#allocation27_spill] sm:$0xff] %v18183_v19 }
 0x2a2   : > { %14006 = vmatmul.mubr.f32.gmra.mrb[68].mxu0 %v18150_v45 }
 0x2a3   : > { %14008 = vmatprep.mubr.f32.mxu0 %v18144_v44 }
 0x2a4   : > { %2723 = vrot.lane.b32.xlu1 %v17544_v62, %s16264_s16  ;;  %v3288_v62 = vld [vmem:[#allocation2 + $0xc7] sm:$0xff] }
 0x2a5   : > { %3554 = vrot.lane.b32.xlu0 %v3481_v9, %s16266_s20 }
 0x2a6   : > { %14009 = vmatmul.mubr.f32.gmra.mrb[70].mxu0 %v18158_v1  ;;  %v23828_v1 = vld [vmem:[#allocation28_spill] sm:$0xff] }
 0x2a7   : > { %14019 = vmatprep.mubr.f32.mxu0 %v17565_v25  ;;  %v23829_v25 = vand.u32 4294901760, %v23828_v1 }
 0x2a8   : > { %2910 = vrot.lane.b32.xlu1 %v3286_v34, %s16266_s20  ;;  %v3289_v34 = vld [vmem:[#allocation2 + $0xcf] sm:$0xff] }
 0x2a9   : > { %3173 = vrot.lane.b32.xlu0 %v17597_v32, %s16265_s19  ;;  %v18180_v8 = vpack.c.bf16 %v23829_v25, %v23827_v20  ;;  %v18191_v32 = vld [vmem:[#allocation2 + $0xc8] sm:$0xff] }
 0x2aa   : > { %14020 = vmatmul.mubr.f32.vlgmr.msra.gmra.mrb[72].mxu0 %v17550_v55  ;;  %v3154_v20 = vpop.permute.xlu0 %3153 }
 0x2ab   : > { %14022 = vmatprep.mubr.f32.mxu0 %v17620_v22  ;;  %15198 = vmatpush3.bf16.msra.mxu0 %v17232_v28  ;;  %v2515_v25 = vpop.permute.xlu1 %2514  ;;  %3248 = vst.msk [vmem:[#allocation3 + $0x20] sm:$0xff] %vm2604_vm4, %v3154_v20  ;;  %v2647_v20 = vld [vmem:[#allocation2 + $0xa9] sm:$0xff] }
 0x2ac   : > { %15200 = vmatprep.subr.bf16.mxu0 %v23825_v41  ;;  %2912 = vrot.lane.b32.xlu1 %v3287_v6, %s16266_s20  ;;  %2608 = vst.msk [vmem:[#allocation3 + $0x48] sm:$0xff] %vm2604_vm4, %v2515_v25  ;;  %v18202_v6 = vsub.f32 %v17855_v39, %v17871_v16  ;;  %v18214_v39 = vld [vmem:[#allocation2 + $0xc9] sm:$0xff]  ;;  %v18218_v25 = vsub.f32 %v17884_v24, %v17898_v7 }
 0x2ad   : > { %3360 = vrot.lane.b32.xlu0 %v3288_v62, %s16264_s16  ;;  %v18234_v24 = vsub.f32 %v17909_v12, %v17924_v26  ;;  %v18247_v12 = vld [vmem:[#allocation2 + $0xf1] sm:$0xff] }
 0x2ae   : > { %14023 = vmatmul.mubr.f32.gmra.mrb[74].mxu0 %v17606_v40  ;;  %23831 = vst [vmem:[#allocation28_spill] sm:$0xff] %v18202_v6  ;;  %v3152_v49 = vpop.permute.xlu0 %3151  ;;  %23833 = vst [vmem:[#allocation109_spill] sm:$0xff] %v18218_v25 }
 0x2af   : > { %14025 = vmatprep.mubr.f32.mxu0 %v17652_v53  ;;  %15202 = vmatpush3.bf16.msra.mxu0 %v23825_v41  ;;  %v2708_v1 = vpop.permute.xlu1 %2707  ;;  %3247 = vst.msk [vmem:[#allocation3 + $0x8] sm:$0xff] %vm2604_vm4, %v3152_v49  ;;  %23835 = vst [vmem:[#allocation111_spill] sm:$0xff] %v18234_v24 }
 0x2b0   : > { %15204 = vmatprep.subr.bf16.mxu0 %v18180_v8  ;;  %2528 = vrot.lane.b32.xlu1 %v3478_v42, %s16265_s19  ;;  %2801 = vst.msk [vmem:[#allocation3 + $0x48] sm:$0xff] %vm2797_vm5, %v2708_v1  ;;  %v18211_v42 = vsub.f32 %v17874_v3, %v17890_v13  ;;  %v18227_v3 = vsub.f32 %v17901_v57, %v17915_v58  ;;  %v2650_v57 = vld [vmem:[#allocation2 + $0xd1] sm:$0xff] }
 0x2b1   : > { %3552 = vrot.lane.b32.xlu0 %v18191_v32, %s16266_s20 }
 0x2b2   : > { %14026 = vmatmul.mubr.f32.gmra.mrb[76].mxu0 %v17640_v15  ;;  %23832 = vst [vmem:[#allocation108_spill] sm:$0xff] %v18211_v42  ;;  %23834 = vst [vmem:[#allocation110_spill] sm:$0xff] %v18227_v3 }
 0x2b3   : > { %14028 = vmatprep.mubr.f32.mxu0 %v17692_v54  ;;  %v2895_v1 = vpop.permute.xlu1 %2894 }
 0x2b4   : > { %2721 = vrot.lane.b32.xlu1 %v2647_v20, %s16264_s16  ;;  %v3539_v49 = vpop.permute.xlu0 %3538  ;;  %2991 = vst.msk [vmem:[#allocation3] sm:$0xff] %vm2990_vm6, %v2895_v1  ;;  %v18230_v20 = vld [vmem:[#allocation2 + $0xf0] sm:$0xff]  ;;  %v18251_v1 = vsub.f32 %v17935_v2, %v17948_v36  ;;  %v18267_v2 = vsub.f32 %v17960_v5, %v17984_v27  ;;  %v18281_v5 = vld [vmem:[#allocation2 + $0xe8] sm:$0xff] }
 0x2b5   : > { %3362 = vrot.lane.b32.xlu0 %v3289_v34, %s16264_s16 }
 0x2b6   : > { %14029 = vmatmul.mubr.f32.gmra.mrb[78].mxu0 %v17676_v38  ;;  %23837 = vst [vmem:[#allocation113_spill] sm:$0xff] %v18251_v1  ;;  %23839 = vst [vmem:[#allocation115_spill] sm:$0xff] %v18267_v2 }
 0x2b7   : > { %14031 = vmatprep.mubr.f32.mxu0 %v18202_v6  ;;  %v2897_v19 = vpop.permute.xlu1 %2896 }
 0x2b8   : > { %2534 = vrot.lane.b32.xlu1 %v3481_v9, %s16265_s19  ;;  %v3158_v7 = vpop.permute.xlu0 %3157  ;;  %2992 = vst.msk [vmem:[#allocation3 + $0x18] sm:$0xff] %vm2990_vm6, %v2897_v19  ;;  %v18244_v9 = vsub.f32 %v17927_v10, %v17940_v11  ;;  %v18260_v10 = vsub.f32 %v17951_v43, %v17972_v37  ;;  %v18277_v43 = vsub.f32 %v17987_v30, %v18008_v0 }
 0x2b9   : > { %3171 = vrot.lane.b32.xlu0 %v18214_v39, %s16265_s19  ;;  %3250 = vst.msk [vmem:[#allocation3 + $0x50] sm:$0xff] %vm2604_vm4, %v3158_v7 }
 0x2ba   : > { %14032 = vmatmul.mubr.f32.gmra.mrb[80].mxu0 %v18211_v42  ;;  %23836 = vst [vmem:[#allocation112_spill] sm:$0xff] %v18244_v9  ;;  %23838 = vst [vmem:[#allocation114_spill] sm:$0xff] %v18260_v10 }
 0x2bb   : > { %14034 = vmatprep.mubr.f32.mxu0 %v18218_v25  ;;  %v2513_v19 = vpop.permute.xlu1 %2512  ;;  %23840 = vst [vmem:[#allocation116_spill] sm:$0xff] %v18277_v43 }
 0x2bc   : > { %2727 = vrot.lane.b32.xlu1 %v2650_v57, %s16264_s16  ;;  %v3537_v7 = vpop.permute.xlu0 %3536  ;;  %2607 = vst.msk [vmem:[#allocation3 + $0x30] sm:$0xff] %vm2604_vm4, %v2513_v19  ;;  %v18263_v57 = vld [vmem:[#allocation2 + $0xe7] sm:$0xff]  ;;  %v18322_v19 = vsub.f32 %v18063_v23, %v18080_v47  ;;  %v18337_v23 = vld [vmem:[#allocation2 + $0x110] sm:$0xff]  ;;  %v18341_v47 = vsub.f32 %v18089_v17, %v18098_v35  ;;  %v18354_v17 = vsub.f32 %v18101_v51, %v18110_v63 }
 0x2bd   : > { %3558 = vrot.lane.b32.xlu0 %v18230_v20, %s16266_s20  ;;  %v18359_v35 = vld [vmem:[#allocation2 + $0x111] sm:$0xff] }
 0x2be   : > { %14035 = vmatmul.mubr.f32.gmra.mrb[82].mxu0 %v18227_v3  ;;  %23845 = vst [vmem:[#allocation121_spill] sm:$0xff] %v18322_v19  ;;  %23847 = vst [vmem:[#allocation123_spill] sm:$0xff] %v18341_v47 }
 0x2bf   : > { %14037 = vmatprep.mubr.f32.mxu0 %v18234_v24  ;;  %v2706_v36 = vpop.permute.xlu1 %2705  ;;  %23850 = vst [vmem:[#allocation126_spill] sm:$0xff] %v18354_v17 }
 0x2c0   : > { %2914 = vrot.lane.b32.xlu1 %v3288_v62, %s16266_s20  ;;  %v3347_v11 = vpop.permute.xlu0 %3346  ;;  %2800 = vst.msk [vmem:[#allocation3 + $0x30] sm:$0xff] %vm2797_vm5, %v2706_v36  ;;  %v18285_v62 = vsub.f32 %v17996_v60, %v18018_v61  ;;  %v18294_v36 = vsub.f32 %v18021_v33, %v18045_v18  ;;  %v18299_v60 = vld [vmem:[#allocation2 + $0xef] sm:$0xff] }
 0x2c1   : > { %3177 = vrot.lane.b32.xlu0 %v18247_v12, %s16265_s19  ;;  %3441 = vst.msk [vmem:[#allocation3 + $0x20] sm:$0xff] %vm2797_vm5, %v3347_v11 }
 0x2c2   : > { %14038 = vmatmul.mubr.f32.gmra.mrb[84].mxu0 %v18244_v9  ;;  %3633 = vst.msk [vmem:[#allocation3 + $0x20] sm:$0xff] %vm2990_vm6, %v3539_v49  ;;  %23841 = vst [vmem:[#allocation117_spill] sm:$0xff] %v18285_v62 }
 0x2c3   : > { %14040 = vmatprep.mubr.f32.mxu0 %v18251_v1  ;;  %v2519_v11 = vpop.permute.xlu1 %2518  ;;  %23842 = vst [vmem:[#allocation118_spill] sm:$0xff] %v18294_v36 }
 0x2c4   : > { %2916 = vrot.lane.b32.xlu1 %v3289_v34, %s16266_s20  ;;  %2610 = vst.msk [vmem:[#allocation3 + $0x78] sm:$0xff] %vm2604_vm4, %v2519_v11  ;;  %v3156_v30 = vpop.permute.xlu0 %3155  ;;  %v18303_v34 = vsub.f32 %v18031_v56, %v18051_v29  ;;  %v18318_v56 = vld [vmem:[#allocation2 + $0xe9] sm:$0xff] }
 0x2c5   : > { %3364 = vrot.lane.b32.xlu0 %v18263_v57, %s16264_s16  ;;  %3249 = vst.msk [vmem:[#allocation3 + $0x38] sm:$0xff] %vm2604_vm4, %v3156_v30  ;;  %v3728_v30 = vld [vmem:[#allocation3] sm:$0xff] }
 0x2c6   : > { %14041 = vmatmul.mubr.f32.gmra.mrb[86].mxu0 %v18260_v10  ;;  %23843 = vst [vmem:[#allocation119_spill] sm:$0xff] %v18303_v34 }
 0x2c7   : > { %14043 = vmatprep.mubr.f32.mxu0 %v18267_v2 }
 0x2c8   : > { %2532 = vrot.lane.b32.xlu1 %v18191_v32, %s16265_s19  ;;  %v18314_v32 = vsub.f32 %v18054_v46, %v18073_v48 }
 0x2c9   : > { %3556 = vrot.lane.b32.xlu0 %v18281_v5, %s16266_s20  ;;  %v2712_v49 = vpop.permute.xlu1 %2711 }
 0x2ca   : > { %14044 = vmatmul.mubr.f32.gmra.mrb[88].mxu0 %v18277_v43  ;;  %2803 = vst.msk [vmem:[#allocation3 + $0x78] sm:$0xff] %vm2797_vm5, %v2712_v49  ;;  %v18310_v33 = vpop.permute.xlu0 %3542  ;;  %23844 = vst [vmem:[#allocation120_spill] sm:$0xff] %v18314_v32  ;;  %v3732_v49 = vld [vmem:[#allocation3 + $0x20] sm:$0xff] }
 0x2cb   : > { %14046 = vmatprep.mubr.f32.mxu0 %v18285_v62 }
 0x2cc   : > { %2725 = vrot.lane.b32.xlu1 %v18214_v39, %s16264_s16  ;;  %v18331_v39 = vsub.f32 %v18083_v31, %v18093_v14  ;;  %v18346_v31 = vand.u32 4294901760, %v3728_v30  ;;  %v23851_v14 = vld [vmem:[#allocation96_spill] sm:$0xff] }
 0x2cd   : > { %3366 = vrot.lane.b32.xlu0 %v18299_v60, %s16264_s16  ;;  %v18363_v48 = vsub.f32 %v23851_v14, %v18115_v4  ;;  %v23856_v4 = vld [vmem:[#allocation99_spill] sm:$0xff] }
 0x2ce   : > { %14047 = vmatmul.mubr.f32.gmra.mrb[90].mxu0 %v18294_v36  ;;  %v3345_v11 = vpop.permute.xlu1 %3344  ;;  %v3162_v46 = vpop.permute.xlu0 %3161  ;;  %23846 = vst [vmem:[#allocation122_spill] sm:$0xff] %v18331_v39  ;;  %23848 = vst [vmem:[#allocation124_spill] sm:$0xff] %v18346_v31  ;;  %v18380_v63 = vsub.f32 %v23856_v4, %v18127_v50  ;;  %v23863_v4 = vld [vmem:[#allocation102_spill] sm:$0xff] }
 0x2cf   : > { %14049 = vmatprep.mubr.f32.mxu0 %v18303_v34  ;;  %3440 = vst.msk [vmem:[#allocation3 + $0x8] sm:$0xff] %vm2797_vm5, %v3345_v11  ;;  %23852 = vst [vmem:[#allocation96_spill] sm:$0xff] %v18363_v48 }
 0x2d0   : > { %3632 = vst.msk [vmem:[#allocation3 + $0x8] sm:$0xff] %vm2990_vm6, %v3537_v7  ;;  %2538 = vrot.lane.b32.xlu1 %v18230_v20, %s16265_s19  ;;  %v18349_v7 = vand.u32 4294901760, %v3732_v49  ;;  %23857 = vst [vmem:[#allocation99_spill] sm:$0xff] %v18380_v63 }
 0x2d1   : > { %3175 = vrot.lane.b32.xlu0 %v18318_v56, %s16265_s19  ;;  %3252 = vst.msk [vmem:[#allocation3 + $0x80] sm:$0xff] %vm2604_vm4, %v3162_v46  ;;  %v3731_v46 = vld [vmem:[#allocation3 + $0x18] sm:$0xff] }
 0x2d2   : > { %14050 = vmatmul.mubr.f32.gmra.mrb[92].mxu0 %v18314_v32  ;;  %v2899_v11 = vpop.permute.xlu1 %2898  ;;  %23849 = vst [vmem:[#allocation125_spill] sm:$0xff] %v18349_v7  ;;  %v3349_v20 = vpop.permute.xlu0 %3348  ;;  %v18371_v51 = vand.u32 4294901760, %v3731_v46 }
 0x2d3   : > { %14052 = vmatprep.mubr.f32.mxu0 %v18322_v19  ;;  %2993 = vst.msk [vmem:[#allocation3 + $0x30] sm:$0xff] %vm2990_vm6, %v2899_v11  ;;  %v18369_v11 = vsub.f32 %v3728_v30, %v18346_v31  ;;  %v18385_v30 = vld [vmem:[#allocation2 + $0x107] sm:$0xff]  ;;  %v18389_v31 = vsub.f32 %v18123_v59, %v18135_v21 }
 0x2d4   : > { %3442 = vst.msk [vmem:[#allocation3 + $0x38] sm:$0xff] %vm2797_vm5, %v3349_v20  ;;  %2731 = vrot.lane.b32.xlu1 %v18247_v12, %s16264_s16  ;;  %23854 = vst [vmem:[#allocation128_spill] sm:$0xff] %v18371_v51  ;;  %v18375_v12 = vsub.f32 %v3732_v49, %v18349_v7 }
 0x2d5   : > { %3562 = vrot.lane.b32.xlu0 %v18337_v23, %s16266_s20  ;;  %23853 = vst [vmem:[#allocation127_spill] sm:$0xff] %v18369_v11  ;;  %23858 = vst [vmem:[#allocation130_spill] sm:$0xff] %v18389_v31 }
 0x2d6   : > { %14053 = vmatmul.mubr.f32.gmra.mrb[94].mxu0 %v18331_v39  ;;  %v2901_v20 = vpop.permute.xlu1 %2900  ;;  %23855 = vst [vmem:[#allocation129_spill] sm:$0xff] %v18375_v12  ;;  %v3541_v14 = vpop.permute.xlu0 %3540  ;;  %v23872_v18 = vand.u32 4294901760, %v18375_v12 }
 0x2d7   : > { %14055 = vmatprep.mubr.f32.mxu0 %v18341_v47  ;;  %2994 = vst.msk [vmem:[#allocation3 + $0x48] sm:$0xff] %vm2990_vm6, %v2901_v20  ;;  %v3729_v29 = vld [vmem:[#allocation3 + $0x8] sm:$0xff]  ;;  %3634 = vst.msk [vmem:[#allocation3 + $0x38] sm:$0xff] %vm2990_vm6, %v3541_v14  ;;  %v18398_v20 = vsub.f32 %v3731_v46, %v18371_v51  ;;  %v18412_v46 = vsub.f32 %v23863_v4, %v18150_v45 }
 0x2d8   : > { %2918 = vrot.lane.b32.xlu1 %v18263_v57, %s16266_s20  ;;  %v18391_v49 = vand.u32 4294901760, %v3729_v29  ;;  %v18403_v57 = vsub.f32 %v18130_v52, %v18144_v44  ;;  %v18419_v52 = vld [vmem:[#allocation2 + $0x108] sm:$0xff] }
 0x2d9   : > { %3181 = vrot.lane.b32.xlu0 %v18359_v35, %s16265_s19  ;;  %23860 = vst [vmem:[#allocation132_spill] sm:$0xff] %v18398_v20  ;;  %23864 = vst [vmem:[#allocation102_spill] sm:$0xff] %v18412_v46  ;;  %v23866_v4 = vld [vmem:[#allocation106_spill] sm:$0xff] }
 0x2da   : > { %14056 = vmatmul.mubr.f32.gmra.mrb[96].mxu0 %v18354_v17  ;;  %23859 = vst [vmem:[#allocation131_spill] sm:$0xff] %v18391_v49  ;;  %v2517_v14 = vpop.permute.xlu1 %2516  ;;  %23861 = vst [vmem:[#allocation133_spill] sm:$0xff] %v18403_v57  ;;  %v18406_v59 = vsub.f32 %v3729_v29, %v18391_v49  ;;  %v3734_v21 = vld [vmem:[#allocation3 + $0x30] sm:$0xff] }
 0x2db   : > { %14058 = vmatprep.mubr.f32.mxu0 %v18363_v48  ;;  %2609 = vst.msk [vmem:[#allocation3 + $0x60] sm:$0xff] %vm2604_vm4, %v2517_v14  ;;  %v18414_v51 = vand.u32 4294901760, %v3734_v21  ;;  %v23867_v14 = vld [vmem:[#allocation104_spill] sm:$0xff] }
 0x2dc   : > { %23862 = vst [vmem:[#allocation134_spill] sm:$0xff] %v18406_v59  ;;  %v3351_v50 = vpop.permute.xlu0 %3350  ;;  %2920 = vrot.lane.b32.xlu1 %v18299_v60, %s16266_s20  ;;  %v18429_v7 = vsub.f32 %v23867_v14, %v23866_v4  ;;  %v4070_v14 = vsub.f32 %v18375_v12, %v23872_v18 }
 0x2dd   : > { %3368 = vrot.lane.b32.xlu0 %v18385_v30, %s16264_s16  ;;  %23865 = vst [vmem:[#allocation135_spill] sm:$0xff] %v18414_v51  ;;  %3443 = vst.msk [vmem:[#allocation3 + $0x50] sm:$0xff] %vm2797_vm5, %v3351_v50  ;;  %v23869_v50 = vand.u32 4294901760, %v18369_v11  ;;  %v18436_v29 = vsub.f32 %v3734_v21, %v18414_v51  ;;  %v18451_v21 = vld [vmem:[#allocation2 + $0x10f] sm:$0xff] }
 0x2de   : > { %14059 = vmatmul.mubr.f32.gmra.mrb[98].mxu0 %v18380_v63  ;;  %3635 = vst.msk [vmem:[#allocation3 + $0x50] sm:$0xff] %vm2990_vm6, %v18310_v33  ;;  %23868 = vst [vmem:[#allocation104_spill] sm:$0xff] %v18429_v7  ;;  %v2710_v44 = vpop.permute.xlu1 %2709  ;;  %v23871_v33 = vand.u32 4294901760, %v18406_v59  ;;  %v3737_v4 = vld [vmem:[#allocation3 + $0x48] sm:$0xff] }
 0x2df   : > { %14061 = vmatprep.mubr.f32.mxu0 %v18389_v31  ;;  %v4061_v60 = vsub.f32 %v18369_v11, %v23869_v50  ;;  %23870 = vst [vmem:[#allocation136_spill] sm:$0xff] %v18436_v29  ;;  %2802 = vst.msk [vmem:[#allocation3 + $0x60] sm:$0xff] %vm2797_vm5, %v2710_v44  ;;  %v3735_v11 = vld [vmem:[#allocation3 + $0x38] sm:$0xff]  ;;  %v18446_v49 = vand.u32 4294901760, %v3737_v4  ;;  %v23875_v44 = vand.u32 4294901760, %v18398_v20 }
 0x2e0   : > { %v4055_v45 = vsub.f32 %v18406_v59, %v23871_v33  ;;  %v3160_v50 = vpop.permute.xlu0 %3159  ;;  %2536 = vrot.lane.b32.xlu1 %v18281_v5, %s16265_s19  ;;  %v18453_v33 = vand.u32 4294901760, %v3735_v11  ;;  %v23876_v5 = vld [vmem:[#allocation47_spill] sm:$0xff] }
 0x2e1   : > { %3560 = vrot.lane.b32.xlu0 %v18419_v52, %s16266_s20  ;;  %23873 = vst [vmem:[#allocation137_spill] sm:$0xff] %v18446_v49  ;;  %3251 = vst.msk [vmem:[#allocation3 + $0x68] sm:$0xff] %vm2604_vm4, %v3160_v50  ;;  %v4062_v18 = vand.u32 4294901760, %v4061_v60  ;;  %v4076_v12 = vsub.f32 %v18398_v20, %v23875_v44  ;;  %v23877_v61 = vand.u32 4294901760, %v23876_v5  ;;  %v18468_v27 = vsub.f32 %v3737_v4, %v18446_v49  ;;  %v23880_v44 = vld [vmem:[#allocation31_spill] sm:$0xff]  ;;  %v23882_v50 = vld [vmem:[#allocation32_spill] sm:$0xff] }
 0x2e2   : > { %14062 = vmatmul.mubr.f32.gmra.mrb[100].mxu0 %v18412_v46  ;;  %v4056_v51 = vand.u32 4294901760, %v4055_v45  ;;  %23874 = vst [vmem:[#allocation138_spill] sm:$0xff] %v18453_v33  ;;  %v2523_v59 = vpop.permute.xlu1 %2522  ;;  %v4071_v45 = vand.u32 4294901760, %v4070_v14  ;;  %v18465_v0 = vsub.f32 %v3735_v11, %v18453_v33  ;;  %v23881_v20 = vand.u32 4294901760, %v23880_v44 }
 0x2e3   : > { %14064 = vmatprep.mubr.f32.mxu0 %v18403_v57  ;;  %23879 = vst [vmem:[#allocation139_spill] sm:$0xff] %v18468_v27  ;;  %2612 = vst.msk [vmem:[#allocation3 + $0xa8] sm:$0xff] %vm2604_vm4, %v2523_v59  ;;  %v23884_v59 = vand.u32 4294901760, %v17550_v55  ;;  %v4077_v14 = vand.u32 4294901760, %v4076_v12  ;;  %v23135_v44 = vand.u32 4294901760, %v18468_v27 }
 0x2e4   : > { %4057 = vmatprep.mubr.f32.mxu1 %v4056_v51  ;;  %23878 = vst [vmem:[#allocation47_spill] sm:$0xff] %v18465_v0  ;;  %v18471_v60 = vpop.permute.xlu0 %3546  ;;  %v23883_v51 = vand.u32 4294901760, %v23882_v50  ;;  %2729 = vrot.lane.b32.xlu1 %v18318_v56, %s16264_s16  ;;  %v23150_v11 = vand.u32 4294901760, %v18465_v0  ;;  %v23887_v56 = vand.u32 4294901760, %v17620_v22  ;;  %v18505_v22 = vld [vmem:[#allocation2 + $0x130] sm:$0xff] }
 0x2e5   : > { %3370 = vrot.lane.b32.xlu0 %v18451_v21, %s16264_s16  ;;  %4063 = vmatmul.mubr.f32.vlgmr.msra.gmra.mrb[32].mxu1 %v4062_v18  ;;  %v3738_v4 = vld [vmem:[#allocation3 + $0x50] sm:$0xff]  ;;  %v23885_v18 = vand.u32 4294901760, %v18436_v29 }
 0x2e6   : > { %14065 = vmatmul.mubr.f32.gmra.mrb[102].mxu0 %v18429_v7  ;;  %v15207_v37 = vpack.c.bf16 %v23883_v51, %v23881_v20  ;;  %4072 = vmatprep.mubr.f32.mxu1 %v4071_v45  ;;  %v18489_v50 = vand.u32 4294901760, %v3738_v4  ;;  %v2716_v5 = vpop.permute.xlu1 %2715  ;;  %v4085_v45 = vsub.f32 %v18465_v0, %v23150_v11 }
 0x2e7   : > { %14075 = vmatprep.mubr.f32.mxu0 %v23877_v61  ;;  %v18479_v61 = vld [vmem:[#allocation2 + $0x109] sm:$0xff]  ;;  %v4091_v20 = vsub.f32 %v18436_v29, %v23885_v18  ;;  %2805 = vst.msk [vmem:[#allocation3 + $0xa8] sm:$0xff] %vm2797_vm5, %v2716_v5  ;;  %v23890_v18 = vand.u32 4294901760, %v17652_v53  ;;  %v18524_v53 = vld [vmem:[#allocation2 + $0x131] sm:$0xff] }
 0x2e8   : > { %23886 = vst [vmem:[#allocation31_spill] sm:$0xff] %v18489_v50  ;;  %v3166_v55 = vpop.permute.xlu0 %3165  ;;  %v18500_v12 = vsub.f32 %v3738_v4, %v18489_v50  ;;  %2542 = vrot.lane.b32.xlu1 %v18337_v23, %s16265_s19  ;;  %v4086_v51 = vand.u32 4294901760, %v4085_v45  ;;  %v4106_v23 = vsub.f32 %v18468_v27, %v23135_v44  ;;  %v23967_v29 = vld [vmem:[#allocation87_spill] sm:$0xff] }
 0x2e9   : > { %3179 = vrot.lane.b32.xlu0 %v18479_v61, %s16265_s19  ;;  %4078 = vmatmul.mubr.f32.gmra.mrb[34].mxu1 %v4077_v14  ;;  %3254 = vst.msk [vmem:[#allocation3 + $0xb0] sm:$0xff] %vm2604_vm4, %v3166_v55  ;;  %v23892_v55 = vand.u32 4294901760, %v17692_v54  ;;  %v23893_v54 = vand.u32 4294901760, %v17676_v38  ;;  %v23131_v38 = vand.u32 4294901760, %v18218_v25  ;;  %v23938_v25 = vld [vmem:[#allocation75_spill] sm:$0xff] }
 0x2ea   : > { %14076 = vmatmul.mubr.f32.vlgmr.msra.gmra.mrb[104].mxu0 %v23884_v59  ;;  %23888 = vst [vmem:[#allocation32_spill] sm:$0xff] %v18500_v12  ;;  %v4092_v59 = vand.u32 4294901760, %v4091_v20  ;;  %v23139_v14 = vand.u32 4294901760, %v18500_v12  ;;  %4087 = vmatprep.mubr.f32.mxu1 %v4086_v51  ;;  %v2903_v4 = vpop.permute.xlu1 %2902  ;;  %v23891_v20 = vand.u32 4294901760, %v17640_v15  ;;  %v18537_v51 = vld [vmem:[#allocation2 + $0x127] sm:$0xff]  ;;  %v23133_v15 = vand.u32 4294901760, %v18202_v6 }
 0x2eb   : > { %14078 = vmatprep.mubr.f32.mxu0 %v23887_v56  ;;  %15206 = vmatpush3.bf16.msra.mxu0 %v18180_v8  ;;  %v23889_v8 = vand.u32 4294901760, %v17606_v40  ;;  %2995 = vst.msk [vmem:[#allocation3 + $0x60] sm:$0xff] %vm2990_vm6, %v2903_v4 }
 0x2ec   : > { %15208 = vmatprep.subr.bf16.mxu0 %v15207_v37  ;;  %v3353_v5 = vpop.permute.xlu0 %3352  ;;  %v4100_v40 = vsub.f32 %v18500_v12, %v23139_v14  ;;  %2735 = vrot.lane.b32.xlu1 %v18359_v35, %s16264_s16 }
 0x2ed   : > { %3566 = vrot.lane.b32.xlu0 %v18505_v22, %s16266_s20  ;;  %4093 = vmatmul.mubr.f32.gmra.mrb[36].mxu1 %v4092_v59  ;;  %3444 = vst.msk [vmem:[#allocation3 + $0x68] sm:$0xff] %vm2797_vm5, %v3353_v5 }
 0x2ee   : > { %14079 = vmatmul.mubr.f32.gmra.mrb[106].mxu0 %v23889_v8  ;;  %v4101_v56 = vand.u32 4294901760, %v4100_v40  ;;  %v2905_v45 = vpop.permute.xlu1 %2904 }
 0x2ef   : > { %14081 = vmatprep.mubr.f32.mxu0 %v23890_v18  ;;  %15210 = vmatpush3.bf16.msra.mxu0 %v15207_v37  ;;  %v4107_v37 = vand.u32 4294901760, %v4106_v23  ;;  %2996 = vst.msk [vmem:[#allocation3 + $0x78] sm:$0xff] %vm2990_vm6, %v2905_v45  ;;  %v18553_v23 = vld [vmem:[#allocation2 + $0x128] sm:$0xff] }
 0x2f0   : > { %15212 = vmatprep.subr.bf16.mxu0 %v17232_v28  ;;  %4102 = vmatprep.mubr.f32.mxu1 %v4101_v56  ;;  %v23129_v56 = vand.u32 4294901760, %v18227_v3 }
 0x2f1   : > { %3185 = vrot.lane.b32.xlu0 %v18524_v53, %s16265_s19  ;;  %v3545_v35 = vpop.permute.xlu0 %3544  ;;  %4108 = vmatmul.mubr.f32.gmra.mrb[38].mxu1 %v4107_v37  ;;  %v23130_v37 = vand.u32 4294901760, %v18234_v24  ;;  %v18869_v24 = vld [vmem:[#allocation2 + $0x190] sm:$0xff] }
 0x2f2   : > { %14082 = vmatmul.mubr.f32.gmra.mrb[108].mxu0 %v23891_v20  ;;  %3636 = vst.msk [vmem:[#allocation3 + $0x68] sm:$0xff] %vm2990_vm6, %v3545_v35  ;;  %2922 = vrot.lane.b32.xlu1 %v18385_v30, %s16266_s20  ;;  %v2521_v8 = vpop.permute.xlu1 %2520  ;;  %v3740_v59 = vld [vmem:[#allocation3 + $0x60] sm:$0xff]  ;;  %v23132_v30 = vand.u32 4294901760, %v18211_v42  ;;  %v23941_v42 = vld [vmem:[#allocation14_spill] sm:$0xff] }
 0x2f3   : > { %14084 = vmatprep.mubr.f32.mxu0 %v23892_v55  ;;  %2611 = vst.msk [vmem:[#allocation3 + $0x90] sm:$0xff] %vm2604_vm4, %v2521_v8  ;;  %v18548_v18 = vand.u32 4294901760, %v3740_v59  ;;  %v18574_v55 = vld [vmem:[#allocation2 + $0x12f] sm:$0xff]  ;;  %v23216_v6 = vand.u32 4294901760, %v23941_v42 }
 0x2f5   : > { %3372 = vrot.lane.b32.xlu0 %v18537_v51, %s16264_s16  ;;  %23894 = vst [vmem:[#allocation140_spill] sm:$0xff] %v18548_v18  ;;  %v18563_v5 = vsub.f32 %v3740_v59, %v18548_v18 }
 0x2f6   : > { %14085 = vmatmul.mubr.f32.gmra.mrb[110].mxu0 %v23893_v54  ;;  %2924 = vrot.lane.b32.xlu1 %v18451_v21, %s16266_s20  ;;  %v2714_v40 = vpop.permute.xlu1 %2713  ;;  %v3743_v21 = vld [vmem:[#allocation3 + $0x78] sm:$0xff] }
 0x2f7   : > { %14087 = vmatprep.mubr.f32.mxu0 %v23133_v15  ;;  %v3355_v4 = vpop.permute.xlu0 %3354  ;;  %23895 = vst [vmem:[#allocation141_spill] sm:$0xff] %v18563_v5  ;;  %2804 = vst.msk [vmem:[#allocation3 + $0x90] sm:$0xff] %vm2797_vm5, %v2714_v40  ;;  %v18569_v45 = vand.u32 4294901760, %v3743_v21  ;;  %v23137_v54 = vand.u32 4294901760, %v18563_v5  ;;  %v23134_v40 = vand.u32 4294901760, %v18244_v9 }
 0x2f8   : > { %3445 = vst.msk [vmem:[#allocation3 + $0x80] sm:$0xff] %vm2797_vm5, %v3355_v4 }
 0x2f9   : > { %3637 = vst.msk [vmem:[#allocation3 + $0x80] sm:$0xff] %vm2990_vm6, %v18471_v60  ;;  %3564 = vrot.lane.b32.xlu0 %v18553_v23, %s16266_s20  ;;  %v3741_v60 = vld [vmem:[#allocation3 + $0x68] sm:$0xff]  ;;  %23896 = vst [vmem:[#allocation142_spill] sm:$0xff] %v18569_v45  ;;  %v18590_v59 = vsub.f32 %v3743_v21, %v18569_v45  ;;  %v4121_v21 = vsub.f32 %v18563_v5, %v23137_v54  ;;  %v24001_v45 = vld [vmem:[#allocation101_spill] sm:$0xff] }
 0x2fa   : > { %14088 = vmatmul.mubr.f32.gmra.mrb[112].mxu0 %v23132_v30  ;;  %2540 = vrot.lane.b32.xlu1 %v18419_v52, %s16265_s19  ;;  %v18577_v35 = vand.u32 4294901760, %v3741_v60  ;;  %v2527_v8 = vpop.permute.xlu1 %2526 }
 0x2fb   : > { %14090 = vmatprep.mubr.f32.mxu0 %v23131_v38  ;;  %v3164_v20 = vpop.permute.xlu0 %3163  ;;  %23899 = vst [vmem:[#allocation145_spill] sm:$0xff] %v18590_v59  ;;  %2614 = vst.msk [vmem:[#allocation3 + $0xd8] sm:$0xff] %vm2604_vm4, %v2527_v8  ;;  %v23142_v30 = vand.u32 4294901760, %v18590_v59 }
 0x2fc   : > { %3253 = vst.msk [vmem:[#allocation3 + $0x98] sm:$0xff] %vm2604_vm4, %v3164_v20  ;;  %23897 = vst [vmem:[#allocation143_spill] sm:$0xff] %v18577_v35  ;;  %v18587_v52 = vsub.f32 %v3741_v60, %v18577_v35  ;;  %v18598_v20 = vld [vmem:[#allocation2 + $0x129] sm:$0xff] }
 0x2fd   : > { %3374 = vrot.lane.b32.xlu0 %v18574_v55, %s16264_s16  ;;  %v24009_v35 = vld [vmem:[#allocation103_spill] sm:$0xff] }
 0x2fe   : > { %14091 = vmatmul.mubr.f32.gmra.mrb[114].mxu0 %v23129_v56  ;;  %23898 = vst [vmem:[#allocation144_spill] sm:$0xff] %v18587_v52  ;;  %2733 = vrot.lane.b32.xlu1 %v18479_v61, %s16264_s16  ;;  %v23136_v56 = vand.u32 4294901760, %v18251_v1  ;;  %v2720_v61 = vpop.permute.xlu1 %2719 }
 0x2ff   : > { %14093 = vmatprep.mubr.f32.mxu0 %v23130_v37  ;;  %v18593_v4 = vpop.permute.xlu0 %3550  ;;  %v23138_v37 = vand.u32 4294901760, %v18587_v52  ;;  %2807 = vst.msk [vmem:[#allocation3 + $0xd8] sm:$0xff] %vm2797_vm5, %v2720_v61  ;;  %v4122_v61 = vand.u32 4294901760, %v4121_v21 }
 0x300   : > { %v3744_v60 = vld [vmem:[#allocation3 + $0x80] sm:$0xff] }
 0x301   : > { %3183 = vrot.lane.b32.xlu0 %v18598_v20, %s16265_s19  ;;  %v18609_v8 = vand.u32 4294901760, %v3744_v60  ;;  %v4115_v38 = vsub.f32 %v18587_v52, %v23138_v37  ;;  %v23140_v37 = vand.u32 4294901760, %v18267_v2 }
 0x302   : > { %14094 = vmatmul.mubr.f32.gmra.mrb[116].mxu0 %v23134_v40  ;;  %v23141_v40 = vand.u32 4294901760, %v18260_v10  ;;  %2546 = vrot.lane.b32.xlu1 %v18505_v22, %s16265_s19  ;;  %v2907_v14 = vpop.permute.xlu1 %2906  ;;  %v4136_v22 = vsub.f32 %v18590_v59, %v23142_v30  ;;  %v18660_v30 = vld [vmem:[#allocation2 + $0x147] sm:$0xff] }
 0x303   : > { %23900 = vst [vmem:[#allocation146_spill] sm:$0xff] %v18609_v8  ;;  %14096 = vmatprep.mubr.f32.mxu0 %v23136_v56  ;;  %v3170_v15 = vpop.permute.xlu0 %3169  ;;  %v18620_v44 = vsub.f32 %v3744_v60, %v18609_v8  ;;  %v18625_v56 = vld [vmem:[#allocation2 + $0x150] sm:$0xff]  ;;  %v4116_v54 = vand.u32 4294901760, %v4115_v38  ;;  %2997 = vst.msk [vmem:[#allocation3 + $0x90] sm:$0xff] %vm2990_vm6, %v2907_v14  ;;  %v23146_v38 = vand.u32 4294901760, %v18277_v43 }
 0x304   : > { %3256 = vst.msk [vmem:[#allocation3 + $0xe0] sm:$0xff] %vm2604_vm4, %v3170_v15 }
 0x305   : > { %23901 = vst [vmem:[#allocation147_spill] sm:$0xff] %v18620_v44  ;;  %3570 = vrot.lane.b32.xlu0 %v18625_v56, %s16266_s20  ;;  %v23148_v60 = vand.u32 4294901760, %v18620_v44  ;;  %4117 = vmatprep.mubr.f32.mxu1 %v4116_v54  ;;  %v18646_v54 = vld [vmem:[#allocation2 + $0x151] sm:$0xff] }
 0x306   : > { %14097 = vmatmul.mubr.f32.gmra.mrb[118].mxu0 %v23141_v40  ;;  %4123 = vmatmul.mubr.f32.gmra.mrb[40].mxu1 %v4122_v61  ;;  %v2909_v61 = vpop.permute.xlu1 %2908  ;;  %v4137_v40 = vand.u32 4294901760, %v4136_v22 }
 0x307   : > { %14099 = vmatprep.mubr.f32.mxu0 %v23140_v37  ;;  %v3357_v15 = vpop.permute.xlu0 %3356  ;;  %v4130_v21 = vsub.f32 %v18620_v44, %v23148_v60  ;;  %2739 = vrot.lane.b32.xlu1 %v18524_v53, %s16264_s16  ;;  %v23145_v37 = vand.u32 4294901760, %v18285_v62  ;;  %2998 = vst.msk [vmem:[#allocation3 + $0xa8] sm:$0xff] %vm2990_vm6, %v2909_v61  ;;  %v23927_v62 = vld [vmem:[#allocation53_spill] sm:$0xff] }
 0x308   : > { %3446 = vst.msk [vmem:[#allocation3 + $0x98] sm:$0xff] %vm2797_vm5, %v3357_v15  ;;  %v23143_v15 = vand.u32 4294901760, %v18294_v36 }
 0x309   : > { %3189 = vrot.lane.b32.xlu0 %v18646_v54, %s16265_s19  ;;  %v4131_v14 = vand.u32 4294901760, %v4130_v21  ;;  %v23144_v21 = vand.u32 4294901760, %v18303_v34 }
 0x30a   : > { %14100 = vmatmul.mubr.f32.gmra.mrb[120].mxu0 %v23146_v38  ;;  %v2525_v22 = vpop.permute.xlu1 %2524 }
 0x30b   : > { %14102 = vmatprep.mubr.f32.mxu0 %v23145_v37  ;;  %4132 = vmatprep.mubr.f32.mxu1 %v4131_v14  ;;  %v3549_v53 = vpop.permute.xlu0 %3548  ;;  %v3746_v14 = vld [vmem:[#allocation3 + $0x90] sm:$0xff]  ;;  %2613 = vst.msk [vmem:[#allocation3 + $0xc0] sm:$0xff] %vm2604_vm4, %v2525_v22  ;;  %v23153_v37 = vand.u32 4294901760, %v18331_v39 }
 0x30c   : > { %3638 = vst.msk [vmem:[#allocation3 + $0x98] sm:$0xff] %vm2990_vm6, %v3549_v53  ;;  %4138 = vmatmul.mubr.f32.gmra.mrb[42].mxu1 %v4137_v40  ;;  %2926 = vrot.lane.b32.xlu1 %v18537_v51, %s16266_s20  ;;  %v23147_v51 = vand.u32 4294901760, %v18314_v32  ;;  %v18671_v61 = vand.u32 4294901760, %v3746_v14  ;;  %v18676_v53 = vld [vmem:[#allocation2 + $0x148] sm:$0xff] }
 0x30d   : > { %3376 = vrot.lane.b32.xlu0 %v18660_v30, %s16264_s16 }
 0x30e   : > { %14103 = vmatmul.mubr.f32.gmra.mrb[122].mxu0 %v23143_v15  ;;  %23902 = vst [vmem:[#allocation148_spill] sm:$0xff] %v18671_v61  ;;  %v23149_v15 = vand.u32 4294901760, %v18322_v19  ;;  %v18686_v22 = vsub.f32 %v3746_v14, %v18671_v61  ;;  %v18697_v14 = vld [vmem:[#allocation2 + $0x14f] sm:$0xff]  ;;  %v23163_v19 = vand.u32 4294901760, %v18354_v17 }
 0x30f   : > { %14105 = vmatprep.mubr.f32.mxu0 %v23144_v21  ;;  %v3359_v40 = vpop.permute.xlu0 %3358 }
 0x310   : > { %3447 = vst.msk [vmem:[#allocation3 + $0xb0] sm:$0xff] %vm2797_vm5, %v3359_v40  ;;  %2928 = vrot.lane.b32.xlu1 %v18574_v55, %s16266_s20  ;;  %23903 = vst [vmem:[#allocation149_spill] sm:$0xff] %v18686_v22  ;;  %v2718_v40 = vpop.permute.xlu1 %2717  ;;  %v3749_v55 = vld [vmem:[#allocation3 + $0xa8] sm:$0xff] }
 0x311   : > { %3639 = vst.msk [vmem:[#allocation3 + $0xb0] sm:$0xff] %vm2990_vm6, %v18593_v4  ;;  %3568 = vrot.lane.b32.xlu0 %v18676_v53, %s16266_s20  ;;  %v18692_v38 = vand.u32 4294901760, %v3749_v55 }
 0x312   : > { %14106 = vmatmul.mubr.f32.gmra.mrb[124].mxu0 %v23147_v51  ;;  %2806 = vst.msk [vmem:[#allocation3 + $0xc0] sm:$0xff] %vm2797_vm5, %v2718_v40  ;;  %v23154_v51 = vand.u32 4294901760, %v18341_v47  ;;  %v23166_v40 = vand.u32 4294901760, %v18363_v48 }
 0x313   : > { %14108 = vmatprep.mubr.f32.mxu0 %v23149_v15  ;;  %v3168_v21 = vpop.permute.xlu0 %3167  ;;  %v3747_v4 = vld [vmem:[#allocation3 + $0x98] sm:$0xff]  ;;  %23904 = vst [vmem:[#allocation150_spill] sm:$0xff] %v18692_v38 }
 0x314   : > { %3255 = vst.msk [vmem:[#allocation3 + $0xc8] sm:$0xff] %vm2604_vm4, %v3168_v21  ;;  %2544 = vrot.lane.b32.xlu1 %v18553_v23, %s16265_s19  ;;  %v18700_v60 = vand.u32 4294901760, %v3747_v4  ;;  %v2531_v15 = vpop.permute.xlu1 %2530  ;;  %v18713_v21 = vsub.f32 %v3749_v55, %v18692_v38 }
 0x315   : > { %3378 = vrot.lane.b32.xlu0 %v18697_v14, %s16264_s16  ;;  %2616 = vst.msk [vmem:[#allocation3 + $0x108] sm:$0xff] %vm2604_vm4, %v2531_v15  ;;  %v23908_v15 = vand.u32 4294901760, %v18686_v22 }
 0x316   : > { %23905 = vst [vmem:[#allocation151_spill] sm:$0xff] %v18700_v60  ;;  %14109 = vmatmul.mubr.f32.gmra.mrb[126].mxu0 %v23153_v37  ;;  %v18710_v23 = vsub.f32 %v3747_v4, %v18700_v60  ;;  %23907 = vst [vmem:[#allocation153_spill] sm:$0xff] %v18713_v21  ;;  %v18721_v37 = vld [vmem:[#allocation2 + $0x149] sm:$0xff] }
 0x317   : > { %14111 = vmatprep.mubr.f32.mxu0 %v23154_v51  ;;  %v18716_v11 = vpop.permute.xlu0 %3554  ;;  %v4151_v55 = vsub.f32 %v18686_v22, %v23908_v15  ;;  %v18748_v15 = vld [vmem:[#allocation2 + $0x170] sm:$0xff]  ;;  %v23957_v22 = vld [vmem:[#allocation82_spill] sm:$0xff] }
 0x318   : > { %23906 = vst [vmem:[#allocation152_spill] sm:$0xff] %v18710_v23  ;;  %2737 = vrot.lane.b32.xlu1 %v18598_v20, %s16264_s16  ;;  %v23167_v51 = vand.u32 4294901760, %v18710_v23  ;;  %v3750_v4 = vld [vmem:[#allocation3 + $0xb0] sm:$0xff]  ;;  %v2724_v20 = vpop.permute.xlu1 %2723 }
 0x319   : > { %3187 = vrot.lane.b32.xlu0 %v18721_v37, %s16265_s19  ;;  %v18732_v47 = vand.u32 4294901760, %v3750_v4  ;;  %2809 = vst.msk [vmem:[#allocation3 + $0x108] sm:$0xff] %vm2797_vm5, %v2724_v20  ;;  %v4152_v20 = vand.u32 4294901760, %v4151_v55  ;;  %v18770_v55 = vld [vmem:[#allocation2 + $0x171] sm:$0xff] }
 0x31a   : > { %14112 = vmatmul.mubr.f32.gmra.mrb[128].mxu0 %v23163_v19  ;;  %v4145_v39 = vsub.f32 %v18710_v23, %v23167_v51  ;;  %v23170_v19 = vand.u32 4294901760, %v18380_v63  ;;  %v23171_v51 = vand.u32 4294901760, %v18389_v31 }
 0x31b   : > { %23909 = vst [vmem:[#allocation154_spill] sm:$0xff] %v18732_v47  ;;  %14114 = vmatprep.mubr.f32.mxu0 %v23166_v40  ;;  %v3174_v17 = vpop.permute.xlu0 %3173  ;;  %v18743_v34 = vsub.f32 %v3750_v4, %v18732_v47 }
 0x31c   : > { %3258 = vst.msk [vmem:[#allocation3 + $0x110] sm:$0xff] %vm2604_vm4, %v3174_v17  ;;  %2550 = vrot.lane.b32.xlu1 %v18625_v56, %s16265_s19  ;;  %v4146_v40 = vand.u32 4294901760, %v4145_v39  ;;  %v2911_v32 = vpop.permute.xlu1 %2910  ;;  %v23911_v17 = vand.u32 4294901760, %v18713_v21  ;;  %v23174_v56 = vand.u32 4294901760, %v18403_v57  ;;  %v18842_v57 = vld [vmem:[#allocation2 + $0x169] sm:$0xff] }
 0x31d   : > { %23910 = vst [vmem:[#allocation155_spill] sm:$0xff] %v18743_v34  ;;  %3574 = vrot.lane.b32.xlu0 %v18748_v15, %s16266_s20  ;;  %v23175_v4 = vand.u32 4294901760, %v18743_v34  ;;  %2999 = vst.msk [vmem:[#allocation3 + $0xc0] sm:$0xff] %vm2990_vm6, %v2911_v32 }
 0x31e   : > { %14115 = vmatmul.mubr.f32.gmra.mrb[130].mxu0 %v23170_v19  ;;  %4147 = vmatprep.mubr.f32.mxu1 %v4146_v40  ;;  %v4166_v39 = vsub.f32 %v18713_v21, %v23911_v17  ;;  %v23173_v19 = vand.u32 4294901760, %v18412_v46  ;;  %v23921_v46 = vld [vmem:[#allocation49_spill] sm:$0xff] }
 0x31f   : > { %14117 = vmatprep.mubr.f32.mxu0 %v23171_v51  ;;  %4153 = vmatmul.mubr.f32.gmra.mrb[44].mxu1 %v4152_v20  ;;  %v3361_v48 = vpop.permute.xlu0 %3360  ;;  %v4160_v40 = vsub.f32 %v18743_v34, %v23175_v4  ;;  %v23172_v20 = vand.u32 4294901760, %v18429_v7 }
 0x320   : > { %3448 = vst.msk [vmem:[#allocation3 + $0xc8] sm:$0xff] %vm2797_vm5, %v3361_v48  ;;  %2743 = vrot.lane.b32.xlu1 %v18646_v54, %s16264_s16  ;;  %v2913_v17 = vpop.permute.xlu1 %2912  ;;  %v4167_v51 = vand.u32 4294901760, %v4166_v39  ;;  %v18783_v54 = vld [vmem:[#allocation2 + $0x167] sm:$0xff] }
 0x321   : > { %3193 = vrot.lane.b32.xlu0 %v18770_v55, %s16265_s19  ;;  %v4161_v32 = vand.u32 4294901760, %v4160_v40  ;;  %3000 = vst.msk [vmem:[#allocation3 + $0xd8] sm:$0xff] %vm2990_vm6, %v2913_v17  ;;  %v23912_v40 = vld [vmem:[#allocation46_spill] sm:$0xff] }
 0x322   : > { %14118 = vmatmul.mubr.f32.gmra.mrb[132].mxu0 %v23173_v19  ;;  %v23916_v19 = vld [vmem:[#allocation51_spill] sm:$0xff] }
 0x323   : > { %14120 = vmatprep.mubr.f32.mxu0 %v23174_v56  ;;  %4162 = vmatprep.mubr.f32.mxu1 %v4161_v32  ;;  %v3553_v48 = vpop.permute.xlu0 %3552 }
 0x324   : > { %3640 = vst.msk [vmem:[#allocation3 + $0xc8] sm:$0xff] %vm2990_vm6, %v3553_v48  ;;  %4168 = vmatmul.mubr.f32.gmra.mrb[46].mxu1 %v4167_v51  ;;  %2930 = vrot.lane.b32.xlu1 %v18660_v30, %s16266_s20  ;;  %v2529_v39 = vpop.permute.xlu1 %2528  ;;  %v3752_v32 = vld [vmem:[#allocation3 + $0xc0] sm:$0xff]  ;;  %v18796_v30 = vld [vmem:[#allocation2 + $0x168] sm:$0xff] }
 0x325   : > { %3380 = vrot.lane.b32.xlu0 %v18783_v54, %s16264_s16  ;;  %2615 = vst.msk [vmem:[#allocation3 + $0xf0] sm:$0xff] %vm2604_vm4, %v2529_v39  ;;  %v18791_v48 = vand.u32 4294901760, %v3752_v32  ;;  %v23914_v51 = vld [vmem:[#allocation45_spill] sm:$0xff] }
 0x326   : > { %14121 = vmatmul.mubr.f32.gmra.mrb[134].mxu0 %v23172_v20 }
 0x327   : > { %14131 = vmatprep.mubr.f32.mxu0 %v23912_v40  ;;  %v3363_v17 = vpop.permute.xlu0 %3362  ;;  %23913 = vst [vmem:[#allocation46_spill] sm:$0xff] %v18791_v48  ;;  %v18804_v39 = vsub.f32 %v3752_v32, %v18791_v48  ;;  %v18817_v32 = vld [vmem:[#allocation2 + $0x16f] sm:$0xff] }
 0x328   : > { %3449 = vst.msk [vmem:[#allocation3 + $0xe0] sm:$0xff] %vm2797_vm5, %v3363_v17  ;;  %2932 = vrot.lane.b32.xlu1 %v18697_v14, %s16266_s20  ;;  %v2722_v20 = vpop.permute.xlu1 %2721  ;;  %v3755_v17 = vld [vmem:[#allocation3 + $0xd8] sm:$0xff] }
 0x329   : > { %3641 = vst.msk [vmem:[#allocation3 + $0xe0] sm:$0xff] %vm2990_vm6, %v18716_v11  ;;  %3572 = vrot.lane.b32.xlu0 %v18796_v30, %s16266_s20  ;;  %23915 = vst [vmem:[#allocation45_spill] sm:$0xff] %v18804_v39  ;;  %v18809_v4 = vand.u32 4294901760, %v3755_v17  ;;  %v18813_v11 = vpop.f32.mrb[32].mxu0 }
 0x32a   : > { %14132 = vmatmul.mubr.f32.vlgmr.msra.gmra.mrb[136].mxu0 %v23914_v51  ;;  %2808 = vst.msk [vmem:[#allocation3 + $0xf0] sm:$0xff] %vm2797_vm5, %v2722_v20  ;;  %23918 = vst [vmem:[#allocation156_spill] sm:$0xff] %v18813_v11  ;;  %v18823_v20 = vpop.f32.mrb[33].mxu0 }
 0x32b   : > { %14134 = vmatprep.mubr.f32.mxu0 %v23916_v19  ;;  %15214 = vmatpush3.bf16.msra.mxu0 %v17232_v28  ;;  %v3172_v14 = vpop.permute.xlu0 %3171  ;;  %v3753_v56 = vld [vmem:[#allocation3 + $0xc8] sm:$0xff]  ;;  %23917 = vst [vmem:[#allocation51_spill] sm:$0xff] %v18809_v4  ;;  %23920 = vst [vmem:[#allocation158_spill] sm:$0xff] %v18823_v20 }
 0x32c   : > { %15216 = vmatprep.subr.bf16.mxu0 %v23825_v41  ;;  %3257 = vst.msk [vmem:[#allocation3 + $0xf8] sm:$0xff] %vm2604_vm4, %v3172_v14  ;;  %2548 = vrot.lane.b32.xlu1 %v18676_v53, %s16265_s19  ;;  %v18819_v7 = vand.u32 4294901760, %v3753_v56  ;;  %v2535_v31 = vpop.permute.xlu1 %2534  ;;  %v23922_v14 = vld [vmem:[#allocation54_spill] sm:$0xff]  ;;  %v18832_v53 = vsub.f32 %v3755_v17, %v18809_v4  ;;  %v18838_v20 = vpop.f32.mrb[34].mxu0  ;;  %v23983_v4 = vld [vmem:[#allocation21_spill] sm:$0xff] }
 0x32d   : > { %3382 = vrot.lane.b32.xlu0 %v18817_v32, %s16264_s16  ;;  %2618 = vst.msk [vmem:[#allocation3 + $0x138] sm:$0xff] %vm2604_vm4, %v2535_v31  ;;  %23925 = vst [vmem:[#allocation159_spill] sm:$0xff] %v18838_v20  ;;  %v18847_v17 = vpop.f32.mrb[35].mxu0  ;;  %v23928_v31 = vand.u32 4294901760, %v18804_v39 }
 0x32e   : > { %23919 = vst [vmem:[#allocation157_spill] sm:$0xff] %v18819_v7  ;;  %14135 = vmatmul.mubr.f32.gmra.mrb[138].mxu0 %v23921_v46  ;;  %v18829_v11 = vsub.f32 %v3753_v56, %v18819_v7  ;;  %23924 = vst [vmem:[#allocation54_spill] sm:$0xff] %v18832_v53  ;;  %v23992_v7 = vld [vmem:[#allocation98_spill] sm:$0xff] }
 0x32f   : > { %14137 = vmatprep.mubr.f32.mxu0 %v23922_v14  ;;  %15218 = vmatpush3.bf16.msra.mxu0 %v23825_v41  ;;  %v18836_v63 = vpop.permute.xlu0 %3558  ;;  %23926 = vst [vmem:[#allocation160_spill] sm:$0xff] %v18847_v17  ;;  %v4181_v43 = vsub.f32 %v18804_v39, %v23928_v31  ;;  %v18928_v41 = vld [vmem:[#allocation2 + $0x188] sm:$0xff] }
 0x330   : > { %23923 = vst [vmem:[#allocation49_spill] sm:$0xff] %v18829_v11  ;;  %2741 = vrot.lane.b32.xlu1 %v18721_v37, %s16264_s16  ;;  %v23204_v36 = vand.u32 4294901760, %v18829_v11  ;;  %v3756_v56 = vld [vmem:[#allocation3 + $0xe0] sm:$0xff]  ;;  %v2728_v2 = vpop.permute.xlu1 %2727  ;;  %v23930_v37 = vld [vmem:[#allocation58_spill] sm:$0xff] }
 0x331   : > { %3191 = vrot.lane.b32.xlu0 %v18842_v57, %s16265_s19  ;;  %v18853_v20 = vand.u32 4294901760, %v3756_v56  ;;  %2811 = vst.msk [vmem:[#allocation3 + $0x138] sm:$0xff] %vm2797_vm5, %v2728_v2  ;;  %v18865_v31 = vpop.f32.mrb[36].mxu0  ;;  %v23934_v2 = vld [vmem:[#allocation57_spill] sm:$0xff]  ;;  %v4182_v1 = vand.u32 4294901760, %v4181_v43 }
 0x332   : > { %14138 = vmatmul.mubr.f32.gmra.mrb[140].mxu0 %v23927_v62  ;;  %v4175_v10 = vsub.f32 %v18829_v11, %v23204_v36  ;;  %23932 = vst [vmem:[#allocation161_spill] sm:$0xff] %v18865_v31  ;;  %v18873_v36 = vpop.f32.mrb[37].mxu0  ;;  %v23935_v31 = vand.u32 4294901760, %v18832_v53  ;;  %v23952_v11 = vld [vmem:[#allocation12_spill] sm:$0xff] }
 0x333   : > { %23929 = vst [vmem:[#allocation53_spill] sm:$0xff] %v18853_v20  ;;  %14140 = vmatprep.mubr.f32.mxu0 %v23930_v37  ;;  %v3178_v17 = vpop.permute.xlu0 %3177  ;;  %v18862_v9 = vsub.f32 %v3756_v56, %v18853_v20  ;;  %23933 = vst [vmem:[#allocation162_spill] sm:$0xff] %v18873_v36  ;;  %v23275_v20 = vand.u32 4294901760, %v23983_v4 }
 0x334   : > { %3260 = vst.msk [vmem:[#allocation3 + $0x140] sm:$0xff] %vm2604_vm4, %v3178_v17  ;;  %2554 = vrot.lane.b32.xlu1 %v18748_v15, %s16265_s19  ;;  %v4176_v3 = vand.u32 4294901760, %v4175_v10  ;;  %v2915_v17 = vpop.permute.xlu1 %2914  ;;  %v4196_v15 = vsub.f32 %v18832_v53, %v23935_v31  ;;  %v23948_v53 = vld [vmem:[#allocation77_spill] sm:$0xff] }
 0x335   : > { %23931 = vst [vmem:[#allocation58_spill] sm:$0xff] %v18862_v9  ;;  %3578 = vrot.lane.b32.xlu0 %v18869_v24, %s16266_s20  ;;  %v23207_v56 = vand.u32 4294901760, %v18862_v9  ;;  %3001 = vst.msk [vmem:[#allocation3 + $0xf0] sm:$0xff] %vm2990_vm6, %v2915_v17  ;;  %v18886_v43 = vpop.f32.mrb[38].mxu0 }
 0x336   : > { %14141 = vmatmul.mubr.f32.gmra.mrb[142].mxu0 %v23934_v2  ;;  %4177 = vmatprep.mubr.f32.mxu1 %v4176_v3  ;;  %23936 = vst [vmem:[#allocation57_spill] sm:$0xff] %v18886_v43  ;;  %v18890_v3 = vld [vmem:[#allocation2 + $0x191] sm:$0xff]  ;;  %v18904_v43 = vld [vmem:[#allocation2 + $0x187] sm:$0xff] }
 0x337   : > { %14143 = vmatprep.mubr.f32.mxu0 %v17871_v16  ;;  %4183 = vmatmul.mubr.f32.gmra.mrb[48].mxu1 %v4182_v1  ;;  %v3365_v10 = vpop.permute.xlu0 %3364  ;;  %v4190_v36 = vsub.f32 %v18862_v9, %v23207_v56  ;;  %v18894_v1 = vpop.f32.mrb[39].mxu0  ;;  %v4197_v56 = vand.u32 4294901760, %v4196_v15 }
 0x338   : > { %3450 = vst.msk [vmem:[#allocation3 + $0xf8] sm:$0xff] %vm2797_vm5, %v3365_v10  ;;  %2747 = vrot.lane.b32.xlu1 %v18770_v55, %s16264_s16  ;;  %23937 = vst [vmem:[#allocation163_spill] sm:$0xff] %v18894_v1  ;;  %v2917_v17 = vpop.permute.xlu1 %2916  ;;  %v23940_v1 = vld [vmem:[#allocation38_spill] sm:$0xff] }
 0x339   : > { %3197 = vrot.lane.b32.xlu0 %v18890_v3, %s16265_s19  ;;  %v4191_v31 = vand.u32 4294901760, %v4190_v36  ;;  %3002 = vst.msk [vmem:[#allocation3 + $0x108] sm:$0xff] %vm2990_vm6, %v2917_v17  ;;  %v18900_v55 = vpop.f32.mrb[40].mxu0  ;;  %v23215_v36 = vand.u32 4294901760, %v23940_v1  ;;  %v4544_v17 = vsub.f32 %v23941_v42, %v23216_v6  ;;  %v23946_v6 = vld [vmem:[#allocation76_spill] sm:$0xff] }
 0x33a   : > { %14144 = vmatmul.mubr.f32.gmra.mrb[144].mxu0 %v17890_v13  ;;  %23939 = vst [vmem:[#allocation75_spill] sm:$0xff] %v18900_v55  ;;  %v18910_v15 = vpop.f32.mrb[41].mxu0 }
 0x33b   : > { %14146 = vmatprep.mubr.f32.mxu0 %v23938_v25  ;;  %4192 = vmatprep.mubr.f32.mxu1 %v4191_v31  ;;  %v3557_v10 = vpop.permute.xlu0 %3556  ;;  %23942 = vst [vmem:[#allocation38_spill] sm:$0xff] %v18910_v15 }
 0x33c   : > { %3642 = vst.msk [vmem:[#allocation3 + $0xf8] sm:$0xff] %vm2990_vm6, %v3557_v10  ;;  %4198 = vmatmul.mubr.f32.gmra.mrb[50].mxu1 %v4197_v56  ;;  %2934 = vrot.lane.b32.xlu1 %v18783_v54, %s16266_s20  ;;  %v2533_v31 = vpop.permute.xlu1 %2532  ;;  %v3758_v56 = vld [vmem:[#allocation3 + $0xf0] sm:$0xff]  ;;  %v4537_v54 = vsub.f32 %v23940_v1, %v23215_v36  ;;  %v4545_v36 = vand.u32 4294901760, %v4544_v17 }
 0x33d   : > { %3384 = vrot.lane.b32.xlu0 %v18904_v43, %s16264_s16  ;;  %2617 = vst.msk [vmem:[#allocation3 + $0x120] sm:$0xff] %vm2604_vm4, %v2533_v31  ;;  %v18921_v55 = vand.u32 4294901760, %v3758_v56  ;;  %v18924_v15 = vpop.f32.mrb[42].mxu0 }
 0x33e   : > { %14147 = vmatmul.mubr.f32.gmra.mrb[146].mxu0 %v17915_v58  ;;  %23944 = vst [vmem:[#allocation164_spill] sm:$0xff] %v18924_v15  ;;  %v4538_v28 = vand.u32 4294901760, %v4537_v54  ;;  %v18934_v31 = vpop.f32.mrb[43].mxu0 }
 0x33f   : > { %14149 = vmatprep.mubr.f32.mxu0 %v17924_v26  ;;  %v3367_v10 = vpop.permute.xlu0 %3366  ;;  %23943 = vst [vmem:[#allocation14_spill] sm:$0xff] %v18921_v55  ;;  %23945 = vst [vmem:[#allocation165_spill] sm:$0xff] %v18934_v31 }
 0x340   : > { %3451 = vst.msk [vmem:[#allocation3 + $0x110] sm:$0xff] %vm2797_vm5, %v3367_v10  ;;  %2936 = vrot.lane.b32.xlu1 %v18817_v32, %s16266_s20  ;;  %v18938_v10 = vsub.f32 %v3758_v56, %v18921_v55  ;;  %v2726_v15 = vpop.permute.xlu1 %2725  ;;  %v3761_v32 = vld [vmem:[#allocation3 + $0x108] sm:$0xff]  ;;  %v14932_v9 = vpack.c.bf16 %v4545_v36, %v4538_v28  ;;  %v23953_v36 = vld [vmem:[#allocation13_spill] sm:$0xff]  ;;  %v23959_v28 = vmov 0.0|0.0  }
 0x341   : > { %3643 = vst.msk [vmem:[#allocation3 + $0x110] sm:$0xff] %vm2990_vm6, %v18836_v63  ;;  %3576 = vrot.lane.b32.xlu0 %v18928_v41, %s16266_s20  ;;  %v18942_v63 = vand.u32 4294901760, %v3761_v32  ;;  %v18945_v39 = vpop.f32.mrb[44].mxu0  ;;  %v18949_v56 = vld [vmem:[#allocation2 + $0x18f] sm:$0xff] }
 0x342   : > { %14150 = vmatmul.mubr.f32.gmra.mrb[148].mxu0 %v23946_v6  ;;  %23947 = vst [vmem:[#allocation76_spill] sm:$0xff] %v18938_v10  ;;  %2810 = vst.msk [vmem:[#allocation3 + $0x120] sm:$0xff] %vm2797_vm5, %v2726_v15  ;;  %14933 = vmatpush1.bf16.msra.mxu1 %v14932_v9  ;;  %v18957_v21 = vpop.f32.mrb[45].mxu0  ;;  %v23960_v15 = vand.u32 4294901760, %v23952_v11  ;;  %v23965_v27 = vand.u32 4294901760, %v18938_v10 }
 0x343   : > { %14152 = vmatprep.mubr.f32.mxu0 %v23948_v53  ;;  %v3176_v54 = vpop.permute.xlu0 %3175  ;;  %v3759_v17 = vld [vmem:[#allocation3 + $0xf8] sm:$0xff]  ;;  %23949 = vst [vmem:[#allocation77_spill] sm:$0xff] %v18942_v63  ;;  %23950 = vst [vmem:[#allocation166_spill] sm:$0xff] %v18945_v39  ;;  %14934 = vmatprep.subr.bf16.mxu1 %v23959_v28 }
 0x344   : > { %3259 = vst.msk [vmem:[#allocation3 + $0x128] sm:$0xff] %vm2604_vm4, %v3176_v54  ;;  %2552 = vrot.lane.b32.xlu1 %v18796_v30, %s16265_s19  ;;  %v18951_v31 = vand.u32 4294901760, %v3759_v17  ;;  %23954 = vst [vmem:[#allocation12_spill] sm:$0xff] %v18957_v21  ;;  %v23955_v54 = vld [vmem:[#allocation81_spill] sm:$0xff]  ;;  %v18962_v30 = vsub.f32 %v3761_v32, %v18942_v63  ;;  %v2539_v34 = vpop.permute.xlu1 %2538  ;;  %v4551_v23 = vsub.f32 %v23952_v11, %v23960_v15  ;;  %v23961_v21 = vand.u32 4294901760, %v23953_v36 }
 0x345   : > { %3386 = vrot.lane.b32.xlu0 %v18949_v56, %s16264_s16  ;;  %2620 = vst.msk [vmem:[#allocation3 + $0x168] sm:$0xff] %vm2604_vm4, %v2539_v34  ;;  %v18978_v39 = vpop.f32.mrb[46].mxu0  ;;  %v23964_v34 = vld [vmem:[#allocation86_spill] sm:$0xff] }
 0x346   : > { %23951 = vst [vmem:[#allocation167_spill] sm:$0xff] %v18951_v31  ;;  %14153 = vmatmul.mubr.f32.gmra.mrb[150].mxu0 %v23955_v54  ;;  %23956 = vst [vmem:[#allocation13_spill] sm:$0xff] %v18962_v30  ;;  %v18966_v9 = vsub.f32 %v3759_v17, %v18951_v31  ;;  %v4558_v59 = vsub.f32 %v23953_v36, %v23961_v21  ;;  %v18982_v17 = vld [vmem:[#allocation2 + $0x189] sm:$0xff]  ;;  %v4552_v52 = vand.u32 4294901760, %v4551_v23  ;;  %v18987_v21 = vpop.f32.mrb[47].mxu0  ;;  %v23980_v31 = vld [vmem:[#allocation93_spill] sm:$0xff] }
 0x347   : > { %14155 = vmatprep.mubr.f32.mxu0 %v23957_v22  ;;  %v18976_v32 = vpop.permute.xlu0 %3562  ;;  %23962 = vst [vmem:[#allocation82_spill] sm:$0xff] %v18978_v39  ;;  %23963 = vst [vmem:[#allocation168_spill] sm:$0xff] %v18987_v21  ;;  %v4211_v39 = vsub.f32 %v18938_v10, %v23965_v27  ;;  %v19009_v10 = vld [vmem:[#allocation2 + $0x1b0] sm:$0xff] }
 0x348   : > { %23958 = vst [vmem:[#allocation81_spill] sm:$0xff] %v18966_v9  ;;  %2745 = vrot.lane.b32.xlu1 %v18842_v57, %s16264_s16  ;;  %v23255_v44 = vand.u32 4294901760, %v18966_v9  ;;  %v3762_v5 = vld [vmem:[#allocation3 + $0x110] sm:$0xff]  ;;  %v4559_v15 = vand.u32 4294901760, %v4558_v59  ;;  %v2732_v57 = vpop.permute.xlu1 %2731 }
 0x349   : > { %3195 = vrot.lane.b32.xlu0 %v18982_v17, %s16265_s19  ;;  %v18993_v12 = vand.u32 4294901760, %v3762_v5  ;;  %2813 = vst.msk [vmem:[#allocation3 + $0x168] sm:$0xff] %vm2797_vm5, %v2732_v57  ;;  %v19005_v27 = vpop.f32.mrb[48].mxu0  ;;  %v23973_v57 = vld [vmem:[#allocation90_spill] sm:$0xff] }
 0x34a   : > { %14156 = vmatmul.mubr.f32.gmra.mrb[152].mxu0 %v23964_v34  ;;  %v4205_v59 = vsub.f32 %v18966_v9, %v23255_v44  ;;  %v14935_v0 = vpack.c.bf16 %v4559_v15, %v4552_v52  ;;  %23969 = vst [vmem:[#allocation169_spill] sm:$0xff] %v19005_v27  ;;  %v23970_v44 = vld [vmem:[#allocation16_spill] sm:$0xff]  ;;  %v23971_v52 = vld [vmem:[#allocation17_spill] sm:$0xff]  ;;  %v23974_v9 = vld [vmem:[#allocation91_spill] sm:$0xff] }
 0x34b   : > { %23966 = vst [vmem:[#allocation86_spill] sm:$0xff] %v18993_v12  ;;  %14158 = vmatprep.mubr.f32.mxu0 %v23967_v29  ;;  %v3182_v21 = vpop.permute.xlu0 %3181  ;;  %v19002_v63 = vsub.f32 %v3762_v5, %v18993_v12  ;;  %v23260_v23 = vand.u32 4294901760, %v23970_v44  ;;  %v19015_v5 = vpop.f32.mrb[49].mxu0  ;;  %v23976_v12 = vand.u32 4294901760, %v23971_v52 }
 0x34c   : > { %3262 = vst.msk [vmem:[#allocation3 + $0x170] sm:$0xff] %vm2604_vm4, %v3182_v21  ;;  %2558 = vrot.lane.b32.xlu1 %v18869_v24, %s16265_s19  ;;  %v4206_v55 = vand.u32 4294901760, %v4205_v59  ;;  %14936 = vmatpush1.bf16.msra.mxu1 %v14935_v0  ;;  %23972 = vst [vmem:[#allocation16_spill] sm:$0xff] %v19015_v5  ;;  %v4212_v21 = vand.u32 4294901760, %v4211_v39  ;;  %v2919_v24 = vpop.permute.xlu1 %2918  ;;  %v23975_v0 = vand.u32 4294901760, %v18962_v30 }
 0x34d   : > { %23968 = vst [vmem:[#allocation87_spill] sm:$0xff] %v19002_v63  ;;  %3582 = vrot.lane.b32.xlu0 %v19009_v10, %s16266_s20  ;;  %v23263_v27 = vand.u32 4294901760, %v19002_v63  ;;  %v4565_v15 = vsub.f32 %v23970_v44, %v23260_v23  ;;  %v4572_v5 = vsub.f32 %v23971_v52, %v23976_v12  ;;  %3003 = vst.msk [vmem:[#allocation3 + $0x120] sm:$0xff] %vm2990_vm6, %v2919_v24  ;;  %14937 = vmatprep.subr.bf16.mxu1 %v23959_v28  ;;  %v19039_v23 = vld [vmem:[#allocation2 + $0x1b1] sm:$0xff] }
 0x34e   : > { %14159 = vmatmul.mubr.f32.gmra.mrb[154].mxu0 %v23973_v57  ;;  %4207 = vmatprep.mubr.f32.mxu1 %v4206_v55  ;;  %v4226_v59 = vsub.f32 %v18962_v30, %v23975_v0  ;;  %v19035_v0 = vpop.f32.mrb[50].mxu0  ;;  %v23979_v30 = vld [vmem:[#allocation92_spill] sm:$0xff] }
 0x34f   : > { %14161 = vmatprep.mubr.f32.mxu0 %v23974_v9  ;;  %4213 = vmatmul.mubr.f32.gmra.mrb[52].mxu1 %v4212_v21  ;;  %v3369_v39 = vpop.permute.xlu0 %3368  ;;  %v4220_v55 = vsub.f32 %v19002_v63, %v23263_v27  ;;  %23977 = vst [vmem:[#allocation17_spill] sm:$0xff] %v19035_v0  ;;  %v4566_v12 = vand.u32 4294901760, %v4565_v15  ;;  %v4573_v21 = vand.u32 4294901760, %v4572_v5  ;;  %v19043_v24 = vpop.f32.mrb[51].mxu0  ;;  %v19053_v5 = vld [vmem:[#allocation2 + $0x1a7] sm:$0xff] }
 0x350   : > { %3452 = vst.msk [vmem:[#allocation3 + $0x128] sm:$0xff] %vm2797_vm5, %v3369_v39  ;;  %2751 = vrot.lane.b32.xlu1 %v18890_v3, %s16264_s16  ;;  %23978 = vst [vmem:[#allocation90_spill] sm:$0xff] %v19043_v24  ;;  %v2921_v63 = vpop.permute.xlu1 %2920  ;;  %v4227_v39 = vand.u32 4294901760, %v4226_v59 }
 0x351   : > { %3201 = vrot.lane.b32.xlu0 %v19039_v23, %s16265_s19  ;;  %v4221_v27 = vand.u32 4294901760, %v4220_v55  ;;  %v14938_v0 = vpack.c.bf16 %v4573_v21, %v4566_v12  ;;  %3004 = vst.msk [vmem:[#allocation3 + $0x138] sm:$0xff] %vm2990_vm6, %v2921_v63  ;;  %v19049_v15 = vpop.f32.mrb[52].mxu0  ;;  %v23982_v55 = vld [vmem:[#allocation20_spill] sm:$0xff]  ;;  %v23985_v63 = vld [vmem:[#allocation94_spill] sm:$0xff]  ;;  %v23986_v12 = vld [vmem:[#allocation95_spill] sm:$0xff] }
 0x352   : > { %14162 = vmatmul.mubr.f32.gmra.mrb[156].mxu0 %v23979_v30  ;;  %23981 = vst [vmem:[#allocation91_spill] sm:$0xff] %v19049_v15  ;;  %v23272_v24 = vand.u32 4294901760, %v23982_v55 }
 0x353   : > { %14164 = vmatprep.mubr.f32.mxu0 %v23980_v31  ;;  %4222 = vmatprep.mubr.f32.mxu1 %v4221_v27  ;;  %v3561_v3 = vpop.permute.xlu0 %3560  ;;  %v19059_v27 = vpop.f32.mrb[53].mxu0 }
 0x354   : > { %3644 = vst.msk [vmem:[#allocation3 + $0x128] sm:$0xff] %vm2990_vm6, %v3561_v3  ;;  %4228 = vmatmul.mubr.f32.gmra.mrb[54].mxu1 %v4227_v39  ;;  %2938 = vrot.lane.b32.xlu1 %v18904_v43, %s16266_s20  ;;  %23984 = vst [vmem:[#allocation92_spill] sm:$0xff] %v19059_v27  ;;  %v2537_v59 = vpop.permute.xlu1 %2536  ;;  %v3764_v21 = vld [vmem:[#allocation3 + $0x120] sm:$0xff]  ;;  %v4579_v43 = vsub.f32 %v23982_v55, %v23272_v24  ;;  %v4586_v39 = vsub.f32 %v23983_v4, %v23275_v20  ;;  %v24012_v55 = vld [vmem:[#allocation30_spill] sm:$0xff] }
 0x355   : > { %3388 = vrot.lane.b32.xlu0 %v19053_v5, %s16264_s16  ;;  %14939 = vmatpush1.bf16.msra.mxu1 %v14938_v0  ;;  %2619 = vst.msk [vmem:[#allocation3 + $0x150] sm:$0xff] %vm2604_vm4, %v2537_v59  ;;  %v19070_v15 = vand.u32 4294901760, %v3764_v21  ;;  %v19074_v27 = vpop.f32.mrb[54].mxu0  ;;  %v19078_v0 = vld [vmem:[#allocation2 + $0x1a8] sm:$0xff]  ;;  %v23990_v20 = vld [vmem:[#allocation97_spill] sm:$0xff] }
 0x356   : > { %14165 = vmatmul.mubr.f32.gmra.mrb[158].mxu0 %v23985_v63  ;;  %14940 = vmatprep.subr.bf16.mxu1 %v23959_v28  ;;  %23988 = vst [vmem:[#allocation94_spill] sm:$0xff] %v19074_v27  ;;  %v4580_v24 = vand.u32 4294901760, %v4579_v43  ;;  %v4587_v48 = vand.u32 4294901760, %v4586_v39  ;;  %v19084_v59 = vpop.f32.mrb[55].mxu0 }
 0x357   : > { %14167 = vmatprep.mubr.f32.mxu0 %v23986_v12  ;;  %v3371_v3 = vpop.permute.xlu0 %3370  ;;  %23987 = vst [vmem:[#allocation93_spill] sm:$0xff] %v19070_v15  ;;  %23989 = vst [vmem:[#allocation95_spill] sm:$0xff] %v19084_v59 }
 0x358   : > { %3453 = vst.msk [vmem:[#allocation3 + $0x140] sm:$0xff] %vm2797_vm5, %v3371_v3  ;;  %2940 = vrot.lane.b32.xlu1 %v18949_v56, %s16266_s20  ;;  %v19088_v3 = vsub.f32 %v3764_v21, %v19070_v15  ;;  %v2730_v27 = vpop.permute.xlu1 %2729  ;;  %v3767_v56 = vld [vmem:[#allocation3 + $0x138] sm:$0xff]  ;;  %v14941_v38 = vpack.c.bf16 %v4587_v48, %v4580_v24  ;;  %v19099_v21 = vld [vmem:[#allocation2 + $0x1af] sm:$0xff]  ;;  %v23996_v15 = vld [vmem:[#allocation25_spill] sm:$0xff] }
 0x359   : > { %3645 = vst.msk [vmem:[#allocation3 + $0x140] sm:$0xff] %vm2990_vm6, %v18976_v32  ;;  %3580 = vrot.lane.b32.xlu0 %v19078_v0, %s16266_s20  ;;  %v19092_v32 = vand.u32 4294901760, %v3767_v56  ;;  %v19095_v47 = vpop.f32.mrb[56].mxu0  ;;  %v23298_v48 = vand.u32 4294901760, %v23996_v15  ;;  %v23997_v24 = vld [vmem:[#allocation26_spill] sm:$0xff] }
 0x35a   : > { %14168 = vmatmul.mubr.f32.gmra.mrb[160].mxu0 %v23990_v20  ;;  %23991 = vst [vmem:[#allocation97_spill] sm:$0xff] %v19088_v3  ;;  %2812 = vst.msk [vmem:[#allocation3 + $0x150] sm:$0xff] %vm2797_vm5, %v2730_v27  ;;  %14942 = vmatpush1.bf16.msra.mxu1 %v14941_v38  ;;  %v19107_v61 = vpop.f32.mrb[57].mxu0 }
 0x35b   : > { %14170 = vmatprep.mubr.f32.mxu0 %v23992_v7  ;;  %v3180_v43 = vpop.permute.xlu0 %3179  ;;  %v3765_v39 = vld [vmem:[#allocation3 + $0x128] sm:$0xff]  ;;  %23993 = vst [vmem:[#allocation98_spill] sm:$0xff] %v19092_v32  ;;  %23994 = vst [vmem:[#allocation170_spill] sm:$0xff] %v19095_v47  ;;  %14943 = vmatprep.subr.bf16.mxu1 %v23959_v28  ;;  %v4593_v27 = vsub.f32 %v23996_v15, %v23298_v48 }
 0x35c   : > { %3261 = vst.msk [vmem:[#allocation3 + $0x158] sm:$0xff] %vm2604_vm4, %v3180_v43  ;;  %2556 = vrot.lane.b32.xlu1 %v18928_v41, %s16265_s19  ;;  %v19101_v59 = vand.u32 4294901760, %v3765_v39  ;;  %23998 = vst [vmem:[#allocation172_spill] sm:$0xff] %v19107_v61  ;;  %v23999_v43 = vld [vmem:[#allocation100_spill] sm:$0xff]  ;;  %v19112_v41 = vsub.f32 %v3767_v56, %v19092_v32  ;;  %v2543_v60 = vpop.permute.xlu1 %2542  ;;  %v24003_v61 = vand.u32 4294901760, %v23997_v24 }
 0x35d   : > { %3390 = vrot.lane.b32.xlu0 %v19099_v21, %s16264_s16  ;;  %2622 = vst.msk [vmem:[#allocation3 + $0x198] sm:$0xff] %vm2604_vm4, %v2543_v60  ;;  %v19128_v47 = vpop.f32.mrb[58].mxu0  ;;  %v4594_v18 = vand.u32 4294901760, %v4593_v27  ;;  %v24006_v60 = vld [vmem:[#allocation105_spill] sm:$0xff] }
 0x35e   : > { %23995 = vst [vmem:[#allocation171_spill] sm:$0xff] %v19101_v59  ;;  %14171 = vmatmul.mubr.f32.gmra.mrb[162].mxu0 %v23999_v43  ;;  %24000 = vst [vmem:[#allocation100_spill] sm:$0xff] %v19112_v41  ;;  %v19116_v38 = vsub.f32 %v3765_v39, %v19101_v59  ;;  %v4600_v8 = vsub.f32 %v23997_v24, %v24003_v61  ;;  %v19132_v39 = vld [vmem:[#allocation2 + $0x1a9] sm:$0xff]  ;;  %v19137_v61 = vpop.f32.mrb[59].mxu0  ;;  %v24007_v24 = vand.u32 4294901760, %v19088_v3 }
 0x35f   : > { %14173 = vmatprep.mubr.f32.mxu0 %v24001_v45  ;;  %v19126_v56 = vpop.permute.xlu0 %3566  ;;  %24004 = vst [vmem:[#allocation173_spill] sm:$0xff] %v19128_v47  ;;  %24005 = vst [vmem:[#allocation174_spill] sm:$0xff] %v19137_v61 }
 0x360   : > { %24002 = vst [vmem:[#allocation101_spill] sm:$0xff] %v19116_v38  ;;  %2749 = vrot.lane.b32.xlu1 %v18982_v17, %s16264_s16  ;;  %v23309_v32 = vand.u32 4294901760, %v19116_v38  ;;  %v3768_v59 = vld [vmem:[#allocation3 + $0x140] sm:$0xff]  ;;  %v4601_v48 = vand.u32 4294901760, %v4600_v8  ;;  %v4241_v47 = vsub.f32 %v19088_v3, %v24007_v24  ;;  %v2736_v17 = vpop.permute.xlu1 %2735 }
 0x361   : > { %3199 = vrot.lane.b32.xlu0 %v19132_v39, %s16265_s19  ;;  %v19143_v15 = vand.u32 4294901760, %v3768_v59  ;;  %2815 = vst.msk [vmem:[#allocation3 + $0x198] sm:$0xff] %vm2797_vm5, %v2736_v17 }
 0x362   : > { %14174 = vmatmul.mubr.f32.gmra.mrb[164].mxu0 %v24006_v60  ;;  %v4235_v8 = vsub.f32 %v19116_v38, %v23309_v32  ;;  %v14944_v49 = vpack.c.bf16 %v4601_v48, %v4594_v18  ;;  %v23314_v32 = vand.u32 4294901760, %v24012_v55  ;;  %v24013_v38 = vld [vmem:[#allocation33_spill] sm:$0xff]  ;;  %v24014_v18 = vld [vmem:[#allocation78_spill] sm:$0xff]  ;;  %v4242_v17 = vand.u32 4294901760, %v4241_v47 }
 0x363   : > { %24008 = vst [vmem:[#allocation105_spill] sm:$0xff] %v19143_v15  ;;  %14176 = vmatprep.mubr.f32.mxu0 %v24009_v35  ;;  %v3186_v61 = vpop.permute.xlu0 %3185  ;;  %v19152_v4 = vsub.f32 %v3768_v59, %v19143_v15  ;;  %v23312_v27 = vand.u32 4294901760, %v24013_v38  ;;  %v24016_v59 = vld [vmem:[#allocation106_spill] sm:$0xff] }
 0x364   : > { %3264 = vst.msk [vmem:[#allocation3 + $0x1a0] sm:$0xff] %vm2604_vm4, %v3186_v61  ;;  %2562 = vrot.lane.b32.xlu1 %v19009_v10, %s16265_s19  ;;  %v4236_v3 = vand.u32 4294901760, %v4235_v8  ;;  %14945 = vmatpush1.bf16.msra.mxu1 %v14944_v49  ;;  %v24017_v49 = vand.u32 4294901760, %v19112_v41  ;;  %v4607_v8 = vsub.f32 %v24012_v55, %v23314_v32 }
 0x365   : > { %24010 = vst [vmem:[#allocation103_spill] sm:$0xff] %v19152_v4  ;;  %v19155_v24 = vpop.f32.mrb[60].mxu0  ;;  %3586 = vrot.lane.b32.xlu0 %v24014_v18, %s16266_s20  ;;  %v23313_v61 = vand.u32 4294901760, %v19152_v4  ;;  %14946 = vmatprep.subr.bf16.mxu1 %v23959_v28 }
 0x366   : > { %24011 = vst [vmem:[#allocation175_spill] sm:$0xff] %v19155_v24  ;;  %v19163_v48 = vpop.f32.mrb[61].mxu0  ;;  %14177 = vmatmul.mubr.f32.gmra.mrb[166].mxu0 %v24016_v59  ;;  %4237 = vmatprep.mubr.f32.mxu1 %v4236_v3  ;;  %v2923_v24 = vpop.permute.xlu1 %2922  ;;  %v4256_v10 = vsub.f32 %v19112_v41, %v24017_v49  ;;  %v19187_v49 = vld [vmem:[#allocation2 + $0x1d1] sm:$0xff] }
 0x367   : > { %24015 = vst [vmem:[#allocation30_spill] sm:$0xff] %v19163_v48  ;;  %14187 = vmatprep.mubr.f32.mxu0 %v23912_v40  ;;  %v4614_v48 = vsub.f32 %v24013_v38, %v23312_v27  ;;  %4243 = vmatmul.mubr.f32.gmra.mrb[56].mxu1 %v4242_v17  ;;  %3005 = vst.msk [vmem:[#allocation3 + $0x150] sm:$0xff] %vm2990_vm6, %v2923_v24  ;;  %v3373_v47 = vpop.permute.xlu0 %3372  ;;  %v4250_v40 = vsub.f32 %v19152_v4, %v23313_v61  ;;  %v4608_v27 = vand.u32 4294901760, %v4607_v8  ;;  %v19201_v8 = vld [vmem:[#allocation2 + $0x1c7] sm:$0xff] }
 0x368   : > { %3454 = vst.msk [vmem:[#allocation3 + $0x158] sm:$0xff] %vm2797_vm5, %v3373_v47  ;;  %2755 = vrot.lane.b32.xlu1 %v19039_v23, %s16264_s16  ;;  %v4257_v47 = vand.u32 4294901760, %v4256_v10 }
 0x369   : > { %v19185_v3 = vpop.f32.mrb[62].mxu0  ;;  %v4615_v17 = vand.u32 4294901760, %v4614_v48  ;;  %3205 = vrot.lane.b32.xlu0 %v19187_v49, %s16265_s19  ;;  %v4251_v61 = vand.u32 4294901760, %v4250_v40 }
 0x36a   : > { %24018 = vst [vmem:[#allocation33_spill] sm:$0xff] %v19185_v3  ;;  %v19191_v24 = vpop.f32.mrb[63].mxu0  ;;  %14188 = vmatmul.mubr.f32.vlgmr.msra.gmra.mrb[168].mxu0 %v23914_v51  ;;  %v2925_v32 = vpop.permute.xlu1 %2924  ;;  %v24021_v51 = vld [vmem:[#allocation36_spill] sm:$0xff] }
 0x36b   : > { %24019 = vst [vmem:[#allocation78_spill] sm:$0xff] %v19191_v24  ;;  %14190 = vmatprep.mubr.f32.mxu0 %v23916_v19  ;;  %v14947_v41 = vpack.c.bf16 %v4615_v17, %v4608_v27  ;;  %4252 = vmatprep.mubr.f32.mxu1 %v4251_v61  ;;  %3006 = vst.msk [vmem:[#allocation3 + $0x168] sm:$0xff] %vm2990_vm6, %v2925_v32  ;;  %v3565_v23 = vpop.permute.xlu0 %3564  ;;  %v23318_v40 = vand.u32 4294901760, %v24021_v51  ;;  %v24022_v24 = vld [vmem:[#allocation37_spill] sm:$0xff] }
 0x36c   : > { %3646 = vst.msk [vmem:[#allocation3 + $0x158] sm:$0xff] %vm2990_vm6, %v3565_v23  ;;  %4258 = vmatmul.mubr.f32.gmra.mrb[58].mxu1 %v4257_v47  ;;  %2942 = vrot.lane.b32.xlu1 %v19053_v5, %s16266_s20  ;;  %v23317_v19 = vand.u32 4294901760, %v24022_v24  ;;  %v24026_v23 = vld [vmem:[#allocation79_spill] sm:$0xff] }
 0x36d   : > { %v19199_v48 = vpop.f32.mrb[64].mxu0  ;;  %3392 = vrot.lane.b32.xlu0 %v19201_v8, %s16264_s16  ;;  %14948 = vmatpush1.bf16.msra.mxu1 %v14947_v41  ;;  %v4621_v5 = vsub.f32 %v24021_v51, %v23318_v40 }
 0x36e   : > { %24020 = vst [vmem:[#allocation106_spill] sm:$0xff] %v19199_v48  ;;  %v19207_v27 = vpop.f32.mrb[65].mxu0  ;;  %14191 = vmatmul.mubr.f32.gmra.mrb[170].mxu0 %v23921_v46  ;;  %v2541_v32 = vpop.permute.xlu1 %2540  ;;  %v3770_v61 = vld [vmem:[#allocation3 + $0x150] sm:$0xff]  ;;  %v4628_v10 = vsub.f32 %v24022_v24, %v23317_v19  ;;  %14949 = vmatprep.subr.bf16.mxu1 %v23959_v28 }
 0x36f   : > { %24023 = vst [vmem:[#allocation36_spill] sm:$0xff] %v19207_v27  ;;  %14193 = vmatprep.mubr.f32.mxu0 %v23922_v14  ;;  %2621 = vst.msk [vmem:[#allocation3 + $0x180] sm:$0xff] %vm2604_vm4, %v2541_v32  ;;  %v3375_v17 = vpop.permute.xlu0 %3374  ;;  %v19218_v47 = vand.u32 4294901760, %v3770_v61  ;;  %v4622_v14 = vand.u32 4294901760, %v4621_v5 }
 0x370   : > { %3455 = vst.msk [vmem:[#allocation3 + $0x170] sm:$0xff] %vm2797_vm5, %v3375_v17  ;;  %2944 = vrot.lane.b32.xlu1 %v19099_v21, %s16266_s20  ;;  %v4629_v41 = vand.u32 4294901760, %v4628_v10 }
 0x371   : > { %24024 = vst [vmem:[#allocation37_spill] sm:$0xff] %v19218_v47  ;;  %v19224_v46 = vpop.f32.mrb[66].mxu0  ;;  %3647 = vst.msk [vmem:[#allocation3 + $0x170] sm:$0xff] %vm2990_vm6, %v19126_v56  ;;  %3584 = vrot.lane.b32.xlu0 %v24026_v23, %s16266_s20  ;;  %v19234_v19 = vsub.f32 %v3770_v61, %v19218_v47 }
 0x372   : > { %24025 = vst [vmem:[#allocation176_spill] sm:$0xff] %v19224_v46  ;;  %v19230_v32 = vpop.f32.mrb[67].mxu0  ;;  %14194 = vmatmul.mubr.f32.gmra.mrb[172].mxu0 %v23927_v62  ;;  %v2734_v17 = vpop.permute.xlu1 %2733  ;;  %v3773_v21 = vld [vmem:[#allocation3 + $0x168] sm:$0xff]  ;;  %v14950_v40 = vpack.c.bf16 %v4629_v41, %v4622_v14  ;;  %v24033_v46 = vld [vmem:[#allocation41_spill] sm:$0xff]  ;;  %v24034_v41 = vld [vmem:[#allocation80_spill] sm:$0xff] }
 0x373   : > { %24027 = vst [vmem:[#allocation79_spill] sm:$0xff] %v19230_v32  ;;  %24028 = vst [vmem:[#allocation177_spill] sm:$0xff] %v19234_v19  ;;  %14196 = vmatprep.mubr.f32.mxu0 %v23930_v37  ;;  %v3184_v5 = vpop.permute.xlu0 %3183  ;;  %v3771_v10 = vld [vmem:[#allocation3 + $0x158] sm:$0xff]  ;;  %v19238_v56 = vand.u32 4294901760, %v3773_v21 }
 0x374   : > { %2814 = vst.msk [vmem:[#allocation3 + $0x180] sm:$0xff] %vm2797_vm5, %v2734_v17  ;;  %2560 = vrot.lane.b32.xlu1 %v19078_v0, %s16265_s19  ;;  %v19245_v61 = vand.u32 4294901760, %v3771_v10  ;;  %14951 = vmatpush1.bf16.msra.mxu1 %v14950_v40  ;;  %v24032_v32 = vld [vmem:[#allocation40_spill] sm:$0xff] }
 0x375   : > { %24029 = vst [vmem:[#allocation178_spill] sm:$0xff] %v19238_v56  ;;  %3263 = vst.msk [vmem:[#allocation3 + $0x188] sm:$0xff] %vm2604_vm4, %v3184_v5  ;;  %v19243_v62 = vpop.f32.mrb[68].mxu0  ;;  %v23319_v37 = vand.u32 4294901760, %v24032_v32  ;;  %3394 = vrot.lane.b32.xlu0 %v24034_v41, %s16264_s16  ;;  %v19256_v0 = vsub.f32 %v3773_v21, %v19238_v56  ;;  %14952 = vmatprep.subr.bf16.mxu1 %v23959_v28 }
 0x376   : > { %24030 = vst [vmem:[#allocation179_spill] sm:$0xff] %v19243_v62  ;;  %24031 = vst [vmem:[#allocation180_spill] sm:$0xff] %v19245_v61  ;;  %v19251_v17 = vpop.f32.mrb[69].mxu0  ;;  %14197 = vmatmul.mubr.f32.gmra.mrb[174].mxu0 %v23934_v2  ;;  %v2547_v62 = vpop.permute.xlu1 %2546  ;;  %v19260_v40 = vsub.f32 %v3771_v10, %v19245_v61 }
 0x377   : > { %24035 = vst [vmem:[#allocation40_spill] sm:$0xff] %v19251_v17  ;;  %24036 = vst [vmem:[#allocation41_spill] sm:$0xff] %v19256_v0  ;;  %14199 = vmatprep.mubr.f32.mxu0 %v17871_v16  ;;  %v4635_v14 = vsub.f32 %v24032_v32, %v23319_v37  ;;  %v24038_v17 = vand.u32 4294901760, %v24033_v46  ;;  %v19270_v21 = vpop.permute.xlu0 %3570  ;;  %v19274_v16 = vld [vmem:[#allocation2 + $0x1c9] sm:$0xff] }
 0x378   : > { %24037 = vst [vmem:[#allocation80_spill] sm:$0xff] %v19260_v40  ;;  %2624 = vst.msk [vmem:[#allocation3 + $0x1c8] sm:$0xff] %vm2604_vm4, %v2547_v62  ;;  %2753 = vrot.lane.b32.xlu1 %v19132_v39, %s16264_s16  ;;  %v23324_v5 = vand.u32 4294901760, %v19260_v40  ;;  %v3774_v27 = vld [vmem:[#allocation3 + $0x170] sm:$0xff] }
 0x379   : > { %v4642_v2 = vsub.f32 %v24033_v46, %v24038_v17  ;;  %v19276_v10 = vpop.f32.mrb[70].mxu0  ;;  %v4636_v48 = vand.u32 4294901760, %v4635_v14  ;;  %3203 = vrot.lane.b32.xlu0 %v19274_v16, %s16265_s19  ;;  %v24041_v17 = vand.u32 4294901760, %v19234_v19  ;;  %v19287_v3 = vand.u32 4294901760, %v3774_v27 }
 0x37a   : > { %24039 = vst [vmem:[#allocation181_spill] sm:$0xff] %v19276_v10  ;;  %14200 = vmatmul.mubr.f32.gmra.mrb[176].mxu0 %v17890_v13  ;;  %v19282_v62 = vpop.f32.mrb[71].mxu0  ;;  %v2740_v4 = vpop.permute.xlu1 %2739  ;;  %v4265_v14 = vsub.f32 %v19260_v40, %v23324_v5  ;;  %v24046_v40 = vld [vmem:[#allocation44_spill] sm:$0xff] }
 0x37b   : > { %v4643_v37 = vand.u32 4294901760, %v4642_v2  ;;  %24040 = vst [vmem:[#allocation182_spill] sm:$0xff] %v19282_v62  ;;  %v4271_v39 = vsub.f32 %v19234_v19, %v24041_v17  ;;  %24042 = vst [vmem:[#allocation183_spill] sm:$0xff] %v19287_v3  ;;  %14202 = vmatprep.mubr.f32.mxu0 %v23938_v25  ;;  %v3190_v13 = vpop.permute.xlu0 %3189  ;;  %v19296_v62 = vsub.f32 %v3774_v27, %v19287_v3  ;;  %v24045_v19 = vld [vmem:[#allocation43_spill] sm:$0xff]  ;;  %v23328_v2 = vand.u32 4294901760, %v24046_v40 }
 0x37c   : > { %2817 = vst.msk [vmem:[#allocation3 + $0x1c8] sm:$0xff] %vm2797_vm5, %v2740_v4  ;;  %2566 = vrot.lane.b32.xlu1 %v24014_v18, %s16265_s19  ;;  %v4266_v25 = vand.u32 4294901760, %v4265_v14  ;;  %v23329_v5 = vand.u32 4294901760, %v24045_v19 }
 0x37d   : > { %v14953_v10 = vpack.c.bf16 %v4643_v37, %v4636_v48  ;;  %24043 = vst [vmem:[#allocation184_spill] sm:$0xff] %v19296_v62  ;;  %3266 = vst.msk [vmem:[#allocation3 + $0x1d0] sm:$0xff] %vm2604_vm4, %v3190_v13  ;;  %v19301_v17 = vpop.f32.mrb[72].mxu0  ;;  %v24047_v48 = vld [vmem:[#allocation83_spill] sm:$0xff]  ;;  %v4272_v27 = vand.u32 4294901760, %v4271_v39  ;;  %v23327_v37 = vand.u32 4294901760, %v19296_v62 }
 0x37e   : > { %24044 = vst [vmem:[#allocation185_spill] sm:$0xff] %v19301_v17  ;;  %3590 = vrot.lane.b32.xlu0 %v24047_v48, %s16266_s20  ;;  %v19307_v4 = vpop.f32.mrb[73].mxu0  ;;  %14203 = vmatmul.mubr.f32.gmra.mrb[178].mxu0 %v17915_v58  ;;  %v2927_v18 = vpop.permute.xlu1 %2926  ;;  %v4649_v13 = vsub.f32 %v24045_v19, %v23329_v5  ;;  %v4656_v17 = vsub.f32 %v24046_v40, %v23328_v2  ;;  %v19329_v39 = vld [vmem:[#allocation2 + $0x1f1] sm:$0xff] }
 0x37f   : > { %14954 = vmatpush1.bf16.msra.mxu1 %v14953_v10  ;;  %24048 = vst [vmem:[#allocation43_spill] sm:$0xff] %v19307_v4  ;;  %4267 = vmatprep.mubr.f32.mxu1 %v4266_v25  ;;  %v24049_v10 = vand.u32 4294901760, %v19256_v0  ;;  %3007 = vst.msk [vmem:[#allocation3 + $0x180] sm:$0xff] %vm2990_vm6, %v2927_v18  ;;  %v3377_v58 = vpop.permute.xlu0 %3376 }
 0x380   : > { %14205 = vmatprep.mubr.f32.mxu0 %v17924_v26  ;;  %4273 = vmatmul.mubr.f32.gmra.mrb[60].mxu1 %v4272_v27  ;;  %v4280_v26 = vsub.f32 %v19296_v62, %v23327_v37  ;;  %3456 = vst.msk [vmem:[#allocation3 + $0x188] sm:$0xff] %vm2797_vm5, %v3377_v58  ;;  %v4657_v27 = vand.u32 4294901760, %v4656_v17  ;;  %v19343_v17 = vld [vmem:[#allocation2 + $0x1e7] sm:$0xff] }
 0x381   : > { %v4286_v14 = vsub.f32 %v19256_v0, %v24049_v10  ;;  %14955 = vmatprep.subr.bf16.mxu1 %v23959_v28  ;;  %2759 = vrot.lane.b32.xlu1 %v19187_v49, %s16264_s16  ;;  %v19331_v25 = vpop.f32.mrb[74].mxu0  ;;  %v4650_v10 = vand.u32 4294901760, %v4649_v13 }
 0x382   : > { %24050 = vst [vmem:[#allocation44_spill] sm:$0xff] %v19331_v25  ;;  %3209 = vrot.lane.b32.xlu0 %v19329_v39, %s16265_s19  ;;  %v19335_v18 = vpop.f32.mrb[75].mxu0  ;;  %14206 = vmatmul.mubr.f32.gmra.mrb[180].mxu0 %v23946_v6  ;;  %v4281_v37 = vand.u32 4294901760, %v4280_v26  ;;  %v2929_v2 = vpop.permute.xlu1 %2928  ;;  %v24053_v6 = vld [vmem:[#allocation48_spill] sm:$0xff] }
 0x383   : > { %24051 = vst [vmem:[#allocation83_spill] sm:$0xff] %v19335_v18  ;;  %14208 = vmatprep.mubr.f32.mxu0 %v23948_v53  ;;  %v4287_v58 = vand.u32 4294901760, %v4286_v14  ;;  %v14956_v5 = vpack.c.bf16 %v4657_v27, %v4650_v10  ;;  %3008 = vst.msk [vmem:[#allocation3 + $0x198] sm:$0xff] %vm2990_vm6, %v2929_v2  ;;  %v3569_v49 = vpop.permute.xlu0 %3568  ;;  %v23331_v26 = vand.u32 4294901760, %v24053_v6  ;;  %v24054_v25 = vld [vmem:[#allocation52_spill] sm:$0xff] }
 0x384   : > { %4282 = vmatprep.mubr.f32.mxu1 %v4281_v37  ;;  %3648 = vst.msk [vmem:[#allocation3 + $0x188] sm:$0xff] %vm2990_vm6, %v3569_v49  ;;  %v23330_v53 = vand.u32 4294901760, %v24054_v25  ;;  %v24058_v49 = vld [vmem:[#allocation84_spill] sm:$0xff] }
 0x385   : > { %4288 = vmatmul.mubr.f32.gmra.mrb[62].mxu1 %v4287_v58  ;;  %2946 = vrot.lane.b32.xlu1 %v19201_v8, %s16266_s20  ;;  %v19345_v13 = vpop.f32.mrb[76].mxu0  ;;  %v4663_v8 = vsub.f32 %v24053_v6, %v23331_v26 }
 0x386   : > { %24052 = vst [vmem:[#allocation186_spill] sm:$0xff] %v19345_v13  ;;  %3396 = vrot.lane.b32.xlu0 %v19343_v17, %s16264_s16  ;;  %v19351_v37 = vpop.f32.mrb[77].mxu0  ;;  %14209 = vmatmul.mubr.f32.gmra.mrb[182].mxu0 %v23955_v54  ;;  %v2545_v2 = vpop.permute.xlu1 %2544  ;;  %v3776_v14 = vld [vmem:[#allocation3 + $0x180] sm:$0xff]  ;;  %v4670_v10 = vsub.f32 %v24054_v25, %v23330_v53 }
 0x387   : > { %24055 = vst [vmem:[#allocation48_spill] sm:$0xff] %v19351_v37  ;;  %14211 = vmatprep.mubr.f32.mxu0 %v23957_v22  ;;  %14957 = vmatpush1.bf16.msra.mxu1 %v14956_v5  ;;  %2623 = vst.msk [vmem:[#allocation3 + $0x1b0] sm:$0xff] %vm2604_vm4, %v2545_v2  ;;  %v3379_v27 = vpop.permute.xlu0 %3378  ;;  %v19362_v58 = vand.u32 4294901760, %v3776_v14  ;;  %v4664_v54 = vand.u32 4294901760, %v4663_v8 }
 0x388   : > { %14958 = vmatprep.subr.bf16.mxu1 %v23959_v28  ;;  %3457 = vst.msk [vmem:[#allocation3 + $0x1a0] sm:$0xff] %vm2797_vm5, %v3379_v27  ;;  %v4671_v5 = vand.u32 4294901760, %v4670_v10 }
 0x389   : > { %24056 = vst [vmem:[#allocation52_spill] sm:$0xff] %v19362_v58  ;;  %2948 = vrot.lane.b32.xlu1 %v24034_v41, %s16266_s20  ;;  %v19368_v22 = vpop.f32.mrb[78].mxu0  ;;  %3649 = vst.msk [vmem:[#allocation3 + $0x1a0] sm:$0xff] %vm2990_vm6, %v19270_v21  ;;  %v19378_v53 = vsub.f32 %v3776_v14, %v19362_v58 }
 0x38a   : > { %24057 = vst [vmem:[#allocation187_spill] sm:$0xff] %v19368_v22  ;;  %3588 = vrot.lane.b32.xlu0 %v24058_v49, %s16266_s20  ;;  %v19374_v2 = vpop.f32.mrb[79].mxu0  ;;  %14212 = vmatmul.mubr.f32.gmra.mrb[184].mxu0 %v23964_v34  ;;  %v2738_v27 = vpop.permute.xlu1 %2737  ;;  %v3779_v41 = vld [vmem:[#allocation3 + $0x198] sm:$0xff]  ;;  %v14959_v26 = vpack.c.bf16 %v4671_v5, %v4664_v54  ;;  %v24066_v5 = vld [vmem:[#allocation85_spill] sm:$0xff] }
 0x38b   : > { %24059 = vst [vmem:[#allocation84_spill] sm:$0xff] %v19374_v2  ;;  %24060 = vst [vmem:[#allocation188_spill] sm:$0xff] %v19378_v53  ;;  %14214 = vmatprep.mubr.f32.mxu0 %v23967_v29  ;;  %v3188_v8 = vpop.permute.xlu0 %3187  ;;  %v3777_v10 = vld [vmem:[#allocation3 + $0x188] sm:$0xff]  ;;  %v19382_v21 = vand.u32 4294901760, %v3779_v41  ;;  %v24064_v22 = vld [vmem:[#allocation56_spill] sm:$0xff] }
 0x38c   : > { %2816 = vst.msk [vmem:[#allocation3 + $0x1b0] sm:$0xff] %vm2797_vm5, %v2738_v27  ;;  %v19389_v14 = vand.u32 4294901760, %v3777_v10  ;;  %14960 = vmatpush1.bf16.msra.mxu1 %v14959_v26  ;;  %v23332_v29 = vand.u32 4294901760, %v24064_v22  ;;  %v24065_v2 = vld [vmem:[#allocation59_spill] sm:$0xff] }
 0x38d   : > { %24061 = vst [vmem:[#allocation189_spill] sm:$0xff] %v19382_v21  ;;  %3265 = vst.msk [vmem:[#allocation3 + $0x1b8] sm:$0xff] %vm2604_vm4, %v3188_v8  ;;  %2564 = vrot.lane.b32.xlu1 %v24026_v23, %s16265_s19  ;;  %v19387_v34 = vpop.f32.mrb[80].mxu0  ;;  %v19400_v23 = vsub.f32 %v3779_v41, %v19382_v21  ;;  %14961 = vmatprep.subr.bf16.mxu1 %v23959_v28 }
 0x38e   : > { %24062 = vst [vmem:[#allocation190_spill] sm:$0xff] %v19387_v34  ;;  %24063 = vst [vmem:[#allocation191_spill] sm:$0xff] %v19389_v14  ;;  %3398 = vrot.lane.b32.xlu0 %v24066_v5, %s16264_s16  ;;  %v19395_v27 = vpop.f32.mrb[81].mxu0  ;;  %14215 = vmatmul.mubr.f32.gmra.mrb[186].mxu0 %v23973_v57  ;;  %v2551_v34 = vpop.permute.xlu1 %2550  ;;  %v19404_v26 = vsub.f32 %v3777_v10, %v19389_v14  ;;  %v4677_v54 = vsub.f32 %v24064_v22, %v23332_v29 }
 0x38f   : > { %24067 = vst [vmem:[#allocation56_spill] sm:$0xff] %v19395_v27  ;;  %24068 = vst [vmem:[#allocation59_spill] sm:$0xff] %v19400_v23  ;;  %14217 = vmatprep.mubr.f32.mxu0 %v23974_v9  ;;  %v24070_v27 = vand.u32 4294901760, %v24065_v2  ;;  %v19414_v41 = vpop.permute.xlu0 %3574  ;;  %v19418_v9 = vld [vmem:[#allocation2 + $0x1e9] sm:$0xff] }
 0x390   : > { %24069 = vst [vmem:[#allocation85_spill] sm:$0xff] %v19404_v26  ;;  %2626 = vst.msk [vmem:[#allocation3 + $0x1f8] sm:$0xff] %vm2604_vm4, %v2551_v34  ;;  %v23335_v8 = vand.u32 4294901760, %v19404_v26  ;;  %v3780_v13 = vld [vmem:[#allocation3 + $0x1a0] sm:$0xff]  ;;  %v4678_v37 = vand.u32 4294901760, %v4677_v54  ;;  %v24073_v34 = vand.u32 4294901760, %v19378_v53 }
 0x391   : > { %v4684_v57 = vsub.f32 %v24065_v2, %v24070_v27  ;;  %2757 = vrot.lane.b32.xlu1 %v19274_v16, %s16264_s16  ;;  %v19420_v10 = vpop.f32.mrb[82].mxu0  ;;  %v19431_v18 = vand.u32 4294901760, %v3780_v13 }
 0x392   : > { %24071 = vst [vmem:[#allocation192_spill] sm:$0xff] %v19420_v10  ;;  %3207 = vrot.lane.b32.xlu0 %v19418_v9, %s16265_s19  ;;  %v19425_v27 = vpop.f32.mrb[83].mxu0  ;;  %14218 = vmatmul.mubr.f32.gmra.mrb[188].mxu0 %v23979_v30  ;;  %v4301_v16 = vsub.f32 %v19378_v53, %v24073_v34  ;;  %v2744_v4 = vpop.permute.xlu1 %2743  ;;  %v4295_v54 = vsub.f32 %v19404_v26, %v23335_v8  ;;  %v24077_v53 = vld [vmem:[#allocation60_spill] sm:$0xff]  ;;  %v24078_v26 = vld [vmem:[#allocation62_spill] sm:$0xff] }
 0x393   : > { %v4685_v29 = vand.u32 4294901760, %v4684_v57  ;;  %24072 = vst [vmem:[#allocation193_spill] sm:$0xff] %v19425_v27  ;;  %24074 = vst [vmem:[#allocation194_spill] sm:$0xff] %v19431_v18  ;;  %14220 = vmatprep.mubr.f32.mxu0 %v23980_v31  ;;  %v3194_v27 = vpop.permute.xlu0 %3193  ;;  %v19440_v30 = vsub.f32 %v3780_v13, %v19431_v18  ;;  %v23340_v8 = vand.u32 4294901760, %v24077_v53  ;;  %v23338_v57 = vand.u32 4294901760, %v24078_v26 }
 0x394   : > { %2819 = vst.msk [vmem:[#allocation3 + $0x1f8] sm:$0xff] %vm2797_vm5, %v2744_v4  ;;  %v4296_v31 = vand.u32 4294901760, %v4295_v54  ;;  %v4302_v13 = vand.u32 4294901760, %v4301_v16  ;;  %v3118_v16 = vld [vmem:[#allocation2 + $0x211] sm:$0xff] }
 0x395   : > { %v14962_v10 = vpack.c.bf16 %v4685_v29, %v4678_v37  ;;  %24075 = vst [vmem:[#allocation195_spill] sm:$0xff] %v19440_v30  ;;  %3268 = vst.msk [vmem:[#allocation3 + $0x200] sm:$0xff] %vm2604_vm4, %v3194_v27  ;;  %2570 = vrot.lane.b32.xlu1 %v24047_v48, %s16265_s19  ;;  %v19445_v34 = vpop.f32.mrb[84].mxu0  ;;  %v24079_v37 = vld [vmem:[#allocation88_spill] sm:$0xff]  ;;  %v23339_v29 = vand.u32 4294901760, %v19440_v30  ;;  %v4691_v54 = vsub.f32 %v24077_v53, %v23340_v8 }
 0x396   : > { %24076 = vst [vmem:[#allocation196_spill] sm:$0xff] %v19445_v34  ;;  %3594 = vrot.lane.b32.xlu0 %v24079_v37, %s16266_s20  ;;  %v19451_v4 = vpop.f32.mrb[85].mxu0  ;;  %14221 = vmatmul.mubr.f32.gmra.mrb[190].mxu0 %v23985_v63  ;;  %v2931_v48 = vpop.permute.xlu1 %2930  ;;  %v4698_v37 = vsub.f32 %v24078_v26, %v23338_v57 }
 0x397   : > { %14963 = vmatpush1.bf16.msra.mxu1 %v14962_v10  ;;  %24080 = vst [vmem:[#allocation60_spill] sm:$0xff] %v19451_v4  ;;  %4297 = vmatprep.mubr.f32.mxu1 %v4296_v31  ;;  %v24081_v10 = vand.u32 4294901760, %v19400_v23  ;;  %3009 = vst.msk [vmem:[#allocation3 + $0x1b0] sm:$0xff] %vm2990_vm6, %v2931_v48  ;;  %v3381_v63 = vpop.permute.xlu0 %3380 }
 0x398   : > { %14223 = vmatprep.mubr.f32.mxu0 %v23986_v12  ;;  %4303 = vmatmul.mubr.f32.gmra.mrb[64].mxu1 %v4302_v13  ;;  %v4310_v12 = vsub.f32 %v19440_v30, %v23339_v29  ;;  %3458 = vst.msk [vmem:[#allocation3 + $0x1b8] sm:$0xff] %vm2797_vm5, %v3381_v63  ;;  %v4699_v57 = vand.u32 4294901760, %v4698_v37  ;;  %v19486_v37 = vld [vmem:[#allocation2 + $0x207] sm:$0xff] }
 0x399   : > { %v4316_v27 = vsub.f32 %v19400_v23, %v24081_v10  ;;  %14964 = vmatprep.subr.bf16.mxu1 %v23959_v28  ;;  %2950 = vrot.lane.b32.xlu1 %v19343_v17, %s16266_s20  ;;  %v19473_v31 = vpop.f32.mrb[86].mxu0  ;;  %v4692_v10 = vand.u32 4294901760, %v4691_v54 }
 0x39a   : > { %24082 = vst [vmem:[#allocation62_spill] sm:$0xff] %v19473_v31  ;;  %3213 = vrot.lane.b32.xlu0 %v3118_v16, %s16265_s19  ;;  %v19476_v13 = vpop.f32.mrb[87].mxu0  ;;  %14224 = vmatmul.mubr.f32.gmra.mrb[192].mxu0 %v23990_v20  ;;  %v4311_v48 = vand.u32 4294901760, %v4310_v12  ;;  %v2933_v29 = vpop.permute.xlu1 %2932 }
 0x39b   : > { %24083 = vst [vmem:[#allocation88_spill] sm:$0xff] %v19476_v13  ;;  %14226 = vmatprep.mubr.f32.mxu0 %v23992_v7  ;;  %v4317_v8 = vand.u32 4294901760, %v4316_v27  ;;  %v14965_v63 = vpack.c.bf16 %v4699_v57, %v4692_v10  ;;  %3010 = vst.msk [vmem:[#allocation3 + $0x1c8] sm:$0xff] %vm2990_vm6, %v2933_v29  ;;  %v3573_v17 = vpop.permute.xlu0 %3572  ;;  %v24087_v27 = vld [vmem:[#allocation64_spill] sm:$0xff] }
 0x39c   : > { %4312 = vmatprep.mubr.f32.mxu1 %v4311_v48  ;;  %3650 = vst.msk [vmem:[#allocation3 + $0x1b8] sm:$0xff] %vm2990_vm6, %v3573_v17  ;;  %v24090_v48 = vld [vmem:[#allocation89_spill] sm:$0xff] }
 0x39d   : > { %4318 = vmatmul.mubr.f32.gmra.mrb[66].mxu1 %v4317_v8  ;;  %2952 = vrot.lane.b32.xlu1 %v24066_v5, %s16266_s20  ;;  %v19484_v54 = vpop.f32.mrb[88].mxu0  ;;  %v24086_v8 = vld [vmem:[#allocation63_spill] sm:$0xff]  ;;  %v23342_v5 = vand.u32 4294901760, %v24087_v27 }
 0x39e   : > { %24084 = vst [vmem:[#allocation197_spill] sm:$0xff] %v19484_v54  ;;  %3400 = vrot.lane.b32.xlu0 %v19486_v37, %s16264_s16  ;;  %v19490_v7 = vpop.f32.mrb[89].mxu0  ;;  %14227 = vmatmul.mubr.f32.gmra.mrb[194].mxu0 %v23999_v43  ;;  %v2549_v20 = vpop.permute.xlu1 %2548  ;;  %v3782_v57 = vld [vmem:[#allocation3 + $0x1b0] sm:$0xff]  ;;  %v23341_v29 = vand.u32 4294901760, %v24086_v8 }
 0x39f   : > { %24085 = vst [vmem:[#allocation198_spill] sm:$0xff] %v19490_v7  ;;  %14229 = vmatprep.mubr.f32.mxu0 %v24001_v45  ;;  %14966 = vmatpush1.bf16.msra.mxu1 %v14965_v63  ;;  %2625 = vst.msk [vmem:[#allocation3 + $0x1e0] sm:$0xff] %vm2604_vm4, %v2549_v20  ;;  %v3383_v12 = vpop.permute.xlu0 %3382  ;;  %v19497_v16 = vand.u32 4294901760, %v3782_v57  ;;  %v4712_v10 = vsub.f32 %v24087_v27, %v23342_v5 }
 0x3a0   : > { %14967 = vmatprep.subr.bf16.mxu1 %v23959_v28  ;;  %3459 = vst.msk [vmem:[#allocation3 + $0x1d0] sm:$0xff] %vm2797_vm5, %v3383_v12  ;;  %v4705_v45 = vsub.f32 %v24086_v8, %v23341_v29 }
 0x3a1   : > { %24088 = vst [vmem:[#allocation63_spill] sm:$0xff] %v19497_v16  ;;  %2568 = vrot.lane.b32.xlu1 %v24058_v49, %s16265_s19  ;;  %v19503_v43 = vpop.f32.mrb[90].mxu0  ;;  %3651 = vst.msk [vmem:[#allocation3 + $0x1d0] sm:$0xff] %vm2990_vm6, %v19414_v41  ;;  %v19519_v49 = vsub.f32 %v3782_v57, %v19497_v16  ;;  %v4713_v29 = vand.u32 4294901760, %v4712_v10  ;;  %v3309_v57 = vld [vmem:[#allocation2 + $0x20f] sm:$0xff] }
 0x3a2   : > { %24089 = vst [vmem:[#allocation199_spill] sm:$0xff] %v19503_v43  ;;  %3592 = vrot.lane.b32.xlu0 %v24090_v48, %s16266_s20  ;;  %v19515_v63 = vpop.f32.mrb[91].mxu0  ;;  %14230 = vmatmul.mubr.f32.gmra.mrb[196].mxu0 %v24006_v60  ;;  %v2742_v17 = vpop.permute.xlu1 %2741  ;;  %v3785_v20 = vld [vmem:[#allocation3 + $0x1c8] sm:$0xff]  ;;  %v4706_v12 = vand.u32 4294901760, %v4705_v45 }
 0x3a3   : > { %24091 = vst [vmem:[#allocation89_spill] sm:$0xff] %v19515_v63  ;;  %24092 = vst [vmem:[#allocation200_spill] sm:$0xff] %v19519_v49  ;;  %14232 = vmatprep.mubr.f32.mxu0 %v24009_v35  ;;  %v3192_v5 = vpop.permute.xlu0 %3191  ;;  %v3783_v41 = vld [vmem:[#allocation3 + $0x1b8] sm:$0xff]  ;;  %v19523_v43 = vand.u32 4294901760, %v3785_v20  ;;  %v24096_v10 = vld [vmem:[#allocation66_spill] sm:$0xff] }
 0x3a4   : > { %2818 = vst.msk [vmem:[#allocation3 + $0x1e0] sm:$0xff] %vm2797_vm5, %v2742_v17  ;;  %v19530_v48 = vand.u32 4294901760, %v3783_v41  ;;  %v14968_v45 = vpack.c.bf16 %v4713_v29, %v4706_v12  ;;  %v23343_v63 = vand.u32 4294901760, %v24096_v10  ;;  %v24097_v35 = vld [vmem:[#allocation67_spill] sm:$0xff] }
 0x3a5   : > { %24093 = vst [vmem:[#allocation201_spill] sm:$0xff] %v19523_v43  ;;  %3267 = vst.msk [vmem:[#allocation3 + $0x1e8] sm:$0xff] %vm2604_vm4, %v3192_v5  ;;  %2761 = vrot.lane.b32.xlu1 %v19418_v9, %s16264_s16  ;;  %v19528_v60 = vpop.f32.mrb[92].mxu0  ;;  %v23344_v7 = vand.u32 4294901760, %v24097_v35 }
 0x3a6   : > { %24094 = vst [vmem:[#allocation202_spill] sm:$0xff] %v19528_v60  ;;  %24095 = vst [vmem:[#allocation203_spill] sm:$0xff] %v19530_v48  ;;  %3402 = vrot.lane.b32.xlu0 %v3309_v57, %s16264_s16  ;;  %v19535_v17 = vpop.f32.mrb[93].mxu0  ;;  %14233 = vmatmul.mubr.f32.gmra.mrb[198].mxu0 %v24016_v59  ;;  %v2555_v5 = vpop.permute.xlu1 %2554  ;;  %v19540_v9 = vsub.f32 %v3783_v41, %v19530_v48  ;;  %v19543_v60 = vsub.f32 %v3785_v20, %v19523_v43  ;;  %v3117_v20 = vld [vmem:[#allocation2 + $0x209] sm:$0xff] }
 0x3a7   : > { %24098 = vst [vmem:[#allocation204_spill] sm:$0xff] %v19535_v17  ;;  %14969 = vmatpush1.bf16.msra.mxu1 %v14968_v45  ;;  %v4719_v29 = vsub.f32 %v24096_v10, %v23343_v63  ;;  %v4726_v12 = vsub.f32 %v24097_v35, %v23344_v7  ;;  %2628 = vst.msk [vmem:[#allocation3 + $0x228] sm:$0xff] %vm2604_vm4, %v2555_v5  ;;  %v19552_v54 = vpop.permute.xlu0 %3578  ;;  %v24103_v5 = vand.u32 4294901760, %v19519_v49 }
 0x3a8   : > { %24099 = vst [vmem:[#allocation205_spill] sm:$0xff] %v19540_v9  ;;  %24100 = vst [vmem:[#allocation206_spill] sm:$0xff] %v19543_v60  ;;  %14970 = vmatprep.subr.bf16.mxu1 %v23959_v28  ;;  %v23347_v41 = vand.u32 4294901760, %v19540_v9  ;;  %v3786_v45 = vld [vmem:[#allocation3 + $0x1d0] sm:$0xff] }
 0x3a9   : > { %2763 = vrot.lane.b32.xlu1 %v19329_v39, %s16264_s16  ;;  %v19557_v59 = vpop.f32.mrb[94].mxu0  ;;  %v4720_v63 = vand.u32 4294901760, %v4719_v29  ;;  %v4727_v17 = vand.u32 4294901760, %v4726_v12  ;;  %v4331_v13 = vsub.f32 %v19519_v49, %v24103_v5  ;;  %v19566_v31 = vand.u32 4294901760, %v3786_v45  ;;  %v3311_v39 = vld [vmem:[#allocation2 + $0x22f] sm:$0xff]  ;;  %v24107_v49 = vld [vmem:[#allocation68_spill] sm:$0xff] }
 0x3aa   : > { %24101 = vst [vmem:[#allocation207_spill] sm:$0xff] %v19557_v59  ;;  %3211 = vrot.lane.b32.xlu0 %v3117_v20, %s16265_s19  ;;  %v19561_v7 = vpop.f32.mrb[95].mxu0  ;;  %v2748_v4 = vpop.permute.xlu1 %2747  ;;  %v4325_v59 = vsub.f32 %v19540_v9, %v23347_v41  ;;  %v23350_v41 = vand.u32 4294901760, %v24107_v49  ;;  %v24108_v9 = vld [vmem:[#allocation70_spill] sm:$0xff] }
 0x3ab   : > { %24102 = vst [vmem:[#allocation208_spill] sm:$0xff] %v19561_v7  ;;  %24104 = vst [vmem:[#allocation209_spill] sm:$0xff] %v19566_v31  ;;  %v14971_v29 = vpack.c.bf16 %v4727_v17, %v4720_v63  ;;  %v3198_v12 = vpop.permute.xlu0 %3197  ;;  %v19574_v20 = vsub.f32 %v3786_v45, %v19566_v31  ;;  %v23351_v34 = vand.u32 4294901760, %v24108_v9  ;;  %v4332_v63 = vand.u32 4294901760, %v4331_v13 }
 0x3ac   : > { %2821 = vst.msk [vmem:[#allocation3 + $0x228] sm:$0xff] %vm2797_vm5, %v2748_v4  ;;  %v4326_v7 = vand.u32 4294901760, %v4325_v59 }
 0x3ad   : > { %24105 = vst [vmem:[#allocation210_spill] sm:$0xff] %v19574_v20  ;;  %3270 = vst.msk [vmem:[#allocation3 + $0x230] sm:$0xff] %vm2604_vm4, %v3198_v12  ;;  %v19577_v5 = vpop.f32.mrb[96].mxu0  ;;  %2954 = vrot.lane.b32.xlu1 %v19486_v37, %s16266_s20  ;;  %14972 = vmatpush1.bf16.msra.mxu1 %v14971_v29  ;;  %v23360_v17 = vand.u32 4294901760, %v19574_v20  ;;  %v3503_v12 = vld [vmem:[#allocation2 + $0x230] sm:$0xff]  ;;  %v24110_v37 = vand.u32 4294901760, %v19543_v60  ;;  %v4733_v29 = vsub.f32 %v24107_v49, %v23350_v41 }
 0x3ae   : > { %24106 = vst [vmem:[#allocation211_spill] sm:$0xff] %v19577_v5  ;;  %3406 = vrot.lane.b32.xlu0 %v3311_v39, %s16264_s16  ;;  %v19584_v4 = vpop.f32.mrb[97].mxu0  ;;  %14973 = vmatprep.subr.bf16.mxu1 %v23959_v28  ;;  %v2935_v45 = vpop.permute.xlu1 %2934  ;;  %v4740_v39 = vsub.f32 %v24108_v9, %v23351_v34  ;;  %v24113_v34 = vld [vmem:[#allocation71_spill] sm:$0xff] }
 0x3af   : > { %24109 = vst [vmem:[#allocation212_spill] sm:$0xff] %v19584_v4  ;;  %4327 = vmatprep.mubr.f32.mxu1 %v4326_v7  ;;  %v4346_v59 = vsub.f32 %v19543_v60, %v24110_v37  ;;  %3011 = vst.msk [vmem:[#allocation3 + $0x1e0] sm:$0xff] %vm2990_vm6, %v2935_v45  ;;  %v3385_v13 = vpop.permute.xlu0 %3384  ;;  %v4340_v7 = vsub.f32 %v19574_v20, %v23360_v17  ;;  %v4734_v37 = vand.u32 4294901760, %v4733_v29  ;;  %v23362_v45 = vand.u32 4294901760, %v24113_v34  ;;  %v24114_v60 = vld [vmem:[#allocation72_spill] sm:$0xff] }
 0x3b0   : > { %4333 = vmatmul.mubr.f32.gmra.mrb[68].mxu1 %v4332_v63  ;;  %3460 = vst.msk [vmem:[#allocation3 + $0x1e8] sm:$0xff] %vm2797_vm5, %v3385_v13  ;;  %v4741_v41 = vand.u32 4294901760, %v4740_v39  ;;  %v23361_v23 = vand.u32 4294901760, %v24114_v60 }
 0x3b1   : > { %v19602_v4 = vpop.f32.mrb[98].mxu0  ;;  %2956 = vrot.lane.b32.xlu1 %v3309_v57, %s16266_s20  ;;  %v4341_v63 = vand.u32 4294901760, %v4340_v7  ;;  %v4347_v0 = vand.u32 4294901760, %v4346_v59  ;;  %v4747_v57 = vsub.f32 %v24113_v34, %v23362_v45 }
 0x3b2   : > { %24111 = vst [vmem:[#allocation213_spill] sm:$0xff] %v19602_v4  ;;  %3598 = vrot.lane.b32.xlu0 %v3503_v12, %s16266_s20  ;;  %v19606_v5 = vpop.f32.mrb[99].mxu0  ;;  %v2937_v30 = vpop.permute.xlu1 %2936  ;;  %v14974_v17 = vpack.c.bf16 %v4741_v41, %v4734_v37  ;;  %v4754_v12 = vsub.f32 %v24114_v60, %v23361_v23 }
 0x3b3   : > { %24112 = vst [vmem:[#allocation214_spill] sm:$0xff] %v19606_v5  ;;  %4342 = vmatprep.mubr.f32.mxu1 %v4341_v63  ;;  %3012 = vst.msk [vmem:[#allocation3 + $0x1f8] sm:$0xff] %vm2990_vm6, %v2937_v30  ;;  %v3577_v13 = vpop.permute.xlu0 %3576  ;;  %v4748_v41 = vand.u32 4294901760, %v4747_v57 }
 0x3b4   : > { %3652 = vst.msk [vmem:[#allocation3 + $0x1e8] sm:$0xff] %vm2990_vm6, %v3577_v13  ;;  %4348 = vmatmul.mubr.f32.gmra.mrb[70].mxu1 %v4347_v0  ;;  %v4755_v59 = vand.u32 4294901760, %v4754_v12 }
 0x3b5   : > { %v19618_v29 = vpop.f32.mrb[100].mxu0  ;;  %14975 = vmatpush1.bf16.msra.mxu1 %v14974_v17 }
 0x3b6   : > { %24115 = vst [vmem:[#allocation215_spill] sm:$0xff] %v19618_v29  ;;  %v19620_v39 = vpop.f32.mrb[101].mxu0  ;;  %v2553_v30 = vpop.permute.xlu1 %2552  ;;  %v3788_v7 = vld [vmem:[#allocation3 + $0x1e0] sm:$0xff]  ;;  %14976 = vmatprep.subr.bf16.mxu1 %v23959_v28  ;;  %v14977_v23 = vpack.c.bf16 %v4755_v59, %v4748_v41 }
 0x3b7   : > { %24116 = vst [vmem:[#allocation216_spill] sm:$0xff] %v19620_v39  ;;  %2627 = vst.msk [vmem:[#allocation3 + $0x210] sm:$0xff] %vm2604_vm4, %v2553_v30  ;;  %v3387_v37 = vpop.permute.xlu0 %3386  ;;  %v19624_v63 = vand.u32 4294901760, %v3788_v7 }
 0x3b8   : > { %3461 = vst.msk [vmem:[#allocation3 + $0x200] sm:$0xff] %vm2797_vm5, %v3387_v37 }
 0x3b9   : > { %24117 = vst [vmem:[#allocation217_spill] sm:$0xff] %v19624_v63  ;;  %v19627_v0 = vpop.f32.mrb[102].mxu0  ;;  %3653 = vst.msk [vmem:[#allocation3 + $0x200] sm:$0xff] %vm2990_vm6, %v19552_v54  ;;  %v19634_v13 = vsub.f32 %v3788_v7, %v19624_v63  ;;  %14978 = vmatpush1.bf16.msra.mxu1 %v14977_v23 }
 0x3ba   : > { %24118 = vst [vmem:[#allocation218_spill] sm:$0xff] %v19627_v0  ;;  %v19631_v17 = vpop.f32.mrb[103].mxu0  ;;  %v2746_v57 = vpop.permute.xlu1 %2745  ;;  %v3791_v12 = vld [vmem:[#allocation3 + $0x1f8] sm:$0xff]  ;;  %14979 = vmatprep.subr.bf16.mxu1 %v23959_v28 }
 0x3bb   : > { %24119 = vst [vmem:[#allocation219_spill] sm:$0xff] %v19631_v17  ;;  %24120 = vst [vmem:[#allocation220_spill] sm:$0xff] %v19634_v13  ;;  %v3196_v41 = vpop.permute.xlu0 %3195  ;;  %v3789_v59 = vld [vmem:[#allocation3 + $0x1e8] sm:$0xff]  ;;  %v19638_v30 = vand.u32 4294901760, %v3791_v12  ;;  %v23363_v23 = vand.u32 4294901760, %v19634_v13 }
 0x3bc   : > { %2820 = vst.msk [vmem:[#allocation3 + $0x210] sm:$0xff] %vm2797_vm5, %v2746_v57  ;;  %v19643_v54 = vand.u32 4294901760, %v3789_v59 }
 0x3bd   : > { %24121 = vst [vmem:[#allocation221_spill] sm:$0xff] %v19638_v30  ;;  %3269 = vst.msk [vmem:[#allocation3 + $0x218] sm:$0xff] %vm2604_vm4, %v3196_v41  ;;  %v19641_v37 = vpop.f32.mrb[104].mxu0  ;;  %v19652_v57 = vsub.f32 %v3791_v12, %v19638_v30  ;;  %v4361_v4 = vsub.f32 %v19634_v13, %v23363_v23 }
 0x3be   : > { %24122 = vst [vmem:[#allocation222_spill] sm:$0xff] %v19641_v37  ;;  %24123 = vst [vmem:[#allocation223_spill] sm:$0xff] %v19643_v54  ;;  %v19645_v45 = vpop.f32.mrb[105].mxu0  ;;  %v2559_v7 = vpop.permute.xlu1 %2558  ;;  %v19649_v17 = vsub.f32 %v3789_v59, %v19643_v54 }
 0x3bf   : > { %24124 = vst [vmem:[#allocation224_spill] sm:$0xff] %v19645_v45  ;;  %24126 = vst [vmem:[#allocation226_spill] sm:$0xff] %v19652_v57  ;;  %v3583_v0 = vpop.permute.xlu0 %3582  ;;  %v4362_v20 = vand.u32 4294901760, %v4361_v4 }
 0x3c0   : > { %24125 = vst [vmem:[#allocation225_spill] sm:$0xff] %v19649_v17  ;;  %2630 = vst.msk [vmem:[#allocation3 + $0x258] sm:$0xff] %vm2604_vm4, %v2559_v7  ;;  %v23370_v41 = vand.u32 4294901760, %v19649_v17  ;;  %v3792_v29 = vld [vmem:[#allocation3 + $0x200] sm:$0xff]  ;;  %v23371_v7 = vand.u32 4294901760, %v19652_v57 }
 0x3c1   : > { %v19655_v39 = vpop.f32.mrb[106].mxu0  ;;  %v19663_v37 = vand.u32 4294901760, %v3792_v29 }
 0x3c2   : > { %24127 = vst [vmem:[#allocation227_spill] sm:$0xff] %v19655_v39  ;;  %v19658_v5 = vpop.f32.mrb[107].mxu0  ;;  %v2752_v59 = vpop.permute.xlu1 %2751  ;;  %v4355_v12 = vsub.f32 %v19649_v17, %v23370_v41 }
 0x3c3   : > { %24128 = vst [vmem:[#allocation228_spill] sm:$0xff] %v19658_v5  ;;  %24129 = vst [vmem:[#allocation229_spill] sm:$0xff] %v19663_v37  ;;  %v3202_v39 = vpop.permute.xlu0 %3201  ;;  %v19671_v45 = vsub.f32 %v3792_v29, %v19663_v37 }
 0x3c4   : > { %2823 = vst.msk [vmem:[#allocation3 + $0x258] sm:$0xff] %vm2797_vm5, %v2752_v59  ;;  %v4356_v23 = vand.u32 4294901760, %v4355_v12  ;;  %v4376_v59 = vsub.f32 %v19652_v57, %v23371_v7 }
 0x3c5   : > { %24130 = vst [vmem:[#allocation230_spill] sm:$0xff] %v19671_v45  ;;  %3272 = vst.msk [vmem:[#allocation3 + $0x260] sm:$0xff] %vm2604_vm4, %v3202_v39  ;;  %v19674_v5 = vpop.f32.mrb[108].mxu0  ;;  %v23372_v62 = vand.u32 4294901760, %v19671_v45 }
 0x3c6   : > { %24131 = vst [vmem:[#allocation231_spill] sm:$0xff] %v19674_v5  ;;  %v19676_v13 = vpop.f32.mrb[109].mxu0  ;;  %4357 = vmatprep.mubr.f32.mxu1 %v4356_v23  ;;  %v2939_v41 = vpop.permute.xlu1 %2938 }
 0x3c7   : > { %24132 = vst [vmem:[#allocation232_spill] sm:$0xff] %v19676_v13  ;;  %4363 = vmatmul.mubr.f32.gmra.mrb[72].mxu1 %v4362_v20  ;;  %3013 = vst.msk [vmem:[#allocation3 + $0x210] sm:$0xff] %vm2990_vm6, %v2939_v41  ;;  %v3389_v29 = vpop.permute.xlu0 %3388  ;;  %v4370_v39 = vsub.f32 %v19671_v45, %v23372_v62  ;;  %v4377_v13 = vand.u32 4294901760, %v4376_v59 }
 0x3c8   : > { %3462 = vst.msk [vmem:[#allocation3 + $0x218] sm:$0xff] %vm2797_vm5, %v3389_v29 }
 0x3c9   : > { %v19687_v12 = vpop.f32.mrb[110].mxu0  ;;  %v4371_v23 = vand.u32 4294901760, %v4370_v39 }
 0x3ca   : > { %24133 = vst [vmem:[#allocation233_spill] sm:$0xff] %v19687_v12  ;;  %v19689_v4 = vpop.f32.mrb[111].mxu0  ;;  %v2941_v5 = vpop.permute.xlu1 %2940 }
 0x3cb   : > { %24134 = vst [vmem:[#allocation234_spill] sm:$0xff] %v19689_v4  ;;  %4372 = vmatprep.mubr.f32.mxu1 %v4371_v23  ;;  %3014 = vst.msk [vmem:[#allocation3 + $0x228] sm:$0xff] %vm2990_vm6, %v2941_v5  ;;  %v3581_v20 = vpop.permute.xlu0 %3580 }
 0x3cc   : > { %3654 = vst.msk [vmem:[#allocation3 + $0x218] sm:$0xff] %vm2990_vm6, %v3581_v20  ;;  %4378 = vmatmul.mubr.f32.gmra.mrb[74].mxu1 %v4377_v13 }
 0x3cd   : > { %v19693_v41 = vpop.f32.mrb[112].mxu0 }
 0x3ce   : > { %24135 = vst [vmem:[#allocation235_spill] sm:$0xff] %v19693_v41  ;;  %v19695_v7 = vpop.f32.mrb[113].mxu0  ;;  %v2557_v62 = vpop.permute.xlu1 %2556  ;;  %v3794_v29 = vld [vmem:[#allocation3 + $0x210] sm:$0xff] }
 0x3cf   : > { %24136 = vst [vmem:[#allocation236_spill] sm:$0xff] %v19695_v7  ;;  %2629 = vst.msk [vmem:[#allocation3 + $0x240] sm:$0xff] %vm2604_vm4, %v2557_v62  ;;  %v3391_v12 = vpop.permute.xlu0 %3390  ;;  %v19698_v4 = vand.u32 4294901760, %v3794_v29 }
 0x3d0   : > { %3463 = vst.msk [vmem:[#allocation3 + $0x230] sm:$0xff] %vm2797_vm5, %v3391_v12 }
 0x3d1   : > { %24137 = vst [vmem:[#allocation237_spill] sm:$0xff] %v19698_v4  ;;  %v19701_v59 = vpop.f32.mrb[114].mxu0  ;;  %3655 = vst.msk [vmem:[#allocation3 + $0x230] sm:$0xff] %vm2990_vm6, %v3583_v0  ;;  %v19707_v13 = vsub.f32 %v3794_v29, %v19698_v4 }
 0x3d2   : > { %24138 = vst [vmem:[#allocation238_spill] sm:$0xff] %v19701_v59  ;;  %v19704_v5 = vpop.f32.mrb[115].mxu0  ;;  %v2750_v39 = vpop.permute.xlu1 %2749  ;;  %v3797_v23 = vld [vmem:[#allocation3 + $0x228] sm:$0xff] }
 0x3d3   : > { %24139 = vst [vmem:[#allocation239_spill] sm:$0xff] %v19704_v5  ;;  %24140 = vst [vmem:[#allocation240_spill] sm:$0xff] %v19707_v13  ;;  %v3200_v20 = vpop.permute.xlu0 %3199  ;;  %v3795_v62 = vld [vmem:[#allocation3 + $0x218] sm:$0xff]  ;;  %v19710_v7 = vand.u32 4294901760, %v3797_v23  ;;  %v23383_v5 = vand.u32 4294901760, %v19707_v13 }
 0x3d4   : > { %2822 = vst.msk [vmem:[#allocation3 + $0x240] sm:$0xff] %vm2797_vm5, %v2750_v39  ;;  %v19715_v59 = vand.u32 4294901760, %v3795_v62 }
 0x3d5   : > { %24141 = vst [vmem:[#allocation241_spill] sm:$0xff] %v19710_v7  ;;  %3271 = vst.msk [vmem:[#allocation3 + $0x248] sm:$0xff] %vm2604_vm4, %v3200_v20  ;;  %v19713_v12 = vpop.f32.mrb[116].mxu0  ;;  %v19724_v39 = vsub.f32 %v3797_v23, %v19710_v7 }
 0x3d6   : > { %24142 = vst [vmem:[#allocation242_spill] sm:$0xff] %v19713_v12  ;;  %24143 = vst [vmem:[#allocation243_spill] sm:$0xff] %v19715_v59  ;;  %v19717_v0 = vpop.f32.mrb[117].mxu0  ;;  %v2563_v29 = vpop.permute.xlu1 %2562  ;;  %v19721_v41 = vsub.f32 %v3795_v62, %v19715_v59 }
 0x3d7   : > { %24144 = vst [vmem:[#allocation244_spill] sm:$0xff] %v19717_v0  ;;  %24146 = vst [vmem:[#allocation246_spill] sm:$0xff] %v19724_v39  ;;  %v3587_v57 = vpop.permute.xlu0 %3586  ;;  %v4391_v0 = vsub.f32 %v19707_v13, %v23383_v5 }
 0x3d8   : > { %24145 = vst [vmem:[#allocation245_spill] sm:$0xff] %v19721_v41  ;;  %2632 = vst.msk [vmem:[#allocation3 + $0x288] sm:$0xff] %vm2604_vm4, %v2563_v29  ;;  %v23390_v20 = vand.u32 4294901760, %v19721_v41  ;;  %v3798_v12 = vld [vmem:[#allocation3 + $0x230] sm:$0xff]  ;;  %v23391_v29 = vand.u32 4294901760, %v19724_v39 }
 0x3d9   : > { %v19727_v45 = vpop.f32.mrb[118].mxu0  ;;  %v19735_v4 = vand.u32 4294901760, %v3798_v12  ;;  %v4392_v59 = vand.u32 4294901760, %v4391_v0 }
 0x3da   : > { %24147 = vst [vmem:[#allocation247_spill] sm:$0xff] %v19727_v45  ;;  %v19730_v17 = vpop.f32.mrb[119].mxu0  ;;  %v2756_v62 = vpop.permute.xlu1 %2755  ;;  %v4385_v23 = vsub.f32 %v19721_v41, %v23390_v20 }
 0x3db   : > { %24148 = vst [vmem:[#allocation248_spill] sm:$0xff] %v19730_v17  ;;  %24149 = vst [vmem:[#allocation249_spill] sm:$0xff] %v19735_v4  ;;  %v3206_v45 = vpop.permute.xlu0 %3205  ;;  %v19743_v7 = vsub.f32 %v3798_v12, %v19735_v4 }
 0x3dc   : > { %2825 = vst.msk [vmem:[#allocation3 + $0x288] sm:$0xff] %vm2797_vm5, %v2756_v62  ;;  %v4386_v5 = vand.u32 4294901760, %v4385_v23  ;;  %v4406_v62 = vsub.f32 %v19724_v39, %v23391_v29 }
 0x3dd   : > { %24150 = vst [vmem:[#allocation250_spill] sm:$0xff] %v19743_v7  ;;  %3274 = vst.msk [vmem:[#allocation3 + $0x290] sm:$0xff] %vm2604_vm4, %v3206_v45  ;;  %v19746_v17 = vpop.f32.mrb[120].mxu0  ;;  %v23392_v30 = vand.u32 4294901760, %v19743_v7 }
 0x3de   : > { %24151 = vst [vmem:[#allocation251_spill] sm:$0xff] %v19746_v17  ;;  %v19748_v13 = vpop.f32.mrb[121].mxu0  ;;  %4387 = vmatprep.mubr.f32.mxu1 %v4386_v5  ;;  %v2943_v20 = vpop.permute.xlu1 %2942  ;;  %v4407_v17 = vand.u32 4294901760, %v4406_v62 }
 0x3df   : > { %24152 = vst [vmem:[#allocation252_spill] sm:$0xff] %v19748_v13  ;;  %4393 = vmatmul.mubr.f32.gmra.mrb[76].mxu1 %v4392_v59  ;;  %3015 = vst.msk [vmem:[#allocation3 + $0x240] sm:$0xff] %vm2990_vm6, %v2943_v20  ;;  %v3393_v12 = vpop.permute.xlu0 %3392  ;;  %v4400_v45 = vsub.f32 %v19743_v7, %v23392_v30 }
 0x3e0   : > { %3464 = vst.msk [vmem:[#allocation3 + $0x248] sm:$0xff] %vm2797_vm5, %v3393_v12 }
 0x3e1   : > { %v19759_v23 = vpop.f32.mrb[122].mxu0  ;;  %v4401_v5 = vand.u32 4294901760, %v4400_v45 }
 0x3e2   : > { %24153 = vst [vmem:[#allocation253_spill] sm:$0xff] %v19759_v23  ;;  %v19761_v0 = vpop.f32.mrb[123].mxu0  ;;  %v2945_v13 = vpop.permute.xlu1 %2944 }
 0x3e3   : > { %24154 = vst [vmem:[#allocation254_spill] sm:$0xff] %v19761_v0  ;;  %4402 = vmatprep.mubr.f32.mxu1 %v4401_v5  ;;  %3016 = vst.msk [vmem:[#allocation3 + $0x258] sm:$0xff] %vm2990_vm6, %v2945_v13  ;;  %v3585_v59 = vpop.permute.xlu0 %3584 }
 0x3e4   : > { %3656 = vst.msk [vmem:[#allocation3 + $0x248] sm:$0xff] %vm2990_vm6, %v3585_v59  ;;  %4408 = vmatmul.mubr.f32.gmra.mrb[78].mxu1 %v4407_v17 }
 0x3e5   : > { %v19765_v20 = vpop.f32.mrb[124].mxu0 }
 0x3e6   : > { %24155 = vst [vmem:[#allocation255_spill] sm:$0xff] %v19765_v20  ;;  %v19767_v29 = vpop.f32.mrb[125].mxu0  ;;  %v2561_v30 = vpop.permute.xlu1 %2560  ;;  %v3800_v12 = vld [vmem:[#allocation3 + $0x240] sm:$0xff] }
 0x3e7   : > { %24156 = vst [vmem:[#allocation256_spill] sm:$0xff] %v19767_v29  ;;  %2631 = vst.msk [vmem:[#allocation3 + $0x270] sm:$0xff] %vm2604_vm4, %v2561_v30  ;;  %v3395_v23 = vpop.permute.xlu0 %3394  ;;  %v19770_v0 = vand.u32 4294901760, %v3800_v12 }
 0x3e8   : > { %3465 = vst.msk [vmem:[#allocation3 + $0x260] sm:$0xff] %vm2797_vm5, %v3395_v23 }
 0x3e9   : > { %24157 = vst [vmem:[#allocation257_spill] sm:$0xff] %v19770_v0  ;;  %v19773_v62 = vpop.f32.mrb[126].mxu0  ;;  %3657 = vst.msk [vmem:[#allocation3 + $0x260] sm:$0xff] %vm2990_vm6, %v3587_v57  ;;  %v19779_v17 = vsub.f32 %v3800_v12, %v19770_v0 }
 0x3ea   : > { %24158 = vst [vmem:[#allocation258_spill] sm:$0xff] %v19773_v62  ;;  %v19776_v13 = vpop.f32.mrb[127].mxu0  ;;  %v2754_v45 = vpop.permute.xlu1 %2753  ;;  %v3803_v5 = vld [vmem:[#allocation3 + $0x258] sm:$0xff] }
 0x3eb   : > { %24159 = vst [vmem:[#allocation259_spill] sm:$0xff] %v19776_v13  ;;  %24160 = vst [vmem:[#allocation260_spill] sm:$0xff] %v19779_v17  ;;  %v3204_v59 = vpop.permute.xlu0 %3203  ;;  %v3801_v30 = vld [vmem:[#allocation3 + $0x248] sm:$0xff]  ;;  %v19782_v29 = vand.u32 4294901760, %v3803_v5  ;;  %v23403_v13 = vand.u32 4294901760, %v19779_v17 }
 0x3ec   : > { %2824 = vst.msk [vmem:[#allocation3 + $0x270] sm:$0xff] %vm2797_vm5, %v2754_v45  ;;  %v19787_v62 = vand.u32 4294901760, %v3801_v30 }
 0x3ed   : > { %24161 = vst [vmem:[#allocation261_spill] sm:$0xff] %v19782_v29  ;;  %3273 = vst.msk [vmem:[#allocation3 + $0x278] sm:$0xff] %vm2604_vm4, %v3204_v59  ;;  %v19785_v23 = vpop.f32.mrb[128].mxu0  ;;  %v19796_v45 = vsub.f32 %v3803_v5, %v19782_v29 }
 0x3ee   : > { %24162 = vst [vmem:[#allocation262_spill] sm:$0xff] %v19785_v23  ;;  %24163 = vst [vmem:[#allocation263_spill] sm:$0xff] %v19787_v62  ;;  %v19789_v57 = vpop.f32.mrb[129].mxu0  ;;  %v2567_v12 = vpop.permute.xlu1 %2566  ;;  %v19793_v20 = vsub.f32 %v3801_v30, %v19787_v62 }
 0x3ef   : > { %24164 = vst [vmem:[#allocation264_spill] sm:$0xff] %v19789_v57  ;;  %24166 = vst [vmem:[#allocation266_spill] sm:$0xff] %v19796_v45  ;;  %v4421_v57 = vsub.f32 %v19779_v17, %v23403_v13 }
 0x3f0   : > { %24165 = vst [vmem:[#allocation265_spill] sm:$0xff] %v19793_v20  ;;  %2634 = vst.msk [vmem:[#allocation3 + $0x2b8] sm:$0xff] %vm2604_vm4, %v2567_v12  ;;  %v3591_v39 = vpop.permute.xlu0 %3590  ;;  %v23410_v59 = vand.u32 4294901760, %v19793_v20  ;;  %v3804_v23 = vld [vmem:[#allocation3 + $0x260] sm:$0xff]  ;;  %v23411_v12 = vand.u32 4294901760, %v19796_v45 }
 0x3f1   : > { %v19799_v7 = vpop.f32.mrb[130].mxu0  ;;  %v19807_v0 = vand.u32 4294901760, %v3804_v23  ;;  %v4422_v62 = vand.u32 4294901760, %v4421_v57 }
 0x3f2   : > { %24167 = vst [vmem:[#allocation267_spill] sm:$0xff] %v19799_v7  ;;  %v19802_v41 = vpop.f32.mrb[131].mxu0  ;;  %v4415_v5 = vsub.f32 %v19793_v20, %v23410_v59 }
 0x3f3   : > { %24168 = vst [vmem:[#allocation268_spill] sm:$0xff] %v19802_v41  ;;  %24169 = vst [vmem:[#allocation269_spill] sm:$0xff] %v19807_v0  ;;  %v2760_v30 = vpop.permute.xlu1 %2759  ;;  %v19815_v29 = vsub.f32 %v3804_v23, %v19807_v0 }
 0x3f4   : > { %2827 = vst.msk [vmem:[#allocation3 + $0x2b8] sm:$0xff] %vm2797_vm5, %v2760_v30  ;;  %v3210_v7 = vpop.permute.xlu0 %3209  ;;  %v4416_v13 = vand.u32 4294901760, %v4415_v5  ;;  %v4436_v30 = vsub.f32 %v19796_v45, %v23411_v12 }
 0x3f5   : > { %24170 = vst [vmem:[#allocation270_spill] sm:$0xff] %v19815_v29  ;;  %3276 = vst.msk [vmem:[#allocation3 + $0x2c0] sm:$0xff] %vm2604_vm4, %v3210_v7  ;;  %v19818_v41 = vpop.f32.mrb[132].mxu0  ;;  %v23412_v4 = vand.u32 4294901760, %v19815_v29 }
 0x3f6   : > { %24171 = vst [vmem:[#allocation271_spill] sm:$0xff] %v19818_v41  ;;  %v19820_v17 = vpop.f32.mrb[133].mxu0  ;;  %4417 = vmatprep.mubr.f32.mxu1 %v4416_v13  ;;  %v4437_v41 = vand.u32 4294901760, %v4436_v30 }
 0x3f7   : > { %24172 = vst [vmem:[#allocation272_spill] sm:$0xff] %v19820_v17  ;;  %v2947_v59 = vpop.permute.xlu1 %2946  ;;  %4423 = vmatmul.mubr.f32.gmra.mrb[80].mxu1 %v4422_v62  ;;  %v4430_v7 = vsub.f32 %v19815_v29, %v23412_v4 }
 0x3f8   : > { %3017 = vst.msk [vmem:[#allocation3 + $0x270] sm:$0xff] %vm2990_vm6, %v2947_v59  ;;  %v3397_v23 = vpop.permute.xlu0 %3396 }
 0x3f9   : > { %3466 = vst.msk [vmem:[#allocation3 + $0x278] sm:$0xff] %vm2797_vm5, %v3397_v23  ;;  %v19831_v5 = vpop.f32.mrb[134].mxu0  ;;  %v4431_v57 = vand.u32 4294901760, %v4430_v7 }
 0x3fa   : > { %24173 = vst [vmem:[#allocation273_spill] sm:$0xff] %v19831_v5  ;;  %v19833_v17 = vpop.f32.mrb[135].mxu0 }
 0x3fb   : > { %24174 = vst [vmem:[#allocation274_spill] sm:$0xff] %v19833_v17  ;;  %v2949_v13 = vpop.permute.xlu1 %2948  ;;  %4432 = vmatprep.mubr.f32.mxu1 %v4431_v57 }
 0x3fc   : > { %3018 = vst.msk [vmem:[#allocation3 + $0x288] sm:$0xff] %vm2990_vm6, %v2949_v13  ;;  %v3589_v62 = vpop.permute.xlu0 %3588  ;;  %4438 = vmatmul.mubr.f32.gmra.mrb[82].mxu1 %v4437_v41 }
 0x3fd   : > { %3658 = vst.msk [vmem:[#allocation3 + $0x278] sm:$0xff] %vm2990_vm6, %v3589_v62  ;;  %v19837_v59 = vpop.f32.mrb[136].mxu0 }
 0x3fe   : > { %24175 = vst [vmem:[#allocation275_spill] sm:$0xff] %v19837_v59  ;;  %v19839_v12 = vpop.f32.mrb[137].mxu0 }
 0x3ff   : > { %24176 = vst [vmem:[#allocation276_spill] sm:$0xff] %v19839_v12  ;;  %v2565_v4 = vpop.permute.xlu1 %2564  ;;  %v3806_v23 = vld [vmem:[#allocation3 + $0x270] sm:$0xff] }
 0x400   : > { %2633 = vst.msk [vmem:[#allocation3 + $0x2a0] sm:$0xff] %vm2604_vm4, %v2565_v4  ;;  %v3399_v7 = vpop.permute.xlu0 %3398  ;;  %v19842_v5 = vand.u32 4294901760, %v3806_v23 }
 0x401   : > { %3467 = vst.msk [vmem:[#allocation3 + $0x290] sm:$0xff] %vm2797_vm5, %v3399_v7  ;;  %v19845_v30 = vpop.f32.mrb[138].mxu0 }
 0x402   : > { %24177 = vst [vmem:[#allocation277_spill] sm:$0xff] %v19842_v5  ;;  %24178 = vst [vmem:[#allocation278_spill] sm:$0xff] %v19845_v30  ;;  %v19848_v57 = vpop.f32.mrb[139].mxu0  ;;  %v19851_v41 = vsub.f32 %v3806_v23, %v19842_v5 }
 0x403   : > { %3659 = vst.msk [vmem:[#allocation3 + $0x290] sm:$0xff] %vm2990_vm6, %v3591_v39  ;;  %24179 = vst [vmem:[#allocation279_spill] sm:$0xff] %v19848_v57  ;;  %v2758_v13 = vpop.permute.xlu1 %2757  ;;  %v3809_v62 = vld [vmem:[#allocation3 + $0x288] sm:$0xff] }
 0x404   : > { %24180 = vst [vmem:[#allocation280_spill] sm:$0xff] %v19851_v41  ;;  %2826 = vst.msk [vmem:[#allocation3 + $0x2a0] sm:$0xff] %vm2797_vm5, %v2758_v13  ;;  %v3208_v17 = vpop.permute.xlu0 %3207  ;;  %v3807_v4 = vld [vmem:[#allocation3 + $0x278] sm:$0xff]  ;;  %v19854_v59 = vand.u32 4294901760, %v3809_v62  ;;  %v23423_v57 = vand.u32 4294901760, %v19851_v41 }
 0x405   : > { %3275 = vst.msk [vmem:[#allocation3 + $0x2a8] sm:$0xff] %vm2604_vm4, %v3208_v17  ;;  %v19857_v7 = vpop.f32.mrb[140].mxu0  ;;  %v19859_v30 = vand.u32 4294901760, %v3807_v4 }
 0x406   : > { %24181 = vst [vmem:[#allocation281_spill] sm:$0xff] %v19854_v59  ;;  %24182 = vst [vmem:[#allocation282_spill] sm:$0xff] %v19857_v7  ;;  %v19861_v39 = vpop.f32.mrb[141].mxu0  ;;  %v19868_v13 = vsub.f32 %v3809_v62, %v19854_v59 }
 0x407   : > { %24183 = vst [vmem:[#allocation283_spill] sm:$0xff] %v19859_v30  ;;  %24184 = vst [vmem:[#allocation284_spill] sm:$0xff] %v19861_v39  ;;  %v2571_v23 = vpop.permute.xlu1 %2570  ;;  %v19865_v12 = vsub.f32 %v3807_v4, %v19859_v30  ;;  %v4451_v39 = vsub.f32 %v19851_v41, %v23423_v57 }
 0x408   : > { %24186 = vst [vmem:[#allocation286_spill] sm:$0xff] %v19868_v13  ;;  %2636 = vst.msk [vmem:[#allocation3 + $0x2e8] sm:$0xff] %vm2604_vm4, %v2571_v23  ;;  %v3595_v45 = vpop.permute.xlu0 %3594  ;;  %v23433_v23 = vand.u32 4294901760, %v19868_v13 }
 0x409   : > { %24185 = vst [vmem:[#allocation285_spill] sm:$0xff] %v19865_v12  ;;  %v19871_v29 = vpop.f32.mrb[142].mxu0  ;;  %v23430_v17 = vand.u32 4294901760, %v19865_v12  ;;  %v4452_v30 = vand.u32 4294901760, %v4451_v39 }
 0x40a   : > { %24187 = vst [vmem:[#allocation287_spill] sm:$0xff] %v19871_v29  ;;  %v3810_v7 = vld [vmem:[#allocation3 + $0x290] sm:$0xff]  ;;  %v19874_v20 = vpop.f32.mrb[143].mxu0 }
 0x40b   : > { %24188 = vst [vmem:[#allocation288_spill] sm:$0xff] %v19874_v20  ;;  %v19879_v5 = vand.u32 4294901760, %v3810_v7  ;;  %v2951_v4 = vpop.permute.xlu1 %2950  ;;  %v4445_v62 = vsub.f32 %v19865_v12, %v23430_v17 }
 0x40c   : > { %3019 = vst.msk [vmem:[#allocation3 + $0x2a0] sm:$0xff] %vm2990_vm6, %v2951_v4  ;;  %v3214_v29 = vpop.permute.xlu0 %3213  ;;  %v4466_v4 = vsub.f32 %v19868_v13, %v23433_v23 }
 0x40d   : > { %24189 = vst [vmem:[#allocation289_spill] sm:$0xff] %v19879_v5  ;;  %v19887_v59 = vsub.f32 %v3810_v7, %v19879_v5  ;;  %3278 = vst.msk [vmem:[#allocation3 + $0x2f0] sm:$0xff] %vm2604_vm4, %v3214_v29  ;;  %v19890_v20 = vpop.f32.mrb[144].mxu0  ;;  %v4446_v57 = vand.u32 4294901760, %v4445_v62 }
 0x40e   : > { %24191 = vst [vmem:[#allocation291_spill] sm:$0xff] %v19890_v20  ;;  %v19892_v41 = vpop.f32.mrb[145].mxu0  ;;  %v4467_v20 = vand.u32 4294901760, %v4466_v4 }
 0x40f   : > { %24190 = vst [vmem:[#allocation290_spill] sm:$0xff] %v19887_v59  ;;  %24192 = vst [vmem:[#allocation292_spill] sm:$0xff] %v19892_v41  ;;  %v23434_v0 = vand.u32 4294901760, %v19887_v59  ;;  %4447 = vmatprep.mubr.f32.mxu1 %v4446_v57  ;;  %v2953_v17 = vpop.permute.xlu1 %2952 }
 0x410   : > { %4453 = vmatmul.mubr.f32.gmra.mrb[84].mxu1 %v4452_v30  ;;  %3020 = vst.msk [vmem:[#allocation3 + $0x2b8] sm:$0xff] %vm2990_vm6, %v2953_v17  ;;  %v3401_v7 = vpop.permute.xlu0 %3400 }
 0x411   : > { %v4460_v29 = vsub.f32 %v19887_v59, %v23434_v0  ;;  %3468 = vst.msk [vmem:[#allocation3 + $0x2a8] sm:$0xff] %vm2797_vm5, %v3401_v7  ;;  %v19903_v62 = vpop.f32.mrb[146].mxu0 }
 0x412   : > { %24193 = vst [vmem:[#allocation293_spill] sm:$0xff] %v19903_v62  ;;  %v19905_v39 = vpop.f32.mrb[147].mxu0 }
 0x413   : > { %24194 = vst [vmem:[#allocation294_spill] sm:$0xff] %v19905_v39  ;;  %v4461_v57 = vand.u32 4294901760, %v4460_v29  ;;  %v2569_v41 = vpop.permute.xlu1 %2568  ;;  %v3812_v12 = vld [vmem:[#allocation3 + $0x2a0] sm:$0xff] }
 0x414   : > { %2635 = vst.msk [vmem:[#allocation3 + $0x2d0] sm:$0xff] %vm2604_vm4, %v2569_v41  ;;  %v3593_v30 = vpop.permute.xlu0 %3592  ;;  %v19913_v7 = vand.u32 4294901760, %v3812_v12 }
 0x415   : > { %4462 = vmatprep.mubr.f32.mxu1 %v4461_v57  ;;  %3660 = vst.msk [vmem:[#allocation3 + $0x2a8] sm:$0xff] %vm2990_vm6, %v3593_v30  ;;  %v19909_v17 = vpop.f32.mrb[148].mxu0 }
 0x416   : > { %4468 = vmatmul.mubr.f32.gmra.mrb[86].mxu1 %v4467_v20  ;;  %24195 = vst [vmem:[#allocation295_spill] sm:$0xff] %v19909_v17  ;;  %v19911_v23 = vpop.f32.mrb[149].mxu0  ;;  %24197 = vst [vmem:[#allocation297_spill] sm:$0xff] %v19913_v7  ;;  %v19923_v20 = vsub.f32 %v3812_v12, %v19913_v7 }
 0x417   : > { %24196 = vst [vmem:[#allocation296_spill] sm:$0xff] %v19911_v23  ;;  %v2762_v0 = vpop.permute.xlu1 %2761  ;;  %v3815_v39 = vld [vmem:[#allocation3 + $0x2b8] sm:$0xff] }
 0x418   : > { %2828 = vst.msk [vmem:[#allocation3 + $0x2d0] sm:$0xff] %vm2797_vm5, %v2762_v0  ;;  %v3403_v29 = vpop.permute.xlu0 %3402  ;;  %24200 = vst [vmem:[#allocation300_spill] sm:$0xff] %v19923_v20  ;;  %v19925_v30 = vand.u32 4294901760, %v3815_v39 }
 0x419   : > { %3469 = vst.msk [vmem:[#allocation3 + $0x2c0] sm:$0xff] %vm2797_vm5, %v3403_v29  ;;  %v19917_v4 = vpop.f32.mrb[150].mxu0 }
 0x41a   : > { %24198 = vst [vmem:[#allocation298_spill] sm:$0xff] %v19917_v4  ;;  %3661 = vst.msk [vmem:[#allocation3 + $0x2c0] sm:$0xff] %vm2990_vm6, %v3595_v45  ;;  %v19920_v41 = vpop.f32.mrb[151].mxu0  ;;  %v24204_v4 = vld [vmem:[#allocation107_spill] sm:$0xff] }
 0x41b   : > { %24199 = vst [vmem:[#allocation299_spill] sm:$0xff] %v19920_v41  ;;  %v2764_v57 = vpop.permute.xlu1 %2763  ;;  %24201 = vst [vmem:[#allocation301_spill] sm:$0xff] %v19925_v30  ;;  %v24206_v41 = vld [vmem:[#allocation27_spill] sm:$0xff] }
 0x41c   : > { %2829 = vst.msk [vmem:[#allocation3 + $0x2e8] sm:$0xff] %vm2797_vm5, %v2764_v57  ;;  %v3212_v23 = vpop.permute.xlu0 %3211  ;;  %v3813_v0 = vld [vmem:[#allocation3 + $0x2a8] sm:$0xff] }
 0x41d   : > { %3277 = vst.msk [vmem:[#allocation3 + $0x2d8] sm:$0xff] %vm2604_vm4, %v3212_v23  ;;  %v19929_v17 = vpop.f32.mrb[152].mxu0  ;;  %v19931_v29 = vand.u32 4294901760, %v3813_v0  ;;  %v19944_v23 = vsub.f32 %v3815_v39, %v19925_v30 }
 0x41e   : > { %24202 = vst [vmem:[#allocation302_spill] sm:$0xff] %v19929_v17  ;;  %3470 = vst.msk [vmem:[#allocation3 + $0x2d8] sm:$0xff] %vm2797_vm5, %v24204_v4  ;;  %v19935_v45 = vpop.f32.mrb[153].mxu0 }
 0x41f   : > { %24203 = vst [vmem:[#allocation303_spill] sm:$0xff] %v19931_v29  ;;  %24205 = vst [vmem:[#allocation107_spill] sm:$0xff] %v19935_v45  ;;  %v2955_v62 = vpop.permute.xlu1 %2954  ;;  %v19941_v57 = vsub.f32 %v3813_v0, %v19931_v29 }
 0x420   : > { %3662 = vst.msk [vmem:[#allocation3 + $0x2d8] sm:$0xff] %vm2990_vm6, %v24206_v41  ;;  %24208 = vst [vmem:[#allocation304_spill] sm:$0xff] %v19944_v23  ;;  %v3407_v17 = vpop.permute.xlu0 %3406  ;;  %v24211_v41 = vand.u32 4294901760, %v19923_v20 }
 0x421   : > { %24207 = vst [vmem:[#allocation27_spill] sm:$0xff] %v19941_v57  ;;  %3021 = vst.msk [vmem:[#allocation3 + $0x2d0] sm:$0xff] %vm2990_vm6, %v2955_v62  ;;  %v19948_v4 = vpop.f32.mrb[154].mxu0  ;;  %v23449_v45 = vand.u32 4294901760, %v19941_v57  ;;  %v3816_v12 = vld [vmem:[#allocation3 + $0x2c0] sm:$0xff] }
 0x422   : > { %3471 = vst.msk [vmem:[#allocation3 + $0x2f0] sm:$0xff] %vm2797_vm5, %v3407_v17  ;;  %24209 = vst [vmem:[#allocation305_spill] sm:$0xff] %v19948_v4  ;;  %v19951_v13 = vpop.f32.mrb[155].mxu0  ;;  %v4481_v0 = vsub.f32 %v19923_v20, %v24211_v41  ;;  %v19956_v59 = vand.u32 4294901760, %v3816_v12  ;;  %v23450_v17 = vand.u32 4294901760, %v19944_v23 }
 0x423   : > { %24210 = vst [vmem:[#allocation306_spill] sm:$0xff] %v19951_v13  ;;  %v2957_v39 = vpop.permute.xlu1 %2956  ;;  %v4475_v62 = vsub.f32 %v19941_v57, %v23449_v45 }
 0x424   : > { %24212 = vst [vmem:[#allocation307_spill] sm:$0xff] %v19956_v59  ;;  %v3599_v30 = vpop.permute.xlu0 %3598  ;;  %3022 = vst.msk [vmem:[#allocation3 + $0x2e8] sm:$0xff] %vm2990_vm6, %v2957_v39  ;;  %v19964_v4 = vsub.f32 %v3816_v12, %v19956_v59  ;;  %v4482_v7 = vand.u32 4294901760, %v4481_v0  ;;  %v4496_v45 = vsub.f32 %v19944_v23, %v23450_v17 }
 0x425   : > { %3663 = vst.msk [vmem:[#allocation3 + $0x2f0] sm:$0xff] %vm2990_vm6, %v3599_v30  ;;  %v19967_v13 = vpop.f32.mrb[156].mxu0  ;;  %v4476_v41 = vand.u32 4294901760, %v4475_v62 }
 0x426   : > { %24213 = vst [vmem:[#allocation308_spill] sm:$0xff] %v19964_v4  ;;  %24214 = vst [vmem:[#allocation309_spill] sm:$0xff] %v19967_v13  ;;  %v19969_v20 = vpop.f32.mrb[157].mxu0  ;;  %v23455_v29 = vand.u32 4294901760, %v19964_v4  ;;  %v4497_v23 = vand.u32 4294901760, %v4496_v45 }
 0x427   : > { %24215 = vst [vmem:[#allocation310_spill] sm:$0xff] %v19969_v20  ;;  %v3819_v5 = vld [vmem:[#allocation3 + $0x2d8] sm:$0xff]  ;;  %4477 = vmatprep.mubr.f32.mxu1 %v4476_v41 }
 0x428   : > { %v19975_v39 = vand.u32 4294901760, %v3819_v5  ;;  %v3818_v12 = vld [vmem:[#allocation3 + $0x2d0] sm:$0xff]  ;;  %4483 = vmatmul.mubr.f32.gmra.mrb[88].mxu1 %v4482_v7  ;;  %v4490_v30 = vsub.f32 %v19964_v4, %v23455_v29 }
 0x429   : > { %v19980_v62 = vand.u32 4294901760, %v3818_v12  ;;  %v19982_v20 = vpop.f32.mrb[158].mxu0 }
 0x42a   : > { %24216 = vst [vmem:[#allocation311_spill] sm:$0xff] %v19975_v39  ;;  %24218 = vst [vmem:[#allocation313_spill] sm:$0xff] %v19982_v20  ;;  %v19985_v0 = vsub.f32 %v3819_v5, %v19975_v39  ;;  %v19987_v41 = vpop.f32.mrb[159].mxu0  ;;  %v4491_v13 = vand.u32 4294901760, %v4490_v30 }
 0x42b   : > { %24217 = vst [vmem:[#allocation312_spill] sm:$0xff] %v19980_v62  ;;  %24220 = vst [vmem:[#allocation315_spill] sm:$0xff] %v19987_v41  ;;  %v19990_v17 = vsub.f32 %v3818_v12, %v19980_v62  ;;  %v3821_v57 = vld [vmem:[#allocation3 + $0x2e8] sm:$0xff] }
 0x42c   : > { %24219 = vst [vmem:[#allocation314_spill] sm:$0xff] %v19985_v0  ;;  %v23462_v7 = vand.u32 4294901760, %v19985_v0  ;;  %4492 = vmatprep.mubr.f32.mxu1 %v4491_v13  ;;  %v3822_v4 = vld [vmem:[#allocation3 + $0x2f0] sm:$0xff]  ;;  %v19994_v59 = vand.u32 4294901760, %v3821_v57 }
 0x42d   : > { %24221 = vst [vmem:[#allocation316_spill] sm:$0xff] %v19990_v17  ;;  %v23465_v29 = vand.u32 4294901760, %v19990_v17  ;;  %4498 = vmatmul.mubr.f32.gmra.mrb[90].mxu1 %v4497_v23  ;;  %v19996_v20 = vpop.f32.mrb[160].mxu0  ;;  %v20001_v30 = vand.u32 4294901760, %v3822_v4 }
 0x42e   : > { %24222 = vst [vmem:[#allocation317_spill] sm:$0xff] %v19994_v59  ;;  %24223 = vst [vmem:[#allocation318_spill] sm:$0xff] %v19996_v20  ;;  %v4505_v5 = vsub.f32 %v19985_v0, %v23462_v7  ;;  %v20003_v12 = vpop.f32.mrb[161].mxu0  ;;  %v20009_v45 = vsub.f32 %v3821_v57, %v19994_v59 }
 0x42f   : > { %24224 = vst [vmem:[#allocation319_spill] sm:$0xff] %v20001_v30  ;;  %24225 = vst [vmem:[#allocation320_spill] sm:$0xff] %v20003_v12  ;;  %v4511_v13 = vsub.f32 %v19990_v17, %v23465_v29  ;;  %v20012_v23 = vsub.f32 %v3822_v4, %v20001_v30 }
 0x430   : > { %24226 = vst [vmem:[#allocation321_spill] sm:$0xff] %v20009_v45  ;;  %v4506_v41 = vand.u32 4294901760, %v4505_v5  ;;  %v23466_v62 = vand.u32 4294901760, %v20009_v45 }
 0x431   : > { %24227 = vst [vmem:[#allocation322_spill] sm:$0xff] %v20012_v23  ;;  %v4512_v20 = vand.u32 4294901760, %v4511_v13  ;;  %v20015_v7 = vpop.f32.mrb[162].mxu0  ;;  %v23469_v0 = vand.u32 4294901760, %v20012_v23 }
 0x432   : > { %4507 = vmatprep.mubr.f32.mxu1 %v4506_v41  ;;  %24228 = vst [vmem:[#allocation323_spill] sm:$0xff] %v20015_v7  ;;  %v20018_v12 = vpop.f32.mrb[163].mxu0  ;;  %v4526_v57 = vsub.f32 %v20009_v45, %v23466_v62  ;;  %v24232_v7 = vld [vmem:[#allocation131_spill] sm:$0xff]  ;;  %v24235_v45 = vld [vmem:[#allocation124_spill] sm:$0xff] }
 0x433   : > { %4513 = vmatmul.mubr.f32.gmra.mrb[92].mxu1 %v4512_v20  ;;  %24229 = vst [vmem:[#allocation324_spill] sm:$0xff] %v20018_v12  ;;  %v4520_v4 = vsub.f32 %v20012_v23, %v23469_v0  ;;  %v14980_v12 = vpack.c.bf16 %v23941_v42, %v23940_v1  ;;  %v24236_v0 = vld [vmem:[#allocation125_spill] sm:$0xff] }
 0x434   : > { %v4527_v5 = vand.u32 4294901760, %v4526_v57 }
 0x435   : > { %v20026_v13 = vpop.f32.mrb[164].mxu0  ;;  %v4521_v29 = vand.u32 4294901760, %v4520_v4 }
 0x436   : > { %24230 = vst [vmem:[#allocation325_spill] sm:$0xff] %v20026_v13  ;;  %v20028_v41 = vpop.f32.mrb[165].mxu0 }
 0x437   : > { %24231 = vst [vmem:[#allocation326_spill] sm:$0xff] %v20028_v41  ;;  %4522 = vmatprep.mubr.f32.mxu1 %v4521_v29  ;;  %v14983_v29 = vpack.c.bf16 %v23953_v36, %v23952_v11  ;;  %v24242_v41 = vld [vmem:[#allocation135_spill] sm:$0xff] }
 0x438   : > { %4528 = vmatmul.mubr.f32.gmra.mrb[94].mxu1 %v4527_v5  ;;  %v24239_v5 = vld [vmem:[#allocation128_spill] sm:$0xff] }
 0x439   : > { %4758 = vmatprep.mubr.f32.mxu1 %v24232_v7  ;;  %v20031_v20 = vpop.f32.mrb[166].mxu0  ;;  %v24348_v7 = vld [vmem:[#allocation97_spill] sm:$0xff] }
 0x43a   : > { %24233 = vst [vmem:[#allocation327_spill] sm:$0xff] %v20031_v20  ;;  %v20035_v62 = vpop.f32.mrb[167].mxu0 }
 0x43b   : > { %24234 = vst [vmem:[#allocation328_spill] sm:$0xff] %v20035_v62  ;;  %v14986_v62 = vpack.c.bf16 %v23971_v52, %v23970_v44 }
 0x43c   : > { %4760 = vmatmul.mubr.f32.vlgmr.msra.gmra.mrb[32].mxu1 %v24235_v45 }
 0x43d   : > { %4765 = vmatprep.mubr.f32.mxu1 %v24236_v0  ;;  %14981 = vmatpush1.bf16.msra.mxu1 %v14980_v12  ;;  %v20039_v57 = vpop.f32.mrb[168].mxu0  ;;  %v24251_v0 = vld [vmem:[#allocation26_spill] sm:$0xff] }
 0x43e   : > { %24237 = vst [vmem:[#allocation329_spill] sm:$0xff] %v20039_v57  ;;  %v20043_v4 = vpop.f32.mrb[169].mxu0  ;;  %14982 = vmatprep.subr.bf16.mxu1 %v23959_v28  ;;  %v24244_v57 = vld [vmem:[#allocation20_spill] sm:$0xff] }
 0x43f   : > { %24238 = vst [vmem:[#allocation330_spill] sm:$0xff] %v20043_v4  ;;  %v24245_v4 = vld [vmem:[#allocation21_spill] sm:$0xff] }
 0x440   : > { %4767 = vmatmul.mubr.f32.gmra.mrb[34].mxu1 %v24239_v5 }
 0x441   : > { %4772 = vmatprep.mubr.f32.mxu1 %v18453_v33  ;;  %v20048_v20 = vpop.f32.mrb[170].mxu0  ;;  %14984 = vmatpush1.bf16.msra.mxu1 %v14983_v29  ;;  %v14989_v33 = vpack.c.bf16 %v24245_v4, %v24244_v57  ;;  %v24247_v29 = vld [vmem:[#allocation137_spill] sm:$0xff] }
 0x442   : > { %24240 = vst [vmem:[#allocation331_spill] sm:$0xff] %v20048_v20  ;;  %v20052_v12 = vpop.f32.mrb[171].mxu0  ;;  %14985 = vmatprep.subr.bf16.mxu1 %v23959_v28  ;;  %v24248_v20 = vld [vmem:[#allocation143_spill] sm:$0xff] }
 0x443   : > { %24241 = vst [vmem:[#allocation332_spill] sm:$0xff] %v20052_v12 }
 0x444   : > { %4774 = vmatmul.mubr.f32.gmra.mrb[36].mxu1 %v24242_v41  ;;  %v24250_v41 = vld [vmem:[#allocation25_spill] sm:$0xff] }
 0x445   : > { %4779 = vmatprep.mubr.f32.mxu1 %v18489_v50  ;;  %v20057_v13 = vpop.f32.mrb[172].mxu0  ;;  %14987 = vmatpush1.bf16.msra.mxu1 %v14986_v62  ;;  %v14992_v50 = vpack.c.bf16 %v24251_v0, %v24250_v41  ;;  %v24253_v62 = vld [vmem:[#allocation140_spill] sm:$0xff] }
 0x446   : > { %24243 = vst [vmem:[#allocation333_spill] sm:$0xff] %v20057_v13  ;;  %v20061_v5 = vpop.f32.mrb[173].mxu0  ;;  %14988 = vmatprep.subr.bf16.mxu1 %v23959_v28  ;;  %v24254_v13 = vld [vmem:[#allocation146_spill] sm:$0xff] }
 0x447   : > { %24246 = vst [vmem:[#allocation20_spill] sm:$0xff] %v20061_v5 }
 0x448   : > { %4781 = vmatmul.mubr.f32.gmra.mrb[38].mxu1 %v24247_v29 }
 0x449   : > { %4786 = vmatprep.mubr.f32.mxu1 %v24248_v20  ;;  %v20066_v12 = vpop.f32.mrb[174].mxu0  ;;  %14990 = vmatpush1.bf16.msra.mxu1 %v14989_v33  ;;  %v14995_v20 = vpack.c.bf16 %v24013_v38, %v24012_v55  ;;  %v24257_v33 = vld [vmem:[#allocation142_spill] sm:$0xff] }
 0x44a   : > { %24249 = vst [vmem:[#allocation21_spill] sm:$0xff] %v20066_v12  ;;  %v20070_v45 = vpop.f32.mrb[175].mxu0  ;;  %14991 = vmatprep.subr.bf16.mxu1 %v23959_v28  ;;  %v24258_v12 = vld [vmem:[#allocation151_spill] sm:$0xff] }
 0x44b   : > { %24252 = vst [vmem:[#allocation25_spill] sm:$0xff] %v20070_v45 }
 0x44c   : > { %4788 = vmatmul.mubr.f32.gmra.mrb[40].mxu1 %v24253_v62 }
 0x44d   : > { %4793 = vmatprep.mubr.f32.mxu1 %v24254_v13  ;;  %v20075_v5 = vpop.f32.mrb[176].mxu0  ;;  %14993 = vmatpush1.bf16.msra.mxu1 %v14992_v50  ;;  %v14998_v13 = vpack.c.bf16 %v24022_v24, %v24021_v51  ;;  %v24261_v50 = vld [vmem:[#allocation148_spill] sm:$0xff] }
 0x44e   : > { %24255 = vst [vmem:[#allocation26_spill] sm:$0xff] %v20075_v5  ;;  %v20079_v29 = vpop.f32.mrb[177].mxu0  ;;  %14994 = vmatprep.subr.bf16.mxu1 %v23959_v28  ;;  %v24262_v5 = vld [vmem:[#allocation154_spill] sm:$0xff] }
 0x44f   : > { %24256 = vst [vmem:[#allocation334_spill] sm:$0xff] %v20079_v29 }
 0x450   : > { %4795 = vmatmul.mubr.f32.gmra.mrb[42].mxu1 %v24257_v33 }
 0x451   : > { %4800 = vmatprep.mubr.f32.mxu1 %v24258_v12  ;;  %v20084_v45 = vpop.f32.mrb[178].mxu0  ;;  %14996 = vmatpush1.bf16.msra.mxu1 %v14995_v20  ;;  %v15001_v12 = vpack.c.bf16 %v24033_v46, %v24032_v32  ;;  %v24265_v20 = vld [vmem:[#allocation150_spill] sm:$0xff] }
 0x452   : > { %24259 = vst [vmem:[#allocation335_spill] sm:$0xff] %v20084_v45  ;;  %v20088_v62 = vpop.f32.mrb[179].mxu0  ;;  %14997 = vmatprep.subr.bf16.mxu1 %v23959_v28  ;;  %v24266_v45 = vld [vmem:[#allocation157_spill] sm:$0xff] }
 0x453   : > { %24260 = vst [vmem:[#allocation336_spill] sm:$0xff] %v20088_v62 }
 0x454   : > { %4802 = vmatmul.mubr.f32.gmra.mrb[44].mxu1 %v24261_v50 }
 0x455   : > { %4807 = vmatprep.mubr.f32.mxu1 %v24262_v5  ;;  %v20093_v29 = vpop.f32.mrb[180].mxu0  ;;  %14999 = vmatpush1.bf16.msra.mxu1 %v14998_v13  ;;  %v15004_v5 = vpack.c.bf16 %v24046_v40, %v24045_v19  ;;  %v24269_v13 = vld [vmem:[#allocation46_spill] sm:$0xff] }
 0x456   : > { %24263 = vst [vmem:[#allocation337_spill] sm:$0xff] %v20093_v29  ;;  %v20097_v33 = vpop.f32.mrb[181].mxu0  ;;  %15000 = vmatprep.subr.bf16.mxu1 %v23959_v28  ;;  %v24270_v29 = vld [vmem:[#allocation53_spill] sm:$0xff] }
 0x457   : > { %24264 = vst [vmem:[#allocation338_spill] sm:$0xff] %v20097_v33 }
 0x458   : > { %4809 = vmatmul.mubr.f32.gmra.mrb[46].mxu1 %v24265_v20 }
 0x459   : > { %4814 = vmatprep.mubr.f32.mxu1 %v24266_v45  ;;  %v20102_v62 = vpop.f32.mrb[182].mxu0  ;;  %15002 = vmatpush1.bf16.msra.mxu1 %v15001_v12  ;;  %v15007_v45 = vpack.c.bf16 %v24054_v25, %v24053_v6  ;;  %v24273_v12 = vld [vmem:[#allocation51_spill] sm:$0xff] }
 0x45a   : > { %24267 = vst [vmem:[#allocation339_spill] sm:$0xff] %v20102_v62  ;;  %v20106_v50 = vpop.f32.mrb[183].mxu0  ;;  %15003 = vmatprep.subr.bf16.mxu1 %v23959_v28  ;;  %v24274_v62 = vld [vmem:[#allocation167_spill] sm:$0xff] }
 0x45b   : > { %24268 = vst [vmem:[#allocation340_spill] sm:$0xff] %v20106_v50 }
 0x45c   : > { %4816 = vmatmul.mubr.f32.gmra.mrb[48].mxu1 %v24269_v13 }
 0x45d   : > { %4821 = vmatprep.mubr.f32.mxu1 %v24270_v29  ;;  %v20111_v33 = vpop.f32.mrb[184].mxu0  ;;  %15005 = vmatpush1.bf16.msra.mxu1 %v15004_v5  ;;  %v15010_v29 = vpack.c.bf16 %v24065_v2, %v24064_v22  ;;  %v24277_v5 = vld [vmem:[#allocation14_spill] sm:$0xff] }
 0x45e   : > { %24271 = vst [vmem:[#allocation341_spill] sm:$0xff] %v20111_v33  ;;  %v20115_v20 = vpop.f32.mrb[185].mxu0  ;;  %15006 = vmatprep.subr.bf16.mxu1 %v23959_v28  ;;  %v24278_v33 = vld [vmem:[#allocation86_spill] sm:$0xff] }
 0x45f   : > { %24272 = vst [vmem:[#allocation342_spill] sm:$0xff] %v20115_v20 }
 0x460   : > { %4823 = vmatmul.mubr.f32.gmra.mrb[50].mxu1 %v24273_v12 }
 0x461   : > { %4828 = vmatprep.mubr.f32.mxu1 %v24274_v62  ;;  %v20120_v50 = vpop.f32.mrb[186].mxu0  ;;  %15008 = vmatpush1.bf16.msra.mxu1 %v15007_v45  ;;  %v15013_v62 = vpack.c.bf16 %v24078_v26, %v24077_v53  ;;  %v24281_v45 = vld [vmem:[#allocation77_spill] sm:$0xff] }
 0x462   : > { %24275 = vst [vmem:[#allocation343_spill] sm:$0xff] %v20120_v50  ;;  %v20124_v13 = vpop.f32.mrb[187].mxu0  ;;  %15009 = vmatprep.subr.bf16.mxu1 %v23959_v28  ;;  %v24282_v50 = vld [vmem:[#allocation171_spill] sm:$0xff] }
 0x463   : > { %24276 = vst [vmem:[#allocation344_spill] sm:$0xff] %v20124_v13 }
 0x464   : > { %4830 = vmatmul.mubr.f32.gmra.mrb[52].mxu1 %v24277_v5 }
 0x465   : > { %4835 = vmatprep.mubr.f32.mxu1 %v24278_v33  ;;  %v20129_v20 = vpop.f32.mrb[188].mxu0  ;;  %15011 = vmatpush1.bf16.msra.mxu1 %v15010_v29  ;;  %v15016_v33 = vpack.c.bf16 %v24087_v27, %v24086_v8  ;;  %v24285_v29 = vld [vmem:[#allocation93_spill] sm:$0xff]  ;;  %v24370_v27 = vld [vmem:[#allocation226_spill] sm:$0xff] }
 0x466   : > { %24279 = vst [vmem:[#allocation345_spill] sm:$0xff] %v20129_v20  ;;  %v20133_v12 = vpop.f32.mrb[189].mxu0  ;;  %15012 = vmatprep.subr.bf16.mxu1 %v23959_v28  ;;  %v15019_v20 = vpack.c.bf16 %v24097_v35, %v24096_v10  ;;  %v24356_v35 = vld [vmem:[#allocation73_spill] sm:$0xff] }
 0x467   : > { %24280 = vst [vmem:[#allocation346_spill] sm:$0xff] %v20133_v12  ;;  %v24357_v10 = vld [vmem:[#allocation41_spill] sm:$0xff] }
 0x468   : > { %4837 = vmatmul.mubr.f32.gmra.mrb[54].mxu1 %v24281_v45  ;;  %v24338_v45 = vld [vmem:[#allocation42_spill] sm:$0xff] }
 0x469   : > { %4842 = vmatprep.mubr.f32.mxu1 %v24282_v50  ;;  %v20138_v13 = vpop.f32.mrb[190].mxu0  ;;  %15014 = vmatpush1.bf16.msra.mxu1 %v15013_v62  ;;  %v24288_v62 = vld [vmem:[#allocation98_spill] sm:$0xff] }
 0x46a   : > { %24283 = vst [vmem:[#allocation347_spill] sm:$0xff] %v20138_v13  ;;  %v20142_v5 = vpop.f32.mrb[191].mxu0  ;;  %15015 = vmatprep.subr.bf16.mxu1 %v23959_v28  ;;  %v15022_v13 = vpack.c.bf16 %v24108_v9, %v24107_v49  ;;  %v24353_v9 = vld [vmem:[#allocation69_spill] sm:$0xff] }
 0x46b   : > { %24284 = vst [vmem:[#allocation348_spill] sm:$0xff] %v20142_v5  ;;  %v24354_v49 = vld [vmem:[#allocation177_spill] sm:$0xff] }
 0x46c   : > { %4844 = vmatmul.mubr.f32.gmra.mrb[56].mxu1 %v24285_v29  ;;  %v24337_v29 = vld [vmem:[#allocation58_spill] sm:$0xff] }
 0x46d   : > { %4849 = vmatprep.mubr.f32.mxu1 %v19143_v15  ;;  %v20147_v12 = vpop.f32.mrb[192].mxu0  ;;  %15017 = vmatpush1.bf16.msra.mxu1 %v15016_v33 }
 0x46e   : > { %24286 = vst [vmem:[#allocation349_spill] sm:$0xff] %v20147_v12  ;;  %v20151_v50 = vpop.f32.mrb[193].mxu0  ;;  %15018 = vmatprep.subr.bf16.mxu1 %v23959_v28 }
 0x46f   : > { %24287 = vst [vmem:[#allocation350_spill] sm:$0xff] %v20151_v50  ;;  %v15025_v50 = vpack.c.bf16 %v24114_v60, %v24113_v34  ;;  %v24350_v60 = vld [vmem:[#allocation65_spill] sm:$0xff]  ;;  %v24351_v34 = vld [vmem:[#allocation100_spill] sm:$0xff] }
 0x470   : > { %4851 = vmatmul.mubr.f32.gmra.mrb[58].mxu1 %v24288_v62  ;;  %v24336_v62 = vld [vmem:[#allocation45_spill] sm:$0xff] }
 0x471   : > { %4856 = vmatprep.mubr.f32.mxu1 %v19245_v61  ;;  %v20156_v5 = vpop.f32.mrb[194].mxu0  ;;  %15020 = vmatpush1.bf16.msra.mxu1 %v15019_v20  ;;  %v24294_v20 = vld [vmem:[#allocation243_spill] sm:$0xff] }
 0x472   : > { %24289 = vst [vmem:[#allocation351_spill] sm:$0xff] %v20156_v5  ;;  %v20160_v15 = vpop.f32.mrb[195].mxu0  ;;  %15021 = vmatprep.subr.bf16.mxu1 %v23959_v28  ;;  %v24299_v5 = vld [vmem:[#allocation257_spill] sm:$0xff]  ;;  %v24335_v61 = vld [vmem:[#allocation39_spill] sm:$0xff] }
 0x473   : > { %24290 = vst [vmem:[#allocation352_spill] sm:$0xff] %v20160_v15  ;;  %v24298_v15 = vld [vmem:[#allocation263_spill] sm:$0xff] }
 0x474   : > { %4858 = vmatmul.mubr.f32.gmra.mrb[60].mxu1 %v19218_v47  ;;  %v24334_v47 = vld [vmem:[#allocation49_spill] sm:$0xff] }
 0x475   : > { %4863 = vmatprep.mubr.f32.mxu1 %v19287_v3  ;;  %v20165_v33 = vpop.f32.mrb[196].mxu0  ;;  %15023 = vmatpush1.bf16.msra.mxu1 %v15022_v13  ;;  %v24295_v13 = vld [vmem:[#allocation237_spill] sm:$0xff] }
 0x476   : > { %24291 = vst [vmem:[#allocation353_spill] sm:$0xff] %v20165_v33  ;;  %v20169_v12 = vpop.f32.mrb[197].mxu0  ;;  %15024 = vmatprep.subr.bf16.mxu1 %v23959_v28  ;;  %v24297_v33 = vld [vmem:[#allocation241_spill] sm:$0xff] }
 0x477   : > { %24292 = vst [vmem:[#allocation354_spill] sm:$0xff] %v20169_v12  ;;  %v24296_v12 = vld [vmem:[#allocation249_spill] sm:$0xff] }
 0x478   : > { %4865 = vmatmul.mubr.f32.gmra.mrb[62].mxu1 %v19238_v56  ;;  %v24332_v56 = vld [vmem:[#allocation34_spill] sm:$0xff]  ;;  %v24333_v3 = vld [vmem:[#allocation153_spill] sm:$0xff] }
 0x479   : > { %4870 = vmatprep.mubr.f32.mxu1 %v19389_v14  ;;  %15026 = vmatpush1.bf16.msra.mxu1 %v15025_v50  ;;  %v24293_v50 = vld [vmem:[#allocation221_spill] sm:$0xff]  ;;  %v24331_v14 = vld [vmem:[#allocation155_spill] sm:$0xff] }
 0x47a   : > { %15027 = vmatprep.subr.bf16.mxu1 %v23959_v28 }
 0x47c   : > { %4872 = vmatmul.mubr.f32.gmra.mrb[64].mxu1 %v19362_v58  ;;  %v24330_v58 = vld [vmem:[#allocation149_spill] sm:$0xff] }
 0x47d   : > { %4877 = vmatprep.mubr.f32.mxu1 %v19431_v18  ;;  %v24329_v18 = vld [vmem:[#allocation29_spill] sm:$0xff] }
 0x480   : > { %4879 = vmatmul.mubr.f32.gmra.mrb[66].mxu1 %v19382_v21  ;;  %v24328_v21 = vld [vmem:[#allocation152_spill] sm:$0xff] }
 0x481   : > { %4884 = vmatprep.mubr.f32.mxu1 %v19530_v48  ;;  %v24327_v48 = vld [vmem:[#allocation145_spill] sm:$0xff] }
 0x484   : > { %4886 = vmatmul.mubr.f32.gmra.mrb[68].mxu1 %v19497_v16  ;;  %v24326_v16 = vld [vmem:[#allocation22_spill] sm:$0xff] }
 0x485   : > { %4891 = vmatprep.mubr.f32.mxu1 %v19566_v31  ;;  %v24325_v31 = vld [vmem:[#allocation147_spill] sm:$0xff] }
 0x488   : > { %4893 = vmatmul.mubr.f32.gmra.mrb[70].mxu1 %v19523_v43  ;;  %v24300_v43 = vld [vmem:[#allocation269_spill] sm:$0xff] }
 0x489   : > { %4898 = vmatprep.mubr.f32.mxu1 %v19643_v54  ;;  %v24301_v54 = vld [vmem:[#allocation261_spill] sm:$0xff] }
 0x48c   : > { %4900 = vmatmul.mubr.f32.gmra.mrb[72].mxu1 %v19624_v63  ;;  %v24302_v63 = vld [vmem:[#allocation283_spill] sm:$0xff] }
 0x48d   : > { %4905 = vmatprep.mubr.f32.mxu1 %v19663_v37  ;;  %v24303_v37 = vld [vmem:[#allocation277_spill] sm:$0xff] }
 0x490   : > { %4907 = vmatmul.mubr.f32.gmra.mrb[74].mxu1 %v24293_v50  ;;  %v24304_v50 = vld [vmem:[#allocation289_spill] sm:$0xff] }
 0x491   : > { %4912 = vmatprep.mubr.f32.mxu1 %v24294_v20  ;;  %v24305_v20 = vld [vmem:[#allocation281_spill] sm:$0xff] }
 0x494   : > { %4914 = vmatmul.mubr.f32.gmra.mrb[76].mxu1 %v24295_v13  ;;  %v24306_v13 = vld [vmem:[#allocation303_spill] sm:$0xff] }
 0x495   : > { %4919 = vmatprep.mubr.f32.mxu1 %v24296_v12  ;;  %v24307_v12 = vld [vmem:[#allocation297_spill] sm:$0xff] }
 0x498   : > { %4921 = vmatmul.mubr.f32.gmra.mrb[78].mxu1 %v24297_v33  ;;  %v24308_v33 = vld [vmem:[#allocation307_spill] sm:$0xff] }
 0x499   : > { %4926 = vmatprep.mubr.f32.mxu1 %v24298_v15  ;;  %v24309_v15 = vld [vmem:[#allocation301_spill] sm:$0xff] }
 0x49c   : > { %4928 = vmatmul.mubr.f32.gmra.mrb[80].mxu1 %v24299_v5  ;;  %v24324_v5 = vld [vmem:[#allocation141_spill] sm:$0xff] }
 0x49d   : > { %4933 = vmatprep.mubr.f32.mxu1 %v24300_v43  ;;  %v24310_v43 = vld [vmem:[#allocation312_spill] sm:$0xff] }
 0x4a0   : > { %4935 = vmatmul.mubr.f32.gmra.mrb[82].mxu1 %v24301_v54  ;;  %v24323_v54 = vld [vmem:[#allocation18_spill] sm:$0xff] }
 0x4a1   : > { %4940 = vmatprep.mubr.f32.mxu1 %v24302_v63  ;;  %v24322_v63 = vld [vmem:[#allocation144_spill] sm:$0xff] }
 0x4a4   : > { %4942 = vmatmul.mubr.f32.gmra.mrb[84].mxu1 %v24303_v37  ;;  %v24311_v37 = vld [vmem:[#allocation134_spill] sm:$0xff] }
 0x4a5   : > { %4947 = vmatprep.mubr.f32.mxu1 %v24304_v50  ;;  %v24312_v50 = vld [vmem:[#allocation127_spill] sm:$0xff] }
 0x4a8   : > { %4949 = vmatmul.mubr.f32.gmra.mrb[86].mxu1 %v24305_v20  ;;  %v24313_v20 = vld [vmem:[#allocation129_spill] sm:$0xff] }
 0x4a9   : > { %4954 = vmatprep.mubr.f32.mxu1 %v24306_v13  ;;  %v24314_v13 = vld [vmem:[#allocation35_spill] sm:$0xff] }
 0x4ac   : > { %4956 = vmatmul.mubr.f32.gmra.mrb[88].mxu1 %v24307_v12  ;;  %v24321_v12 = vld [vmem:[#allocation139_spill] sm:$0xff] }
 0x4ad   : > { %4961 = vmatprep.mubr.f32.mxu1 %v24308_v33  ;;  %v24315_v33 = vld [vmem:[#allocation132_spill] sm:$0xff] }
 0x4b0   : > { %4963 = vmatmul.mubr.f32.gmra.mrb[90].mxu1 %v24309_v15  ;;  %v24316_v15 = vld [vmem:[#allocation47_spill] sm:$0xff] }
 0x4b1   : > { %4968 = vmatprep.mubr.f32.mxu1 %v19975_v39  ;;  %v24317_v39 = vld [vmem:[#allocation19_spill] sm:$0xff] }
 0x4b4   : > { %4970 = vmatmul.mubr.f32.gmra.mrb[92].mxu1 %v24310_v43  ;;  %v24320_v43 = vld [vmem:[#allocation15_spill] sm:$0xff] }
 0x4b5   : > { %4975 = vmatprep.mubr.f32.mxu1 %v20001_v30  ;;  %v24318_v30 = vld [vmem:[#allocation136_spill] sm:$0xff] }
 0x4b8   : > { %4977 = vmatmul.mubr.f32.gmra.mrb[94].mxu1 %v19994_v59  ;;  %v24319_v59 = vld [vmem:[#allocation32_spill] sm:$0xff] }
 0x4b9   : > { %5112 = vmatprep.mubr.f32.mxu1 %v24311_v37 }
 0x4bc   : > { %5115 = vmatmul.mubr.f32.vlgmr.msra.gmra.mrb[32].mxu1 %v24312_v50 }
 0x4bd   : > { %5121 = vmatprep.mubr.f32.mxu1 %v24313_v20  ;;  %15029 = vmatpush1.bf16.msra.mxu1 %v24314_v13  ;;  %v24347_v13 = vld [vmem:[#allocation61_spill] sm:$0xff] }
 0x4be   : > { %15030 = vmatprep.subr.bf16.mxu1 %v23959_v28 }
 0x4c0   : > { %5124 = vmatmul.mubr.f32.gmra.mrb[34].mxu1 %v24315_v33 }
 0x4c1   : > { %5130 = vmatprep.mubr.f32.mxu1 %v24316_v15  ;;  %15032 = vmatpush1.bf16.msra.mxu1 %v24317_v39  ;;  %v24345_v39 = vld [vmem:[#allocation13_spill] sm:$0xff] }
 0x4c2   : > { %15033 = vmatprep.subr.bf16.mxu1 %v23959_v28 }
 0x4c4   : > { %5133 = vmatmul.mubr.f32.gmra.mrb[36].mxu1 %v24318_v30 }
 0x4c5   : > { %5139 = vmatprep.mubr.f32.mxu1 %v24319_v59  ;;  %15035 = vmatpush1.bf16.msra.mxu1 %v24320_v43  ;;  %v24344_v43 = vld [vmem:[#allocation55_spill] sm:$0xff] }
 0x4c6   : > { %15036 = vmatprep.subr.bf16.mxu1 %v23959_v28 }
 0x4c8   : > { %5142 = vmatmul.mubr.f32.gmra.mrb[38].mxu1 %v24321_v12 }
 0x4c9   : > { %5148 = vmatprep.mubr.f32.mxu1 %v24322_v63  ;;  %15038 = vmatpush1.bf16.msra.mxu1 %v24323_v54  ;;  %v24342_v54 = vld [vmem:[#allocation76_spill] sm:$0xff] }
 0x4ca   : > { %15039 = vmatprep.subr.bf16.mxu1 %v23959_v28 }
 0x4cc   : > { %5151 = vmatmul.mubr.f32.gmra.mrb[40].mxu1 %v24324_v5 }
 0x4cd   : > { %5157 = vmatprep.mubr.f32.mxu1 %v24325_v31  ;;  %15041 = vmatpush1.bf16.msra.mxu1 %v24326_v16  ;;  %v24341_v16 = vld [vmem:[#allocation50_spill] sm:$0xff] }
 0x4ce   : > { %15042 = vmatprep.subr.bf16.mxu1 %v23959_v28 }
 0x4d0   : > { %5160 = vmatmul.mubr.f32.gmra.mrb[42].mxu1 %v24327_v48 }
 0x4d1   : > { %5166 = vmatprep.mubr.f32.mxu1 %v24328_v21  ;;  %15044 = vmatpush1.bf16.msra.mxu1 %v24329_v18  ;;  %v24339_v18 = vld [vmem:[#allocation54_spill] sm:$0xff] }
 0x4d2   : > { %15045 = vmatprep.subr.bf16.mxu1 %v23959_v28 }
 0x4d4   : > { %5169 = vmatmul.mubr.f32.gmra.mrb[44].mxu1 %v24330_v58 }
 0x4d5   : > { %5175 = vmatprep.mubr.f32.mxu1 %v24331_v14  ;;  %15047 = vmatpush1.bf16.msra.mxu1 %v24332_v56  ;;  %v24340_v56 = vld [vmem:[#allocation81_spill] sm:$0xff] }
 0x4d6   : > { %15048 = vmatprep.subr.bf16.mxu1 %v23959_v28 }
 0x4d8   : > { %5178 = vmatmul.mubr.f32.gmra.mrb[46].mxu1 %v24333_v3 }
 0x4d9   : > { %5184 = vmatprep.mubr.f32.mxu1 %v24334_v47  ;;  %15050 = vmatpush1.bf16.msra.mxu1 %v24335_v61  ;;  %v24343_v61 = vld [vmem:[#allocation87_spill] sm:$0xff] }
 0x4da   : > { %15051 = vmatprep.subr.bf16.mxu1 %v23959_v28 }
 0x4dc   : > { %5187 = vmatmul.mubr.f32.gmra.mrb[48].mxu1 %v24336_v62 }
 0x4dd   : > { %5193 = vmatprep.mubr.f32.mxu1 %v24337_v29  ;;  %15053 = vmatpush1.bf16.msra.mxu1 %v24338_v45  ;;  %v24346_v45 = vld [vmem:[#allocation101_spill] sm:$0xff] }
 0x4de   : > { %15054 = vmatprep.subr.bf16.mxu1 %v23959_v28 }
 0x4e0   : > { %5196 = vmatmul.mubr.f32.gmra.mrb[50].mxu1 %v24339_v18 }
 0x4e1   : > { %5202 = vmatprep.mubr.f32.mxu1 %v24340_v56  ;;  %15056 = vmatpush1.bf16.msra.mxu1 %v24341_v16  ;;  %v24349_v16 = vld [vmem:[#allocation103_spill] sm:$0xff] }
 0x4e2   : > { %15057 = vmatprep.subr.bf16.mxu1 %v23959_v28 }
 0x4e4   : > { %5205 = vmatmul.mubr.f32.gmra.mrb[52].mxu1 %v24342_v54 }
 0x4e5   : > { %5211 = vmatprep.mubr.f32.mxu1 %v24343_v61  ;;  %15059 = vmatpush1.bf16.msra.mxu1 %v24344_v43  ;;  %v24352_v43 = vld [vmem:[#allocation80_spill] sm:$0xff] }
 0x4e6   : > { %15060 = vmatprep.subr.bf16.mxu1 %v23959_v28 }
 0x4e8   : > { %5214 = vmatmul.mubr.f32.gmra.mrb[54].mxu1 %v24345_v39 }
 0x4e9   : > { %5220 = vmatprep.mubr.f32.mxu1 %v24346_v45  ;;  %15062 = vmatpush1.bf16.msra.mxu1 %v24347_v13  ;;  %v24355_v13 = vld [vmem:[#allocation184_spill] sm:$0xff] }
 0x4ea   : > { %15063 = vmatprep.subr.bf16.mxu1 %v23959_v28 }
 0x4ec   : > { %5223 = vmatmul.mubr.f32.gmra.mrb[56].mxu1 %v24348_v7  ;;  %v24366_v7 = vld [vmem:[#allocation206_spill] sm:$0xff] }
 0x4ed   : > { %5229 = vmatprep.mubr.f32.mxu1 %v24349_v16  ;;  %15065 = vmatpush1.bf16.msra.mxu1 %v24350_v60  ;;  %v24358_v60 = vld [vmem:[#allocation85_spill] sm:$0xff]  ;;  %v24359_v16 = vld [vmem:[#allocation74_spill] sm:$0xff] }
 0x4ee   : > { %15066 = vmatprep.subr.bf16.mxu1 %v23959_v28 }
 0x4f0   : > { %5232 = vmatmul.mubr.f32.gmra.mrb[58].mxu1 %v24351_v34  ;;  %v24362_v34 = vld [vmem:[#allocation59_spill] sm:$0xff] }
 0x4f1   : > { %5238 = vmatprep.mubr.f32.mxu1 %v24352_v43  ;;  %15068 = vmatpush1.bf16.msra.mxu1 %v24353_v9  ;;  %v24360_v43 = vld [vmem:[#allocation188_spill] sm:$0xff]  ;;  %v24361_v9 = vld [vmem:[#allocation195_spill] sm:$0xff] }
 0x4f2   : > { %15069 = vmatprep.subr.bf16.mxu1 %v23959_v28 }
 0x4f4   : > { %5241 = vmatmul.mubr.f32.gmra.mrb[60].mxu1 %v24354_v49  ;;  %v24363_v49 = vld [vmem:[#allocation205_spill] sm:$0xff] }
 0x4f5   : > { %5247 = vmatprep.mubr.f32.mxu1 %v24355_v13  ;;  %15071 = vmatpush1.bf16.msra.mxu1 %v24356_v35  ;;  %v24364_v13 = vld [vmem:[#allocation200_spill] sm:$0xff]  ;;  %v24365_v35 = vld [vmem:[#allocation210_spill] sm:$0xff] }
 0x4f6   : > { %15072 = vmatprep.subr.bf16.mxu1 %v23959_v28 }
 0x4f8   : > { %5250 = vmatmul.mubr.f32.gmra.mrb[62].mxu1 %v24357_v10  ;;  %v24367_v10 = vld [vmem:[#allocation225_spill] sm:$0xff] }
 0x4f9   : > { %5256 = vmatprep.mubr.f32.mxu1 %v24358_v60  ;;  %15074 = vmatpush1.bf16.msra.mxu1 %v24359_v16  ;;  %v24368_v60 = vld [vmem:[#allocation220_spill] sm:$0xff]  ;;  %v24369_v16 = vld [vmem:[#allocation230_spill] sm:$0xff] }
 0x4fa   : > { %15075 = vmatprep.subr.bf16.mxu1 %v23959_v28 }
 0x4fc   : > { %5259 = vmatmul.mubr.f32.gmra.mrb[64].mxu1 %v24360_v43  ;;  %v24371_v43 = vld [vmem:[#allocation245_spill] sm:$0xff] }
 0x4fd   : > { %5265 = vmatprep.mubr.f32.mxu1 %v24361_v9  ;;  %v24372_v9 = vld [vmem:[#allocation240_spill] sm:$0xff] }
 0x500   : > { %5268 = vmatmul.mubr.f32.gmra.mrb[66].mxu1 %v24362_v34  ;;  %v24373_v34 = vld [vmem:[#allocation250_spill] sm:$0xff] }
 0x501   : > { %5274 = vmatprep.mubr.f32.mxu1 %v24363_v49  ;;  %v24374_v49 = vld [vmem:[#allocation246_spill] sm:$0xff] }
 0x504   : > { %5277 = vmatmul.mubr.f32.gmra.mrb[68].mxu1 %v24364_v13  ;;  %v24375_v13 = vld [vmem:[#allocation265_spill] sm:$0xff] }
 0x505   : > { %5283 = vmatprep.mubr.f32.mxu1 %v24365_v35  ;;  %v24376_v35 = vld [vmem:[#allocation260_spill] sm:$0xff] }
 0x508   : > { %5286 = vmatmul.mubr.f32.gmra.mrb[70].mxu1 %v24366_v7  ;;  %v24377_v7 = vld [vmem:[#allocation270_spill] sm:$0xff] }
 0x509   : > { %5292 = vmatprep.mubr.f32.mxu1 %v24367_v10  ;;  %v24378_v10 = vld [vmem:[#allocation266_spill] sm:$0xff] }
 0x50c   : > { %5295 = vmatmul.mubr.f32.gmra.mrb[72].mxu1 %v24368_v60  ;;  %v24379_v60 = vld [vmem:[#allocation285_spill] sm:$0xff] }
 0x50d   : > { %5301 = vmatprep.mubr.f32.mxu1 %v24369_v16  ;;  %v24380_v16 = vld [vmem:[#allocation280_spill] sm:$0xff] }
 0x510   : > { %5304 = vmatmul.mubr.f32.gmra.mrb[74].mxu1 %v24370_v27  ;;  %v24381_v27 = vld [vmem:[#allocation290_spill] sm:$0xff] }
 0x511   : > { %5310 = vmatprep.mubr.f32.mxu1 %v24371_v43  ;;  %v24382_v43 = vld [vmem:[#allocation286_spill] sm:$0xff] }
 0x514   : > { %5313 = vmatmul.mubr.f32.gmra.mrb[76].mxu1 %v24372_v9  ;;  %v24383_v9 = vld [vmem:[#allocation27_spill] sm:$0xff] }
 0x515   : > { %5319 = vmatprep.mubr.f32.mxu1 %v24373_v34  ;;  %v24384_v34 = vld [vmem:[#allocation300_spill] sm:$0xff] }
 0x518   : > { %5322 = vmatmul.mubr.f32.gmra.mrb[78].mxu1 %v24374_v49  ;;  %v24385_v49 = vld [vmem:[#allocation308_spill] sm:$0xff] }
 0x519   : > { %5328 = vmatprep.mubr.f32.mxu1 %v24375_v13  ;;  %v24386_v13 = vld [vmem:[#allocation304_spill] sm:$0xff] }
 0x51c   : > { %5331 = vmatmul.mubr.f32.gmra.mrb[80].mxu1 %v24376_v35  ;;  %v24387_v35 = vld [vmem:[#allocation314_spill] sm:$0xff] }
 0x51d   : > { %5337 = vmatprep.mubr.f32.mxu1 %v24377_v7 }
 0x520   : > { %5340 = vmatmul.mubr.f32.gmra.mrb[82].mxu1 %v24378_v10 }
 0x521   : > { %5346 = vmatprep.mubr.f32.mxu1 %v24379_v60  ;;  %v24388_v60 = vld [vmem:[#allocation321_spill] sm:$0xff] }
 0x524   : > { %5349 = vmatmul.mubr.f32.gmra.mrb[84].mxu1 %v24380_v16 }
 0x525   : > { %5355 = vmatprep.mubr.f32.mxu1 %v24381_v27  ;;  %v24389_v27 = vand.u32 4294901760, %v24311_v37  ;;  %v24407_v37 = vand.u32 4294901760, %v24251_v0  ;;  %v24413_v0 = vand.u32 4294901760, %v24328_v21  ;;  %v24419_v21 = vand.u32 4294901760, %v24033_v46 }
 0x526   : > { %v24425_v46 = vand.u32 4294901760, %v24337_v29  ;;  %v24431_v29 = vand.u32 4294901760, %v24065_v2  ;;  %v24437_v2 = vand.u32 4294901760, %v24346_v45 }
 0x528   : > { %5358 = vmatmul.mubr.f32.gmra.mrb[86].mxu1 %v24382_v43  ;;  %v24390_v43 = vand.u32 4294901760, %v23940_v1  ;;  %v24398_v1 = vand.u32 4294901760, %v23970_v44  ;;  %v24404_v44 = vand.u32 4294901760, %v24321_v12 }
 0x529   : > { %5364 = vmatprep.mubr.f32.mxu1 %v24383_v9  ;;  %v24391_v9 = vand.u32 4294901760, %v23941_v42  ;;  %v24397_v42 = vand.u32 4294901760, %v24316_v15  ;;  %v24403_v15 = vand.u32 4294901760, %v24245_v4  ;;  %v24414_v4 = vand.u32 4294901760, %v24021_v51 }
 0x52a   : > { %v24420_v51 = vand.u32 4294901760, %v24333_v3  ;;  %v24426_v3 = vand.u32 4294901760, %v24053_v6  ;;  %v24432_v6 = vand.u32 4294901760, %v24342_v54  ;;  %v24438_v54 = vand.u32 4294901760, %v24086_v8  ;;  %v24449_v8 = vld [vmem:[#allocation100_spill] sm:$0xff] }
 0x52c   : > { %5367 = vmatmul.mubr.f32.gmra.mrb[88].mxu1 %v24384_v34  ;;  %v15076_v34 = vpack.c.bf16 %v24391_v9, %v24390_v43  ;;  %v24399_v43 = vand.u32 4294901760, %v23971_v52  ;;  %v24405_v52 = vand.u32 4294901760, %v24322_v63  ;;  %v24411_v63 = vand.u32 4294901760, %v24013_v38 }
 0x52d   : > { %5373 = vmatprep.mubr.f32.mxu1 %v24385_v49  ;;  %v24392_v49 = vand.u32 4294901760, %v24312_v50  ;;  %v24417_v38 = vand.u32 4294901760, %v24331_v14  ;;  %v24423_v14 = vand.u32 4294901760, %v24046_v40  ;;  %v24429_v40 = vand.u32 4294901760, %v24340_v56 }
 0x52e   : > { %v24435_v56 = vand.u32 4294901760, %v24078_v26  ;;  %v24443_v26 = vld [vmem:[#allocation103_spill] sm:$0xff] }
 0x530   : > { %5376 = vmatmul.mubr.f32.gmra.mrb[90].mxu1 %v24386_v13  ;;  %v24393_v13 = vand.u32 4294901760, %v24313_v20 }
 0x531   : > { %5382 = vmatprep.mubr.f32.mxu1 %v24387_v35 }
 0x534   : > { %5385 = vmatmul.mubr.f32.gmra.mrb[92].mxu1 %v19990_v17  ;;  %v24394_v17 = vand.u32 4294901760, %v23952_v11  ;;  %v24400_v11 = vand.u32 4294901760, %v24318_v30  ;;  %v24409_v30 = vand.u32 4294901760, %v24325_v31  ;;  %v24415_v31 = vand.u32 4294901760, %v24022_v24 }
 0x535   : > { %5391 = vmatprep.mubr.f32.mxu1 %v20012_v23  ;;  %v24395_v23 = vand.u32 4294901760, %v23953_v36  ;;  %v24401_v36 = vand.u32 4294901760, %v24319_v59  ;;  %v24421_v24 = vand.u32 4294901760, %v24334_v47  ;;  %v24427_v47 = vand.u32 4294901760, %v24054_v25 }
 0x536   : > { %v15094_v12 = vpack.c.bf16 %v24415_v31, %v24414_v4  ;;  %v24433_v25 = vand.u32 4294901760, %v24343_v61 }
 0x537   : > { %v15103_v50 = vpack.c.bf16 %v24427_v47, %v24426_v3  ;;  %v24479_v47 = vld [vmem:[#allocation210_spill] sm:$0xff] }
 0x538   : > { %5394 = vmatmul.mubr.f32.gmra.mrb[94].mxu1 %v24388_v60  ;;  %v15079_v60 = vpack.c.bf16 %v24395_v23, %v24394_v17  ;;  %v24408_v17 = vand.u32 4294901760, %v24324_v5  ;;  %v24410_v23 = vand.u32 4294901760, %v24012_v55  ;;  %v24416_v55 = vand.u32 4294901760, %v24330_v58 }
 0x539   : > { %5498 = vmatprep.mubr.f32.mxu1 %v24389_v27  ;;  %v24396_v27 = vand.u32 4294901760, %v24315_v33  ;;  %v24422_v58 = vand.u32 4294901760, %v24045_v19  ;;  %v24428_v19 = vand.u32 4294901760, %v24339_v18  ;;  %v24434_v18 = vand.u32 4294901760, %v24077_v53  ;;  %v24441_v53 = vld [vmem:[#allocation97_spill] sm:$0xff] }
 0x53b   : > { %v15100_v33 = vpack.c.bf16 %v24423_v14, %v24422_v58  ;;  %v24473_v58 = vld [vmem:[#allocation59_spill] sm:$0xff] }
 0x53c   : > { %5502 = vmatmul.mubr.f32.vlgmr.msra.gmra.mrb[32].mxu1 %v24392_v49  ;;  %v15082_v49 = vpack.c.bf16 %v24399_v43, %v24398_v1  ;;  %v24442_v1 = vand.u32 4294901760, %v24441_v53  ;;  %v24444_v43 = vand.u32 4294901760, %v24443_v26  ;;  %v24474_v14 = vand.u32 4294901760, %v24473_v58  ;;  %v24497_v53 = vld [vmem:[#allocation246_spill] sm:$0xff]  ;;  %v24499_v26 = vld [vmem:[#allocation265_spill] sm:$0xff]  ;;  %v24536_v58 = vld [vmem:[#allocation15_spill] sm:$0xff] }
 0x53d   : > { %5509 = vmatprep.mubr.f32.mxu1 %v24393_v13  ;;  %15077 = vmatpush1.bf16.msra.mxu1 %v15076_v34  ;;  %v24402_v34 = vand.u32 4294901760, %v24244_v57  ;;  %v15091_v57 = vpack.c.bf16 %v24411_v63, %v24410_v23  ;;  %v15109_v13 = vpack.c.bf16 %v24435_v56, %v24434_v18  ;;  %v24459_v23 = vld [vmem:[#allocation184_spill] sm:$0xff]  ;;  %v24489_v56 = vld [vmem:[#allocation226_spill] sm:$0xff] }
 0x53e   : > { %15078 = vmatprep.subr.bf16.mxu1 %v23959_v28  ;;  %v24460_v63 = vand.u32 4294901760, %v24459_v23 }
 0x53f   : > { %v15085_v9 = vpack.c.bf16 %v24403_v15, %v24402_v34  ;;  %v24450_v34 = vand.u32 4294901760, %v24449_v8  ;;  %v24451_v15 = vld [vmem:[#allocation80_spill] sm:$0xff] }
 0x540   : > { %5513 = vmatmul.mubr.f32.gmra.mrb[34].mxu1 %v24396_v27  ;;  %v24439_v27 = vld [vmem:[#allocation64_spill] sm:$0xff] }
 0x541   : > { %5520 = vmatprep.mubr.f32.mxu1 %v24397_v42  ;;  %15080 = vmatpush1.bf16.msra.mxu1 %v15079_v60  ;;  %v24406_v60 = vand.u32 4294901760, %v24250_v41  ;;  %v24412_v41 = vand.u32 4294901760, %v24327_v48  ;;  %v24418_v48 = vand.u32 4294901760, %v24032_v32  ;;  %v24424_v32 = vand.u32 4294901760, %v24336_v62 }
 0x542   : > { %15081 = vmatprep.subr.bf16.mxu1 %v23959_v28  ;;  %v24430_v62 = vand.u32 4294901760, %v24064_v22  ;;  %v24436_v22 = vand.u32 4294901760, %v24345_v39  ;;  %v24440_v61 = vand.u32 4294901760, %v24439_v27  ;;  %v24445_v39 = vld [vmem:[#allocation66_spill] sm:$0xff] }
 0x543   : > { %v15088_v59 = vpack.c.bf16 %v24407_v37, %v24406_v60  ;;  %v15097_v5 = vpack.c.bf16 %v24419_v21, %v24418_v48  ;;  %v24455_v60 = vld [vmem:[#allocation70_spill] sm:$0xff]  ;;  %v24469_v21 = vld [vmem:[#allocation188_spill] sm:$0xff] }
 0x544   : > { %5524 = vmatmul.mubr.f32.gmra.mrb[36].mxu1 %v24400_v11  ;;  %v15106_v20 = vpack.c.bf16 %v24431_v29, %v24430_v62  ;;  %v15112_v42 = vpack.c.bf16 %v24440_v61, %v24438_v54  ;;  %v24447_v11 = vld [vmem:[#allocation67_spill] sm:$0xff]  ;;  %v24456_v37 = vand.u32 4294901760, %v24455_v60  ;;  %v24483_v62 = vld [vmem:[#allocation225_spill] sm:$0xff]  ;;  %v24493_v54 = vld [vmem:[#allocation240_spill] sm:$0xff] }
 0x545   : > { %5531 = vmatprep.mubr.f32.mxu1 %v24401_v36  ;;  %15083 = vmatpush1.bf16.msra.mxu1 %v15082_v49  ;;  %v24446_v49 = vand.u32 4294901760, %v24445_v39  ;;  %v24448_v45 = vand.u32 4294901760, %v24447_v11  ;;  %v24484_v29 = vand.u32 4294901760, %v24483_v62  ;;  %v24494_v27 = vand.u32 4294901760, %v24493_v54  ;;  %v24495_v61 = vld [vmem:[#allocation250_spill] sm:$0xff]  ;;  %v24501_v39 = vld [vmem:[#allocation260_spill] sm:$0xff] }
 0x546   : > { %15084 = vmatprep.subr.bf16.mxu1 %v23959_v28  ;;  %v24503_v11 = vand.u32 4294901760, %v24377_v7  ;;  %v24512_v60 = vld [vmem:[#allocation27_spill] sm:$0xff]  ;;  %v24514_v7 = vld [vmem:[#allocation300_spill] sm:$0xff] }
 0x547   : > { %v15115_v36 = vpack.c.bf16 %v24448_v45, %v24446_v49  ;;  %v24502_v49 = vand.u32 4294901760, %v24501_v39  ;;  %v24504_v45 = vand.u32 4294901760, %v24378_v10  ;;  %v24516_v10 = vld [vmem:[#allocation308_spill] sm:$0xff]  ;;  %v24556_v54 = vld [vmem:[#allocation167_spill] sm:$0xff]  ;;  %v24564_v39 = vld [vmem:[#allocation93_spill] sm:$0xff] }
 0x548   : > { %5535 = vmatmul.mubr.f32.gmra.mrb[38].mxu1 %v24404_v44  ;;  %v24453_v44 = vld [vmem:[#allocation68_spill] sm:$0xff] }
 0x549   : > { %5542 = vmatprep.mubr.f32.mxu1 %v24405_v52  ;;  %15086 = vmatpush1.bf16.msra.mxu1 %v15085_v9  ;;  %v24452_v9 = vand.u32 4294901760, %v24451_v15  ;;  %v24454_v52 = vand.u32 4294901760, %v24453_v44  ;;  %v24508_v15 = vld [vmem:[#allocation290_spill] sm:$0xff]  ;;  %v24546_v62 = vld [vmem:[#allocation148_spill] sm:$0xff] }
 0x54a   : > { %15087 = vmatprep.subr.bf16.mxu1 %v23959_v28  ;;  %v24510_v44 = vld [vmem:[#allocation286_spill] sm:$0xff] }
 0x54c   : > { %5546 = vmatmul.mubr.f32.gmra.mrb[40].mxu1 %v24408_v17  ;;  %v24457_v17 = vld [vmem:[#allocation177_spill] sm:$0xff] }
 0x54d   : > { %5553 = vmatprep.mubr.f32.mxu1 %v24409_v30  ;;  %15089 = vmatpush1.bf16.msra.mxu1 %v15088_v59  ;;  %v15118_v59 = vpack.c.bf16 %v24456_v37, %v24454_v52  ;;  %v24458_v30 = vand.u32 4294901760, %v24457_v17  ;;  %v24511_v52 = vand.u32 4294901760, %v24510_v44  ;;  %v24513_v37 = vand.u32 4294901760, %v24512_v60  ;;  %v24573_v44 = vld [vmem:[#allocation178_spill] sm:$0xff] }
 0x54e   : > { %15090 = vmatprep.subr.bf16.mxu1 %v23959_v28  ;;  %v24517_v17 = vand.u32 4294901760, %v24516_v10  ;;  %v24575_v60 = vld [vmem:[#allocation74_spill] sm:$0xff]  ;;  %v24579_v10 = vld [vmem:[#allocation189_spill] sm:$0xff] }
 0x550   : > { %5557 = vmatmul.mubr.f32.gmra.mrb[42].mxu1 %v24412_v41 }
 0x551   : > { %5564 = vmatprep.mubr.f32.mxu1 %v24413_v0  ;;  %15092 = vmatpush1.bf16.msra.mxu1 %v15091_v57  ;;  %v24461_v57 = vld [vmem:[#allocation71_spill] sm:$0xff]  ;;  %v24463_v0 = vld [vmem:[#allocation72_spill] sm:$0xff] }
 0x552   : > { %15093 = vmatprep.subr.bf16.mxu1 %v23959_v28  ;;  %v24462_v41 = vand.u32 4294901760, %v24461_v57  ;;  %v24464_v4 = vand.u32 4294901760, %v24463_v0 }
 0x554   : > { %5568 = vmatmul.mubr.f32.gmra.mrb[44].mxu1 %v24416_v55  ;;  %v15121_v31 = vpack.c.bf16 %v24464_v4, %v24462_v41  ;;  %v24523_v41 = vld [vmem:[#allocation322_spill] sm:$0xff]  ;;  %v24525_v4 = vld [vmem:[#allocation321_spill] sm:$0xff] }
 0x555   : > { %5575 = vmatprep.mubr.f32.mxu1 %v24417_v38  ;;  %15095 = vmatpush1.bf16.msra.mxu1 %v15094_v12  ;;  %v24465_v12 = vld [vmem:[#allocation41_spill] sm:$0xff]  ;;  %v24524_v0 = vand.u32 4294901760, %v24523_v41 }
 0x556   : > { %15096 = vmatprep.subr.bf16.mxu1 %v23959_v28  ;;  %v24466_v55 = vand.u32 4294901760, %v24465_v12  ;;  %v24467_v38 = vld [vmem:[#allocation85_spill] sm:$0xff]  ;;  %v24527_v12 = vld [vmem:[#allocation131_spill] sm:$0xff] }
 0x557   : > { %v24468_v48 = vand.u32 4294901760, %v24467_v38  ;;  %v24529_v38 = vld [vmem:[#allocation125_spill] sm:$0xff] }
 0x558   : > { %5579 = vmatmul.mubr.f32.gmra.mrb[46].mxu1 %v24420_v51  ;;  %v24471_v51 = vld [vmem:[#allocation195_spill] sm:$0xff]  ;;  %v24586_v41 = vld [vmem:[#allocation229_spill] sm:$0xff] }
 0x559   : > { %5586 = vmatprep.mubr.f32.mxu1 %v24421_v24  ;;  %15098 = vmatpush1.bf16.msra.mxu1 %v15097_v5  ;;  %v24470_v5 = vand.u32 4294901760, %v24469_v21  ;;  %v24472_v24 = vand.u32 4294901760, %v24471_v51  ;;  %v24532_v21 = vld [vmem:[#allocation138_spill] sm:$0xff]  ;;  %v24534_v51 = vld [vmem:[#allocation135_spill] sm:$0xff] }
 0x55a   : > { %15099 = vmatprep.subr.bf16.mxu1 %v23959_v28 }
 0x55c   : > { %5590 = vmatmul.mubr.f32.gmra.mrb[48].mxu1 %v24424_v32 }
 0x55d   : > { %5597 = vmatprep.mubr.f32.mxu1 %v24425_v46  ;;  %15101 = vmatpush1.bf16.msra.mxu1 %v15100_v33  ;;  %v24475_v33 = vld [vmem:[#allocation205_spill] sm:$0xff]  ;;  %v24477_v46 = vld [vmem:[#allocation200_spill] sm:$0xff] }
 0x55e   : > { %15102 = vmatprep.subr.bf16.mxu1 %v23959_v28  ;;  %v24476_v32 = vand.u32 4294901760, %v24475_v33  ;;  %v24478_v3 = vand.u32 4294901760, %v24477_v46  ;;  %v24538_v33 = vld [vmem:[#allocation143_spill] sm:$0xff]  ;;  %v24540_v46 = vld [vmem:[#allocation140_spill] sm:$0xff] }
 0x560   : > { %5601 = vmatmul.mubr.f32.gmra.mrb[50].mxu1 %v24428_v19  ;;  %v24481_v19 = vld [vmem:[#allocation206_spill] sm:$0xff] }
 0x561   : > { %5608 = vmatprep.mubr.f32.mxu1 %v24429_v40  ;;  %15104 = vmatpush1.bf16.msra.mxu1 %v15103_v50  ;;  %v24480_v50 = vand.u32 4294901760, %v24479_v47  ;;  %v24482_v40 = vand.u32 4294901760, %v24481_v19  ;;  %v24542_v47 = vld [vmem:[#allocation22_spill] sm:$0xff]  ;;  %v24544_v19 = vld [vmem:[#allocation151_spill] sm:$0xff] }
 0x562   : > { %15105 = vmatprep.subr.bf16.mxu1 %v23959_v28 }
 0x564   : > { %5612 = vmatmul.mubr.f32.gmra.mrb[52].mxu1 %v24432_v6 }
 0x565   : > { %5619 = vmatprep.mubr.f32.mxu1 %v24433_v25  ;;  %15107 = vmatpush1.bf16.msra.mxu1 %v15106_v20  ;;  %v24485_v20 = vld [vmem:[#allocation220_spill] sm:$0xff]  ;;  %v24487_v25 = vld [vmem:[#allocation230_spill] sm:$0xff] }
 0x566   : > { %15108 = vmatprep.subr.bf16.mxu1 %v23959_v28  ;;  %v24486_v6 = vand.u32 4294901760, %v24485_v20  ;;  %v24488_v18 = vand.u32 4294901760, %v24487_v25  ;;  %v24548_v20 = vld [vmem:[#allocation34_spill] sm:$0xff]  ;;  %v24550_v25 = vld [vmem:[#allocation157_spill] sm:$0xff] }
 0x568   : > { %5623 = vmatmul.mubr.f32.gmra.mrb[54].mxu1 %v24436_v22  ;;  %v24491_v22 = vld [vmem:[#allocation245_spill] sm:$0xff] }
 0x569   : > { %5630 = vmatprep.mubr.f32.mxu1 %v24437_v2  ;;  %15110 = vmatpush1.bf16.msra.mxu1 %v15109_v13  ;;  %v24490_v13 = vand.u32 4294901760, %v24489_v56  ;;  %v24492_v2 = vand.u32 4294901760, %v24491_v22  ;;  %v24552_v56 = vld [vmem:[#allocation46_spill] sm:$0xff] }
 0x56a   : > { %15111 = vmatprep.subr.bf16.mxu1 %v23959_v28  ;;  %v24554_v22 = vld [vmem:[#allocation42_spill] sm:$0xff] }
 0x56c   : > { %5634 = vmatmul.mubr.f32.gmra.mrb[56].mxu1 %v24442_v1  ;;  %v24498_v1 = vand.u32 4294901760, %v24497_v53  ;;  %v24560_v53 = vld [vmem:[#allocation55_spill] sm:$0xff] }
 0x56d   : > { %5641 = vmatprep.mubr.f32.mxu1 %v24444_v43  ;;  %15113 = vmatpush1.bf16.msra.mxu1 %v15112_v42  ;;  %v24496_v42 = vand.u32 4294901760, %v24495_v61  ;;  %v24500_v43 = vand.u32 4294901760, %v24499_v26  ;;  %v24558_v61 = vld [vmem:[#allocation14_spill] sm:$0xff]  ;;  %v24562_v26 = vld [vmem:[#allocation171_spill] sm:$0xff] }
 0x56e   : > { %15114 = vmatprep.subr.bf16.mxu1 %v23959_v28 }
 0x570   : > { %5645 = vmatmul.mubr.f32.gmra.mrb[58].mxu1 %v24450_v34  ;;  %v24507_v34 = vand.u32 4294901760, %v24380_v16  ;;  %v24520_v16 = vand.u32 4294901760, %v24387_v35  ;;  %v24531_v35 = vld [vmem:[#allocation128_spill] sm:$0xff] }
 0x571   : > { %5652 = vmatprep.mubr.f32.mxu1 %v24452_v9  ;;  %15116 = vmatpush1.bf16.msra.mxu1 %v15115_v36  ;;  %v24505_v36 = vld [vmem:[#allocation285_spill] sm:$0xff]  ;;  %v24509_v9 = vand.u32 4294901760, %v24508_v15  ;;  %v24571_v15 = vld [vmem:[#allocation183_spill] sm:$0xff] }
 0x572   : > { %15117 = vmatprep.subr.bf16.mxu1 %v23959_v28  ;;  %v24506_v8 = vand.u32 4294901760, %v24505_v36  ;;  %v24568_v36 = vld [vmem:[#allocation180_spill] sm:$0xff] }
 0x574   : > { %5656 = vmatmul.mubr.f32.gmra.mrb[60].mxu1 %v24458_v30  ;;  %v24518_v30 = vld [vmem:[#allocation304_spill] sm:$0xff] }
 0x575   : > { %5663 = vmatprep.mubr.f32.mxu1 %v24460_v63  ;;  %15119 = vmatpush1.bf16.msra.mxu1 %v15118_v59  ;;  %v24515_v59 = vand.u32 4294901760, %v24514_v7  ;;  %v24519_v23 = vand.u32 4294901760, %v24518_v30  ;;  %v24521_v63 = vld [vmem:[#allocation316_spill] sm:$0xff]  ;;  %v24581_v30 = vld [vmem:[#allocation63_spill] sm:$0xff] }
 0x576   : > { %15120 = vmatprep.subr.bf16.mxu1 %v23959_v28  ;;  %v24522_v57 = vand.u32 4294901760, %v24521_v63  ;;  %v24577_v7 = vld [vmem:[#allocation52_spill] sm:$0xff]  ;;  %v24584_v63 = vld [vmem:[#allocation223_spill] sm:$0xff] }
 0x578   : > { %5667 = vmatmul.mubr.f32.gmra.mrb[62].mxu1 %v24466_v55  ;;  %v24528_v55 = vld [vmem:[#allocation124_spill] sm:$0xff] }
 0x579   : > { %5674 = vmatprep.mubr.f32.mxu1 %v24468_v48  ;;  %15122 = vmatpush1.bf16.msra.mxu1 %v15121_v31  ;;  %v24526_v31 = vand.u32 4294901760, %v24525_v4  ;;  %v24530_v48 = vld [vmem:[#allocation35_spill] sm:$0xff] }
 0x57a   : > { %15123 = vmatprep.subr.bf16.mxu1 %v23959_v28  ;;  %v24588_v4 = vld [vmem:[#allocation243_spill] sm:$0xff] }
 0x57c   : > { %5678 = vmatmul.mubr.f32.gmra.mrb[64].mxu1 %v24470_v5  ;;  %v24533_v5 = vld [vmem:[#allocation19_spill] sm:$0xff] }
 0x57d   : > { %5685 = vmatprep.mubr.f32.mxu1 %v24472_v24  ;;  %v24535_v24 = vld [vmem:[#allocation31_spill] sm:$0xff] }
 0x580   : > { %5689 = vmatmul.mubr.f32.gmra.mrb[66].mxu1 %v24474_v14  ;;  %v24537_v14 = vld [vmem:[#allocation137_spill] sm:$0xff] }
 0x581   : > { %5696 = vmatprep.mubr.f32.mxu1 %v24476_v32  ;;  %v24539_v32 = vld [vmem:[#allocation18_spill] sm:$0xff] }
 0x584   : > { %5700 = vmatmul.mubr.f32.gmra.mrb[68].mxu1 %v24478_v3  ;;  %v24541_v3 = vld [vmem:[#allocation146_spill] sm:$0xff] }
 0x585   : > { %5707 = vmatprep.mubr.f32.mxu1 %v24480_v50  ;;  %v24543_v50 = vld [vmem:[#allocation142_spill] sm:$0xff] }
 0x588   : > { %5711 = vmatmul.mubr.f32.gmra.mrb[70].mxu1 %v24482_v40  ;;  %v24545_v40 = vld [vmem:[#allocation29_spill] sm:$0xff] }
 0x589   : > { %5718 = vmatprep.mubr.f32.mxu1 %v24484_v29  ;;  %v24547_v29 = vld [vmem:[#allocation154_spill] sm:$0xff] }
 0x58c   : > { %5722 = vmatmul.mubr.f32.gmra.mrb[72].mxu1 %v24486_v6  ;;  %v24549_v6 = vld [vmem:[#allocation150_spill] sm:$0xff] }
 0x58d   : > { %5729 = vmatprep.mubr.f32.mxu1 %v24488_v18  ;;  %v24551_v18 = vld [vmem:[#allocation39_spill] sm:$0xff] }
 0x590   : > { %5733 = vmatmul.mubr.f32.gmra.mrb[74].mxu1 %v24490_v13  ;;  %v24553_v13 = vld [vmem:[#allocation53_spill] sm:$0xff] }
 0x591   : > { %5740 = vmatprep.mubr.f32.mxu1 %v24492_v2  ;;  %v24555_v2 = vld [vmem:[#allocation51_spill] sm:$0xff] }
 0x594   : > { %5744 = vmatmul.mubr.f32.gmra.mrb[76].mxu1 %v24494_v27  ;;  %v24557_v27 = vld [vmem:[#allocation50_spill] sm:$0xff] }
 0x595   : > { %5751 = vmatprep.mubr.f32.mxu1 %v24496_v42  ;;  %v24559_v42 = vld [vmem:[#allocation86_spill] sm:$0xff] }
 0x598   : > { %5755 = vmatmul.mubr.f32.gmra.mrb[78].mxu1 %v24498_v1  ;;  %v24561_v1 = vld [vmem:[#allocation77_spill] sm:$0xff] }
 0x599   : > { %5762 = vmatprep.mubr.f32.mxu1 %v24500_v43  ;;  %v24563_v43 = vld [vmem:[#allocation61_spill] sm:$0xff] }
 0x59c   : > { %5766 = vmatmul.mubr.f32.gmra.mrb[80].mxu1 %v24502_v49  ;;  %v24565_v49 = vld [vmem:[#allocation105_spill] sm:$0xff] }
 0x59d   : > { %5773 = vmatprep.mubr.f32.mxu1 %v24503_v11  ;;  %v24566_v11 = vld [vmem:[#allocation65_spill] sm:$0xff] }
 0x5a0   : > { %5777 = vmatmul.mubr.f32.gmra.mrb[82].mxu1 %v24504_v45  ;;  %v24567_v45 = vld [vmem:[#allocation98_spill] sm:$0xff] }
 0x5a1   : > { %5784 = vmatprep.mubr.f32.mxu1 %v24506_v8  ;;  %v24569_v8 = vld [vmem:[#allocation69_spill] sm:$0xff] }
 0x5a4   : > { %5788 = vmatmul.mubr.f32.gmra.mrb[84].mxu1 %v24507_v34  ;;  %v24570_v34 = vld [vmem:[#allocation37_spill] sm:$0xff] }
 0x5a5   : > { %5795 = vmatprep.mubr.f32.mxu1 %v24509_v9  ;;  %v24572_v9 = vld [vmem:[#allocation73_spill] sm:$0xff] }
 0x5a8   : > { %5799 = vmatmul.mubr.f32.gmra.mrb[86].mxu1 %v24511_v52  ;;  %v24574_v52 = vld [vmem:[#allocation191_spill] sm:$0xff] }
 0x5a9   : > { %5806 = vmatprep.mubr.f32.mxu1 %v24513_v37  ;;  %v24576_v37 = vld [vmem:[#allocation23_spill] sm:$0xff] }
 0x5ac   : > { %5810 = vmatmul.mubr.f32.gmra.mrb[88].mxu1 %v24515_v59  ;;  %v24578_v59 = vld [vmem:[#allocation194_spill] sm:$0xff] }
 0x5ad   : > { %5817 = vmatprep.mubr.f32.mxu1 %v24517_v17  ;;  %v24580_v17 = vld [vmem:[#allocation203_spill] sm:$0xff] }
 0x5b0   : > { %5821 = vmatmul.mubr.f32.gmra.mrb[90].mxu1 %v24519_v23  ;;  %v24582_v23 = vld [vmem:[#allocation209_spill] sm:$0xff] }
 0x5b1   : > { %5828 = vmatprep.mubr.f32.mxu1 %v24520_v16  ;;  %v24583_v16 = vld [vmem:[#allocation201_spill] sm:$0xff] }
 0x5b4   : > { %5832 = vmatmul.mubr.f32.gmra.mrb[92].mxu1 %v24522_v57  ;;  %v24585_v57 = vld [vmem:[#allocation217_spill] sm:$0xff] }
 0x5b5   : > { %5839 = vmatprep.mubr.f32.mxu1 %v24524_v0  ;;  %v24587_v0 = vld [vmem:[#allocation221_spill] sm:$0xff] }
 0x5b8   : > { %5843 = vmatmul.mubr.f32.gmra.mrb[94].mxu1 %v24526_v31  ;;  %v24589_v31 = vld [vmem:[#allocation237_spill] sm:$0xff] }
 0x5b9   : > { %6009 = vmatprep.mubr.f32.mxu1 %v24527_v12 }
 0x5bc   : > { %6011 = vmatmul.mubr.f32.vlgmr.msra.gmra.mrb[32].mxu1 %v24528_v55 }
 0x5bd   : > { %6016 = vmatprep.mubr.f32.mxu1 %v24529_v38  ;;  %15125 = vmatpush1.bf16.msra.mxu1 %v24530_v48  ;;  %v24590_v48 = vld [vmem:[#allocation249_spill] sm:$0xff] }
 0x5be   : > { %15126 = vmatprep.subr.bf16.mxu1 %v23959_v28 }
 0x5c0   : > { %6018 = vmatmul.mubr.f32.gmra.mrb[34].mxu1 %v24531_v35 }
 0x5c1   : > { %6023 = vmatprep.mubr.f32.mxu1 %v24532_v21  ;;  %15128 = vmatpush1.bf16.msra.mxu1 %v24533_v5  ;;  %v24591_v5 = vld [vmem:[#allocation241_spill] sm:$0xff] }
 0x5c2   : > { %15129 = vmatprep.subr.bf16.mxu1 %v23959_v28 }
 0x5c4   : > { %6025 = vmatmul.mubr.f32.gmra.mrb[36].mxu1 %v24534_v51 }
 0x5c5   : > { %6030 = vmatprep.mubr.f32.mxu1 %v24535_v24  ;;  %15131 = vmatpush1.bf16.msra.mxu1 %v24536_v58  ;;  %v24592_v58 = vld [vmem:[#allocation263_spill] sm:$0xff] }
 0x5c6   : > { %15132 = vmatprep.subr.bf16.mxu1 %v23959_v28 }
 0x5c8   : > { %6032 = vmatmul.mubr.f32.gmra.mrb[38].mxu1 %v24537_v14 }
 0x5c9   : > { %6037 = vmatprep.mubr.f32.mxu1 %v24538_v33  ;;  %15134 = vmatpush1.bf16.msra.mxu1 %v24539_v32  ;;  %v24593_v32 = vld [vmem:[#allocation257_spill] sm:$0xff] }
 0x5ca   : > { %15135 = vmatprep.subr.bf16.mxu1 %v23959_v28 }
 0x5cc   : > { %6039 = vmatmul.mubr.f32.gmra.mrb[40].mxu1 %v24540_v46 }
 0x5cd   : > { %6044 = vmatprep.mubr.f32.mxu1 %v24541_v3  ;;  %15137 = vmatpush1.bf16.msra.mxu1 %v24542_v47  ;;  %v24594_v47 = vld [vmem:[#allocation269_spill] sm:$0xff] }
 0x5ce   : > { %15138 = vmatprep.subr.bf16.mxu1 %v23959_v28 }
 0x5d0   : > { %6046 = vmatmul.mubr.f32.gmra.mrb[42].mxu1 %v24543_v50 }
 0x5d1   : > { %6051 = vmatprep.mubr.f32.mxu1 %v24544_v19  ;;  %15140 = vmatpush1.bf16.msra.mxu1 %v24545_v40  ;;  %v24595_v40 = vld [vmem:[#allocation261_spill] sm:$0xff] }
 0x5d2   : > { %15141 = vmatprep.subr.bf16.mxu1 %v23959_v28 }
 0x5d4   : > { %6053 = vmatmul.mubr.f32.gmra.mrb[44].mxu1 %v24546_v62 }
 0x5d5   : > { %6058 = vmatprep.mubr.f32.mxu1 %v24547_v29  ;;  %15143 = vmatpush1.bf16.msra.mxu1 %v24548_v20  ;;  %v24596_v20 = vld [vmem:[#allocation283_spill] sm:$0xff] }
 0x5d6   : > { %15144 = vmatprep.subr.bf16.mxu1 %v23959_v28 }
 0x5d8   : > { %6060 = vmatmul.mubr.f32.gmra.mrb[46].mxu1 %v24549_v6 }
 0x5d9   : > { %6065 = vmatprep.mubr.f32.mxu1 %v24550_v25  ;;  %15146 = vmatpush1.bf16.msra.mxu1 %v24551_v18  ;;  %v24597_v18 = vld [vmem:[#allocation277_spill] sm:$0xff] }
 0x5da   : > { %15147 = vmatprep.subr.bf16.mxu1 %v23959_v28 }
 0x5dc   : > { %6067 = vmatmul.mubr.f32.gmra.mrb[48].mxu1 %v24552_v56 }
 0x5dd   : > { %6072 = vmatprep.mubr.f32.mxu1 %v24553_v13  ;;  %15149 = vmatpush1.bf16.msra.mxu1 %v24554_v22  ;;  %v24598_v22 = vld [vmem:[#allocation289_spill] sm:$0xff] }
 0x5de   : > { %15150 = vmatprep.subr.bf16.mxu1 %v23959_v28 }
 0x5e0   : > { %6074 = vmatmul.mubr.f32.gmra.mrb[50].mxu1 %v24555_v2 }
 0x5e1   : > { %6079 = vmatprep.mubr.f32.mxu1 %v24556_v54  ;;  %15152 = vmatpush1.bf16.msra.mxu1 %v24557_v27  ;;  %v24599_v27 = vld [vmem:[#allocation281_spill] sm:$0xff] }
 0x5e2   : > { %15153 = vmatprep.subr.bf16.mxu1 %v23959_v28 }
 0x5e4   : > { %6081 = vmatmul.mubr.f32.gmra.mrb[52].mxu1 %v24558_v61 }
 0x5e5   : > { %6086 = vmatprep.mubr.f32.mxu1 %v24559_v42  ;;  %15155 = vmatpush1.bf16.msra.mxu1 %v24560_v53  ;;  %v24600_v53 = vld [vmem:[#allocation303_spill] sm:$0xff] }
 0x5e6   : > { %15156 = vmatprep.subr.bf16.mxu1 %v23959_v28 }
 0x5e8   : > { %6088 = vmatmul.mubr.f32.gmra.mrb[54].mxu1 %v24561_v1 }
 0x5e9   : > { %6093 = vmatprep.mubr.f32.mxu1 %v24562_v26  ;;  %15158 = vmatpush1.bf16.msra.mxu1 %v24563_v43  ;;  %v24601_v43 = vld [vmem:[#allocation297_spill] sm:$0xff] }
 0x5ea   : > { %15159 = vmatprep.subr.bf16.mxu1 %v23959_v28 }
 0x5ec   : > { %6095 = vmatmul.mubr.f32.gmra.mrb[56].mxu1 %v24564_v39 }
 0x5ed   : > { %6100 = vmatprep.mubr.f32.mxu1 %v24565_v49  ;;  %15161 = vmatpush1.bf16.msra.mxu1 %v24566_v11  ;;  %v24602_v11 = vld [vmem:[#allocation307_spill] sm:$0xff] }
 0x5ee   : > { %15162 = vmatprep.subr.bf16.mxu1 %v23959_v28 }
 0x5f0   : > { %6102 = vmatmul.mubr.f32.gmra.mrb[58].mxu1 %v24567_v45 }
 0x5f1   : > { %6107 = vmatprep.mubr.f32.mxu1 %v24568_v36  ;;  %15164 = vmatpush1.bf16.msra.mxu1 %v24569_v8  ;;  %v24603_v8 = vld [vmem:[#allocation301_spill] sm:$0xff] }
 0x5f2   : > { %15165 = vmatprep.subr.bf16.mxu1 %v23959_v28 }
 0x5f4   : > { %6109 = vmatmul.mubr.f32.gmra.mrb[60].mxu1 %v24570_v34 }
 0x5f5   : > { %6114 = vmatprep.mubr.f32.mxu1 %v24571_v15  ;;  %15167 = vmatpush1.bf16.msra.mxu1 %v24572_v9  ;;  %v24604_v9 = vld [vmem:[#allocation311_spill] sm:$0xff] }
 0x5f6   : > { %15168 = vmatprep.subr.bf16.mxu1 %v23959_v28 }
 0x5f8   : > { %6116 = vmatmul.mubr.f32.gmra.mrb[62].mxu1 %v24573_v44 }
 0x5f9   : > { %6121 = vmatprep.mubr.f32.mxu1 %v24574_v52  ;;  %15170 = vmatpush1.bf16.msra.mxu1 %v24575_v60  ;;  %v24605_v60 = vld [vmem:[#allocation312_spill] sm:$0xff] }
 0x5fa   : > { %15375 = vmatprep.subr.bf16.mxu1 %v24576_v37 }
 0x5fc   : > { %6123 = vmatmul.mubr.f32.gmra.mrb[64].mxu1 %v24577_v7 }
 0x5fd   : > { %6128 = vmatprep.mubr.f32.mxu1 %v24578_v59 }
 0x600   : > { %6130 = vmatmul.mubr.f32.gmra.mrb[66].mxu1 %v24579_v10 }
 0x601   : > { %6135 = vmatprep.mubr.f32.mxu1 %v24580_v17 }
 0x604   : > { %6137 = vmatmul.mubr.f32.gmra.mrb[68].mxu1 %v24581_v30 }
 0x605   : > { %6142 = vmatprep.mubr.f32.mxu1 %v24582_v23 }
 0x608   : > { %6144 = vmatmul.mubr.f32.gmra.mrb[70].mxu1 %v24583_v16 }
 0x609   : > { %6149 = vmatprep.mubr.f32.mxu1 %v24584_v63 }
 0x60c   : > { %6151 = vmatmul.mubr.f32.gmra.mrb[72].mxu1 %v24585_v57 }
 0x60d   : > { %6156 = vmatprep.mubr.f32.mxu1 %v24586_v41 }
 0x610   : > { %6158 = vmatmul.mubr.f32.gmra.mrb[74].mxu1 %v24587_v0 }
 0x611   : > { %6163 = vmatprep.mubr.f32.mxu1 %v24588_v4 }
 0x614   : > { %6165 = vmatmul.mubr.f32.gmra.mrb[76].mxu1 %v24589_v31 }
 0x615   : > { %6170 = vmatprep.mubr.f32.mxu1 %v24590_v48 }
 0x618   : > { %6172 = vmatmul.mubr.f32.gmra.mrb[78].mxu1 %v24591_v5 }
 0x619   : > { %6177 = vmatprep.mubr.f32.mxu1 %v24592_v58 }
 0x61c   : > { %6179 = vmatmul.mubr.f32.gmra.mrb[80].mxu1 %v24593_v32 }
 0x61d   : > { %6184 = vmatprep.mubr.f32.mxu1 %v24594_v47 }
 0x620   : > { %6186 = vmatmul.mubr.f32.gmra.mrb[82].mxu1 %v24595_v40  ;;  %v24606_v40 = vld [vmem:[#allocation319_spill] sm:$0xff] }
 0x621   : > { %6191 = vmatprep.mubr.f32.mxu1 %v24596_v20  ;;  %v24607_v20 = vld [vmem:[#allocation317_spill] sm:$0xff] }
 0x624   : > { %6193 = vmatmul.mubr.f32.gmra.mrb[84].mxu1 %v24597_v18 }
 0x625   : > { %6198 = vmatprep.mubr.f32.mxu1 %v24598_v22 }
 0x628   : > { %6200 = vmatmul.mubr.f32.gmra.mrb[86].mxu1 %v24599_v27 }
 0x629   : > { %6205 = vmatprep.mubr.f32.mxu1 %v24600_v53 }
 0x62c   : > { %6207 = vmatmul.mubr.f32.gmra.mrb[88].mxu1 %v24601_v43  ;;  %v24608_v43 = vld [vmem:[#allocation24_spill] sm:$0xff] }
 0x62d   : > { %6212 = vmatprep.mubr.f32.mxu1 %v24602_v11 }
 0x630   : > { %6214 = vmatmul.mubr.f32.gmra.mrb[90].mxu1 %v24603_v8 }
 0x631   : > { %6219 = vmatprep.mubr.f32.mxu1 %v24604_v9 }
 0x634   : > { %6221 = vmatmul.mubr.f32.gmra.mrb[92].mxu1 %v24605_v60 }
 0x635   : > { %6226 = vmatprep.mubr.f32.mxu1 %v24606_v40 }
 0x638   : > { %6228 = vmatmul.mubr.f32.gmra.mrb[94].mxu1 %v24607_v20 }
 0x639   : > { %6330 = vmatprep.mubr.f32.mxu1 %v24527_v12  ;;  %v24609_v12 = vld [vmem:[#allocation261_spill] sm:$0xff] }
 0x63c   : > { %6332 = vmatmul.mubr.f32.vlgmr.msra.gmra.mrb[32].mxu1 %v24528_v55  ;;  %v24610_v55 = vld [vmem:[#allocation283_spill] sm:$0xff] }
 0x63d   : > { %6337 = vmatprep.mubr.f32.mxu1 %v24529_v38  ;;  %15377 = vmatpush3.bf16.msra.mxu1 %v24576_v37  ;;  %v24611_v38 = vld [vmem:[#allocation297_spill] sm:$0xff] }
 0x63e   : > { %15376 = vmatprep.subr.bf16.mxu1 %v24608_v43 }
 0x640   : > { %6339 = vmatmul.mubr.f32.gmra.mrb[34].mxu1 %v24531_v35  ;;  %v20673_v35 = vld [vmem:[%s22898_s3] sm:$0xff] }
 0x641   : > { %6344 = vmatprep.mubr.f32.mxu1 %v24532_v21  ;;  %15378 = vmatpush3.bf16.msra.mxu1 %v24608_v43  ;;  %v20678_v21 = vld [vmem:[%s22898_s3 + $0x8] sm:$0xff] }
 0x642   : > { %15267 = vmatprep.subr.bf16.mxu1 %v23959_v28 }
 0x644   : > { %6346 = vmatmul.mubr.f32.gmra.mrb[36].mxu1 %v24534_v51  ;;  %v8569_v51 = vand.u32 4294901760, %v20673_v35 }
 0x645   : > { %6351 = vmatprep.mubr.f32.mxu1 %v24535_v24  ;;  %v8572_v24 = vand.u32 4294901760, %v20678_v21 }
 0x648   : > { %6353 = vmatmul.mubr.f32.gmra.mrb[38].mxu1 %v24537_v14  ;;  %v24612_v14 = vld [vmem:[#allocation28_spill] sm:$0xff] }
 0x649   : > { %6358 = vmatprep.mubr.f32.mxu1 %v24538_v33  ;;  %v24613_v33 = vand.u32 4294901760, %v24612_v14 }
 0x64c   : > { %6360 = vmatmul.mubr.f32.gmra.mrb[40].mxu1 %v24540_v46  ;;  %v6706_v46 = vsub.f32 %v24612_v14, %v24613_v33 }
 0x64d   : > { %6365 = vmatprep.mubr.f32.mxu1 %v24541_v3  ;;  %v20690_v3 = vpack.c.bf16 %v8572_v24, %v8569_v51 }
 0x64f   : > { %15220 = vmatprep.subr.bf16.mxu0 %v20690_v3 }
 0x650   : > { %6367 = vmatmul.mubr.f32.gmra.mrb[42].mxu1 %v24543_v50  ;;  %v20696_v50 = vld [vmem:[%s22898_s3 + $0x10] sm:$0xff]  ;;  %15222 = vmatpush3.bf16.msra.mxu0 %v20690_v3 }
 0x651   : > { %6372 = vmatprep.mubr.f32.mxu1 %v24544_v19  ;;  %v20701_v19 = vld [vmem:[%s22898_s3 + $0x18] sm:$0xff] }
 0x654   : > { %6374 = vmatmul.mubr.f32.gmra.mrb[44].mxu1 %v24546_v62  ;;  %v8575_v62 = vand.u32 4294901760, %v20696_v50 }
 0x655   : > { %6379 = vmatprep.mubr.f32.mxu1 %v24547_v29  ;;  %v8578_v29 = vand.u32 4294901760, %v20701_v19 }
 0x658   : > { %6381 = vmatmul.mubr.f32.gmra.mrb[46].mxu1 %v24549_v6  ;;  %v24614_v6 = vld [vmem:[#allocation108_spill] sm:$0xff] }
 0x659   : > { %6386 = vmatprep.mubr.f32.mxu1 %v24550_v25  ;;  %v24615_v25 = vand.u32 4294901760, %v24614_v6 }
 0x65c   : > { %6388 = vmatmul.mubr.f32.gmra.mrb[48].mxu1 %v24552_v56  ;;  %v6716_v56 = vsub.f32 %v24614_v6, %v24615_v25 }
 0x65d   : > { %6393 = vmatprep.mubr.f32.mxu1 %v24553_v13  ;;  %v6707_v13 = vand.u32 4294901760, %v6706_v46  ;;  %v24641_v46 = vld [vmem:[#allocation121_spill] sm:$0xff] }
 0x65e   : > { %v24642_v6 = vand.u32 4294901760, %v24641_v46 }
 0x660   : > { %6395 = vmatmul.mubr.f32.gmra.mrb[50].mxu1 %v24555_v2  ;;  %v24616_v2 = vld [vmem:[#allocation109_spill] sm:$0xff]  ;;  %v6846_v25 = vsub.f32 %v24641_v46, %v24642_v6  ;;  %v24665_v46 = vld [vmem:[#allocation224_spill] sm:$0xff] }
 0x661   : > { %6400 = vmatprep.mubr.f32.mxu1 %v24556_v54  ;;  %v24617_v54 = vand.u32 4294901760, %v24616_v2 }
 0x664   : > { %6402 = vmatmul.mubr.f32.gmra.mrb[52].mxu1 %v24558_v61  ;;  %v6726_v61 = vsub.f32 %v24616_v2, %v24617_v54 }
 0x665   : > { %6407 = vmatprep.mubr.f32.mxu1 %v24559_v42  ;;  %v20718_v42 = vpack.c.bf16 %v8578_v29, %v8575_v62 }
 0x667   : > { %24618 = vst [vmem:[#allocation134_spill] sm:$0xff] %v20718_v42  ;;  %15224 = vmatprep.subr.bf16.mxu0 %v20718_v42 }
 0x668   : > { %6409 = vmatmul.mubr.f32.gmra.mrb[54].mxu1 %v24561_v1  ;;  %v6717_v1 = vand.u32 4294901760, %v6716_v56  ;;  %15226 = vmatpush3.bf16.msra.mxu0 %v20718_v42 }
 0x669   : > { %6414 = vmatprep.mubr.f32.mxu1 %v24562_v26  ;;  %v24619_v26 = vld [vmem:[#allocation110_spill] sm:$0xff] }
 0x66c   : > { %6416 = vmatmul.mubr.f32.gmra.mrb[56].mxu1 %v24564_v39  ;;  %v24620_v39 = vand.u32 4294901760, %v24619_v26 }
 0x66d   : > { %6421 = vmatprep.mubr.f32.mxu1 %v24565_v49 }
 0x66e   : > { %v6736_v49 = vsub.f32 %v24619_v26, %v24620_v39 }
 0x670   : > { %6423 = vmatmul.mubr.f32.gmra.mrb[58].mxu1 %v24567_v45  ;;  %v6727_v45 = vand.u32 4294901760, %v6726_v61  ;;  %v6847_v61 = vand.u32 4294901760, %v6846_v25  ;;  %v24666_v25 = vld [vmem:[#allocation75_spill] sm:$0xff] }
 0x671   : > { %6428 = vmatprep.mubr.f32.mxu1 %v24568_v36  ;;  %v24621_v36 = vld [vmem:[#allocation111_spill] sm:$0xff] }
 0x674   : > { %6430 = vmatmul.mubr.f32.gmra.mrb[60].mxu1 %v24570_v34  ;;  %v24622_v34 = vand.u32 4294901760, %v24621_v36 }
 0x675   : > { %6435 = vmatprep.mubr.f32.mxu1 %v24571_v15 }
 0x676   : > { %v6746_v15 = vsub.f32 %v24621_v36, %v24622_v34 }
 0x678   : > { %6437 = vmatmul.mubr.f32.gmra.mrb[62].mxu1 %v24573_v44  ;;  %v6737_v44 = vand.u32 4294901760, %v6736_v49 }
 0x679   : > { %6442 = vmatprep.mubr.f32.mxu1 %v24574_v52  ;;  %v24623_v52 = vld [vmem:[#allocation112_spill] sm:$0xff] }
 0x67a   : > { %v24624_v37 = vand.u32 4294901760, %v24623_v52 }
 0x67c   : > { %6444 = vmatmul.mubr.f32.gmra.mrb[64].mxu1 %v24577_v7  ;;  %v6756_v7 = vsub.f32 %v24623_v52, %v24624_v37 }
 0x67d   : > { %6449 = vmatprep.mubr.f32.mxu1 %v24578_v59  ;;  %v6747_v59 = vand.u32 4294901760, %v6746_v15 }
 0x680   : > { %6451 = vmatmul.mubr.f32.gmra.mrb[66].mxu1 %v24579_v10  ;;  %v24625_v10 = vld [vmem:[#allocation113_spill] sm:$0xff] }
 0x681   : > { %6456 = vmatprep.mubr.f32.mxu1 %v24580_v17  ;;  %v24626_v17 = vand.u32 4294901760, %v24625_v10 }
 0x684   : > { %6458 = vmatmul.mubr.f32.gmra.mrb[68].mxu1 %v24581_v30  ;;  %v6766_v30 = vsub.f32 %v24625_v10, %v24626_v17 }
 0x685   : > { %6463 = vmatprep.mubr.f32.mxu1 %v24582_v23  ;;  %v6757_v23 = vand.u32 4294901760, %v6756_v7 }
 0x688   : > { %6465 = vmatmul.mubr.f32.gmra.mrb[70].mxu1 %v24583_v16  ;;  %v24627_v16 = vld [vmem:[#allocation114_spill] sm:$0xff] }
 0x689   : > { %6470 = vmatprep.mubr.f32.mxu1 %v24584_v63  ;;  %v24628_v63 = vand.u32 4294901760, %v24627_v16 }
 0x68c   : > { %6472 = vmatmul.mubr.f32.gmra.mrb[72].mxu1 %v24585_v57  ;;  %v6776_v57 = vsub.f32 %v24627_v16, %v24628_v63 }
 0x68d   : > { %6477 = vmatprep.mubr.f32.mxu1 %v24586_v41  ;;  %v6767_v41 = vand.u32 4294901760, %v6766_v30 }
 0x690   : > { %6479 = vmatmul.mubr.f32.gmra.mrb[74].mxu1 %v24587_v0  ;;  %v24629_v0 = vld [vmem:[#allocation115_spill] sm:$0xff] }
 0x691   : > { %6484 = vmatprep.mubr.f32.mxu1 %v24588_v4  ;;  %v24630_v4 = vand.u32 4294901760, %v24629_v0 }
 0x694   : > { %6486 = vmatmul.mubr.f32.gmra.mrb[76].mxu1 %v24589_v31  ;;  %v6786_v31 = vsub.f32 %v24629_v0, %v24630_v4 }
 0x695   : > { %6491 = vmatprep.mubr.f32.mxu1 %v24590_v48  ;;  %v6777_v48 = vand.u32 4294901760, %v6776_v57  ;;  %v24655_v57 = vld [vmem:[#allocation133_spill] sm:$0xff] }
 0x698   : > { %6493 = vmatmul.mubr.f32.gmra.mrb[78].mxu1 %v24591_v5  ;;  %v24631_v5 = vld [vmem:[#allocation116_spill] sm:$0xff] }
 0x699   : > { %6498 = vmatprep.mubr.f32.mxu1 %v24592_v58  ;;  %v24632_v58 = vand.u32 4294901760, %v24631_v5 }
 0x69c   : > { %6500 = vmatmul.mubr.f32.gmra.mrb[80].mxu1 %v24593_v32  ;;  %v6796_v32 = vsub.f32 %v24631_v5, %v24632_v58 }
 0x69d   : > { %6505 = vmatprep.mubr.f32.mxu1 %v24594_v47  ;;  %v6787_v47 = vand.u32 4294901760, %v6786_v31  ;;  %v24657_v31 = vld [vmem:[#allocation102_spill] sm:$0xff] }
 0x6a0   : > { %6507 = vmatmul.mubr.f32.gmra.mrb[82].mxu1 %v24609_v12 }
 0x6a1   : > { %6512 = vmatprep.mubr.f32.mxu1 %v24610_v55  ;;  %v24639_v55 = vld [vmem:[#allocation120_spill] sm:$0xff] }
 0x6a4   : > { %6514 = vmatmul.mubr.f32.gmra.mrb[84].mxu1 %v24597_v18 }
 0x6a5   : > { %6519 = vmatprep.mubr.f32.mxu1 %v24598_v22  ;;  %v6797_v22 = vand.u32 4294901760, %v6796_v32  ;;  %v24659_v32 = vld [vmem:[#allocation104_spill] sm:$0xff] }
 0x6a8   : > { %6521 = vmatmul.mubr.f32.gmra.mrb[86].mxu1 %v24599_v27  ;;  %v24635_v27 = vld [vmem:[#allocation118_spill] sm:$0xff] }
 0x6a9   : > { %6526 = vmatprep.mubr.f32.mxu1 %v24600_v53  ;;  %v24636_v53 = vand.u32 4294901760, %v24635_v27 }
 0x6ab   : > { %v6816_v43 = vsub.f32 %v24635_v27, %v24636_v53  ;;  %v24661_v53 = vld [vmem:[#allocation158_spill] sm:$0xff] }
 0x6ac   : > { %6528 = vmatmul.mubr.f32.gmra.mrb[88].mxu1 %v24611_v38  ;;  %v24640_v38 = vand.u32 4294901760, %v24639_v55 }
 0x6ad   : > { %6533 = vmatprep.mubr.f32.mxu1 %v24602_v11  ;;  %v6817_v12 = vand.u32 4294901760, %v6816_v43 }
 0x6ae   : > { %v6836_v14 = vsub.f32 %v24639_v55, %v24640_v38  ;;  %v24664_v38 = vld [vmem:[#allocation156_spill] sm:$0xff] }
 0x6b0   : > { %6535 = vmatmul.mubr.f32.gmra.mrb[90].mxu1 %v24603_v8  ;;  %v24637_v8 = vld [vmem:[#allocation119_spill] sm:$0xff]  ;;  %v6837_v56 = vand.u32 4294901760, %v6836_v14 }
 0x6b1   : > { %6540 = vmatprep.mubr.f32.mxu1 %v24604_v9  ;;  %v24638_v9 = vand.u32 4294901760, %v24637_v8 }
 0x6b4   : > { %6542 = vmatmul.mubr.f32.gmra.mrb[92].mxu1 %v24605_v60  ;;  %v6826_v60 = vsub.f32 %v24637_v8, %v24638_v9  ;;  %v24662_v8 = vld [vmem:[#allocation38_spill] sm:$0xff] }
 0x6b5   : > { %6547 = vmatprep.mubr.f32.mxu1 %v24606_v40  ;;  %v24633_v40 = vld [vmem:[#allocation117_spill] sm:$0xff] }
 0x6b6   : > { %v6827_v33 = vand.u32 4294901760, %v6826_v60 }
 0x6b8   : > { %6549 = vmatmul.mubr.f32.gmra.mrb[94].mxu1 %v24607_v20  ;;  %v24634_v20 = vand.u32 4294901760, %v24633_v40 }
 0x6b9   : > { %13919 = vmatprep.mubr.f32.mxu1 %v6707_v13  ;;  %v24643_v13 = vld [vmem:[#allocation122_spill] sm:$0xff] }
 0x6ba   : > { %v6806_v18 = vsub.f32 %v24633_v40, %v24634_v20  ;;  %v24644_v2 = vand.u32 4294901760, %v24643_v13 }
 0x6bc   : > { %13920 = vmatmul.mubr.f32.vlgmr.msra.gmra.mrb[96].mxu1 %v6717_v1  ;;  %v6807_v11 = vand.u32 4294901760, %v6806_v18  ;;  %v6856_v54 = vsub.f32 %v24643_v13, %v24644_v2  ;;  %v24645_v1 = vld [vmem:[#allocation123_spill] sm:$0xff]  ;;  %v24667_v2 = vld [vmem:[#allocation276_spill] sm:$0xff] }
 0x6bd   : > { %13922 = vmatprep.mubr.f32.mxu1 %v6727_v45  ;;  %v24646_v26 = vand.u32 4294901760, %v24645_v1  ;;  %v24647_v45 = vld [vmem:[#allocation126_spill] sm:$0xff] }
 0x6be   : > { %v6857_v49 = vand.u32 4294901760, %v6856_v54  ;;  %v24648_v36 = vand.u32 4294901760, %v24647_v45 }
 0x6bf   : > { %v6866_v39 = vsub.f32 %v24645_v1, %v24646_v26  ;;  %v24669_v26 = vld [vmem:[#allocation160_spill] sm:$0xff] }
 0x6c0   : > { %13923 = vmatmul.mubr.f32.gmra.mrb[98].mxu1 %v6737_v44  ;;  %v6876_v34 = vsub.f32 %v24647_v45, %v24648_v36  ;;  %v24649_v44 = vld [vmem:[#allocation96_spill] sm:$0xff]  ;;  %v24670_v45 = vld [vmem:[#allocation330_spill] sm:$0xff] }
 0x6c1   : > { %13925 = vmatprep.mubr.f32.mxu1 %v6747_v59  ;;  %v6867_v15 = vand.u32 4294901760, %v6866_v39  ;;  %v24650_v52 = vand.u32 4294901760, %v24649_v44  ;;  %v24651_v59 = vld [vmem:[#allocation99_spill] sm:$0xff] }
 0x6c2   : > { %v6877_v7 = vand.u32 4294901760, %v6876_v34  ;;  %v24652_v10 = vand.u32 4294901760, %v24651_v59  ;;  %v24671_v34 = vld [vmem:[#allocation222_spill] sm:$0xff] }
 0x6c3   : > { %v6886_v37 = vsub.f32 %v24649_v44, %v24650_v52  ;;  %v24672_v44 = vld [vmem:[#allocation165_spill] sm:$0xff] }
 0x6c4   : > { %13926 = vmatmul.mubr.f32.gmra.mrb[100].mxu1 %v6757_v23  ;;  %v6896_v17 = vsub.f32 %v24651_v59, %v24652_v10  ;;  %v24653_v23 = vld [vmem:[#allocation130_spill] sm:$0xff]  ;;  %v24673_v59 = vld [vmem:[#allocation275_spill] sm:$0xff] }
 0x6c5   : > { %13928 = vmatprep.mubr.f32.mxu1 %v6767_v41  ;;  %v6887_v30 = vand.u32 4294901760, %v6886_v37  ;;  %v24654_v16 = vand.u32 4294901760, %v24653_v23  ;;  %v24656_v41 = vand.u32 4294901760, %v24655_v57 }
 0x6c6   : > { %v6897_v4 = vand.u32 4294901760, %v6896_v17  ;;  %v24674_v17 = vld [vmem:[#allocation83_spill] sm:$0xff] }
 0x6c7   : > { %v6906_v63 = vsub.f32 %v24653_v23, %v24654_v16  ;;  %v6926_v0 = vsub.f32 %v24655_v57, %v24656_v41  ;;  %v24675_v23 = vld [vmem:[#allocation159_spill] sm:$0xff]  ;;  %v24676_v57 = vld [vmem:[#allocation329_spill] sm:$0xff] }
 0x6c8   : > { %13929 = vmatmul.mubr.f32.gmra.mrb[102].mxu1 %v6777_v48  ;;  %v24658_v48 = vand.u32 4294901760, %v24657_v31 }
 0x6c9   : > { %13931 = vmatprep.mubr.f32.mxu1 %v6787_v47  ;;  %v6907_v58 = vand.u32 4294901760, %v6906_v63  ;;  %v24660_v47 = vand.u32 4294901760, %v24659_v32  ;;  %v6927_v20 = vand.u32 4294901760, %v6926_v0  ;;  %v24677_v0 = vld [vmem:[#allocation228_spill] sm:$0xff] }
 0x6ca   : > { %v6916_v5 = vsub.f32 %v24657_v31, %v24658_v48  ;;  %v24678_v31 = vld [vmem:[#allocation164_spill] sm:$0xff] }
 0x6cb   : > { %v6936_v40 = vsub.f32 %v24659_v32, %v24660_v47 }
 0x6cc   : > { %13932 = vmatmul.mubr.f32.gmra.mrb[104].mxu1 %v6797_v22  ;;  %v6917_v18 = vand.u32 4294901760, %v6916_v5 }
 0x6cd   : > { %13934 = vmatprep.mubr.f32.mxu1 %v6807_v11  ;;  %v6937_v22 = vand.u32 4294901760, %v6936_v40  ;;  %v24679_v40 = vld [vmem:[#allocation279_spill] sm:$0xff] }
 0x6d0   : > { %13935 = vmatmul.mubr.f32.gmra.mrb[106].mxu1 %v6817_v12  ;;  %v24663_v12 = vld [vmem:[#allocation43_spill] sm:$0xff] }
 0x6d1   : > { %13937 = vmatprep.mubr.f32.mxu1 %v6827_v33 }
 0x6d4   : > { %13938 = vmatmul.mubr.f32.gmra.mrb[108].mxu1 %v6837_v56 }
 0x6d5   : > { %13940 = vmatprep.mubr.f32.mxu1 %v6847_v61  ;;  %v24668_v61 = vld [vmem:[#allocation185_spill] sm:$0xff] }
 0x6d8   : > { %13941 = vmatmul.mubr.f32.gmra.mrb[110].mxu1 %v6857_v49 }
 0x6d9   : > { %13943 = vmatprep.mubr.f32.mxu1 %v6867_v15 }
 0x6dc   : > { %13944 = vmatmul.mubr.f32.gmra.mrb[112].mxu1 %v6877_v7 }
 0x6dd   : > { %13946 = vmatprep.mubr.f32.mxu1 %v6887_v30 }
 0x6e0   : > { %13947 = vmatmul.mubr.f32.gmra.mrb[114].mxu1 %v6897_v4 }
 0x6e1   : > { %13949 = vmatprep.mubr.f32.mxu1 %v6907_v58 }
 0x6e4   : > { %13950 = vmatmul.mubr.f32.gmra.mrb[116].mxu1 %v6917_v18  ;;  %v24680_v18 = vld [vmem:[#allocation44_spill] sm:$0xff] }
 0x6e5   : > { %13952 = vmatprep.mubr.f32.mxu1 %v6927_v20 }
 0x6e8   : > { %13953 = vmatmul.mubr.f32.gmra.mrb[118].mxu1 %v6937_v22 }
 0x70f   : > { %v6333_v27 = vpop.f32.mrb[32].mxu1 }
 0x710   : > { %v6630_v43 = vadd.f32 %v24661_v53, %v6333_v27  ;;  %v6335_v11 = vpop.f32.mrb[33].mxu1  ;;  %v24681_v53 = vld [vmem:[#allocation162_spill] sm:$0xff] }
 0x712   : > { %v7031_v9 = vadd.f32 %v24662_v8, %v6630_v43 }
 0x713   : > { %v6340_v60 = vpop.f32.mrb[34].mxu1 }
 0x714   : > { %v7297_v55 = vadd.f32 %v24663_v12, %v7031_v9  ;;  %v6640_v14 = vadd.f32 %v24664_v38, %v6340_v60  ;;  %v6342_v33 = vpop.f32.mrb[35].mxu1  ;;  %v24682_v9 = vld [vmem:[#allocation332_spill] sm:$0xff]  ;;  %v24683_v12 = vld [vmem:[#allocation227_spill] sm:$0xff] }
 0x716   : > { %v7591_v6 = vadd.f32 %v24665_v46, %v7297_v55  ;;  %v7037_v56 = vadd.f32 %v24666_v25, %v6640_v14  ;;  %v24684_v14 = vld [vmem:[#allocation12_spill] sm:$0xff] }
 0x717   : > { %v6347_v13 = vpop.f32.mrb[36].mxu1 }
 0x718   : > { %v7922_v54 = vadd.f32 %v24667_v2, %v7591_v6  ;;  %v7304_v1 = vadd.f32 %v24668_v61, %v7037_v56  ;;  %v6650_v39 = vadd.f32 %v24669_v26, %v6347_v13  ;;  %v6349_v49 = vpop.f32.mrb[37].mxu1  ;;  %v24686_v13 = vld [vmem:[#allocation278_spill] sm:$0xff]  ;;  %v24688_v26 = vld [vmem:[#allocation48_spill] sm:$0xff] }
 0x71a   : > { %v8183_v36 = vadd.f32 %v24670_v45, %v7922_v54  ;;  %v7599_v15 = vadd.f32 %v24671_v34, %v7304_v1  ;;  %v7043_v52 = vadd.f32 %v24672_v44, %v6650_v39  ;;  %v24687_v54 = vld [vmem:[#allocation161_spill] sm:$0xff]  ;;  %v24689_v45 = vld [vmem:[#allocation331_spill] sm:$0xff]  ;;  %v24690_v34 = vld [vmem:[#allocation166_spill] sm:$0xff] }
 0x71b   : > { %v6354_v37 = vpop.f32.mrb[38].mxu1 }
 0x71c   : > { %v8404_v7 = vmul.f32 0.2, %v8183_v36  ;;  %v7928_v10 = vadd.f32 %v24673_v59, %v7599_v15  ;;  %v7311_v30 = vadd.f32 %v24674_v17, %v7043_v52  ;;  %v6660_v16 = vadd.f32 %v24675_v23, %v6354_v37  ;;  %v6356_v63 = vpop.f32.mrb[39].mxu1  ;;  %v24692_v37 = vld [vmem:[#allocation232_spill] sm:$0xff]  ;;  %v24693_v23 = vld [vmem:[#allocation186_spill] sm:$0xff] }
 0x71d   : > { %vm8372_vm7 = vcmp.ge.f32.partialorder %v8183_v36, 0.0  ;;  %v24694_v63 = vld [vmem:[#allocation163_spill] sm:$0xff] }
 0x71e   : > { %v8189_v41 = vadd.f32 %v24676_v57, %v7928_v10  ;;  %v7607_v4 = vadd.f32 %v24677_v0, %v7311_v30  ;;  %v7049_v48 = vadd.f32 %v24678_v31, %v6660_v16  ;;  %v8436_v5 = vsel %vm8372_vm7, %v8183_v36, %v8404_v7 }
 0x71f   : > { %v6361_v58 = vpop.f32.mrb[40].mxu1  ;;  %v8473_v32 = vsel %vm2305_vm1, %v8436_v5, 0 }
 0x720   : > { %vm8373_vm8 = vcmp.ge.f32.partialorder %v8189_v41, 0.0  ;;  %v8405_v47 = vmul.f32 0.2, %v8189_v41  ;;  %v7934_v20 = vadd.f32 %v24679_v40, %v7607_v4  ;;  %v7318_v22 = vadd.f32 %v24680_v18, %v7049_v48  ;;  %v6363_v27 = vpop.f32.mrb[41].mxu1  ;;  %v24695_v4 = vld [vmem:[#allocation284_spill] sm:$0xff] }
 0x721   : > { %v6670_v43 = vadd.f32 %v24681_v53, %v6361_v58  ;;  %v20808_v11 = vand.u32 4294901760, %v8473_v32  ;;  %v24696_v58 = vld [vmem:[#allocation231_spill] sm:$0xff] }
 0x722   : > { %v8437_v8 = vsel %vm8373_vm8, %v8189_v41, %v8405_v47  ;;  %v8195_v60 = vadd.f32 %v24682_v9, %v7934_v20  ;;  %v7615_v55 = vadd.f32 %v24683_v12, %v7318_v22  ;;  %v24697_v47 = vld [vmem:[#allocation168_spill] sm:$0xff]  ;;  %v20852_v9 = vsub.f32 %v20673_v35, %v8569_v51  ;;  %v24706_v35 = vld [vmem:[#allocation82_spill] sm:$0xff] }
 0x723   : > { %v8476_v38 = vsel %vm2305_vm1, %v8437_v8, 0  ;;  %v7055_v33 = vadd.f32 %v24684_v14, %v6670_v43  ;;  %v6368_v46 = vpop.f32.mrb[42].mxu1  ;;  %v20815_v6 = vsub.f32 %v8473_v32, %v20808_v11  ;;  %v24698_v22 = vld [vmem:[#allocation20_spill] sm:$0xff]  ;;  %v24703_v14 = vld [vmem:[#allocation57_spill] sm:$0xff] }
 0x724   : > { %v20817_v25 = vand.u32 4294901760, %v8476_v38  ;;  %v8406_v56 = vmul.f32 0.2, %v8195_v60  ;;  %v7940_v2 = vadd.f32 %v24686_v13, %v7615_v55  ;;  %v6680_v61 = vadd.f32 %v24687_v54, %v6368_v46  ;;  %v6370_v1 = vpop.f32.mrb[43].mxu1  ;;  %24700 = vst [vmem:[#allocation47_spill] sm:$0xff] %v20852_v9  ;;  %v24702_v55 = vld [vmem:[#allocation84_spill] sm:$0xff] }
 0x725   : > { %24685 = vst [vmem:[#allocation127_spill] sm:$0xff] %v20815_v6  ;;  %v7325_v39 = vadd.f32 %v24688_v26, %v7055_v33  ;;  %v23530_v49 = vand.u32 4294901760, %v20815_v6  ;;  %vm8374_vm9 = vcmp.ge.f32.partialorder %v8195_v60, 0.0  ;;  %v24705_v26 = vld [vmem:[#allocation234_spill] sm:$0xff] }
 0x726   : > { %v8201_v36 = vadd.f32 %v24689_v45, %v7940_v2  ;;  %v7061_v15 = vadd.f32 %v24690_v34, %v6680_v61  ;;  %v20826_v44 = vsub.f32 %v8476_v38, %v20817_v25  ;;  %v8438_v52 = vsel %vm8374_vm9, %v8195_v60, %v8406_v56  ;;  %v24701_v60 = vld [vmem:[#allocation282_spill] sm:$0xff]  ;;  %v24704_v61 = vld [vmem:[#allocation333_spill] sm:$0xff] }
 0x727   : > { %v7623_v7 = vadd.f32 %v24692_v37, %v7325_v39  ;;  %v6375_v59 = vpop.f32.mrb[44].mxu1  ;;  %v8640_v10 = vsub.f32 %v20815_v6, %v23530_v49  ;;  %v8479_v17 = vsel %vm2305_vm1, %v8438_v52, 0  ;;  %v23532_v45 = vand.u32 4294901760, %v20852_v9  ;;  %v24805_v6 = vld [vmem:[#allocation315_spill] sm:$0xff] }
 0x728   : > { %24691 = vst [vmem:[#allocation129_spill] sm:$0xff] %v20826_v44  ;;  %v8407_v30 = vmul.f32 0.2, %v8201_v36  ;;  %v7332_v16 = vadd.f32 %v24693_v23, %v7061_v15  ;;  %v6690_v57 = vadd.f32 %v24694_v63, %v6375_v59  ;;  %v6377_v41 = vpop.f32.mrb[45].mxu1  ;;  %v23527_v0 = vand.u32 4294901760, %v20826_v44  ;;  %v24709_v59 = vld [vmem:[#allocation288_spill] sm:$0xff] }
 0x729   : > { %v7946_v31 = vadd.f32 %v24695_v4, %v7623_v7  ;;  %v8641_v48 = vand.u32 4294901760, %v8640_v10  ;;  %v20837_v5 = vand.u32 4294901760, %v8479_v17  ;;  %vm8375_vm10 = vcmp.ge.f32.partialorder %v8201_v36, 0.0  ;;  %v24711_v4 = vld [vmem:[#allocation25_spill] sm:$0xff] }
 0x72a   : > { %v7631_v32 = vadd.f32 %v24696_v58, %v7332_v16  ;;  %v7067_v40 = vadd.f32 %v24697_v47, %v6690_v57  ;;  %v8650_v20 = vsub.f32 %v20826_v44, %v23527_v0  ;;  %v8439_v18 = vsel %vm8375_vm10, %v8201_v36, %v8407_v30  ;;  %v24720_v0 = vld [vmem:[#allocation169_spill] sm:$0xff]  ;;  %v24788_v44 = vld [vmem:[#allocation256_spill] sm:$0xff] }
 0x72b   : > { %v8207_v27 = vadd.f32 %v24698_v22, %v7946_v31  ;;  %14243 = vmatprep.mubr.f32.mxu0 %v8641_v48  ;;  %v6382_v53 = vpop.f32.mrb[46].mxu1  ;;  %v20846_v43 = vsub.f32 %v8479_v17, %v20837_v5  ;;  %v8482_v8 = vsel %vm2305_vm1, %v8439_v18, 0  ;;  %v20875_v37 = vsub.f32 %v20678_v21, %v8572_v24  ;;  %v24710_v17 = vld [vmem:[#allocation187_spill] sm:$0xff]  ;;  %v24712_v48 = vld [vmem:[#allocation233_spill] sm:$0xff] }
 0x72c   : > { %v7952_v12 = vadd.f32 %v24701_v60, %v7631_v32  ;;  %v7339_v38 = vadd.f32 %v24702_v55, %v7067_v40  ;;  %v6700_v33 = vadd.f32 %v24703_v14, %v6382_v53  ;;  %v6384_v46 = vpop.f32.mrb[47].mxu1  ;;  %v8651_v56 = vand.u32 4294901760, %v8650_v20 }
 0x72d   : > { %24699 = vst [vmem:[#allocation132_spill] sm:$0xff] %v20846_v43  ;;  %v8408_v13 = vmul.f32 0.2, %v8207_v27  ;;  %v23526_v2 = vand.u32 4294901760, %v20846_v43  ;;  %v20858_v54 = vand.u32 4294901760, %v8482_v8  ;;  %vm8376_vm11 = vcmp.ge.f32.partialorder %v8207_v27, 0.0 }
 0x72e   : > { %v8213_v1 = vadd.f32 %v24704_v61, %v7952_v12  ;;  %v7639_v39 = vadd.f32 %v24705_v26, %v7339_v38  ;;  %v7073_v51 = vadd.f32 %v24706_v35, %v6700_v33  ;;  %14244 = vmatmul.mubr.f32.vlgmr.msra.gmra.mrb[200].mxu0 %v8651_v56  ;;  %24708 = vst [vmem:[#allocation32_spill] sm:$0xff] %v20875_v37  ;;  %v23531_v18 = vand.u32 4294901760, %v20875_v37  ;;  %v24715_v33 = vld [vmem:[#allocation21_spill] sm:$0xff] }
 0x72f   : > { %v20864_v36 = vpop.f32.mrb[48].mxu1  ;;  %v8660_v34 = vsub.f32 %v20846_v43, %v23526_v2  ;;  %v20870_v15 = vsub.f32 %v8482_v8, %v20858_v54  ;;  %v8440_v52 = vsel %vm8376_vm11, %v8207_v27, %v8408_v13  ;;  %v8961_v24 = vsub.f32 %v20852_v9, %v23532_v45  ;;  %v24714_v27 = vld [vmem:[#allocation287_spill] sm:$0xff] }
 0x730   : > { %v8409_v7 = vmul.f32 0.2, %v8213_v1  ;;  %v7958_v10 = vadd.f32 %v24709_v59, %v7639_v39  ;;  %v7346_v30 = vadd.f32 %v24710_v17, %v7073_v51  ;;  %v6391_v23 = vpop.f32.mrb[49].mxu1  ;;  %v8485_v16 = vsel %vm2305_vm1, %v8440_v52, 0 }
 0x731   : > { %24707 = vst [vmem:[#allocation136_spill] sm:$0xff] %v20870_v15  ;;  %v8661_v63 = vand.u32 4294901760, %v8660_v34  ;;  %v23525_v57 = vand.u32 4294901760, %v20870_v15  ;;  %v20881_v41 = vand.u32 4294901760, %v8485_v16  ;;  %vm8377_vm12 = vcmp.ge.f32.partialorder %v8213_v1, 0.0 }
 0x732   : > { %v8219_v31 = vadd.f32 %v24711_v4, %v7958_v10  ;;  %v7647_v58 = vadd.f32 %v24712_v48, %v7346_v30  ;;  %v8441_v21 = vsel %vm8377_vm12, %v8213_v1, %v8409_v7  ;;  %v8962_v38 = vand.u32 4294901760, %v8961_v24 }
 0x733   : > { %14246 = vmatprep.mubr.f32.mxu0 %v8661_v63  ;;  %v20888_v32 = vpop.f32.mrb[50].mxu1  ;;  %v8670_v47 = vsub.f32 %v20870_v15, %v23525_v57  ;;  %v20894_v40 = vsub.f32 %v8485_v16, %v20881_v41  ;;  %v8488_v20 = vsel %vm2305_vm1, %v8441_v21, 0  ;;  %v8968_v14 = vsub.f32 %v20875_v37, %v23531_v18  ;;  %v24722_v18 = vld [vmem:[#allocation190_spill] sm:$0xff]  ;;  %v24729_v15 = vld [vmem:[#allocation192_spill] sm:$0xff] }
 0x734   : > { %v8410_v22 = vmul.f32 0.2, %v8219_v31  ;;  %v7964_v53 = vadd.f32 %v24714_v27, %v7647_v58  ;;  %v6398_v8 = vpop.f32.mrb[51].mxu1  ;;  %v20899_v60 = vand.u32 4294901760, %v8488_v20  ;;  %vm8378_vm13 = vcmp.ge.f32.partialorder %v8219_v31, 0.0 }
 0x735   : > { %24713 = vst [vmem:[#allocation139_spill] sm:$0xff] %v20894_v40  ;;  %v8671_v12 = vand.u32 4294901760, %v8670_v47  ;;  %v23524_v55 = vand.u32 4294901760, %v20894_v40  ;;  %v8969_v39 = vand.u32 4294901760, %v8968_v14 }
 0x736   : > { %v8225_v46 = vadd.f32 %v24715_v33, %v7964_v53  ;;  %v20907_v56 = vsub.f32 %v8488_v20, %v20899_v60  ;;  %v8442_v13 = vsel %vm8378_vm13, %v8219_v31, %v8410_v22 }
 0x737   : > { %14247 = vmatmul.mubr.f32.gmra.mrb[202].mxu0 %v8671_v12  ;;  %v20909_v61 = vpop.f32.mrb[52].mxu1  ;;  %v8680_v1 = vsub.f32 %v20894_v40, %v23524_v55  ;;  %v8491_v26 = vsel %vm2305_vm1, %v8442_v13, 0  ;;  %v15227_v59 = vpack.c.bf16 %v8969_v39, %v8962_v38  ;;  %v24726_v40 = vld [vmem:[#allocation236_spill] sm:$0xff] }
 0x738   : > { %24716 = vst [vmem:[#allocation144_spill] sm:$0xff] %v20907_v56  ;;  %v8411_v35 = vmul.f32 0.2, %v8225_v46  ;;  %v6405_v51 = vpop.f32.mrb[53].mxu1  ;;  %v23523_v34 = vand.u32 4294901760, %v20907_v56  ;;  %v20916_v52 = vand.u32 4294901760, %v8491_v26 }
 0x739   : > { %vm8379_vm14 = vcmp.ge.f32.partialorder %v8225_v46, 0.0  ;;  %v8681_v7 = vand.u32 4294901760, %v8680_v1  ;;  %15228 = vmatprep.subr.bf16.mxu0 %v15227_v59 }
 0x73a   : > { %v8690_v10 = vsub.f32 %v20907_v56, %v23523_v34  ;;  %v20922_v17 = vsub.f32 %v8491_v26, %v20916_v52  ;;  %v8443_v30 = vsel %vm8379_vm14, %v8225_v46, %v8411_v35  ;;  %15230 = vmatpush3.bf16.msra.mxu0 %v15227_v59  ;;  %v20962_v59 = vsub.f32 %v20701_v19, %v8578_v29 }
 0x73b   : > { %14249 = vmatprep.mubr.f32.mxu0 %v8681_v7  ;;  %v20924_v23 = vpop.f32.mrb[54].mxu1  ;;  %v8494_v16 = vsel %vm2305_vm1, %v8443_v30, 0  ;;  %v20957_v7 = vsub.f32 %v20696_v50, %v8575_v62 }
 0x73c   : > { %24717 = vst [vmem:[#allocation141_spill] sm:$0xff] %v20922_v17  ;;  %v6412_v63 = vpop.f32.mrb[55].mxu1  ;;  %v8691_v4 = vand.u32 4294901760, %v8690_v10  ;;  %v23522_v31 = vand.u32 4294901760, %v20922_v17  ;;  %v20928_v48 = vand.u32 4294901760, %v8494_v16 }
 0x73d   : > { %v23528_v63 = vand.u32 4294901760, %v20962_v59 }
 0x73e   : > { %24718 = vst [vmem:[#allocation147_spill] sm:$0xff] %v20928_v48  ;;  %14250 = vmatmul.mubr.f32.gmra.mrb[204].mxu0 %v8691_v4  ;;  %v8700_v58 = vsub.f32 %v20922_v17, %v23522_v31  ;;  %v20934_v21 = vsub.f32 %v8494_v16, %v20928_v48  ;;  %v23529_v16 = vand.u32 4294901760, %v20957_v7  ;;  %v24724_v17 = vld [vmem:[#allocation235_spill] sm:$0xff] }
 0x73f   : > { %v20936_v24 = vpop.f32.mrb[56].mxu1  ;;  %v8982_v50 = vsub.f32 %v20962_v59, %v23528_v63 }
 0x740   : > { %24719 = vst [vmem:[#allocation145_spill] sm:$0xff] %v20934_v21  ;;  %v6419_v47 = vpop.f32.mrb[57].mxu1  ;;  %v8701_v20 = vand.u32 4294901760, %v8700_v58  ;;  %v23521_v22 = vand.u32 4294901760, %v20934_v21  ;;  %v8975_v4 = vsub.f32 %v20957_v7, %v23529_v16 }
 0x741   : > { %v8983_v29 = vand.u32 4294901760, %v8982_v50 }
 0x742   : > { %14252 = vmatprep.mubr.f32.mxu0 %v8701_v20  ;;  %v8710_v27 = vsub.f32 %v20934_v21, %v23521_v22  ;;  %v8976_v19 = vand.u32 4294901760, %v8975_v4  ;;  %v20976_v20 = vpop.f32.mrb[198].mxu0 }
 0x743   : > { %v20942_v53 = vpop.f32.mrb[58].mxu1 }
 0x744   : > { %v6426_v8 = vpop.f32.mrb[59].mxu1  ;;  %v8711_v12 = vand.u32 4294901760, %v8710_v27  ;;  %v15231_v47 = vpack.c.bf16 %v8983_v29, %v8976_v19 }
 0x745   : > { %v20980_v8 = vpop.f32.mrb[199].mxu0 }
 0x746   : > { %14253 = vmatmul.mubr.f32.gmra.mrb[206].mxu0 %v8711_v12  ;;  %15232 = vmatprep.subr.bf16.mxu0 %v15231_v47 }
 0x747   : > { %v20944_v38 = vpop.f32.mrb[60].mxu1  ;;  %15234 = vmatpush3.bf16.msra.mxu0 %v15231_v47  ;;  %v20998_v47 = vpack.c.bf16 %v20875_v37, %v20852_v9 }
 0x748   : > { %v6433_v14 = vpop.f32.mrb[61].mxu1 }
 0x749   : > { %15236 = vmatprep.subr.bf16.mxu0 %v20998_v47 }
 0x74b   : > { %v20946_v33 = vpop.f32.mrb[62].mxu1 }
 0x74c   : > { %v6440_v46 = vpop.f32.mrb[63].mxu1 }
 0x74f   : > { %v20948_v13 = vpop.f32.mrb[64].mxu1 }
 0x750   : > { %v6447_v1 = vpop.f32.mrb[65].mxu1 }
 0x753   : > { %v20950_v26 = vpop.f32.mrb[66].mxu1 }
 0x754   : > { %v6454_v39 = vpop.f32.mrb[67].mxu1 }
 0x757   : > { %v20952_v35 = vpop.f32.mrb[68].mxu1 }
 0x758   : > { %v6461_v51 = vpop.f32.mrb[69].mxu1 }
 0x75b   : > { %v20964_v10 = vpop.f32.mrb[70].mxu1 }
 0x75c   : > { %v6468_v30 = vpop.f32.mrb[71].mxu1 }
 0x75f   : > { %v20974_v62 = vpop.f32.mrb[72].mxu1 }
 0x760   : > { %v6475_v58 = vpop.f32.mrb[73].mxu1 }
 0x763   : > { %v20978_v27 = vpop.f32.mrb[74].mxu1 }
 0x764   : > { %v6482_v12 = vpop.f32.mrb[75].mxu1 }
 0x767   : > { %v20982_v14 = vpop.f32.mrb[76].mxu1 }
 0x768   : > { %v6489_v46 = vpop.f32.mrb[77].mxu1 }
 0x76b   : > { %v20984_v1 = vpop.f32.mrb[78].mxu1 }
 0x76c   : > { %v6496_v39 = vpop.f32.mrb[79].mxu1 }
 0x76f   : > { %v20986_v51 = vpop.f32.mrb[80].mxu1 }
 0x770   : > { %v6503_v30 = vpop.f32.mrb[81].mxu1 }
 0x773   : > { %v20988_v4 = vpop.f32.mrb[82].mxu1 }
 0x774   : > { %v6510_v50 = vpop.f32.mrb[83].mxu1 }
 0x777   : > { %v20990_v58 = vpop.f32.mrb[84].mxu1 }
 0x778   : > { %v6517_v19 = vpop.f32.mrb[85].mxu1 }
 0x77b   : > { %v20992_v29 = vpop.f32.mrb[86].mxu1 }
 0x77c   : > { %v6524_v12 = vpop.f32.mrb[87].mxu1 }
 0x77f   : > { %v20994_v22 = vpop.f32.mrb[88].mxu1 }
 0x780   : > { %v6531_v46 = vpop.f32.mrb[89].mxu1 }
 0x781   : > { %v24721_v46 = vld [vmem:[#allocation16_spill] sm:$0xff] }
 0x783   : > { %v21001_v39 = vpop.f32.mrb[90].mxu1 }
 0x784   : > { %v6538_v30 = vpop.f32.mrb[91].mxu1 }
 0x787   : > { %v21003_v31 = vpop.f32.mrb[92].mxu1 }
 0x788   : > { %v6545_v50 = vpop.f32.mrb[93].mxu1 }
 0x789   : > { %v24723_v50 = vld [vmem:[#allocation56_spill] sm:$0xff] }
 0x78b   : > { %v21005_v34 = vpop.f32.mrb[94].mxu1 }
 0x78c   : > { %v6552_v19 = vpop.f32.mrb[95].mxu1 }
 0x78f   : > { %v13921_v55 = vpop.f32.mrb[96].mxu1 }
 0x790   : > { %v6720_v12 = vadd.f32 %v13921_v55, %v20888_v32  ;;  %v6709_v57 = vpop.f32.mrb[97].mxu1  ;;  %v24725_v32 = vld [vmem:[#allocation17_spill] sm:$0xff] }
 0x791   : > { %v6710_v2 = vadd.f32 %v6709_v57, %v20864_v36  ;;  %v24727_v57 = vld [vmem:[#allocation90_spill] sm:$0xff] }
 0x792   : > { %v7085_v63 = vadd.f32 %v24720_v0, %v6720_v12 }
 0x793   : > { %v7079_v16 = vadd.f32 %v24721_v46, %v6710_v2  ;;  %v13924_v49 = vpop.f32.mrb[98].mxu1  ;;  %v24728_v2 = vld [vmem:[#allocation291_spill] sm:$0xff] }
 0x794   : > { %v7360_v45 = vadd.f32 %v24722_v18, %v7085_v63  ;;  %v6740_v30 = vadd.f32 %v13924_v49, %v20924_v23  ;;  %v6729_v28 = vpop.f32.mrb[99].mxu1  ;;  %v24730_v63 = vld [vmem:[#allocation292_spill] sm:$0xff] }
 0x795   : > { %v7353_v21 = vadd.f32 %v24723_v50, %v7079_v16  ;;  %v6730_v19 = vadd.f32 %v6729_v28, %v20909_v61  ;;  %v24731_v50 = vld [vmem:[#allocation193_spill] sm:$0xff]  ;;  %v24732_v61 = vld [vmem:[#allocation26_spill] sm:$0xff] }
 0x796   : > { %v7663_v56 = vadd.f32 %v24724_v17, %v7360_v45  ;;  %v7097_v55 = vadd.f32 %v24725_v32, %v6740_v30  ;;  %v24734_v30 = vld [vmem:[#allocation91_spill] sm:$0xff]  ;;  %v24735_v32 = vld [vmem:[#allocation334_spill] sm:$0xff] }
 0x797   : > { %v7655_v36 = vadd.f32 %v24726_v40, %v7353_v21  ;;  %v7091_v0 = vadd.f32 %v24727_v57, %v6730_v19  ;;  %v13927_v12 = vpop.f32.mrb[100].mxu1  ;;  %v24733_v40 = vld [vmem:[#allocation238_spill] sm:$0xff]  ;;  %v24736_v57 = vld [vmem:[#allocation239_spill] sm:$0xff] }
 0x798   : > { %v7976_v46 = vadd.f32 %v24728_v2, %v7663_v56  ;;  %v7374_v18 = vadd.f32 %v24729_v15, %v7097_v55  ;;  %v6760_v49 = vadd.f32 %v13927_v12, %v20942_v53  ;;  %v6749_v23 = vpop.f32.mrb[101].mxu1  ;;  %v24737_v55 = vld [vmem:[#allocation92_spill] sm:$0xff]  ;;  %v24738_v2 = vld [vmem:[#allocation293_spill] sm:$0xff] }
 0x799   : > { %v7970_v16 = vadd.f32 %v24730_v63, %v7655_v36  ;;  %v7367_v28 = vadd.f32 %v24731_v50, %v7091_v0  ;;  %v6750_v45 = vadd.f32 %v6749_v23, %v20936_v24  ;;  %v24739_v63 = vld [vmem:[#allocation196_spill] sm:$0xff]  ;;  %v24740_v50 = vld [vmem:[#allocation294_spill] sm:$0xff] }
 0x79a   : > { %v21026_v17 = vadd.f32 %v24732_v61, %v7976_v46  ;;  %v7679_v21 = vadd.f32 %v24733_v40, %v7374_v18  ;;  %v7109_v19 = vadd.f32 %v24734_v30, %v6760_v49  ;;  %v24741_v18 = vld [vmem:[#allocation60_spill] sm:$0xff] }
 0x79b   : > { %v8231_v56 = vadd.f32 %v24735_v32, %v7970_v16  ;;  %v7671_v15 = vadd.f32 %v24736_v57, %v7367_v28  ;;  %v7103_v53 = vadd.f32 %v24737_v55, %v6750_v45  ;;  %v13930_v12 = vpop.f32.mrb[102].mxu1  ;;  %v24742_v16 = vld [vmem:[#allocation335_spill] sm:$0xff]  ;;  %v24743_v28 = vld [vmem:[#allocation242_spill] sm:$0xff] }
 0x79c   : > { %v7988_v36 = vadd.f32 %v24738_v2, %v7679_v21  ;;  %v7388_v0 = vadd.f32 %v24739_v63, %v7109_v19  ;;  %v6780_v24 = vadd.f32 %v13930_v12, %v20946_v33  ;;  %v6769_v23 = vpop.f32.mrb[103].mxu1  ;;  %v24744_v32 = vld [vmem:[#allocation94_spill] sm:$0xff]  ;;  %v24745_v21 = vld [vmem:[#allocation336_spill] sm:$0xff]  ;;  %v24747_v12 = vld [vmem:[#allocation95_spill] sm:$0xff]  ;;  %vm8381_vm2 = vcmp.ge.f32.partialorder %v21026_v17, 0.0 }
 0x79d   : > { %v8412_v46 = vmul.f32 0.2, %v8231_v56  ;;  %v7982_v61 = vadd.f32 %v24740_v50, %v7671_v15  ;;  %v7381_v40 = vadd.f32 %v24741_v18, %v7103_v53  ;;  %v6770_v49 = vadd.f32 %v6769_v23, %v20944_v38  ;;  %v24746_v33 = vld [vmem:[#allocation244_spill] sm:$0xff]  ;;  %v24748_v38 = vld [vmem:[#allocation295_spill] sm:$0xff] }
 0x79e   : > { %v21040_v30 = vadd.f32 %v24742_v16, %v7988_v36  ;;  %v7695_v45 = vadd.f32 %v24743_v28, %v7388_v0  ;;  %v7121_v57 = vadd.f32 %v24744_v32, %v6780_v24  ;;  %vm8380_vm15 = vcmp.ge.f32.partialorder %v8231_v56, 0.0  ;;  %v24749_v36 = vld [vmem:[#allocation62_spill] sm:$0xff]  ;;  %v24751_v28 = vld [vmem:[#allocation88_spill] sm:$0xff]  ;;  %v24752_v32 = vld [vmem:[#allocation337_spill] sm:$0xff] }
 0x79f   : > { %v21045_v19 = vadd.f32 %v24745_v21, %v7982_v61  ;;  %v7687_v55 = vadd.f32 %v24746_v33, %v7381_v40  ;;  %v7115_v2 = vadd.f32 %v24747_v12, %v6770_v49  ;;  %v13933_v15 = vpop.f32.mrb[104].mxu1  ;;  %v8444_v63 = vsel %vm8380_vm15, %v8231_v56, %v8412_v46  ;;  %v24750_v61 = vld [vmem:[#allocation296_spill] sm:$0xff]  ;;  %v24753_v46 = vld [vmem:[#allocation247_spill] sm:$0xff] }
 0x7a0   : > { %v8413_v53 = vmul.f32 0.2, %v21026_v17  ;;  %v8000_v23 = vadd.f32 %v24748_v38, %v7695_v45  ;;  %v7402_v50 = vadd.f32 %v24749_v36, %v7121_v57  ;;  %v6800_v0 = vadd.f32 %v13933_v15, %v20950_v26  ;;  %v6789_v18 = vpop.f32.mrb[105].mxu1  ;;  %v24754_v45 = vld [vmem:[#allocation170_spill] sm:$0xff]  ;;  %v24756_v15 = vld [vmem:[#allocation248_spill] sm:$0xff] }
 0x7a1   : > { %v21054_v24 = vmul.f32 0.2, %v21040_v30  ;;  %v7994_v16 = vadd.f32 %v24750_v61, %v7687_v55  ;;  %v7395_v40 = vadd.f32 %v24751_v28, %v7115_v2  ;;  %v6790_v49 = vadd.f32 %v6789_v18, %v20948_v13  ;;  %v24755_v26 = vld [vmem:[#allocation338_spill] sm:$0xff]  ;;  %v24757_v36 = vld [vmem:[#allocation172_spill] sm:$0xff] }
 0x7a2   : > { %v21060_v56 = vadd.f32 %v24752_v32, %v8000_v23  ;;  %v7711_v21 = vadd.f32 %v24753_v46, %v7402_v50  ;;  %v7133_v33 = vadd.f32 %v24754_v45, %v6800_v0  ;;  %v8497_v57 = vsel %vm2305_vm1, %v8444_v63, 0  ;;  %v24759_v23 = vld [vmem:[#allocation298_spill] sm:$0xff]  ;;  %v24760_v50 = vld [vmem:[#allocation197_spill] sm:$0xff]  ;;  %v24761_v32 = vld [vmem:[#allocation299_spill] sm:$0xff] }
 0x7a3   : > { %v21066_v12 = vadd.f32 %v24755_v26, %v7994_v16  ;;  %v7703_v38 = vadd.f32 %v24756_v15, %v7395_v40  ;;  %v7127_v55 = vadd.f32 %v24757_v36, %v6790_v49  ;;  %v13936_v61 = vpop.f32.mrb[106].mxu1  ;;  %v21070_v2 = vand.u32 4294901760, %v8497_v57  ;;  %v24762_v46 = vld [vmem:[#allocation198_spill] sm:$0xff]  ;;  %v24763_v26 = vld [vmem:[#allocation339_spill] sm:$0xff] }
 0x7a4   : > { %v21073_v13 = vmul.f32 0.2, %v21045_v19  ;;  %v8012_v18 = vadd.f32 %v24759_v23, %v7711_v21  ;;  %v7416_v28 = vadd.f32 %v24760_v50, %v7133_v33  ;;  %v6820_v0 = vadd.f32 %v13936_v61, %v20964_v10  ;;  %v6809_v63 = vpop.f32.mrb[107].mxu1  ;;  %v24764_v36 = vld [vmem:[#allocation251_spill] sm:$0xff]  ;;  %v24765_v21 = vld [vmem:[#allocation173_spill] sm:$0xff]  ;;  %v24767_v61 = vld [vmem:[#allocation340_spill] sm:$0xff] }
 0x7a5   : > { %24758 = vst [vmem:[#allocation152_spill] sm:$0xff] %v21070_v2  ;;  %v21079_v16 = vmul.f32 0.2, %v21060_v56  ;;  %v8006_v40 = vadd.f32 %v24761_v32, %v7703_v38  ;;  %v7409_v49 = vadd.f32 %v24762_v46, %v7127_v55  ;;  %v6810_v45 = vadd.f32 %v6809_v63, %v20952_v35  ;;  %v24768_v38 = vld [vmem:[#allocation252_spill] sm:$0xff]  ;;  %v24769_v32 = vld [vmem:[#allocation174_spill] sm:$0xff] }
 0x7a6   : > { %v21085_v15 = vadd.f32 %v24763_v26, %v8012_v18  ;;  %v7727_v37 = vadd.f32 %v24764_v36, %v7416_v28  ;;  %v7145_v23 = vadd.f32 %v24765_v21, %v6820_v0  ;;  %v21090_v33 = vsub.f32 %v8497_v57, %v21070_v2  ;;  %v24770_v18 = vld [vmem:[#allocation302_spill] sm:$0xff]  ;;  %v24771_v26 = vld [vmem:[#allocation199_spill] sm:$0xff] }
 0x7a7   : > { %v21093_v10 = vmul.f32 0.2, %v21066_v12  ;;  %v21096_v50 = vadd.f32 %v24767_v61, %v8006_v40  ;;  %v7719_v55 = vadd.f32 %v24768_v38, %v7409_v49  ;;  %v7139_v35 = vadd.f32 %v24769_v32, %v6810_v45  ;;  %v13939_v63 = vpop.f32.mrb[108].mxu1  ;;  %v24772_v21 = vld [vmem:[#allocation107_spill] sm:$0xff]  ;;  %v24773_v61 = vld [vmem:[#allocation89_spill] sm:$0xff] }
 0x7a8   : > { %24766 = vst [vmem:[#allocation149_spill] sm:$0xff] %v21090_v33  ;;  %v8024_v46 = vadd.f32 %v24770_v18, %v7727_v37  ;;  %v7430_v28 = vadd.f32 %v24771_v26, %v7145_v23  ;;  %v6840_v0 = vadd.f32 %v13939_v63, %v20978_v27  ;;  %v6829_v36 = vpop.f32.mrb[109].mxu1  ;;  %v21105_v57 = vmul.f32 0.2, %v21085_v15  ;;  %v24774_v45 = vld [vmem:[#allocation341_spill] sm:$0xff]  ;;  %v24776_v23 = vld [vmem:[#allocation175_spill] sm:$0xff] }
 0x7a9   : > { %v8018_v40 = vadd.f32 %v24772_v21, %v7719_v55  ;;  %v7423_v9 = vadd.f32 %v24773_v61, %v7139_v35  ;;  %v6830_v49 = vadd.f32 %v6829_v36, %v20974_v62  ;;  %v24775_v37 = vld [vmem:[#allocation253_spill] sm:$0xff]  ;;  %v23552_v27 = vand.u32 4294901760, %v21090_v33  ;;  %v24777_v26 = vld [vmem:[#allocation342_spill] sm:$0xff] }
 0x7aa   : > { %v21111_v38 = vadd.f32 %v24774_v45, %v8024_v46  ;;  %v7743_v32 = vadd.f32 %v24775_v37, %v7430_v28  ;;  %v7157_v18 = vadd.f32 %v24776_v23, %v6840_v0  ;;  %v21117_v63 = vmul.f32 0.2, %v21096_v50  ;;  %v24778_v55 = vld [vmem:[#allocation254_spill] sm:$0xff]  ;;  %v24780_v36 = vld [vmem:[#allocation305_spill] sm:$0xff] }
 0x7ab   : > { %v21120_v42 = vadd.f32 %v24777_v26, %v8018_v40  ;;  %v7735_v21 = vadd.f32 %v24778_v55, %v7423_v9  ;;  %v24779_v35 = vld [vmem:[#allocation30_spill] sm:$0xff]  ;;  %v13942_v62 = vpop.f32.mrb[110].mxu1  ;;  %v8445_v37 = vsel %vm8381_vm2, %v21026_v17, %v8413_v53  ;;  %v24783_v9 = vld [vmem:[#allocation204_spill] sm:$0xff]  ;;  %vm8382_vm3 = vcmp.ge.f32.partialorder %v21045_v19, 0.0 }
 0x7ac   : > { %v7151_v61 = vadd.f32 %v24779_v35, %v6830_v49  ;;  %v8036_v46 = vadd.f32 %v24780_v36, %v7743_v32  ;;  %v24781_v45 = vld [vmem:[#allocation202_spill] sm:$0xff]  ;;  %v6860_v28 = vadd.f32 %v13942_v62, %v20984_v1  ;;  %v6849_v0 = vpop.f32.mrb[111].mxu1  ;;  %v21131_v23 = vmul.f32 0.2, %v21111_v38  ;;  %v24784_v32 = vld [vmem:[#allocation343_spill] sm:$0xff]  ;;  %v24786_v62 = vld [vmem:[#allocation33_spill] sm:$0xff] }
 0x7ad   : > { %v7444_v43 = vadd.f32 %v24781_v45, %v7157_v18  ;;  %v24782_v40 = vld [vmem:[#allocation306_spill] sm:$0xff]  ;;  %v8720_v49 = vsub.f32 %v21090_v33, %v23552_v27  ;;  %v24785_v1 = vld [vmem:[#allocation255_spill] sm:$0xff]  ;;  %v6850_v17 = vadd.f32 %v6849_v0, %v20982_v14  ;;  %v24787_v53 = vld [vmem:[#allocation344_spill] sm:$0xff]  ;;  %v21150_v27 = vmul.f32 0.2, %v21120_v42 }
 0x7ae   : > { %v8030_v26 = vadd.f32 %v24782_v40, %v7735_v21  ;;  %v7437_v55 = vadd.f32 %v24783_v9, %v7151_v61  ;;  %v21139_v18 = vadd.f32 %v24784_v32, %v8036_v46  ;;  %v7169_v36 = vadd.f32 %v24786_v62, %v6860_v28  ;;  %v24789_v46 = vld [vmem:[#allocation309_spill] sm:$0xff]  ;;  %v24790_v33 = vld [vmem:[#allocation207_spill] sm:$0xff]  ;;  %v24792_v0 = vld [vmem:[#allocation310_spill] sm:$0xff] }
 0x7af   : > { %v7759_v35 = vadd.f32 %v24785_v1, %v7444_v43  ;;  %v8721_v40 = vand.u32 4294901760, %v8720_v49  ;;  %v8500_v61 = vsel %vm2305_vm1, %v8445_v37, 0  ;;  %v13945_v9 = vpop.f32.mrb[112].mxu1  ;;  %v24791_v1 = vld [vmem:[#allocation78_spill] sm:$0xff]  ;;  %vm8383_vm4 = vcmp.ge.f32.partialorder %v21040_v30, 0.0 }
 0x7b0   : > { %v21145_v45 = vadd.f32 %v24787_v53, %v8030_v26  ;;  %v7751_v21 = vadd.f32 %v24788_v44, %v7437_v55  ;;  %v7458_v43 = vadd.f32 %v24790_v33, %v7169_v36  ;;  %v7163_v28 = vadd.f32 %v24791_v1, %v6850_v17  ;;  %v6869_v62 = vpop.f32.mrb[113].mxu1  ;;  %v24794_v55 = vld [vmem:[#allocation345_spill] sm:$0xff]  ;;  %v24795_v53 = vld [vmem:[#allocation258_spill] sm:$0xff] }
 0x7b1   : > { %v8048_v32 = vadd.f32 %v24789_v46, %v7759_v35  ;;  %v21156_v14 = vmul.f32 0.2, %v21139_v18  ;;  %14255 = vmatprep.mubr.f32.mxu0 %v8721_v40  ;;  %v21159_v44 = vand.u32 4294901760, %v8500_v61  ;;  %v6880_v37 = vadd.f32 %v13945_v9, %v20988_v4  ;;  %v24796_v46 = vld [vmem:[#allocation208_spill] sm:$0xff]  ;;  %v24797_v36 = vld [vmem:[#allocation346_spill] sm:$0xff] }
 0x7b2   : > { %v8042_v26 = vadd.f32 %v24792_v0, %v7751_v21  ;;  %v7775_v35 = vadd.f32 %v24795_v53, %v7458_v43  ;;  %v7451_v33 = vadd.f32 %v24796_v46, %v7163_v28  ;;  %v24799_v21 = vld [vmem:[#allocation106_spill] sm:$0xff]  ;;  %v8446_v4 = vsel %vm8382_vm3, %v21045_v19, %v21073_v13  ;;  %v24800_v43 = vld [vmem:[#allocation313_spill] sm:$0xff]  ;;  %v24801_v28 = vld [vmem:[#allocation259_spill] sm:$0xff] }
 0x7b3   : > { %24793 = vst [vmem:[#allocation155_spill] sm:$0xff] %v21159_v44  ;;  %v21163_v49 = vadd.f32 %v24794_v55, %v8048_v32  ;;  %v21172_v1 = vsub.f32 %v8500_v61, %v21159_v44  ;;  %v7181_v40 = vadd.f32 %v24799_v21, %v6880_v37  ;;  %v13948_v9 = vpop.f32.mrb[114].mxu1  ;;  %v21178_v32 = vmul.f32 0.2, %v21145_v45  ;;  %v24802_v37 = vld [vmem:[#allocation211_spill] sm:$0xff] }
 0x7b4   : > { %v21169_v17 = vadd.f32 %v24797_v36, %v8042_v26  ;;  %v8060_v0 = vadd.f32 %v24800_v43, %v7775_v35  ;;  %v7767_v55 = vadd.f32 %v24801_v28, %v7451_v33  ;;  %v8503_v53 = vsel %vm2305_vm1, %v8446_v4, 0  ;;  %v6889_v26 = vpop.f32.mrb[115].mxu1  ;;  %v24804_v19 = vld [vmem:[#allocation347_spill] sm:$0xff]  ;;  %v24806_v4 = vld [vmem:[#allocation262_spill] sm:$0xff] }
 0x7b5   : > { %24798 = vst [vmem:[#allocation153_spill] sm:$0xff] %v21172_v1  ;;  %v21184_v46 = vmul.f32 0.2, %v21163_v49  ;;  %v23559_v61 = vand.u32 4294901760, %v21172_v1  ;;  %v7472_v36 = vadd.f32 %v24802_v37, %v7181_v40  ;;  %v21188_v21 = vand.u32 4294901760, %v8503_v53 }
 0x7b6   : > { %v21191_v13 = vadd.f32 %v24804_v19, %v8060_v0  ;;  %v8054_v44 = vadd.f32 %v24805_v6, %v7767_v55  ;;  %v6870_v35 = vadd.f32 %v6869_v62, %v20986_v51  ;;  %v8447_v40 = vsel %vm8383_vm4, %v21040_v30, %v21054_v24  ;;  %v24808_v6 = vld [vmem:[#allocation348_spill] sm:$0xff] }
 0x7b7   : > { %24803 = vst [vmem:[#allocation49_spill] sm:$0xff] %v21188_v21  ;;  %v8730_v33 = vsub.f32 %v21172_v1, %v23559_v61  ;;  %v7791_v43 = vadd.f32 %v24806_v4, %v7472_v36  ;;  %v21201_v28 = vsub.f32 %v8503_v53, %v21188_v21  ;;  %v13951_v0 = vpop.f32.mrb[116].mxu1  ;;  %v21206_v37 = vmul.f32 0.2, %v21169_v17  ;;  %v24809_v62 = vld [vmem:[#allocation36_spill] sm:$0xff]  ;;  %v24810_v36 = vld [vmem:[#allocation318_spill] sm:$0xff] }
 0x7b8   : > { %v21209_v51 = vadd.f32 %v24808_v6, %v8054_v44  ;;  %v7175_v55 = vadd.f32 %v24809_v62, %v6870_v35  ;;  %v8506_v19 = vsel %vm2305_vm1, %v8447_v40, 0  ;;  %v6909_v61 = vpop.f32.mrb[117].mxu1  ;;  %v21218_v30 = vmul.f32 0.2, %v21191_v13  ;;  %v24812_v24 = vld [vmem:[#allocation212_spill] sm:$0xff]  ;;  %v24813_v35 = vld [vmem:[#allocation349_spill] sm:$0xff] }
 0x7b9   : > { %24807 = vst [vmem:[#allocation45_spill] sm:$0xff] %v21201_v28  ;;  %v8731_v1 = vand.u32 4294901760, %v8730_v33  ;;  %v8072_v4 = vadd.f32 %v24810_v36, %v7791_v43  ;;  %v23566_v53 = vand.u32 4294901760, %v21201_v28  ;;  %v21215_v21 = vand.u32 4294901760, %v8506_v19 }
 0x7ba   : > { %v7465_v2 = vadd.f32 %v24812_v24, %v7175_v55  ;;  %v6900_v44 = vadd.f32 %v13948_v9, %v20992_v29  ;;  %vm8384_vm5 = vcmp.ge.f32.partialorder %v21066_v12, 0.0  ;;  %v24815_v55 = vld [vmem:[#allocation264_spill] sm:$0xff]  ;;  %vm8385_vm6 = vcmp.ge.f32.partialorder %v21060_v56, 0.0 }
 0x7bb   : > { %24811 = vst [vmem:[#allocation58_spill] sm:$0xff] %v21215_v21  ;;  %14256 = vmatmul.mubr.f32.gmra.mrb[208].mxu0 %v8731_v1  ;;  %v21224_v40 = vadd.f32 %v24813_v35, %v8072_v4  ;;  %v8740_v33 = vsub.f32 %v21201_v28, %v23566_v53  ;;  %v21230_v43 = vsub.f32 %v8506_v19, %v21215_v21  ;;  %v13954_v62 = vpop.f32.mrb[118].mxu1  ;;  %v24816_v29 = vld [vmem:[#allocation176_spill] sm:$0xff]  ;;  %v21239_v35 = vmul.f32 0.2, %v21209_v51 }
 0x7bc   : > { %v8448_v6 = vsel %vm8384_vm5, %v21066_v12, %v21093_v10  ;;  %v7783_v36 = vadd.f32 %v24815_v55, %v7465_v2  ;;  %v7193_v9 = vadd.f32 %v24816_v29, %v6900_v44  ;;  %v6890_v4 = vadd.f32 %v6889_v26, %v20990_v58  ;;  %v6929_v24 = vpop.f32.mrb[119].mxu1  ;;  %v24817_v21 = vld [vmem:[#allocation320_spill] sm:$0xff]  ;;  %v24818_v10 = vld [vmem:[#allocation213_spill] sm:$0xff]  ;;  %v24819_v2 = vld [vmem:[#allocation79_spill] sm:$0xff] }
 0x7bd   : > { %24814 = vst [vmem:[#allocation54_spill] sm:$0xff] %v21230_v43  ;;  %v8509_v1 = vsel %vm2305_vm1, %v8448_v6, 0  ;;  %v8741_v53 = vand.u32 4294901760, %v8740_v33  ;;  %v23573_v19 = vand.u32 4294901760, %v21230_v43  ;;  %v8449_v44 = vsel %vm8385_vm6, %v21060_v56, %v21079_v16 }
 0x7be   : > { %v21242_v28 = vand.u32 4294901760, %v8509_v1  ;;  %v8066_v12 = vadd.f32 %v24817_v21, %v7783_v36  ;;  %v7486_v48 = vadd.f32 %v24818_v10, %v7193_v9  ;;  %v7187_v55 = vadd.f32 %v24819_v2, %v6890_v4  ;;  %v24820_v21 = vld [vmem:[#allocation350_spill] sm:$0xff]  ;;  %v24821_v36 = vld [vmem:[#allocation267_spill] sm:$0xff] }
 0x7bf   : > { %14258 = vmatprep.mubr.f32.mxu0 %v8741_v53  ;;  %v8750_v58 = vsub.f32 %v21230_v43, %v23573_v19  ;;  %v6920_v33 = vadd.f32 %v13951_v0, %v21001_v39  ;;  %v24822_v9 = vld [vmem:[#allocation214_spill] sm:$0xff]  ;;  %v8512_v53 = vsel %vm2305_vm1, %v8449_v44, 0  ;;  %v21268_v56 = vmul.f32 0.2, %v21224_v40  ;;  %v24824_v39 = vld [vmem:[#allocation323_spill] sm:$0xff]  ;;  %v24825_v0 = vld [vmem:[#allocation268_spill] sm:$0xff] }
 0x7c0   : > { %v21252_v26 = vsub.f32 %v8509_v1, %v21242_v28  ;;  %v21258_v6 = vadd.f32 %v24820_v21, %v8066_v12  ;;  %v7807_v29 = vadd.f32 %v24821_v36, %v7486_v48  ;;  %v7479_v4 = vadd.f32 %v24822_v9, %v7187_v55  ;;  %v24823_v1 = vld [vmem:[#allocation179_spill] sm:$0xff] }
 0x7c1   : > { %v8751_v10 = vand.u32 4294901760, %v8750_v58  ;;  %v21264_v19 = vand.u32 4294901760, %v8512_v53  ;;  %v7205_v43 = vadd.f32 %v24823_v1, %v6920_v33  ;;  %vm8386_vm7 = vcmp.ge.f32.partialorder %v21096_v50, 0.0  ;;  %v24826_v58 = vld [vmem:[#allocation215_spill] sm:$0xff] }
 0x7c2   : > { %v23576_v2 = vand.u32 4294901760, %v21252_v26  ;;  %v8084_v16 = vadd.f32 %v24824_v39, %v7807_v29  ;;  %v7799_v12 = vadd.f32 %v24825_v0, %v7479_v4  ;;  %v8450_v33 = vsel %vm8386_vm7, %v21096_v50, %v21117_v63  ;;  %v24827_v21 = vld [vmem:[#allocation351_spill] sm:$0xff]  ;;  %v24828_v29 = vld [vmem:[#allocation324_spill] sm:$0xff] }
 0x7c3   : > { %14259 = vmatmul.mubr.f32.gmra.mrb[210].mxu0 %v8751_v10  ;;  %v21277_v55 = vsub.f32 %v8512_v53, %v21264_v19  ;;  %v7500_v44 = vadd.f32 %v24826_v58, %v7205_v43  ;;  %v8515_v4 = vsel %vm2305_vm1, %v8450_v33, 0  ;;  %v6910_v10 = vadd.f32 %v6909_v61, %v20994_v22  ;;  %v24829_v0 = vld [vmem:[#allocation271_spill] sm:$0xff]  ;;  %v24830_v50 = vld [vmem:[#allocation352_spill] sm:$0xff]  ;;  %v24832_v61 = vld [vmem:[#allocation325_spill] sm:$0xff] }
 0x7c4   : > { %v8760_v48 = vsub.f32 %v21252_v26, %v23576_v2  ;;  %v21283_v36 = vadd.f32 %v24827_v21, %v8084_v16  ;;  %v8078_v9 = vadd.f32 %v24828_v29, %v7799_v12  ;;  %v21290_v2 = vand.u32 4294901760, %v8515_v4  ;;  %v24831_v16 = vld [vmem:[#allocation40_spill] sm:$0xff] }
 0x7c5   : > { %v23578_v39 = vand.u32 4294901760, %v21277_v55  ;;  %v7823_v53 = vadd.f32 %v24829_v0, %v7500_v44  ;;  %v21293_v43 = vmul.f32 0.2, %v21258_v6  ;;  %v7199_v58 = vadd.f32 %v24831_v16, %v6910_v10  ;;  %v24833_v21 = vld [vmem:[#allocation216_spill] sm:$0xff]  ;;  %v24834_v0 = vld [vmem:[#allocation353_spill] sm:$0xff] }
 0x7c6   : > { %v8761_v1 = vand.u32 4294901760, %v8760_v48  ;;  %v21296_v63 = vadd.f32 %v24830_v50, %v8078_v9  ;;  %vm8387_vm8 = vcmp.ge.f32.partialorder %v21085_v15, 0.0  ;;  %v21305_v48 = vsub.f32 %v8515_v4, %v21290_v2  ;;  %v24835_v16 = vld [vmem:[#allocation272_spill] sm:$0xff] }
 0x7c7   : > { %v8770_v22 = vsub.f32 %v21277_v55, %v23578_v39  ;;  %v8096_v12 = vadd.f32 %v24832_v61, %v7823_v53  ;;  %v8451_v44 = vsel %vm8387_vm8, %v21085_v15, %v21105_v57  ;;  %v21310_v33 = vmul.f32 0.2, %v21283_v36  ;;  %v24836_v15 = vld [vmem:[#allocation181_spill] sm:$0xff]  ;;  %v24841_v39 = vld [vmem:[#allocation219_spill] sm:$0xff] }
 0x7c8   : > { %14261 = vmatprep.mubr.f32.mxu0 %v8761_v1  ;;  %v7493_v29 = vadd.f32 %v24833_v21, %v7199_v58  ;;  %v8518_v9 = vsel %vm2305_vm1, %v8451_v44, 0  ;;  %v6940_v10 = vadd.f32 %v13954_v62, %v21005_v34  ;;  %v23577_v53 = vand.u32 4294901760, %v21305_v48 }
 0x7c9   : > { %v8771_v1 = vand.u32 4294901760, %v8770_v22  ;;  %v21316_v50 = vadd.f32 %v24834_v0, %v8096_v12  ;;  %v21319_v4 = vand.u32 4294901760, %v8518_v9  ;;  %vm8388_vm9 = vcmp.ge.f32.partialorder %v21120_v42, 0.0  ;;  %v24837_v12 = vld [vmem:[#allocation326_spill] sm:$0xff] }
 0x7ca   : > { %v7815_v61 = vadd.f32 %v24835_v16, %v7493_v29  ;;  %v7217_v57 = vadd.f32 %v24836_v15, %v6940_v10  ;;  %v6930_v58 = vadd.f32 %v6929_v24, %v21003_v31  ;;  %v21326_v44 = vmul.f32 0.2, %v21296_v63  ;;  %v24838_v29 = vld [vmem:[#allocation218_spill] sm:$0xff] }
 0x7cb   : > { %14262 = vmatmul.mubr.f32.gmra.mrb[212].mxu0 %v8771_v1  ;;  %v8780_v34 = vsub.f32 %v21305_v48, %v23577_v53  ;;  %v21332_v62 = vsub.f32 %v8518_v9, %v21319_v4  ;;  %v8452_v22 = vsel %vm8388_vm9, %v21120_v42, %v21150_v27  ;;  %v24839_v24 = vld [vmem:[#allocation182_spill] sm:$0xff]  ;;  %vm8389_vm10 = vcmp.ge.f32.partialorder %v21111_v38, 0.0 }
 0x7cc   : > { %v8090_v21 = vadd.f32 %v24837_v12, %v7815_v61  ;;  %v7514_v10 = vadd.f32 %v24838_v29, %v7217_v57  ;;  %v8521_v31 = vsel %vm2305_vm1, %v8452_v22, 0  ;;  %v7211_v0 = vadd.f32 %v24839_v24, %v6930_v58  ;;  %v24840_v9 = vld [vmem:[#allocation354_spill] sm:$0xff] }
 0x7cd   : > { %v8781_v16 = vand.u32 4294901760, %v8780_v34  ;;  %v23581_v1 = vand.u32 4294901760, %v21332_v62  ;;  %v21341_v15 = vand.u32 4294901760, %v8521_v31  ;;  %v8453_v27 = vsel %vm8389_vm10, %v21111_v38, %v21131_v23 }
 0x7ce   : > { %v21345_v53 = vadd.f32 %v24840_v9, %v8090_v21  ;;  %v7507_v42 = vadd.f32 %v24841_v39, %v7211_v0  ;;  %vm8390_vm11 = vcmp.ge.f32.partialorder %v21145_v45, 0.0  ;;  %v8524_v58 = vsel %vm2305_vm1, %v8453_v27, 0  ;;  %v24843_v27 = vld [vmem:[#allocation273_spill] sm:$0xff] }
 0x7cf   : > { %14264 = vmatprep.mubr.f32.mxu0 %v8781_v16  ;;  %v8790_v61 = vsub.f32 %v21332_v62, %v23581_v1  ;;  %v21355_v57 = vsub.f32 %v8521_v31, %v21341_v15  ;;  %v8454_v34 = vsel %vm8390_vm11, %v21145_v45, %v21178_v32  ;;  %v21361_v39 = vmul.f32 0.2, %v21316_v50 }
 0x7d0   : > { %v21363_v22 = vand.u32 4294901760, %v8524_v58  ;;  %v8527_v38 = vsel %vm2305_vm1, %v8454_v34, 0  ;;  %vm8391_vm12 = vcmp.ge.f32.partialorder %v21139_v18, 0.0  ;;  %vm8392_vm13 = vcmp.ge.f32.partialorder %v21169_v17, 0.0 }
 0x7d1   : > { %v8791_v23 = vand.u32 4294901760, %v8790_v61  ;;  %v23579_v12 = vand.u32 4294901760, %v21355_v57  ;;  %v21368_v21 = vand.u32 4294901760, %v8527_v38  ;;  %v8455_v29 = vsel %vm8391_vm12, %v21139_v18, %v21156_v14 }
 0x7d2   : > { %v21373_v31 = vsub.f32 %v8524_v58, %v21363_v22  ;;  %v8530_v45 = vsel %vm2305_vm1, %v8455_v29, 0  ;;  %vm8393_vm14 = vcmp.ge.f32.partialorder %v21163_v49, 0.0  ;;  %v8456_v18 = vsel %vm8392_vm13, %v21169_v17, %v21206_v37  ;;  %v24845_v29 = vld [vmem:[#allocation327_spill] sm:$0xff] }
 0x7d3   : > { %14265 = vmatmul.mubr.f32.gmra.mrb[214].mxu0 %v8791_v23  ;;  %v8800_v32 = vsub.f32 %v21355_v57, %v23579_v12  ;;  %v21382_v24 = vsub.f32 %v8527_v38, %v21368_v21  ;;  %v21384_v0 = vand.u32 4294901760, %v8530_v45  ;;  %v8533_v16 = vsel %vm2305_vm1, %v8456_v18, 0  ;;  %v24846_v12 = vld [vmem:[#allocation274_spill] sm:$0xff] }
 0x7d4   : > { %v23580_v14 = vand.u32 4294901760, %v21373_v31  ;;  %v8457_v9 = vsel %vm8393_vm14, %v21163_v49, %v21184_v46  ;;  %v7839_v61 = vadd.f32 %v24843_v27, %v7514_v10  ;;  %v21397_v23 = vand.u32 4294901760, %v8533_v16 }
 0x7d5   : > { %24842 = vst [vmem:[#allocation81_spill] sm:$0xff] %v21384_v0  ;;  %v8801_v58 = vand.u32 4294901760, %v8800_v32  ;;  %v23591_v34 = vand.u32 4294901760, %v21382_v24  ;;  %v21395_v38 = vsub.f32 %v8530_v45, %v21384_v0  ;;  %v8536_v37 = vsel %vm2305_vm1, %v8457_v9, 0  ;;  %v24848_v9 = vld [vmem:[#allocation328_spill] sm:$0xff] }
 0x7d6   : > { %24844 = vst [vmem:[#allocation76_spill] sm:$0xff] %v21397_v23  ;;  %v8810_v17 = vsub.f32 %v21373_v31, %v23580_v14  ;;  %v8108_v18 = vadd.f32 %v24845_v29, %v7839_v61  ;;  %v7831_v49 = vadd.f32 %v24846_v12, %v7507_v42  ;;  %v21410_v45 = vsub.f32 %v8533_v16, %v21397_v23 }
 0x7d7   : > { %14267 = vmatprep.mubr.f32.mxu0 %v8801_v58  ;;  %v8820_v46 = vsub.f32 %v21382_v24, %v23591_v34  ;;  %v23582_v10 = vand.u32 4294901760, %v21395_v38  ;;  %v21412_v32 = vand.u32 4294901760, %v8536_v37  ;;  %vm8394_vm15 = vcmp.ge.f32.partialorder %v21209_v51, 0.0 }
 0x7d8   : > { %v8811_v27 = vand.u32 4294901760, %v8810_v17  ;;  %v8369_v14 = vadd.f32 %v20976_v20, %v8108_v18  ;;  %v8102_v1 = vadd.f32 %v24848_v9, %v7831_v49  ;;  %v23588_v61 = vand.u32 4294901760, %v21410_v45 }
 0x7d9   : > { %24847 = vst [vmem:[#allocation87_spill] sm:$0xff] %v21412_v32  ;;  %v8821_v42 = vand.u32 4294901760, %v8820_v46  ;;  %v8830_v12 = vsub.f32 %v21395_v38, %v23582_v10  ;;  %v21422_v58 = vsub.f32 %v8536_v37, %v21412_v32  ;;  %v8458_v20 = vsel %vm8394_vm15, %v21209_v51, %v21239_v35 }
 0x7da   : > { %14268 = vmatmul.mubr.f32.gmra.mrb[216].mxu0 %v8811_v27  ;;  %vm8403_vm2 = vcmp.ge.f32.partialorder %v8369_v14, 0.0  ;;  %v8435_v16 = vmul.f32 0.2, %v8369_v14  ;;  %v8363_v17 = vadd.f32 %v20980_v8, %v8102_v1  ;;  %v8840_v18 = vsub.f32 %v21410_v45, %v23588_v61 }
 0x7db   : > { %14270 = vmatprep.mubr.f32.mxu0 %v8821_v42  ;;  %v8831_v29 = vand.u32 4294901760, %v8830_v12  ;;  %v23584_v49 = vand.u32 4294901760, %v21422_v58  ;;  %v8539_v46 = vsel %vm2305_vm1, %v8458_v20, 0  ;;  %vm8395_vm4 = vcmp.ge.f32.partialorder %v21191_v13, 0.0 }
 0x7dc   : > { %v8467_v37 = vsel %vm8403_vm2, %v8369_v14, %v8435_v16  ;;  %vm8402_vm3 = vcmp.ge.f32.partialorder %v8363_v17, 0.0  ;;  %v8434_v27 = vmul.f32 0.2, %v8363_v17  ;;  %v21432_v9 = vand.u32 4294901760, %v8539_v46 }
 0x7dd   : > { %v8841_v10 = vand.u32 4294901760, %v8840_v18  ;;  %v8850_v8 = vsub.f32 %v21422_v58, %v23584_v49  ;;  %v8566_v51 = vsel %vm2305_vm1, %v8467_v37, 0  ;;  %v8432_v35 = vmul.f32 0.2, %v21345_v53 }
 0x7de   : > { %24849 = vst [vmem:[#allocation13_spill] sm:$0xff] %v21432_v9  ;;  %14271 = vmatmul.mubr.f32.gmra.mrb[218].mxu0 %v8831_v29  ;;  %v8466_v1 = vsel %vm8402_vm3, %v8363_v17, %v8434_v27  ;;  %v21441_v42 = vsub.f32 %v8539_v46, %v21432_v9  ;;  %v8459_v14 = vsel %vm8395_vm4, %v21191_v13, %v21218_v30  ;;  %v21445_v12 = vand.u32 4294901760, %v8566_v51 }
 0x7df   : > { %14273 = vmatprep.mubr.f32.mxu0 %v8841_v10  ;;  %v8563_v16 = vsel %vm2305_vm1, %v8466_v1, 0  ;;  %v8542_v20 = vsel %vm2305_vm1, %v8459_v14, 0  ;;  %vm8396_vm5 = vcmp.ge.f32.partialorder %v21258_v6, 0.0  ;;  %v8851_v18 = vand.u32 4294901760, %v8850_v8 }
 0x7e0   : > { %24850 = vst [vmem:[#allocation101_spill] sm:$0xff] %v21445_v12  ;;  %v21450_v37 = vand.u32 4294901760, %v8563_v16  ;;  %v23583_v17 = vand.u32 4294901760, %v21441_v42  ;;  %v21453_v29 = vand.u32 4294901760, %v8542_v20  ;;  %v8460_v46 = vsel %vm8396_vm5, %v21258_v6, %v21293_v43 }
 0x7e1   : > { %vm8397_vm6 = vcmp.ge.f32.partialorder %v21224_v40, 0.0  ;;  %vm8398_vm7 = vcmp.ge.f32.partialorder %v21296_v63, 0.0  ;;  %vm8399_vm8 = vcmp.ge.f32.partialorder %v21283_v36, 0.0  ;;  %v8545_v27 = vsel %vm2305_vm1, %v8460_v46, 0 }
 0x7e2   : > { %24851 = vst [vmem:[#allocation270_spill] sm:$0xff] %v21450_v37  ;;  %24852 = vst [vmem:[#allocation266_spill] sm:$0xff] %v21453_v29  ;;  %14274 = vmatmul.mubr.f32.gmra.mrb[220].mxu0 %v8851_v18  ;;  %v21461_v13 = vsub.f32 %v8563_v16, %v21450_v37  ;;  %v8860_v30 = vsub.f32 %v21441_v42, %v23583_v17  ;;  %v21467_v10 = vsub.f32 %v8542_v20, %v21453_v29  ;;  %vm16268_vm11 = vmmov 0  }
 0x7e3   : > { %v21470_v6 = vand.u32 4294901760, %v8545_v27  ;;  %v8461_v43 = vsel %vm8397_vm6, %v21224_v40, %v21268_v56  ;;  %v8462_v8 = vsel %vm8398_vm7, %v21296_v63, %v21326_v44  ;;  %v8463_v1 = vsel %vm8399_vm8, %v21283_v36, %v21310_v33 }
 0x7e4   : > { %v8861_v14 = vand.u32 4294901760, %v8860_v30  ;;  %v23585_v16 = vand.u32 4294901760, %v21467_v10  ;;  %v8548_v18 = vsel %vm2305_vm1, %v8461_v43, 0  ;;  %v8551_v20 = vsel %vm2305_vm1, %v8462_v8, 0 }
 0x7e5   : > { %24853 = vst [vmem:[#allocation280_spill] sm:$0xff] %v21470_v6  ;;  %v21482_v46 = vsub.f32 %v8545_v27, %v21470_v6  ;;  %v21484_v17 = vand.u32 4294901760, %v8548_v18  ;;  %v21486_v49 = vand.u32 4294901760, %v8551_v20  ;;  %v8554_v40 = vsel %vm2305_vm1, %v8463_v1, 0 }
 0x7e6   : > { %14276 = vmatprep.mubr.f32.mxu0 %v8861_v14  ;;  %v8870_v56 = vsub.f32 %v21467_v10, %v23585_v16  ;;  %v21492_v36 = vand.u32 4294901760, %v8554_v40  ;;  %vm8400_vm9 = vcmp.ge.f32.partialorder %v21345_v53, 0.0  ;;  %vm8401_vm10 = vcmp.ge.f32.partialorder %v21316_v50, 0.0 }
 0x7e7   : > { %24854 = vst [vmem:[#allocation314_spill] sm:$0xff] %v21484_v17  ;;  %24855 = vst [vmem:[#allocation64_spill] sm:$0xff] %v21486_v49  ;;  %v23586_v63 = vand.u32 4294901760, %v21482_v46  ;;  %v21498_v33 = vsub.f32 %v8548_v18, %v21484_v17  ;;  %v21501_v44 = vsub.f32 %v8551_v20, %v21486_v49  ;;  %v8464_v30 = vsel %vm8400_vm9, %v21345_v53, %v8432_v35 }
 0x7e8   : > { %24856 = vst [vmem:[#allocation97_spill] sm:$0xff] %v21492_v36  ;;  %v8871_v27 = vand.u32 4294901760, %v8870_v56  ;;  %v21505_v43 = vsub.f32 %v8554_v40, %v21492_v36  ;;  %v8557_v8 = vsel %vm2305_vm1, %v8464_v30, 0  ;;  %v8465_v1 = vsel %vm8401_vm10, %v21316_v50, %v21361_v39 }
 0x7e9   : > { %v8880_v14 = vsub.f32 %v21482_v46, %v23586_v63  ;;  %v23587_v18 = vand.u32 4294901760, %v21498_v33  ;;  %v23589_v20 = vand.u32 4294901760, %v21501_v44  ;;  %v21515_v16 = vand.u32 4294901760, %v8557_v8 }
 0x7ea   : > { %14277 = vmatmul.mubr.f32.gmra.mrb[222].mxu0 %v8871_v27  ;;  %v23590_v53 = vand.u32 4294901760, %v21505_v43  ;;  %v8560_v35 = vsel %vm2305_vm1, %v8465_v1, 0  ;;  %v21529_v30 = vsub.f32 %v8566_v51, %v21445_v12  ;;  %v23594_v63 = vand.u32 4294901760, %v21461_v13 }
 0x7eb   : > { %24857 = vst [vmem:[#allocation103_spill] sm:$0xff] %v21515_v16  ;;  %v8881_v40 = vand.u32 4294901760, %v8880_v14  ;;  %v8890_v50 = vsub.f32 %v21498_v33, %v23587_v18  ;;  %v8900_v39 = vsub.f32 %v21501_v44, %v23589_v20  ;;  %v21526_v56 = vsub.f32 %v8557_v8, %v21515_v16 }
 0x7ec   : > { %v21531_v27 = vand.u32 4294901760, %v8560_v35  ;;  %v8910_v18 = vsub.f32 %v21505_v43, %v23590_v53  ;;  %v23593_v53 = vand.u32 4294901760, %v21529_v30  ;;  %vm11272_vm12 = vcmask 256000  }
 0x7ed   : > { %14279 = vmatprep.mubr.f32.mxu0 %v8881_v40  ;;  %v8891_v1 = vand.u32 4294901760, %v8890_v50  ;;  %v8901_v14 = vand.u32 4294901760, %v8900_v39  ;;  %v23592_v61 = vand.u32 4294901760, %v21526_v56  ;;  %v8940_v40 = vsub.f32 %v21461_v13, %v23594_v63 }
 0x7ee   : > { %24858 = vst [vmem:[#allocation66_spill] sm:$0xff] %v21531_v27  ;;  %v21539_v20 = vsub.f32 %v8560_v35, %v21531_v27  ;;  %v8911_v50 = vand.u32 4294901760, %v8910_v18  ;;  %v15239_v18 = vpack.c.bf16 %v20962_v59, %v20957_v7  ;;  %vm11523_vm13 = vcmask 261312  }
 0x7ef   : > { %14280 = vmatmul.mubr.f32.gmra.mrb[224].mxu0 %v8891_v1  ;;  %v8920_v51 = vsub.f32 %v21526_v56, %v23592_v61  ;;  %v8941_v1 = vand.u32 4294901760, %v8940_v40  ;;  %v24862_v40 = vld [vmem:[#allocation49_spill] sm:$0xff]  ;;  %vm11455_vm14 = vcmask 1041409   ;;  %vm11318_vm15 = vcmask 130112  }
 0x7f0   : > { %14282 = vmatprep.mubr.f32.mxu0 %v8901_v14  ;;  %v23595_v8 = vand.u32 4294901760, %v21539_v20  ;;  %v8950_v14 = vsub.f32 %v21529_v30, %v23593_v53  ;;  %v24870_v53 = vld [vmem:[#allocation32_spill] sm:$0xff]  ;;  %vm11457_vm2 = vcmask 1042434   ;;  %vm11459_vm3 = vcmask 1043459  }
 0x7f1   : > { %v8921_v39 = vand.u32 4294901760, %v8920_v51  ;;  %v24861_v51 = vld [vmem:[#allocation155_spill] sm:$0xff]  ;;  %v24871_v63 = vand.u32 4294901760, %v24870_v53  ;;  %vm11461_vm4 = vcmask 1044484   ;;  %vm11463_vm5 = vcmask 1045509  }
 0x7f2   : > { %v8930_v35 = vsub.f32 %v21539_v20, %v23595_v8  ;;  %v8951_v61 = vand.u32 4294901760, %v8950_v14  ;;  %v24868_v14 = vld [vmem:[#allocation47_spill] sm:$0xff]  ;;  %vm11465_vm6 = vcmask 1046534   ;;  %vm11467_vm7 = vcmask 1047559  }
 0x7f3   : > { %14283 = vmatmul.mubr.f32.gmra.mrb[226].mxu0 %v8911_v50  ;;  %v24864_v50 = vld [vmem:[#allocation127_spill] sm:$0xff]  ;;  %vm11478_vm8 = vcmask 130048   ;;  %vm11676_vm9 = vcmask 261248   ;;  %vm12273_vm10 = vcmask 1046528  }
 0x7f4   : > { %14285 = vmatprep.mubr.f32.mxu0 %v8921_v39  ;;  %v8931_v34 = vand.u32 4294901760, %v8930_v35  ;;  %v24865_v39 = vld [vmem:[#allocation129_spill] sm:$0xff]  ;;  %v24866_v35 = vld [vmem:[#allocation132_spill] sm:$0xff]  ;;  %v24881_v53 = vand.u32 4294901760, %v24864_v50 }
 0x7f7   : > { %14286 = vmatmul.mubr.f32.gmra.mrb[228].mxu0 %v8931_v34  ;;  %v24859_v34 = vld [vmem:[#allocation147_spill] sm:$0xff] }
 0x7f8   : > { %14288 = vmatprep.mubr.f32.mxu0 %v8941_v1  ;;  %v24867_v1 = vld [vmem:[#allocation134_spill] sm:$0xff] }
 0x7fb   : > { %14289 = vmatmul.mubr.f32.gmra.mrb[230].mxu0 %v8951_v61  ;;  %v24860_v61 = vld [vmem:[#allocation152_spill] sm:$0xff] }
 0x7fc   : > { %14299 = vmatprep.mubr.f32.mxu0 %v20808_v11 }
 0x7ff   : > { %14300 = vmatmul.mubr.f32.vlgmr.msra.gmra.mrb[200].mxu0 %v20817_v25 }
 0x800   : > { %14302 = vmatprep.mubr.f32.mxu0 %v20837_v5  ;;  %15238 = vmatpush3.bf16.msra.mxu0 %v20998_v47  ;;  %v24863_v47 = vld [vmem:[#allocation58_spill] sm:$0xff] }
 0x801   : > { %15240 = vmatprep.subr.bf16.mxu0 %v15239_v18 }
 0x803   : > { %14303 = vmatmul.mubr.f32.gmra.mrb[202].mxu0 %v20858_v54 }
 0x804   : > { %14305 = vmatprep.mubr.f32.mxu0 %v20881_v41  ;;  %15242 = vmatpush3.bf16.msra.mxu0 %v15239_v18  ;;  %v24869_v18 = vand.u32 4294901760, %v24868_v14  ;;  %v24879_v14 = vld [vmem:[#allocation45_spill] sm:$0xff] }
 0x805   : > { %15244 = vmatprep.subr.bf16.mxu0 %v20690_v3 }
 0x806   : > { %v15251_v8 = vpack.c.bf16 %v24871_v63, %v24869_v18  ;;  %v24880_v63 = vld [vmem:[#allocation54_spill] sm:$0xff]  ;;  %v24882_v18 = vand.u32 4294901760, %v20957_v7 }
 0x807   : > { %14306 = vmatmul.mubr.f32.gmra.mrb[204].mxu0 %v20899_v60 }
 0x808   : > { %14308 = vmatprep.mubr.f32.mxu0 %v20916_v52 }
 0x80b   : > { %14309 = vmatmul.mubr.f32.gmra.mrb[206].mxu0 %v24859_v34 }
 0x80c   : > { %14311 = vmatprep.mubr.f32.mxu0 %v24860_v61 }
 0x80f   : > { %14312 = vmatmul.mubr.f32.gmra.mrb[208].mxu0 %v24861_v51 }
 0x810   : > { %14314 = vmatprep.mubr.f32.mxu0 %v24862_v40 }
 0x813   : > { %14315 = vmatmul.mubr.f32.gmra.mrb[210].mxu0 %v24863_v47 }
 0x814   : > { %14317 = vmatprep.mubr.f32.mxu0 %v21242_v28 }
 0x817   : > { %14318 = vmatmul.mubr.f32.gmra.mrb[212].mxu0 %v21264_v19 }
 0x818   : > { %14320 = vmatprep.mubr.f32.mxu0 %v21290_v2 }
 0x81b   : > { %14321 = vmatmul.mubr.f32.gmra.mrb[214].mxu0 %v21319_v4 }
 0x81c   : > { %14323 = vmatprep.mubr.f32.mxu0 %v21341_v15 }
 0x81f   : > { %14324 = vmatmul.mubr.f32.gmra.mrb[216].mxu0 %v21363_v22 }
 0x820   : > { %14326 = vmatprep.mubr.f32.mxu0 %v21368_v21 }
 0x823   : > { %14327 = vmatmul.mubr.f32.gmra.mrb[218].mxu0 %v21384_v0 }
 0x824   : > { %14329 = vmatprep.mubr.f32.mxu0 %v21397_v23 }
 0x827   : > { %14330 = vmatmul.mubr.f32.gmra.mrb[220].mxu0 %v21412_v32  ;;  %v24885_v32 = vand.u32 4294901760, %v24866_v35 }
 0x828   : > { %14332 = vmatprep.mubr.f32.mxu0 %v21432_v9  ;;  %v24884_v9 = vand.u32 4294901760, %v24865_v39 }
 0x82b   : > { %14333 = vmatmul.mubr.f32.gmra.mrb[222].mxu0 %v21453_v29 }
 0x82c   : > { %14335 = vmatprep.mubr.f32.mxu0 %v21470_v6  ;;  %v24883_v6 = vand.u32 4294901760, %v20962_v59 }
 0x82e   : > { %v15255_v29 = vpack.c.bf16 %v24883_v6, %v24882_v18  ;;  %v24897_v6 = vand.u32 4294901760, %v21305_v48  ;;  %v10464_v18 = vld [vmem:[%s22899_s4 + $0x38] sm:$0xff] }
 0x82f   : > { %14336 = vmatmul.mubr.f32.gmra.mrb[224].mxu0 %v21484_v17  ;;  %v24878_v17 = vld [vmem:[#allocation153_spill] sm:$0xff] }
 0x830   : > { %14338 = vmatprep.mubr.f32.mxu0 %v21486_v49  ;;  %v24877_v49 = vld [vmem:[#allocation149_spill] sm:$0xff] }
 0x833   : > { %14339 = vmatmul.mubr.f32.gmra.mrb[226].mxu0 %v21492_v36  ;;  %v24876_v36 = vld [vmem:[#allocation145_spill] sm:$0xff] }
 0x834   : > { %14341 = vmatprep.mubr.f32.mxu0 %v21515_v16  ;;  %v24875_v16 = vld [vmem:[#allocation141_spill] sm:$0xff] }
 0x835   : > { %v24889_v59 = vand.u32 4294901760, %v24875_v16 }
 0x837   : > { %14342 = vmatmul.mubr.f32.gmra.mrb[228].mxu0 %v21531_v27  ;;  %v24872_v27 = vld [vmem:[#allocation136_spill] sm:$0xff] }
 0x838   : > { %14344 = vmatprep.mubr.f32.mxu0 %v21450_v37  ;;  %v24873_v37 = vld [vmem:[#allocation139_spill] sm:$0xff]  ;;  %v24886_v23 = vand.u32 4294901760, %v24872_v27 }
 0x839   : > { %v24887_v0 = vand.u32 4294901760, %v24873_v37 }
 0x83b   : > { %14345 = vmatmul.mubr.f32.gmra.mrb[230].mxu0 %v21445_v12  ;;  %v24874_v12 = vld [vmem:[#allocation144_spill] sm:$0xff] }
 0x83c   : > { %14355 = vmatprep.mubr.f32.mxu0 %v24864_v50  ;;  %v24888_v7 = vand.u32 4294901760, %v24874_v12  ;;  %v24925_v50 = vld [vmem:[#allocation66_spill] sm:$0xff] }
 0x83f   : > { %14356 = vmatmul.mubr.f32.vlgmr.msra.gmra.mrb[200].mxu0 %v24865_v39  ;;  %v24926_v39 = vld [vmem:[#allocation270_spill] sm:$0xff] }
 0x840   : > { %14358 = vmatprep.mubr.f32.mxu0 %v24866_v35  ;;  %15246 = vmatpush3.bf16.msra.mxu0 %v20690_v3  ;;  %v24927_v35 = vld [vmem:[#allocation101_spill] sm:$0xff] }
 0x841   : > { %15248 = vmatprep.subr.bf16.mxu0 %v24867_v1 }
 0x843   : > { %14359 = vmatmul.mubr.f32.gmra.mrb[202].mxu0 %v24872_v27  ;;  %v24923_v27 = vld [vmem:[#allocation97_spill] sm:$0xff] }
 0x844   : > { %14361 = vmatprep.mubr.f32.mxu0 %v24873_v37  ;;  %15250 = vmatpush3.bf16.msra.mxu0 %v24867_v1  ;;  %v24894_v37 = vand.u32 4294901760, %v24880_v63 }
 0x845   : > { %15252 = vmatprep.subr.bf16.mxu0 %v15251_v8 }
 0x847   : > { %14362 = vmatmul.mubr.f32.gmra.mrb[204].mxu0 %v24874_v12  ;;  %v24895_v12 = vand.u32 4294901760, %v21252_v26 }
 0x848   : > { %14364 = vmatprep.mubr.f32.mxu0 %v24875_v16  ;;  %v24900_v16 = vand.u32 4294901760, %v21373_v31 }
 0x84b   : > { %14365 = vmatmul.mubr.f32.gmra.mrb[206].mxu0 %v24876_v36 }
 0x84c   : > { %14367 = vmatprep.mubr.f32.mxu0 %v24877_v49 }
 0x84f   : > { %14368 = vmatmul.mubr.f32.gmra.mrb[208].mxu0 %v24878_v17 }
 0x850   : > { %14370 = vmatprep.mubr.f32.mxu0 %v24879_v14 }
 0x853   : > { %14371 = vmatmul.mubr.f32.gmra.mrb[210].mxu0 %v24880_v63 }
 0x854   : > { %14373 = vmatprep.mubr.f32.mxu0 %v21252_v26  ;;  %v24902_v26 = vand.u32 4294901760, %v21395_v38 }
 0x857   : > { %14374 = vmatmul.mubr.f32.gmra.mrb[212].mxu0 %v21277_v55 }
 0x858   : > { %14376 = vmatprep.mubr.f32.mxu0 %v21305_v48  ;;  %v24904_v48 = vand.u32 4294901760, %v21422_v58 }
 0x85b   : > { %14377 = vmatmul.mubr.f32.gmra.mrb[214].mxu0 %v21332_v62 }
 0x85c   : > { %14379 = vmatprep.mubr.f32.mxu0 %v21355_v57 }
 0x85f   : > { %14380 = vmatmul.mubr.f32.gmra.mrb[216].mxu0 %v21373_v31  ;;  %v24907_v31 = vand.u32 4294901760, %v21482_v46 }
 0x860   : > { %14382 = vmatprep.mubr.f32.mxu0 %v21382_v24 }
 0x863   : > { %14383 = vmatmul.mubr.f32.gmra.mrb[218].mxu0 %v21395_v38  ;;  %v24909_v38 = vand.u32 4294901760, %v21501_v44 }
 0x864   : > { %14385 = vmatprep.mubr.f32.mxu0 %v21410_v45 }
 0x867   : > { %14386 = vmatmul.mubr.f32.gmra.mrb[220].mxu0 %v21422_v58  ;;  %v24911_v58 = vand.u32 4294901760, %v21526_v56 }
 0x868   : > { %14388 = vmatprep.mubr.f32.mxu0 %v21441_v42 }
 0x86b   : > { %14389 = vmatmul.mubr.f32.gmra.mrb[222].mxu0 %v21467_v10 }
 0x86c   : > { %14391 = vmatprep.mubr.f32.mxu0 %v21482_v46  ;;  %v24914_v46 = vand.u32 4294901760, %v21529_v30 }
 0x86f   : > { %14392 = vmatmul.mubr.f32.gmra.mrb[224].mxu0 %v21498_v33 }
 0x870   : > { %14394 = vmatprep.mubr.f32.mxu0 %v21501_v44  ;;  %v24918_v44 = vld [vmem:[#allocation13_spill] sm:$0xff] }
 0x873   : > { %14395 = vmatmul.mubr.f32.gmra.mrb[226].mxu0 %v21505_v43 }
 0x874   : > { %14397 = vmatprep.mubr.f32.mxu0 %v21526_v56  ;;  %v24921_v56 = vld [vmem:[#allocation314_spill] sm:$0xff] }
 0x877   : > { %14398 = vmatmul.mubr.f32.gmra.mrb[228].mxu0 %v21539_v20 }
 0x878   : > { %14400 = vmatprep.mubr.f32.mxu0 %v21461_v13 }
 0x87b   : > { %14401 = vmatmul.mubr.f32.gmra.mrb[230].mxu0 %v21529_v30  ;;  %v24922_v30 = vld [vmem:[#allocation64_spill] sm:$0xff] }
 0x87c   : > { %14411 = vmatprep.mubr.f32.mxu0 %v24881_v53  ;;  %v10463_v53 = vld [vmem:[%s22899_s4 + $0x30] sm:$0xff] }
 0x87f   : > { %14412 = vmatmul.mubr.f32.vlgmr.msra.gmra.mrb[200].mxu0 %v24884_v9  ;;  %v24890_v9 = vand.u32 4294901760, %v24876_v36  ;;  %v24901_v36 = vand.u32 4294901760, %v21382_v24  ;;  %v24908_v24 = vand.u32 4294901760, %v21498_v33  ;;  %v24917_v33 = vld [vmem:[#allocation87_spill] sm:$0xff] }
 0x880   : > { %14414 = vmatprep.mubr.f32.mxu0 %v24885_v32  ;;  %15254 = vmatpush3.bf16.msra.mxu0 %v15251_v8  ;;  %v24891_v32 = vand.u32 4294901760, %v24877_v49  ;;  %v24898_v49 = vand.u32 4294901760, %v21332_v62  ;;  %v24905_v62 = vand.u32 4294901760, %v21441_v42  ;;  %v24912_v42 = vand.u32 4294901760, %v21539_v20  ;;  %v24920_v20 = vld [vmem:[#allocation280_spill] sm:$0xff]  ;;  %v24924_v8 = vld [vmem:[#allocation103_spill] sm:$0xff] }
 0x881   : > { %15256 = vmatprep.subr.bf16.mxu0 %v15255_v29 }
 0x883   : > { %14415 = vmatmul.mubr.f32.gmra.mrb[202].mxu0 %v24886_v23  ;;  %v24892_v23 = vand.u32 4294901760, %v24878_v17  ;;  %v24899_v17 = vand.u32 4294901760, %v21355_v57  ;;  %v24906_v57 = vand.u32 4294901760, %v21467_v10  ;;  %v24913_v10 = vand.u32 4294901760, %v21461_v13  ;;  %v24916_v13 = vld [vmem:[#allocation76_spill] sm:$0xff] }
 0x884   : > { %14417 = vmatprep.mubr.f32.mxu0 %v24887_v0  ;;  %15258 = vmatpush3.bf16.msra.mxu0 %v15255_v29  ;;  %v24893_v0 = vand.u32 4294901760, %v24879_v14  ;;  %v24896_v29 = vand.u32 4294901760, %v21277_v55  ;;  %v24903_v55 = vand.u32 4294901760, %v21410_v45  ;;  %v24910_v45 = vand.u32 4294901760, %v21505_v43  ;;  %v24919_v43 = vld [vmem:[#allocation266_spill] sm:$0xff] }
 0x885   : > { %15260 = vmatprep.subr.bf16.mxu0 %v20690_v3 }
 0x887   : > { %14418 = vmatmul.mubr.f32.gmra.mrb[204].mxu0 %v24888_v7  ;;  %v10487_v7 = vand.u32 4294901760, %v10463_v53 }
 0x888   : > { %14420 = vmatprep.mubr.f32.mxu0 %v24889_v59  ;;  %v10490_v59 = vand.u32 4294901760, %v10464_v18 }
 0x88b   : > { %14421 = vmatmul.mubr.f32.gmra.mrb[206].mxu0 %v24890_v9  ;;  %v24929_v9 = vmov 0.0  }
 0x88c   : > { %14423 = vmatprep.mubr.f32.mxu0 %v24891_v32  ;;  %14587 = vmatprep.mubr.msk.f32.mxu1 %vm16268_vm11, %v24929_v9  ;;  %11273 = vst.msk [vmem:[#allocation4] sm:$0x7] %vm11272_vm12, %v24929_v9  ;;  %11274 = vst.msk [vmem:[#allocation4 + $0x13] sm:$0x7] %vm11272_vm12, %v24929_v9  ;;  %vm12287_vm12 = vcmask 1045504  }
 0x88f   : > { %14424 = vmatmul.mubr.f32.gmra.mrb[208].mxu0 %v24892_v23 }
 0x890   : > { %14426 = vmatprep.mubr.f32.mxu0 %v24893_v0  ;;  %v21818_v0 = vpack.c.bf16 %v10490_v59, %v10487_v7 }
 0x893   : > { %14427 = vmatmul.mubr.f32.gmra.mrb[210].mxu0 %v24894_v37  ;;  %v21820_v37 = vsub.f32 %v10463_v53, %v10487_v7 }
 0x894   : > { %14429 = vmatprep.mubr.f32.mxu0 %v24895_v12  ;;  %v21822_v12 = vsub.f32 %v10464_v18, %v10490_v59 }
 0x897   : > { %14430 = vmatmul.mubr.f32.gmra.mrb[212].mxu0 %v24896_v29 }
 0x898   : > { %14432 = vmatprep.mubr.f32.mxu0 %v24897_v6 }
 0x89b   : > { %14433 = vmatmul.mubr.f32.gmra.mrb[214].mxu0 %v24898_v49 }
 0x89c   : > { %14435 = vmatprep.mubr.f32.mxu0 %v24899_v17 }
 0x89f   : > { %14436 = vmatmul.mubr.f32.gmra.mrb[216].mxu0 %v24900_v16 }
 0x8a0   : > { %14438 = vmatprep.mubr.f32.mxu0 %v24901_v36 }
 0x8a3   : > { %14439 = vmatmul.mubr.f32.gmra.mrb[218].mxu0 %v24902_v26 }
 0x8a4   : > { %14441 = vmatprep.mubr.f32.mxu0 %v24903_v55 }
 0x8a7   : > { %14442 = vmatmul.mubr.f32.gmra.mrb[220].mxu0 %v24904_v48 }
 0x8a8   : > { %14444 = vmatprep.mubr.f32.mxu0 %v24905_v62 }
 0x8ab   : > { %14445 = vmatmul.mubr.f32.gmra.mrb[222].mxu0 %v24906_v57 }
 0x8ac   : > { %14447 = vmatprep.mubr.f32.mxu0 %v24907_v31 }
 0x8af   : > { %14448 = vmatmul.mubr.f32.gmra.mrb[224].mxu0 %v24908_v24 }
 0x8b0   : > { %14450 = vmatprep.mubr.f32.mxu0 %v24909_v38 }
 0x8b3   : > { %14451 = vmatmul.mubr.f32.gmra.mrb[226].mxu0 %v24910_v45 }
 0x8b4   : > { %14453 = vmatprep.mubr.f32.mxu0 %v24911_v58 }
 0x8b7   : > { %14454 = vmatmul.mubr.f32.gmra.mrb[228].mxu0 %v24912_v42 }
 0x8b8   : > { %14456 = vmatprep.mubr.f32.mxu0 %v24913_v10 }
 0x8bb   : > { %14457 = vmatmul.mubr.f32.gmra.mrb[230].mxu0 %v24914_v46  ;;  %v10596_v46 = vand.u32 4294901760, %v21820_v37 }
 0x8bc   : > { %14467 = vmatprep.mubr.f32.mxu0 %v20808_v11 }
 0x8bf   : > { %14468 = vmatmul.mubr.f32.vlgmr.msra.gmra.mrb[200].mxu0 %v20817_v25 }
 0x8c0   : > { %14470 = vmatprep.mubr.f32.mxu0 %v20837_v5  ;;  %15262 = vmatpush3.bf16.msra.mxu0 %v20690_v3  ;;  %v24915_v3 = vld [vmem:[#allocation81_spill] sm:$0xff] }
 0x8c1   : > { %15264 = vmatprep.subr.bf16.mxu0 %v24867_v1 }
 0x8c3   : > { %14471 = vmatmul.mubr.f32.gmra.mrb[202].mxu0 %v20858_v54 }
 0x8c4   : > { %14473 = vmatprep.mubr.f32.mxu0 %v20881_v41  ;;  %15266 = vmatpush3.bf16.msra.mxu0 %v24867_v1 }
 0x8c7   : > { %14474 = vmatmul.mubr.f32.gmra.mrb[204].mxu0 %v20899_v60 }
 0x8c8   : > { %14476 = vmatprep.mubr.f32.mxu0 %v20916_v52 }
 0x8cb   : > { %14477 = vmatmul.mubr.f32.gmra.mrb[206].mxu0 %v24859_v34 }
 0x8cc   : > { %14479 = vmatprep.mubr.f32.mxu0 %v24860_v61 }
 0x8cf   : > { %14480 = vmatmul.mubr.f32.gmra.mrb[208].mxu0 %v24861_v51 }
 0x8d0   : > { %14482 = vmatprep.mubr.f32.mxu0 %v24862_v40 }
 0x8d3   : > { %14483 = vmatmul.mubr.f32.gmra.mrb[210].mxu0 %v24863_v47 }
 0x8d4   : > { %14485 = vmatprep.mubr.f32.mxu0 %v21242_v28 }
 0x8d7   : > { %14486 = vmatmul.mubr.f32.gmra.mrb[212].mxu0 %v21264_v19 }
 0x8d8   : > { %14488 = vmatprep.mubr.f32.mxu0 %v21290_v2 }
 0x8db   : > { %14489 = vmatmul.mubr.f32.gmra.mrb[214].mxu0 %v21319_v4 }
 0x8dc   : > { %14491 = vmatprep.mubr.f32.mxu0 %v21341_v15 }
 0x8df   : > { %14492 = vmatmul.mubr.f32.gmra.mrb[216].mxu0 %v21363_v22 }
 0x8e0   : > { %14494 = vmatprep.mubr.f32.mxu0 %v21368_v21 }
 0x8e3   : > { %14495 = vmatmul.mubr.f32.gmra.mrb[218].mxu0 %v24915_v3 }
 0x8e4   : > { %14497 = vmatprep.mubr.f32.mxu0 %v24916_v13 }
 0x8e7   : > { %14498 = vmatmul.mubr.f32.gmra.mrb[220].mxu0 %v24917_v33 }
 0x8e8   : > { %14500 = vmatprep.mubr.f32.mxu0 %v24918_v44 }
 0x8eb   : > { %14501 = vmatmul.mubr.f32.gmra.mrb[222].mxu0 %v24919_v43 }
 0x8ec   : > { %14503 = vmatprep.mubr.f32.mxu0 %v24920_v20 }
 0x8ef   : > { %14504 = vmatmul.mubr.f32.gmra.mrb[224].mxu0 %v24921_v56 }
 0x8f0   : > { %14506 = vmatprep.mubr.f32.mxu0 %v24922_v30 }
 0x8f3   : > { %14507 = vmatmul.mubr.f32.gmra.mrb[226].mxu0 %v24923_v27 }
 0x8f4   : > { %14509 = vmatprep.mubr.f32.mxu0 %v24924_v8 }
 0x8f7   : > { %14510 = vmatmul.mubr.f32.gmra.mrb[228].mxu0 %v24925_v50 }
 0x8f8   : > { %14512 = vmatprep.mubr.f32.mxu0 %v24926_v39 }
 0x8fb   : > { %14513 = vmatmul.mubr.f32.gmra.mrb[230].mxu0 %v24927_v35 }
 0x8fc   : > { %14523 = vmatprep.mubr.f32.mxu0 %v20808_v11  ;;  %v10457_v11 = vld [vmem:[%s22899_s4] sm:$0xff] }
 0x8ff   : > { %14524 = vmatmul.mubr.f32.vlgmr.msra.gmra.mrb[200].mxu0 %v20817_v25  ;;  %v10458_v25 = vld [vmem:[%s22899_s4 + $0x8] sm:$0xff] }
 0x900   : > { %14526 = vmatprep.mubr.f32.mxu0 %v20837_v5  ;;  %v10469_v5 = vand.u32 4294901760, %v10457_v11 }
 0x903   : > { %14527 = vmatmul.mubr.f32.gmra.mrb[202].mxu0 %v20858_v54  ;;  %v10472_v54 = vand.u32 4294901760, %v10458_v25 }
 0x904   : > { %14529 = vmatprep.mubr.f32.mxu0 %v20881_v41 }
 0x905   : > { %v21772_v41 = vpack.c.bf16 %v10472_v54, %v10469_v5 }
 0x907   : > { %14530 = vmatmul.mubr.f32.gmra.mrb[204].mxu0 %v20899_v60  ;;  %v21774_v60 = vsub.f32 %v10457_v11, %v10469_v5  ;;  %15269 = vmatpush3.bf16.msra.mxu1 %v21772_v41 }
 0x908   : > { %14532 = vmatprep.mubr.f32.mxu0 %v20916_v52  ;;  %v21776_v52 = vsub.f32 %v10458_v25, %v10472_v54 }
 0x909   : > { %v10554_v32 = vand.u32 4294901760, %v21774_v60 }
 0x90a   : > { %v10561_v23 = vand.u32 4294901760, %v21776_v52 }
 0x90b   : > { %14533 = vmatmul.mubr.f32.gmra.mrb[206].mxu0 %v24859_v34  ;;  %v10555_v29 = vsub.f32 %v21774_v60, %v10554_v32 }
 0x90c   : > { %14535 = vmatprep.mubr.f32.mxu0 %v24860_v61  ;;  %v10461_v61 = vld [vmem:[%s22899_s4 + $0x20] sm:$0xff]  ;;  %v10562_v6 = vsub.f32 %v21776_v52, %v10561_v23  ;;  %v21882_v59 = vpack.c.bf16 %v10561_v23, %v10554_v32 }
 0x90d   : > { %v10556_v49 = vand.u32 4294901760, %v10555_v29 }
 0x90e   : > { %v10563_v17 = vand.u32 4294901760, %v10562_v6 }
 0x90f   : > { %14536 = vmatmul.mubr.f32.gmra.mrb[208].mxu0 %v24861_v51  ;;  %v10462_v51 = vld [vmem:[%s22899_s4 + $0x28] sm:$0xff] }
 0x910   : > { %14538 = vmatprep.mubr.f32.mxu0 %v24862_v40  ;;  %v10481_v40 = vand.u32 4294901760, %v10461_v61  ;;  %v21830_v26 = vpack.c.bf16 %v10563_v17, %v10556_v49 }
 0x912   : > { %v21802_v14 = vsub.f32 %v10461_v61, %v10481_v40 }
 0x913   : > { %14539 = vmatmul.mubr.f32.gmra.mrb[210].mxu0 %v24863_v47  ;;  %v10484_v47 = vand.u32 4294901760, %v10462_v51 }
 0x914   : > { %14541 = vmatprep.mubr.f32.mxu0 %v21242_v28  ;;  %v24928_v28 = vmov 0.0|0.0   ;;  %v10582_v31 = vand.u32 4294901760, %v21802_v14 }
 0x915   : > { %15270 = vmatprep.subr.bf16.mxu1 %v24928_v28  ;;  %v21800_v1 = vpack.c.bf16 %v10484_v47, %v10481_v40  ;;  %v21804_v63 = vsub.f32 %v10462_v51, %v10484_v47 }
 0x916   : > { %v10583_v45 = vsub.f32 %v21802_v14, %v10582_v31 }
 0x917   : > { %14542 = vmatmul.mubr.f32.gmra.mrb[212].mxu0 %v21264_v19  ;;  %v10459_v19 = vld [vmem:[%s22899_s4 + $0x10] sm:$0xff]  ;;  %v10589_v24 = vand.u32 4294901760, %v21804_v63 }
 0x918   : > { %14544 = vmatprep.mubr.f32.mxu0 %v21290_v2  ;;  %v10460_v2 = vld [vmem:[%s22899_s4 + $0x18] sm:$0xff]  ;;  %v10584_v42 = vand.u32 4294901760, %v10583_v45 }
 0x919   : > { %v10590_v58 = vsub.f32 %v21804_v63, %v10589_v24  ;;  %v21898_v23 = vpack.c.bf16 %v10589_v24, %v10582_v31 }
 0x91b   : > { %14545 = vmatmul.mubr.f32.gmra.mrb[214].mxu0 %v21319_v4  ;;  %v10475_v4 = vand.u32 4294901760, %v10459_v19  ;;  %v10591_v10 = vand.u32 4294901760, %v10590_v58 }
 0x91c   : > { %14547 = vmatprep.mubr.f32.mxu0 %v21341_v15  ;;  %v10478_v15 = vand.u32 4294901760, %v10460_v2 }
 0x91e   : > { %v21790_v34 = vsub.f32 %v10460_v2, %v10478_v15 }
 0x91f   : > { %14548 = vmatmul.mubr.f32.gmra.mrb[216].mxu0 %v21363_v22  ;;  %v21786_v22 = vpack.c.bf16 %v10478_v15, %v10475_v4 }
 0x920   : > { %14550 = vmatprep.mubr.f32.mxu0 %v21368_v21  ;;  %v21788_v21 = vsub.f32 %v10459_v19, %v10475_v4  ;;  %v10575_v36 = vand.u32 4294901760, %v21790_v34 }
 0x921   : > { %15272 = vmatpush3.bf16.msra.mxu1 %v21786_v22 }
 0x922   : > { %15273 = vmatprep.subr.bf16.mxu1 %v24928_v28  ;;  %v10568_v16 = vand.u32 4294901760, %v21788_v21  ;;  %v10576_v48 = vsub.f32 %v21790_v34, %v10575_v36 }
 0x923   : > { %14551 = vmatmul.mubr.f32.gmra.mrb[218].mxu0 %v24915_v3  ;;  %v10603_v3 = vand.u32 4294901760, %v21822_v12 }
 0x924   : > { %14553 = vmatprep.mubr.f32.mxu0 %v24916_v13  ;;  %v10569_v55 = vsub.f32 %v21788_v21, %v10568_v16  ;;  %v10577_v57 = vand.u32 4294901760, %v10576_v48  ;;  %v21842_v13 = vpack.c.bf16 %v10591_v10, %v10584_v42  ;;  %v21888_v17 = vpack.c.bf16 %v10575_v36, %v10568_v16 }
 0x925   : > { %15275 = vmatpush3.bf16.msra.mxu1 %v21800_v1 }
 0x926   : > { %15276 = vmatprep.subr.bf16.mxu1 %v24928_v28  ;;  %v10570_v62 = vand.u32 4294901760, %v10569_v55 }
 0x927   : > { %14554 = vmatmul.mubr.f32.gmra.mrb[220].mxu0 %v24917_v33  ;;  %v10597_v33 = vsub.f32 %v21820_v37, %v10596_v46 }
 0x928   : > { %14556 = vmatprep.mubr.f32.mxu0 %v24918_v44  ;;  %v21836_v38 = vpack.c.bf16 %v10577_v57, %v10570_v62  ;;  %v10604_v44 = vsub.f32 %v21822_v12, %v10603_v3 }
 0x929   : > { %15278 = vmatpush3.bf16.msra.mxu1 %v21818_v0 }
 0x92a   : > { %15279 = vmatprep.subr.bf16.mxu1 %v24928_v28 }
 0x92b   : > { %14557 = vmatmul.mubr.f32.gmra.mrb[222].mxu0 %v24919_v43  ;;  %v10598_v43 = vand.u32 4294901760, %v10597_v33 }
 0x92c   : > { %14559 = vmatprep.mubr.f32.mxu0 %v24920_v20  ;;  %v10605_v20 = vand.u32 4294901760, %v10604_v44  ;;  %v21908_v44 = vpack.c.bf16 %v10603_v3, %v10596_v46 }
 0x92f   : > { %14560 = vmatmul.mubr.f32.gmra.mrb[224].mxu0 %v24921_v56  ;;  %v21846_v56 = vpack.c.bf16 %v10605_v20, %v10598_v43 }
 0x930   : > { %14562 = vmatprep.mubr.f32.mxu0 %v24922_v30 }
 0x933   : > { %14563 = vmatmul.mubr.f32.gmra.mrb[226].mxu0 %v24923_v27 }
 0x934   : > { %14565 = vmatprep.mubr.f32.mxu0 %v24924_v8 }
 0x937   : > { %14566 = vmatmul.mubr.f32.gmra.mrb[228].mxu0 %v24925_v50 }
 0x938   : > { %14568 = vmatprep.mubr.f32.mxu0 %v24926_v39 }
 0x93b   : > { %14569 = vmatmul.mubr.f32.gmra.mrb[230].mxu0 %v24927_v35 }
 0x9d2   : > { %v21856_v39 = vpop.f32.mrb[200].mxu0 }
 0x9d3   : > { %v10387_v35 = vsel %vm338_vm0, %v21856_v39, 0.0  ;;  %v21860_v11 = vpop.f32.mrb[201].mxu0 }
 0x9d4   : > { %v10386_v25 = vsel %vm338_vm0, %v21860_v11, 0.0 }
 0x9d5   : > { %v10388_v5 = vadd.f32 %v10387_v35, %v10386_v25 }
 0x9d6   : > { %v21864_v54 = vpop.f32.mrb[202].mxu0 }
 0x9d7   : > { %v21866_v19 = vpop.f32.mrb[203].mxu0  ;;  %v10391_v15 = vsel %vm338_vm0, %v21864_v54, 0.0 }
 0x9d8   : > { %v10389_v2 = vsel %vm338_vm0, %v21866_v19, 0.0 }
 0x9d9   : > { %v10390_v4 = vadd.f32 %v10389_v2, %v10388_v5 }
 0x9da   : > { %v21872_v61 = vpop.f32.mrb[204].mxu0 }
 0x9db   : > { %v21874_v51 = vpop.f32.mrb[205].mxu0  ;;  %v10392_v40 = vadd.f32 %v10391_v15, %v10390_v4  ;;  %v10395_v18 = vsel %vm338_vm0, %v21872_v61, 0.0 }
 0x9dc   : > { %v10393_v47 = vsel %vm338_vm0, %v21874_v51, 0.0 }
 0x9dd   : > { %v10394_v53 = vadd.f32 %v10393_v47, %v10392_v40 }
 0x9de   : > { %v21880_v7 = vpop.f32.mrb[206].mxu0 }
 0x9df   : > { %v21884_v29 = vpop.f32.mrb[207].mxu0  ;;  %v10396_v6 = vadd.f32 %v10395_v18, %v10394_v53  ;;  %v10399_v48 = vsel %vm338_vm0, %v21880_v7, 0.0 }
 0x9e0   : > { %v10397_v49 = vsel %vm338_vm0, %v21884_v29, 0.0 }
 0x9e1   : > { %v10398_v55 = vadd.f32 %v10397_v49, %v10396_v6 }
 0x9e2   : > { %v21892_v62 = vpop.f32.mrb[208].mxu0 }
 0x9e3   : > { %v21894_v57 = vpop.f32.mrb[209].mxu0  ;;  %v10400_v45 = vadd.f32 %v10399_v48, %v10398_v55  ;;  %v10403_v42 = vsel %vm338_vm0, %v21892_v62, 0.0 }
 0x9e4   : > { %v10401_v32 = vsel %vm338_vm0, %v21894_v57, 0.0 }
 0x9e5   : > { %v10402_v58 = vadd.f32 %v10401_v32, %v10400_v45 }
 0x9e6   : > { %v21902_v16 = vpop.f32.mrb[210].mxu0 }
 0x9e7   : > { %v21904_v36 = vpop.f32.mrb[211].mxu0  ;;  %v10404_v10 = vadd.f32 %v10403_v42, %v10402_v58  ;;  %v10407_v20 = vsel %vm338_vm0, %v21902_v16, 0.0 }
 0x9e8   : > { %v10405_v33 = vsel %vm338_vm0, %v21904_v36, 0.0 }
 0x9e9   : > { %v10406_v43 = vadd.f32 %v10405_v33, %v10404_v10 }
 0x9ea   : > { %v21912_v31 = vpop.f32.mrb[212].mxu0 }
 0x9eb   : > { %v21914_v24 = vpop.f32.mrb[213].mxu0  ;;  %v10408_v35 = vadd.f32 %v10407_v20, %v10406_v43  ;;  %v10411_v2 = vsel %vm338_vm0, %v21912_v31, 0.0 }
 0x9ec   : > { %v10409_v25 = vsel %vm338_vm0, %v21914_v24, 0.0 }
 0x9ed   : > { %v10410_v5 = vadd.f32 %v10409_v25, %v10408_v35 }
 0x9ee   : > { %v21920_v4 = vpop.f32.mrb[214].mxu0 }
 0x9ef   : > { %v21922_v46 = vpop.f32.mrb[215].mxu0  ;;  %v10412_v3 = vadd.f32 %v10411_v2, %v10410_v5  ;;  %v10415_v47 = vsel %vm338_vm0, %v21920_v4, 0.0 }
 0x9f0   : > { %v10413_v15 = vsel %vm338_vm0, %v21922_v46, 0.0 }
 0x9f1   : > { %v10414_v40 = vadd.f32 %v10413_v15, %v10412_v3 }
 0x9f2   : > { %v21928_v53 = vpop.f32.mrb[216].mxu0 }
 0x9f3   : > { %v21930_v18 = vpop.f32.mrb[217].mxu0  ;;  %v10416_v6 = vadd.f32 %v10415_v47, %v10414_v40  ;;  %v10419_v48 = vsel %vm338_vm0, %v21928_v53, 0.0 }
 0x9f4   : > { %v10417_v49 = vsel %vm338_vm0, %v21930_v18, 0.0 }
 0x9f5   : > { %v10418_v55 = vadd.f32 %v10417_v49, %v10416_v6 }
 0x9f6   : > { %v21936_v45 = vpop.f32.mrb[218].mxu0 }
 0x9f7   : > { %v21938_v32 = vpop.f32.mrb[219].mxu0  ;;  %v10420_v58 = vadd.f32 %v10419_v48, %v10418_v55  ;;  %v10423_v33 = vsel %vm338_vm0, %v21936_v45, 0.0 }
 0x9f8   : > { %v10421_v42 = vsel %vm338_vm0, %v21938_v32, 0.0 }
 0x9f9   : > { %v10422_v10 = vadd.f32 %v10421_v42, %v10420_v58 }
 0x9fa   : > { %v21944_v43 = vpop.f32.mrb[220].mxu0 }
 0x9fb   : > { %v21946_v20 = vpop.f32.mrb[221].mxu0  ;;  %v10424_v35 = vadd.f32 %v10423_v33, %v10422_v10  ;;  %v10427_v2 = vsel %vm338_vm0, %v21944_v43, 0.0 }
 0x9fc   : > { %v10425_v25 = vsel %vm338_vm0, %v21946_v20, 0.0 }
 0x9fd   : > { %v10426_v5 = vadd.f32 %v10425_v25, %v10424_v35 }
 0x9fe   : > { %v21952_v3 = vpop.f32.mrb[222].mxu0 }
 0x9ff   : > { %24930 = vst [vmem:[#allocation67_spill] sm:$0xff] %v21952_v3  ;;  %v21954_v15 = vpop.f32.mrb[223].mxu0  ;;  %v10428_v40 = vadd.f32 %v10427_v2, %v10426_v5  ;;  %v10431_v49 = vsel %vm338_vm0, %v21952_v3, 0.0 }
 0xa00   : > { %24931 = vst [vmem:[#allocation100_spill] sm:$0xff] %v21954_v15  ;;  %v10429_v47 = vsel %vm338_vm0, %v21954_v15, 0.0 }
 0xa01   : > { %v10430_v6 = vadd.f32 %v10429_v47, %v10428_v40 }
 0xa02   : > { %v21960_v55 = vpop.f32.mrb[224].mxu0 }
 0xa03   : > { %24932 = vst [vmem:[#allocation80_spill] sm:$0xff] %v21960_v55  ;;  %v21962_v48 = vpop.f32.mrb[225].mxu0  ;;  %v10432_v58 = vadd.f32 %v10431_v49, %v10430_v6  ;;  %v10435_v33 = vsel %vm338_vm0, %v21960_v55, 0.0 }
 0xa04   : > { %24933 = vst [vmem:[#allocation68_spill] sm:$0xff] %v21962_v48  ;;  %v10433_v42 = vsel %vm338_vm0, %v21962_v48, 0.0 }
 0xa05   : > { %v10434_v10 = vadd.f32 %v10433_v42, %v10432_v58 }
 0xa06   : > { %v21968_v35 = vpop.f32.mrb[226].mxu0 }
 0xa07   : > { %24934 = vst [vmem:[#allocation70_spill] sm:$0xff] %v21968_v35  ;;  %v21970_v25 = vpop.f32.mrb[227].mxu0  ;;  %v10436_v5 = vadd.f32 %v10435_v33, %v10434_v10  ;;  %v10439_v47 = vsel %vm338_vm0, %v21968_v35, 0.0 }
 0xa08   : > { %24935 = vst [vmem:[#allocation177_spill] sm:$0xff] %v21970_v25  ;;  %v10437_v2 = vsel %vm338_vm0, %v21970_v25, 0.0 }
 0xa09   : > { %v10438_v40 = vadd.f32 %v10437_v2, %v10436_v5 }
 0xa0a   : > { %v21976_v6 = vpop.f32.mrb[228].mxu0 }
 0xa0b   : > { %24936 = vst [vmem:[#allocation184_spill] sm:$0xff] %v21976_v6  ;;  %v21978_v49 = vpop.f32.mrb[229].mxu0  ;;  %v10440_v58 = vadd.f32 %v10439_v47, %v10438_v40  ;;  %v10443_v8 = vsel %vm338_vm0, %v21976_v6, 0.0 }
 0xa0c   : > { %24937 = vst [vmem:[#allocation71_spill] sm:$0xff] %v21978_v49  ;;  %v10441_v42 = vsel %vm338_vm0, %v21978_v49, 0.0 }
 0xa0d   : > { %v10442_v50 = vadd.f32 %v10441_v42, %v10440_v58 }
 0xa0e   : > { %v21984_v10 = vpop.f32.mrb[230].mxu0 }
 0xa0f   : > { %v21986_v33 = vpop.f32.mrb[231].mxu0  ;;  %v10444_v5 = vadd.f32 %v10443_v8, %v10442_v50  ;;  %v10447_v30 = vsel %vm338_vm0, %v21984_v10, 0.0 }
 0xa10   : > { %v10445_v2 = vsel %vm338_vm0, %v21986_v33, 0.0 }
 0xa11   : > { %v10446_v27 = vadd.f32 %v10445_v2, %v10444_v5 }
 0xa13   : > { %v10448_v40 = vadd.f32 %v10447_v30, %v10446_v27 }
 0xa15   : > { %v10449_v47 = vrot.slane %v10448_v40, 4 }
 0xa17   : > { %v10450_v35 = vadd.f32 %v10449_v47, %v10448_v40 }
 0xa19   : > { %v10451_v49 = vrot.slane %v10450_v35, 2 }
 0xa1b   : > { %v10452_v58 = vadd.f32 %v10451_v49, %v10450_v35 }
 0xa1d   : > { %v10453_v42 = vrot.slane %v10452_v58, 1 }
 0xa1f   : > { %v10454_v25 = vadd.f32 %v10453_v42, %v10452_v58 }
 0xa21   : > { %v10456_v6 = vmul.f32 0.00390625, %v10454_v25 }
 0xa23   : > { %v10466_v55 = vsel %vm338_vm0, %v10456_v6, 0  ;;  %v24978_v6 = vld [vmem:[#allocation184_spill] sm:$0xff] }
 0xa24   : > { %v10541_v48 = vand.u32 4294901760, %v10466_v55 }
 0xa26   : > { %v10542_v3 = vsub.f32 %v10466_v55, %v10541_v48 }
 0xa28   : > { %v10543_v8 = vand.u32 4294901760, %v10542_v3 }
 0xa2a   : > { %v10544_v50 = vsub.f32 %v10542_v3, %v10543_v8 }
 0xa2c   : > { %v10545_v15 = vand.u32 4294901760, %v10544_v50 }
 0xa2e   : > { %14588 = vmatmul.mubr.f32.vlgmr.msra.gmra.mrb[120].mxu1 %v10545_v15 }
 0xa2f   : > { %15281 = vmatpush3.bf16.msra.mxu1 %v21830_v26  ;;  %14606 = vmatprep.mubr.msk.f32.mxu1 %vm16268_vm11, %v24929_v9  ;;  %v24938_v26 = vpack.c.bf16 %v21776_v52, %v21774_v60  ;;  %v24941_v60 = vpack.c.bf16 %v21822_v12, %v21820_v37 }
 0xa30   : > { %15282 = vmatprep.subr.bf16.mxu1 %v24928_v28 }
 0xa33   : > { %15284 = vmatpush3.bf16.msra.mxu1 %v21836_v38  ;;  %v24939_v38 = vpack.c.bf16 %v21790_v34, %v21788_v21 }
 0xa34   : > { %15285 = vmatprep.subr.bf16.mxu1 %v24928_v28 }
 0xa37   : > { %15287 = vmatpush3.bf16.msra.mxu1 %v21842_v13  ;;  %v24940_v13 = vpack.c.bf16 %v21804_v63, %v21802_v14  ;;  %v23630_v14 = vlaneseq }
 0xa38   : > { %15288 = vmatprep.subr.bf16.mxu1 %v24928_v28 }
 0xa3b   : > { %15290 = vmatpush3.bf16.msra.mxu1 %v21846_v56 }
 0xa3c   : > { %15291 = vmatprep.subr.bf16.mxu1 %v24928_v28 }
 0xa3e   : > { %14607 = vmatmul.mubr.f32.vlgmr.msra.gmra.mrb[120].mxu1 %v10541_v48 }
 0xa3f   : > { %15293 = vmatpush3.bf16.msra.mxu1 %v24938_v26  ;;  %14625 = vmatprep.mubr.msk.f32.mxu1 %vm16268_vm11, %v24929_v9 }
 0xa40   : > { %15294 = vmatprep.subr.bf16.mxu1 %v24928_v28 }
 0xa43   : > { %15296 = vmatpush3.bf16.msra.mxu1 %v24939_v38 }
 0xa44   : > { %15297 = vmatprep.subr.bf16.mxu1 %v24928_v28 }
 0xa47   : > { %15299 = vmatpush3.bf16.msra.mxu1 %v24940_v13 }
 0xa48   : > { %15300 = vmatprep.subr.bf16.mxu1 %v24928_v28 }
 0xa4b   : > { %15302 = vmatpush3.bf16.msra.mxu1 %v24941_v60 }
 0xa4c   : > { %15303 = vmatprep.subr.bf16.mxu1 %v24928_v28 }
 0xa4e   : > { %14626 = vmatmul.mubr.f32.vlgmr.msra.gmra.mrb[120].mxu1 %v10542_v3 }
 0xa4f   : > { %15305 = vmatpush3.bf16.msra.mxu1 %v21772_v41  ;;  %14644 = vmatprep.mubr.msk.f32.mxu1 %vm16268_vm11, %v24929_v9 }
 0xa50   : > { %15306 = vmatprep.subr.bf16.mxu1 %v24928_v28 }
 0xa53   : > { %15308 = vmatpush3.bf16.msra.mxu1 %v21786_v22 }
 0xa54   : > { %15309 = vmatprep.subr.bf16.mxu1 %v24928_v28 }
 0xa57   : > { %15311 = vmatpush3.bf16.msra.mxu1 %v21800_v1 }
 0xa58   : > { %15312 = vmatprep.subr.bf16.mxu1 %v24928_v28 }
 0xa5b   : > { %15314 = vmatpush3.bf16.msra.mxu1 %v21818_v0 }
 0xa5c   : > { %15315 = vmatprep.subr.bf16.mxu1 %v24928_v28 }
 0xa5e   : > { %14645 = vmatmul.mubr.f32.vlgmr.msra.gmra.mrb[120].mxu1 %v10543_v8 }
 0xa5f   : > { %15317 = vmatpush3.bf16.msra.mxu1 %v21882_v59  ;;  %14663 = vmatprep.mubr.msk.f32.mxu1 %vm16268_vm11, %v24929_v9 }
 0xa60   : > { %15318 = vmatprep.subr.bf16.mxu1 %v24928_v28 }
 0xa63   : > { %15320 = vmatpush3.bf16.msra.mxu1 %v21888_v17 }
 0xa64   : > { %15321 = vmatprep.subr.bf16.mxu1 %v24928_v28 }
 0xa67   : > { %15323 = vmatpush3.bf16.msra.mxu1 %v21898_v23 }
 0xa68   : > { %15324 = vmatprep.subr.bf16.mxu1 %v24928_v28 }
 0xa6b   : > { %15326 = vmatpush3.bf16.msra.mxu1 %v21908_v44 }
 0xa6c   : > { %15327 = vmatprep.subr.bf16.mxu1 %v24928_v28 }
 0xa6e   : > { %14664 = vmatmul.mubr.f32.vlgmr.msra.gmra.mrb[120].mxu1 %v10541_v48 }
 0xa6f   : > { %15329 = vmatpush3.bf16.msra.mxu1 %v21772_v41  ;;  %14682 = vmatprep.mubr.msk.f32.mxu1 %vm16268_vm11, %v24929_v9 }
 0xa70   : > { %15330 = vmatprep.subr.bf16.mxu1 %v24928_v28 }
 0xa73   : > { %15332 = vmatpush3.bf16.msra.mxu1 %v21786_v22 }
 0xa74   : > { %15333 = vmatprep.subr.bf16.mxu1 %v24928_v28 }
 0xa77   : > { %15335 = vmatpush3.bf16.msra.mxu1 %v21800_v1  ;;  %v22054_v1 = vshrl.u32 %v23630_v14, 7 }
 0xa78   : > { %15336 = vmatprep.subr.bf16.mxu1 %v24928_v28 }
 0xa79   : > { %v22057_v63 = vsub.s32 0, %v22054_v1 }
 0xa7b   : > { %15338 = vmatpush3.bf16.msra.mxu1 %v21818_v0 }
 0xa7c   : > { %15339 = vmatprep.subr.bf16.mxu1 %v24928_v28 }
 0xa7e   : > { %14683 = vmatmul.mubr.f32.vlgmr.msra.gmra.mrb[120].mxu1 %v10541_v48 }
 0xa7f   : > { %14693 = vmatprep.mubr.msk.f32.mxu1 %vm16268_vm11, %v24929_v9 }
 0xb51   : > { %v11001_v41 = vpop.f32.mrb[120].mxu1 }
 0xb52   : > { %v12737_v52 = vmul.f32 -1.442695, %v11001_v41  ;;  %v14684_v21 = vpop.f32.mrb[121].mxu1 }
 0xb54   : > { %16118 = vpow2.f32 %v12737_v52 }
 0xb5e   : > { %v16119_v34 = vpop.eup %16118 }
 0xb5f   : > { %v11008_v22 = vadd.f32 1.0, %v16119_v34 }
 0xb61   : > { %16120 = vrcp.f32 %v11008_v22 }
 0xb6b   : > { %v16121_v0 = vpop.eup %16120 }
 0xb6c   : > { %v11014_v37 = vrot.slane %v16121_v0, %v22057_v63 }
 0xb6e   : > { %v22061_v12 = vmul.f32 %v11014_v37, %v21860_v11  ;;  %v22064_v56 = vmul.f32 %v21856_v39, %v11014_v37  ;;  %v22067_v30 = vmul.f32 %v11014_v37, %v21866_v19  ;;  %v22070_v27 = vmul.f32 %v21864_v54, %v11014_v37 }
 0xb6f   : > { %v22073_v59 = vmul.f32 %v11014_v37, %v21874_v51  ;;  %v22076_v17 = vmul.f32 %v21872_v61, %v11014_v37  ;;  %v22079_v23 = vmul.f32 %v11014_v37, %v21884_v29  ;;  %v22082_v11 = vmul.f32 %v21880_v7, %v11014_v37 }
 0xb70   : > { %24942 = vst [vmem:[#allocation72_spill] sm:$0xff] %v22061_v12  ;;  %24943 = vst [vmem:[#allocation41_spill] sm:$0xff] %v22064_v56  ;;  %v22085_v39 = vmul.f32 %v11014_v37, %v21894_v57  ;;  %v22088_v19 = vmul.f32 %v21892_v62, %v11014_v37  ;;  %v22091_v54 = vmul.f32 %v11014_v37, %v21904_v36  ;;  %v11146_v40 = vsel %vm338_vm0, %v22064_v56, 0.0 }
 0xb71   : > { %24944 = vst [vmem:[#allocation85_spill] sm:$0xff] %v22067_v30  ;;  %24945 = vst [vmem:[#allocation188_spill] sm:$0xff] %v22070_v27  ;;  %v22094_v51 = vmul.f32 %v21902_v16, %v11014_v37  ;;  %v22097_v61 = vmul.f32 %v11014_v37, %v21914_v24  ;;  %v22100_v29 = vmul.f32 %v21912_v31, %v11014_v37  ;;  %v11143_v47 = vsel %vm338_vm0, %v22061_v12, 0.0 }
 0xb72   : > { %24946 = vst [vmem:[#allocation195_spill] sm:$0xff] %v22073_v59  ;;  %24947 = vst [vmem:[#allocation59_spill] sm:$0xff] %v22076_v17  ;;  %v22103_v7 = vmul.f32 %v11014_v37, %v21922_v46  ;;  %v22106_v57 = vmul.f32 %v21920_v4, %v11014_v37  ;;  %v22109_v62 = vmul.f32 %v11014_v37, %v21930_v18  ;;  %v24964_v4 = vld [vmem:[#allocation100_spill] sm:$0xff]  ;;  %v24966_v18 = vld [vmem:[#allocation67_spill] sm:$0xff]  ;;  %11147 = vadd.xlane.f32.xlu1 %v11146_v40 }
 0xb73   : > { %24948 = vst [vmem:[#allocation205_spill] sm:$0xff] %v22079_v23  ;;  %24949 = vst [vmem:[#allocation200_spill] sm:$0xff] %v22082_v11  ;;  %v22112_v36 = vmul.f32 %v21928_v53, %v11014_v37  ;;  %v22115_v16 = vmul.f32 %v11014_v37, %v21938_v32  ;;  %v22118_v44 = vmul.f32 %v21936_v45, %v11014_v37  ;;  %v24968_v53 = vld [vmem:[#allocation68_spill] sm:$0xff]  ;;  %v24972_v45 = vld [vmem:[#allocation177_spill] sm:$0xff]  ;;  %11144 = vadd.xlane.f32.xlu0 %v11143_v47 }
 0xb74   : > { %24950 = vst [vmem:[#allocation210_spill] sm:$0xff] %v22085_v39  ;;  %24951 = vst [vmem:[#allocation206_spill] sm:$0xff] %v22088_v19  ;;  %v22121_v31 = vmul.f32 %v11014_v37, %v21946_v20  ;;  %v22124_v24 = vmul.f32 %v21944_v43, %v11014_v37  ;;  %v22127_v46 = vmul.f32 %v11014_v37, %v24964_v4  ;;  %v24970_v32 = vld [vmem:[#allocation80_spill] sm:$0xff]  ;;  %v24974_v20 = vld [vmem:[#allocation70_spill] sm:$0xff]  ;;  %v11149_v58 = vsel %vm338_vm0, %v22067_v30, 0.0 }
 0xb75   : > { %24952 = vst [vmem:[#allocation225_spill] sm:$0xff] %v22091_v54  ;;  %24953 = vst [vmem:[#allocation220_spill] sm:$0xff] %v22094_v51  ;;  %v22130_v3 = vmul.f32 %v24966_v18, %v11014_v37  ;;  %v22133_v15 = vmul.f32 %v11014_v37, %v24968_v53  ;;  %v22136_v55 = vmul.f32 %v24970_v32, %v11014_v37  ;;  %v24976_v43 = vld [vmem:[#allocation71_spill] sm:$0xff]  ;;  %v11047_v42 = vsel %vm338_vm0, %v22061_v12, -inf }
 0xb76   : > { %24954 = vst [vmem:[#allocation230_spill] sm:$0xff] %v22097_v61  ;;  %24955 = vst [vmem:[#allocation226_spill] sm:$0xff] %v22100_v29  ;;  %v22139_v48 = vmul.f32 %v11014_v37, %v24972_v45  ;;  %v22142_v35 = vmul.f32 %v24974_v20, %v11014_v37  ;;  %v22145_v25 = vmul.f32 %v11014_v37, %v24976_v43  ;;  %11048 = vmax.xlane.f32.xlu1 %v11047_v42 }
 0xb77   : > { %24956 = vst [vmem:[#allocation245_spill] sm:$0xff] %v22103_v7  ;;  %24957 = vst [vmem:[#allocation240_spill] sm:$0xff] %v22106_v57  ;;  %v22148_v49 = vmul.f32 %v24978_v6, %v11014_v37  ;;  %v22151_v5 = vmul.f32 %v11014_v37, %v21986_v33  ;;  %v22154_v2 = vmul.f32 %v21984_v10, %v11014_v37  ;;  %11150 = vadd.xlane.f32.xlu0 %v11149_v58 }
 0xb78   : > { %24958 = vst [vmem:[#allocation250_spill] sm:$0xff] %v22109_v62  ;;  %24959 = vst [vmem:[#allocation246_spill] sm:$0xff] %v22112_v36  ;;  %v11152_v10 = vsel %vm338_vm0, %v22070_v27, 0.0  ;;  %v11053_v33 = vsel %vm338_vm0, %v22067_v30, -inf  ;;  %v11050_v8 = vsel %vm338_vm0, %v22064_v56, -inf  ;;  %v11155_v50 = vsel %vm338_vm0, %v22073_v59, 0.0 }
 0xb79   : > { %24960 = vst [vmem:[#allocation265_spill] sm:$0xff] %v22115_v16  ;;  %24961 = vst [vmem:[#allocation260_spill] sm:$0xff] %v22118_v44  ;;  %v11056_v26 = vsel %vm338_vm0, %v22070_v27, -inf  ;;  %v11059_v38 = vsel %vm338_vm0, %v22073_v59, -inf  ;;  %v11158_v13 = vsel %vm338_vm0, %v22076_v17, 0.0  ;;  %v11161_v60 = vsel %vm338_vm0, %v22079_v23, 0.0 }
 0xb7a   : > { %24962 = vst [vmem:[#allocation285_spill] sm:$0xff] %v22121_v31  ;;  %24963 = vst [vmem:[#allocation290_spill] sm:$0xff] %v22124_v24  ;;  %11054 = vmax.xlane.f32.xlu1 %v11053_v33  ;;  %v11062_v41 = vsel %vm338_vm0, %v22076_v17, -inf  ;;  %v11065_v52 = vsel %vm338_vm0, %v22079_v23, -inf  ;;  %v11164_v21 = vsel %vm338_vm0, %v22082_v11, 0.0  ;;  %v11167_v34 = vsel %vm338_vm0, %v22085_v39, 0.0 }
 0xb7b   : > { %24965 = vst [vmem:[#allocation286_spill] sm:$0xff] %v22127_v46  ;;  %24967 = vst [vmem:[#allocation27_spill] sm:$0xff] %v22130_v3  ;;  %11153 = vadd.xlane.f32.xlu0 %v11152_v10  ;;  %v11068_v22 = vsel %vm338_vm0, %v22082_v11, -inf  ;;  %v11071_v0 = vsel %vm338_vm0, %v22085_v39, -inf  ;;  %v11170_v37 = vsel %vm338_vm0, %v22088_v19, 0.0  ;;  %v11173_v4 = vsel %vm338_vm0, %v22091_v54, 0.0 }
 0xb7c   : > { %24969 = vst [vmem:[#allocation300_spill] sm:$0xff] %v22133_v15  ;;  %24971 = vst [vmem:[#allocation308_spill] sm:$0xff] %v22136_v55  ;;  %v11074_v18 = vsel %vm338_vm0, %v22088_v19, -inf  ;;  %v11191_v53 = vsel %vm338_vm0, %v22109_v62, 0.0  ;;  %v11176_v32 = vsel %vm338_vm0, %v22094_v51, 0.0  ;;  %v11197_v45 = vsel %vm338_vm0, %v22115_v16, 0.0 }
 0xb7d   : > { %24973 = vst [vmem:[#allocation304_spill] sm:$0xff] %v22139_v48  ;;  %24975 = vst [vmem:[#allocation316_spill] sm:$0xff] %v22142_v35  ;;  %v11194_v20 = vsel %vm338_vm0, %v22112_v36, 0.0  ;;  %v11077_v43 = vsel %vm338_vm0, %v22091_v54, -inf  ;;  %v11200_v6 = vsel %vm338_vm0, %v22118_v44, 0.0  ;;  %v11095_v40 = vsel %vm338_vm0, %v22109_v62, -inf }
 0xb7e   : > { %24977 = vst [vmem:[#allocation322_spill] sm:$0xff] %v22145_v25  ;;  %24979 = vst [vmem:[#allocation321_spill] sm:$0xff] %v22148_v49  ;;  %11156 = vadd.xlane.f32.xlu1 %v11155_v50  ;;  %v11080_v47 = vsel %vm338_vm0, %v22094_v51, -inf  ;;  %v11101_v58 = vsel %vm338_vm0, %v22115_v16, -inf  ;;  %v11098_v42 = vsel %vm338_vm0, %v22112_v36, -inf  ;;  %v11179_v10 = vsel %vm338_vm0, %v22097_v61, 0.0 }
 0xb7f   : > { %24980 = vst [vmem:[#allocation131_spill] sm:$0xff] %v22151_v5  ;;  %24981 = vst [vmem:[#allocation124_spill] sm:$0xff] %v22154_v2  ;;  %11051 = vmax.xlane.f32.xlu0 %v11050_v8  ;;  %v11104_v33 = vsel %vm338_vm0, %v22118_v44, -inf  ;;  %v11203_v8 = vsel %vm338_vm0, %v22121_v31, 0.0  ;;  %v11182_v50 = vsel %vm338_vm0, %v22100_v29, 0.0 }
 0xb82   : > { %11060 = vmax.xlane.f32.xlu1 %v11059_v38  ;;  %v11206_v38 = vsel %vm338_vm0, %v22124_v24, 0.0 }
 0xb83   : > { %11057 = vmax.xlane.f32.xlu0 %v11056_v26  ;;  %v11083_v26 = vsel %vm338_vm0, %v22097_v61, -inf }
 0xb86   : > { %11162 = vadd.xlane.f32.xlu1 %v11161_v60  ;;  %v11086_v60 = vsel %vm338_vm0, %v22100_v29, -inf }
 0xb87   : > { %11159 = vadd.xlane.f32.xlu0 %v11158_v13  ;;  %v11107_v13 = vsel %vm338_vm0, %v22121_v31, -inf }
 0xb8a   : > { %11066 = vmax.xlane.f32.xlu1 %v11065_v52  ;;  %v11110_v52 = vsel %vm338_vm0, %v22124_v24, -inf }
 0xb8b   : > { %11063 = vmax.xlane.f32.xlu0 %v11062_v41  ;;  %v11185_v41 = vsel %vm338_vm0, %v22103_v7, 0.0 }
 0xb8e   : > { %11168 = vadd.xlane.f32.xlu1 %v11167_v34  ;;  %v11188_v34 = vsel %vm338_vm0, %v22106_v57, 0.0 }
 0xb8f   : > { %11165 = vadd.xlane.f32.xlu0 %v11164_v21  ;;  %v11209_v21 = vsel %vm338_vm0, %v22127_v46, 0.0 }
 0xb92   : > { %11072 = vmax.xlane.f32.xlu1 %v11071_v0  ;;  %v11212_v0 = vsel %vm338_vm0, %v22130_v3, 0.0 }
 0xb93   : > { %11069 = vmax.xlane.f32.xlu0 %v11068_v22  ;;  %v11089_v22 = vsel %vm338_vm0, %v22103_v7, -inf }
 0xb96   : > { %11174 = vadd.xlane.f32.xlu1 %v11173_v4  ;;  %v11092_v4 = vsel %vm338_vm0, %v22106_v57, -inf }
 0xb97   : > { %11171 = vadd.xlane.f32.xlu0 %v11170_v37  ;;  %v11113_v37 = vsel %vm338_vm0, %v22127_v46, -inf }
 0xb9a   : > { %11192 = vadd.xlane.f32.xlu1 %v11191_v53  ;;  %v11116_v53 = vsel %vm338_vm0, %v22130_v3, -inf }
 0xb9b   : > { %11075 = vmax.xlane.f32.xlu0 %v11074_v18  ;;  %v11215_v18 = vsel %vm338_vm0, %v22133_v15, 0.0 }
 0xb9e   : > { %11198 = vadd.xlane.f32.xlu1 %v11197_v45  ;;  %v11218_v45 = vsel %vm338_vm0, %v22136_v55, 0.0 }
 0xb9f   : > { %11177 = vadd.xlane.f32.xlu0 %v11176_v32  ;;  %v11119_v32 = vsel %vm338_vm0, %v22133_v15, -inf }
 0xba2   : > { %11078 = vmax.xlane.f32.xlu1 %v11077_v43  ;;  %v11122_v43 = vsel %vm338_vm0, %v22136_v55, -inf }
 0xba3   : > { %11195 = vadd.xlane.f32.xlu0 %v11194_v20  ;;  %v11221_v20 = vsel %vm338_vm0, %v22139_v48, 0.0 }
 0xba6   : > { %11096 = vmax.xlane.f32.xlu1 %v11095_v40  ;;  %v11224_v40 = vsel %vm338_vm0, %v22142_v35, 0.0 }
 0xba7   : > { %11201 = vadd.xlane.f32.xlu0 %v11200_v6  ;;  %v11125_v6 = vsel %vm338_vm0, %v22139_v48, -inf }
 0xbaa   : > { %11102 = vmax.xlane.f32.xlu1 %v11101_v58  ;;  %v11128_v58 = vsel %vm338_vm0, %v22142_v35, -inf }
 0xbab   : > { %11081 = vmax.xlane.f32.xlu0 %v11080_v47  ;;  %v11227_v47 = vsel %vm338_vm0, %v22145_v25, 0.0 }
 0xbae   : > { %11180 = vadd.xlane.f32.xlu1 %v11179_v10  ;;  %v11230_v10 = vsel %vm338_vm0, %v22148_v49, 0.0 }
 0xbaf   : > { %11099 = vmax.xlane.f32.xlu0 %v11098_v42  ;;  %v11131_v42 = vsel %vm338_vm0, %v22145_v25, -inf }
 0xbb2   : > { %11204 = vadd.xlane.f32.xlu1 %v11203_v8  ;;  %v11134_v8 = vsel %vm338_vm0, %v22148_v49, -inf }
 0xbb3   : > { %11105 = vmax.xlane.f32.xlu0 %v11104_v33  ;;  %v11233_v33 = vsel %vm338_vm0, %v22151_v5, 0.0 }
 0xbb6   : > { %11084 = vmax.xlane.f32.xlu1 %v11083_v26  ;;  %v11236_v26 = vsel %vm338_vm0, %v22154_v2, 0.0 }
 0xbb7   : > { %11183 = vadd.xlane.f32.xlu0 %v11182_v50  ;;  %v11137_v50 = vsel %vm338_vm0, %v22151_v5, -inf }
 0xbba   : > { %11108 = vmax.xlane.f32.xlu1 %v11107_v13  ;;  %v11682_v13 = vld [vmem:[%s22900_s5] sm:$0xff] }
 0xbbb   : > { %11207 = vadd.xlane.f32.xlu0 %v11206_v38  ;;  %v11140_v38 = vsel %vm338_vm0, %v22154_v2, -inf }
 0xbbe   : > { %11186 = vadd.xlane.f32.xlu1 %v11185_v41  ;;  %v11696_v41 = vand.u32 4294901760, %v11682_v13 }
 0xbbf   : > { %11087 = vmax.xlane.f32.xlu0 %v11086_v60  ;;  %v11683_v60 = vld [vmem:[%s22900_s5 + $0x8] sm:$0xff] }
 0xbc2   : > { %11210 = vadd.xlane.f32.xlu1 %v11209_v21  ;;  %v11684_v21 = vld [vmem:[%s22900_s5 + $0x10] sm:$0xff] }
 0xbc3   : > { %11111 = vmax.xlane.f32.xlu0 %v11110_v52  ;;  %v11699_v52 = vand.u32 4294901760, %v11683_v60 }
 0xbc6   : > { %11090 = vmax.xlane.f32.xlu1 %v11089_v22  ;;  %v22298_v22 = vpack.c.bf16 %v11699_v52, %v11696_v41 }
 0xbc7   : > { %11189 = vadd.xlane.f32.xlu0 %v11188_v34  ;;  %v11685_v34 = vld [vmem:[%s22900_s5 + $0x18] sm:$0xff] }
 0xbc8   : > { %15341 = vmatpush3.bf16.msra.mxu1 %v22298_v22 }
 0xbc9   : > { %15342 = vmatprep.subr.bf16.mxu1 %v24928_v28 }
 0xbca   : > { %11114 = vmax.xlane.f32.xlu1 %v11113_v37  ;;  %v22302_v37 = vsub.f32 %v11683_v60, %v11699_v52 }
 0xbcb   : > { %11213 = vadd.xlane.f32.xlu0 %v11212_v0  ;;  %v22300_v0 = vsub.f32 %v11682_v13, %v11696_v41 }
 0xbce   : > { %11216 = vadd.xlane.f32.xlu1 %v11215_v18  ;;  %v11705_v18 = vand.u32 4294901760, %v11685_v34 }
 0xbcf   : > { %11093 = vmax.xlane.f32.xlu0 %v11092_v4  ;;  %v11702_v4 = vand.u32 4294901760, %v11684_v21 }
 0xbd2   : > { %11120 = vmax.xlane.f32.xlu1 %v11119_v32  ;;  %v22308_v32 = vpack.c.bf16 %v11705_v18, %v11702_v4 }
 0xbd3   : > { %11117 = vmax.xlane.f32.xlu0 %v11116_v53  ;;  %v22305_v53 = vsub.f32 %v11684_v21, %v11702_v4 }
 0xbd4   : > { %15344 = vmatpush3.bf16.msra.mxu1 %v22308_v32 }
 0xbd5   : > { %15345 = vmatprep.subr.bf16.mxu1 %v24928_v28 }
 0xbd6   : > { %11222 = vadd.xlane.f32.xlu1 %v11221_v20 }
 0xbd7   : > { %11219 = vadd.xlane.f32.xlu0 %v11218_v45  ;;  %v22310_v45 = vsub.f32 %v11685_v34, %v11705_v18 }
 0xbda   : > { %11126 = vmax.xlane.f32.xlu1 %v11125_v6 }
 0xbdb   : > { %11123 = vmax.xlane.f32.xlu0 %v11122_v43 }
 0xbde   : > { %11228 = vadd.xlane.f32.xlu1 %v11227_v47  ;;  %v11797_v47 = vand.u32 4294901760, %v22300_v0 }
 0xbdf   : > { %11225 = vadd.xlane.f32.xlu0 %v11224_v40 }
 0xbe2   : > { %11132 = vmax.xlane.f32.xlu1 %v11131_v42 }
 0xbe3   : > { %11129 = vmax.xlane.f32.xlu0 %v11128_v58  ;;  %v11804_v58 = vand.u32 4294901760, %v22302_v37 }
 0xbe6   : > { %11234 = vadd.xlane.f32.xlu1 %v11233_v33  ;;  %v11798_v33 = vsub.f32 %v22300_v0, %v11797_v47 }
 0xbe7   : > { %11231 = vadd.xlane.f32.xlu0 %v11230_v10 }
 0xbea   : > { %11138 = vmax.xlane.f32.xlu1 %v11137_v50  ;;  %v11799_v50 = vand.u32 4294901760, %v11798_v33  ;;  %v11811_v33 = vand.u32 4294901760, %v22305_v53 }
 0xbeb   : > { %11135 = vmax.xlane.f32.xlu0 %v11134_v8  ;;  %v11805_v8 = vsub.f32 %v22302_v37, %v11804_v58 }
 0xbef   : > { %11237 = vadd.xlane.f32.xlu0 %v11236_v26  ;;  %v11806_v26 = vand.u32 4294901760, %v11805_v8  ;;  %v11818_v8 = vand.u32 4294901760, %v22310_v45 }
 0xbf1   : > { %v22334_v60 = vpack.c.bf16 %v11806_v26, %v11799_v50  ;;  %v11812_v50 = vsub.f32 %v22305_v53, %v11811_v33  ;;  %v11819_v26 = vsub.f32 %v22310_v45, %v11818_v8 }
 0xbf3   : > { %11141 = vmax.xlane.f32.xlu0 %v11140_v38  ;;  %v11813_v2 = vand.u32 4294901760, %v11812_v50  ;;  %v11820_v25 = vand.u32 4294901760, %v11819_v26  ;;  %v24982_v26 = vlaneseq }
 0xbf5   : > { %v22358_v35 = vpack.c.bf16 %v11820_v25, %v11813_v2  ;;  %v11308_v24 = vand.u32 127, %v24982_v26 }
 0xbf7   : > { %v11518_v25 = vadd.s32 4294967272, %v11308_v24  ;;  %v11513_v2 = vadd.s32 4294967280, %v11308_v24  ;;  %v22423_v30 = vsub.s32 %v11308_v24, %v22054_v1 }
 0xbf9   : > { %v22376_v7 = vsub.s32 %v11518_v25, %v22054_v1  ;;  %v22379_v57 = vsub.s32 %v11513_v2, %v22054_v1 }
 0xbff   : > { %v22314_v20 = vpop.xlane.xlu1 %11147 }
 0xc00   : > { %v22316_v43 = vpop.xlane.xlu0 %11144 }
 0xc03   : > { %v22320_v40 = vpop.xlane.xlu1 %11048 }
 0xc04   : > { %v22318_v6 = vpop.xlane.xlu0 %11150 }
 0xc07   : > { %v22326_v10 = vpop.xlane.xlu1 %11054 }
 0xc08   : > { %v22324_v42 = vpop.xlane.xlu0 %11153 }
 0xc0b   : > { %v22332_v13 = vpop.xlane.xlu1 %11156 }
 0xc0c   : > { %v22330_v38 = vpop.xlane.xlu0 %11051 }
 0xc0f   : > { %v22338_v52 = vpop.xlane.xlu1 %11060 }
 0xc10   : > { %v22336_v41 = vpop.xlane.xlu0 %11057 }
 0xc13   : > { %v22340_v34 = vpop.xlane.xlu1 %11162 }
 0xc14   : > { %v11160_v21 = vpop.xlane.xlu0 %11159 }
 0xc17   : > { %v22344_v18 = vpop.xlane.xlu1 %11066 }
 0xc18   : > { %v22342_v4 = vpop.xlane.xlu0 %11063 }
 0xc1b   : > { %v22350_v5 = vpop.xlane.xlu1 %11168 }
 0xc1c   : > { %v22348_v14 = vpop.xlane.xlu0 %11165 }
 0xc1f   : > { %v22356_v48 = vpop.xlane.xlu1 %11072 }
 0xc20   : > { %v22354_v49 = vpop.xlane.xlu0 %11069 }
 0xc23   : > { %v22364_v46 = vpop.xlane.xlu1 %11174 }
 0xc24   : > { %v22362_v55 = vpop.xlane.xlu0 %11171 }
 0xc27   : > { %v11193_v50 = vpop.xlane.xlu1 %11192 }
 0xc28   : > { %v22368_v31 = vpop.xlane.xlu0 %11075  ;;  %v11256_v62 = vmul.f32 0.015625, %v11193_v50 }
 0xc2a   : > { %v11591_v61 = vrot.slane %v11256_v62, %v22379_v57 }
 0xc2b   : > { %v11199_v44 = vpop.xlane.xlu1 %11198 }
 0xc2c   : > { %v22371_v16 = vpop.xlane.xlu0 %11177  ;;  %v11258_v29 = vmul.f32 0.015625, %v11199_v44 }
 0xc2e   : > { %v11600_v19 = vrot.slane %v11258_v29, %v22379_v57 }
 0xc2f   : > { %v22373_v15 = vpop.xlane.xlu1 %11078 }
 0xc30   : > { %v11196_v36 = vpop.xlane.xlu0 %11195 }
 0xc31   : > { %v11257_v3 = vmul.f32 0.015625, %v11196_v36  ;;  %v22393_v36 = vpack.c.bf16 %v11804_v58, %v11797_v47  ;;  %v11313_v47 = vadd.s32 4294967288, %v11308_v24 }
 0xc33   : > { %v11595_v26 = vrot.slane %v11257_v3, %v22376_v7  ;;  %v22383_v51 = vpop.xlane.xlu1 %11096  ;;  %v22420_v17 = vsub.s32 %v11313_v47, %v22054_v1 }
 0xc34   : > { %v11202_v54 = vpop.xlane.xlu0 %11201 }
 0xc35   : > { %v11596_v50 = vsel %vm11523_vm13, %v11595_v26, %v11591_v61  ;;  %v11259_v39 = vmul.f32 0.015625, %v11202_v54  ;;  %v22402_v54 = vpack.c.bf16 %v11818_v8, %v11811_v33  ;;  %v11242_v33 = vmul.f32 0.015625, %v22318_v6 }
 0xc36   : > { %v11245_v8 = vmul.f32 0.015625, %v11160_v21  ;;  %v11327_v21 = vrot.slane %v22336_v41, %v22420_v17  ;;  %v11246_v41 = vmul.f32 0.015625, %v22340_v34 }
 0xc37   : > { %v11604_v25 = vrot.slane %v11259_v39, %v22376_v7  ;;  %v22390_v2 = vpop.xlane.xlu1 %11102  ;;  %v11528_v6 = vrot.slane %v11242_v33, %v22379_v57 }
 0xc38   : > { %v22388_v23 = vpop.xlane.xlu0 %11081  ;;  %v11541_v24 = vrot.slane %v11245_v8, %v22376_v7 }
 0xc39   : > { %v11605_v62 = vsel %vm11523_vm13, %v11604_v25, %v11600_v19  ;;  %v11243_v19 = vmul.f32 0.015625, %v22324_v42  ;;  %v11241_v25 = vmul.f32 0.015625, %v22314_v20  ;;  %v11244_v42 = vmul.f32 0.015625, %v22332_v13 }
 0xc3a   : > { %v22396_v44 = vsel %vm11455_vm14, %v11605_v62, %v11596_v50  ;;  %v11240_v62 = vmul.f32 0.015625, %v22316_v43  ;;  %v11317_v13 = vrot.slane %v22330_v38, %v22420_v17 }
 0xc3b   : > { %v22400_v61 = vpop.xlane.xlu1 %11180  ;;  %v11532_v59 = vrot.slane %v11243_v19, %v22376_v7  ;;  %v11522_v20 = vrot.slane %v11241_v25, %v22376_v7  ;;  %v11323_v19 = vrot.slane %v22326_v10, %v22423_v30  ;;  %v11336_v25 = vrot.slane %v22342_v4, %v22420_v17 }
 0xc3c   : > { %v22398_v3 = vpop.xlane.xlu0 %11099  ;;  %v11517_v43 = vrot.slane %v11240_v62, %v22379_v57  ;;  %v11247_v62 = vmul.f32 0.015625, %v22348_v14  ;;  %v11537_v33 = vrot.slane %v11244_v42, %v22379_v57  ;;  %v11332_v4 = vrot.slane %v22338_v52, %v22423_v30 }
 0xc3d   : > { %v11533_v47 = vsel %vm11523_vm13, %v11532_v59, %v11528_v6  ;;  %v11312_v59 = vrot.slane %v22320_v40, %v22423_v30  ;;  %v11328_v38 = vsel %vm11318_vm15, %v11327_v21, %v11323_v19  ;;  %v11249_v40 = vmul.f32 0.015625, %v22362_v55 }
 0xc3e   : > { %v11524_v8 = vsel %vm11523_vm13, %v11522_v20, %v11517_v43  ;;  %v11542_v42 = vsel %vm11523_vm13, %v11541_v24, %v11537_v33  ;;  %v11337_v6 = vsel %vm11318_vm15, %v11336_v25, %v11332_v4  ;;  %v11550_v20 = vrot.slane %v11247_v62, %v22376_v7 }
 0xc3f   : > { %v22406_v39 = vpop.xlane.xlu1 %11204  ;;  %v11660_v14 = vsel %vm11455_vm14, %v11533_v47, %v11524_v8  ;;  %v11319_v34 = vsel %vm11318_vm15, %v11317_v13, %v11312_v59  ;;  %v11546_v21 = vrot.slane %v11246_v41, %v22379_v57  ;;  %v11341_v52 = vrot.slane %v22344_v18, %v22423_v30 }
 0xc40   : > { %v22404_v29 = vpop.xlane.xlu0 %11105  ;;  %v11456_v43 = vsel %vm11455_vm14, %v11328_v38, %v11319_v34  ;;  %v11251_v19 = vmul.f32 0.015625, %v22371_v16  ;;  %v11661_v13 = vsel %vm11457_vm2, %v11542_v42, %v11660_v14  ;;  %v11248_v25 = vmul.f32 0.015625, %v22350_v5 }
 0xc41   : > { %v11345_v62 = vrot.slane %v22354_v49, %v22420_v17  ;;  %v11458_v33 = vsel %vm11457_vm2, %v11337_v6, %v11456_v43  ;;  %v11250_v41 = vmul.f32 0.015625, %v22364_v46  ;;  %v11354_v18 = vrot.slane %v22368_v31, %v22420_v17 }
 0xc42   : > { %v11551_v8 = vsel %vm11523_vm13, %v11550_v20, %v11546_v21  ;;  %v11559_v59 = vrot.slane %v11249_v40, %v22376_v7  ;;  %v11363_v5 = vrot.slane %v22388_v23, %v22420_v17  ;;  %v11252_v49 = vmul.f32 0.015625, %v22400_v61 }
 0xc43   : > { %v22408_v11 = vpop.xlane.xlu1 %11084  ;;  %v11568_v38 = vrot.slane %v11251_v19, %v22376_v7  ;;  %v11555_v42 = vrot.slane %v11248_v25, %v22379_v57  ;;  %v11346_v34 = vsel %vm11318_vm15, %v11345_v62, %v11341_v52  ;;  %v11359_v23 = vrot.slane %v22373_v15, %v22423_v30 }
 0xc44   : > { %v11184_v26 = vpop.xlane.xlu0 %11183  ;;  %v11662_v20 = vsel %vm11459_vm3, %v11551_v8, %v11661_v13  ;;  %v11573_v21 = vrot.slane %v11252_v49, %v22379_v57  ;;  %v11460_v15 = vsel %vm11459_vm3, %v11346_v34, %v11458_v33 }
 0xc45   : > { %v11253_v55 = vmul.f32 0.015625, %v11184_v26  ;;  %v11350_v26 = vrot.slane %v22356_v48, %v22423_v30  ;;  %v11564_v48 = vrot.slane %v11250_v41, %v22379_v57  ;;  %v11560_v40 = vsel %vm11523_vm13, %v11559_v59, %v11555_v42 }
 0xc46   : > { %v11364_v43 = vsel %vm11318_vm15, %v11363_v5, %v11359_v23 }
 0xc47   : > { %v22413_v50 = vpop.xlane.xlu1 %11108  ;;  %v11577_v61 = vrot.slane %v11253_v55, %v22376_v7  ;;  %v11355_v6 = vsel %vm11318_vm15, %v11354_v18, %v11350_v26  ;;  %v11569_v52 = vsel %vm11523_vm13, %v11568_v38, %v11564_v48  ;;  %v11663_v18 = vsel %vm11461_vm4, %v11560_v40, %v11662_v20 }
 0xc48   : > { %v22411_v58 = vpop.xlane.xlu0 %11207  ;;  %v11462_v62 = vsel %vm11461_vm4, %v11355_v6, %v11460_v15  ;;  %v11664_v8 = vsel %vm11463_vm5, %v11569_v52, %v11663_v18  ;;  %v11399_v52 = vrot.slane %v22404_v29, %v22420_v17 }
 0xc49   : > { %v11578_v13 = vsel %vm11523_vm13, %v11577_v61, %v11573_v21  ;;  %v11464_v33 = vsel %vm11463_vm5, %v11364_v43, %v11462_v62  ;;  %v11261_v40 = vmul.f32 0.015625, %v22411_v58  ;;  %v11260_v21 = vmul.f32 0.015625, %v22406_v39 }
 0xc4a   : > { %v11665_v49 = vsel %vm11465_vm6, %v11578_v13, %v11664_v8  ;;  %v11395_v13 = vrot.slane %v22390_v2, %v22423_v30  ;;  %v11390_v39 = vrot.slane %v22398_v3, %v22420_v17 }
 0xc4b   : > { %v11187_v12 = vpop.xlane.xlu1 %11186  ;;  %v11609_v29 = vrot.slane %v11260_v21, %v22379_v57 }
 0xc4c   : > { %v22426_v27 = vpop.xlane.xlu0 %11087  ;;  %v11254_v31 = vmul.f32 0.015625, %v11187_v12 }
 0xc4d   : > { %v11372_v46 = vrot.slane %v22426_v27, %v22420_v17  ;;  %v11368_v27 = vrot.slane %v22408_v11, %v22423_v30 }
 0xc4f   : > { %v22446_v10 = vpop.xlane.xlu1 %11210  ;;  %v11373_v19 = vsel %vm11318_vm15, %v11372_v46, %v11368_v27 }
 0xc50   : > { %v22444_v56 = vpop.xlane.xlu0 %11111  ;;  %v11466_v59 = vsel %vm11465_vm6, %v11373_v19, %v11464_v33  ;;  %v11262_v18 = vmul.f32 0.015625, %v22446_v10 }
 0xc53   : > { %v11091_v47 = vpop.xlane.xlu1 %11090 }
 0xc54   : > { %v11190_v24 = vpop.xlane.xlu0 %11189  ;;  %v11377_v55 = vrot.slane %v11091_v47, %v22423_v30 }
 0xc55   : > { %v11255_v16 = vmul.f32 0.015625, %v11190_v24  ;;  %v11582_v24 = vrot.slane %v11254_v31, %v22379_v57 }
 0xc57   : > { %v22483_v14 = vpop.xlane.xlu1 %11114  ;;  %v11586_v12 = vrot.slane %v11255_v16, %v22376_v7 }
 0xc58   : > { %v11214_v4 = vpop.xlane.xlu0 %11213 }
 0xc59   : > { %v11587_v16 = vsel %vm11523_vm13, %v11586_v12, %v11582_v24  ;;  %v11613_v24 = vrot.slane %v11261_v40, %v22376_v7  ;;  %v11263_v62 = vmul.f32 0.015625, %v11214_v4  ;;  %v11400_v4 = vsel %vm11318_vm15, %v11399_v52, %v11395_v13 }
 0xc5a   : > { %v11666_v46 = vsel %vm11467_vm7, %v11587_v16, %v11665_v49 }
 0xc5b   : > { %v11217_v11 = vpop.xlane.xlu1 %11216  ;;  %v11614_v2 = vsel %vm11523_vm13, %v11613_v24, %v11609_v29  ;;  %v11622_v3 = vrot.slane %v11263_v62, %v22376_v7 }
 0xc5c   : > { %v11094_v25 = vpop.xlane.xlu0 %11093  ;;  %v11264_v10 = vmul.f32 0.015625, %v11217_v11 }
 0xc5d   : > { %v11381_v41 = vrot.slane %v11094_v25, %v22420_v17  ;;  %v11408_v25 = vrot.slane %v22444_v56, %v22420_v17  ;;  %v11386_v56 = vrot.slane %v22383_v51, %v22423_v30 }
 0xc5e   : > { %v11627_v21 = vrot.slane %v11264_v10, %v22379_v57 }
 0xc5f   : > { %v11382_v5 = vsel %vm11318_vm15, %v11381_v41, %v11377_v55  ;;  %v22517_v38 = vpop.xlane.xlu1 %11120  ;;  %v11404_v41 = vrot.slane %v22413_v50, %v22423_v30  ;;  %v11391_v50 = vsel %vm11318_vm15, %v11390_v39, %v11386_v56 }
 0xc60   : > { %v11468_v47 = vsel %vm11467_vm7, %v11382_v5, %v11466_v59  ;;  %v22515_v26 = vpop.xlane.xlu0 %11117  ;;  %v11469_v51 = vsel %vm11455_vm14, %v11400_v4, %v11391_v50  ;;  %v11618_v59 = vrot.slane %v11262_v18, %v22379_v57  ;;  %vm12329_vm14 = vcmask 1042432  }
 0xc61   : > { %11479 = vst.msk [vmem:[#allocation4 + $0x3] sm:$0xff] %vm11478_vm8, %v11468_v47  ;;  %v11409_v16 = vsel %vm11318_vm15, %v11408_v25, %v11404_v41 }
 0xc62   : > { %11677 = vst.msk [vmem:[#allocation4 + $0x3] sm:$0xff] %vm11676_vm9, %v11666_v46  ;;  %v11668_v46 = vsel %vm11457_vm2, %v11614_v2, %v22396_v44  ;;  %v11623_v11 = vsel %vm11523_vm13, %v11622_v3, %v11618_v59 }
 0xc63   : > { %v11223_v42 = vpop.xlane.xlu1 %11222 }
 0xc64   : > { %v11220_v31 = vpop.xlane.xlu0 %11219  ;;  %v11266_v40 = vmul.f32 0.015625, %v11223_v42 }
 0xc65   : > { %v11265_v8 = vmul.f32 0.015625, %v11220_v31  ;;  %v11413_v31 = vrot.slane %v22483_v14, %v22423_v30 }
 0xc66   : > { %v11636_v13 = vrot.slane %v11266_v40, %v22379_v57 }
 0xc67   : > { %v22524_v23 = vpop.xlane.xlu1 %11126  ;;  %v11631_v44 = vrot.slane %v11265_v8, %v22376_v7 }
 0xc68   : > { %v22522_v34 = vpop.xlane.xlu0 %11123  ;;  %v11431_v25 = vrot.slane %v22524_v23, %v22423_v30 }
 0xc69   : > { %v11679_v61 = vld [vmem:[#allocation4] sm:$0xff]  ;;  %v11632_v29 = vsel %vm11523_vm13, %v11631_v44, %v11627_v21 }
 0xc6a   : > { %v11687_v48 = vsel %vm2305_vm1, %v11679_v61, 0  ;;  %v11417_v61 = vrot.slane %v22515_v26, %v22420_v17 }
 0xc6b   : > { %v22527_v6 = vand.u32 4294901760, %v11687_v48  ;;  %v11229_v12 = vpop.xlane.xlu1 %11228 }
 0xc6c   : > { %v11226_v27 = vpop.xlane.xlu0 %11225  ;;  %v11268_v52 = vmul.f32 0.015625, %v11229_v12 }
 0xc6d   : > { %v22530_v20 = vsub.f32 %v11687_v48, %v22527_v6  ;;  %v11267_v5 = vmul.f32 0.015625, %v11226_v27  ;;  %v11426_v27 = vrot.slane %v22522_v34, %v22420_v17 }
 0xc6e   : > { %v11645_v41 = vrot.slane %v11268_v52, %v22379_v57 }
 0xc6f   : > { %v11766_v43 = vand.u32 4294901760, %v22530_v20  ;;  %v11133_v58 = vpop.xlane.xlu1 %11132  ;;  %v11640_v14 = vrot.slane %v11267_v5, %v22376_v7 }
 0xc70   : > { %v22535_v15 = vpop.xlane.xlu0 %11129  ;;  %v11440_v39 = vrot.slane %v11133_v58, %v22423_v30 }
 0xc71   : > { %v11767_v19 = vsub.f32 %v22530_v20, %v11766_v43  ;;  %v11435_v26 = vrot.slane %v22535_v15, %v22420_v17  ;;  %v11669_v15 = vsel %vm11459_vm3, %v11623_v11, %v11668_v46  ;;  %v11641_v56 = vsel %vm11523_vm13, %v11640_v14, %v11636_v13 }
 0xc72   : > { %v11670_v8 = vsel %vm11461_vm4, %v11632_v29, %v11669_v15  ;;  %v24983_v14 = vpack.c.bf16 %v22302_v37, %v22300_v0 }
 0xc73   : > { %v11768_v55 = vand.u32 4294901760, %v11767_v19  ;;  %v11235_v49 = vpop.xlane.xlu1 %11234  ;;  %v11422_v19 = vrot.slane %v22517_v38, %v22423_v30  ;;  %v11436_v18 = vsel %vm11318_vm15, %v11435_v26, %v11431_v25  ;;  %v11671_v59 = vsel %vm11463_vm5, %v11641_v56, %v11670_v8 }
 0xc74   : > { %v11232_v33 = vpop.xlane.xlu0 %11231  ;;  %v11270_v42 = vmul.f32 0.015625, %v11235_v49 }
 0xc75   : > { %14694 = vmatmul.mubr.f32.vlgmr.msra.gmra.mrb[122].mxu1 %v11768_v55  ;;  %v11269_v48 = vmul.f32 0.015625, %v11232_v33  ;;  %v11427_v38 = vsel %vm11318_vm15, %v11426_v27, %v11422_v19 }
 0xc76   : > { %15347 = vmatpush3.bf16.msra.mxu1 %v22334_v60  ;;  %14696 = vmatprep.mubr.msk.f32.mxu1 %vm16268_vm11, %v24929_v9  ;;  %v11470_v60 = vsel %vm11457_vm2, %v11409_v16, %v11469_v51  ;;  %v11654_v4 = vrot.slane %v11270_v42, %v22379_v57  ;;  %v24984_v42 = vpack.c.bf16 %v22310_v45, %v22305_v53 }
 0xc77   : > { %15348 = vmatprep.subr.bf16.mxu1 %v24928_v28  ;;  %v11649_v12 = vrot.slane %v11269_v48, %v22376_v7  ;;  %v11139_v55 = vpop.xlane.xlu1 %11138 }
 0xc78   : > { %v11136_v47 = vpop.xlane.xlu0 %11135  ;;  %v11449_v50 = vrot.slane %v11139_v55, %v22423_v30 }
 0xc79   : > { %v11444_v34 = vrot.slane %v11136_v47, %v22420_v17  ;;  %v11650_v3 = vsel %vm11523_vm13, %v11649_v12, %v11645_v41 }
 0xc7a   : > { %15350 = vmatpush3.bf16.msra.mxu1 %v22358_v35  ;;  %v11418_v35 = vsel %vm11318_vm15, %v11417_v61, %v11413_v31  ;;  %v11672_v49 = vsel %vm11465_vm6, %v11650_v3, %v11671_v59 }
 0xc7b   : > { %15351 = vmatprep.subr.bf16.mxu1 %v24928_v28  ;;  %v11471_v33 = vsel %vm11459_vm3, %v11418_v35, %v11470_v60  ;;  %v11445_v2 = vsel %vm11318_vm15, %v11444_v34, %v11440_v39 }
 0xc7c   : > { %v11238_v24 = vpop.xlane.xlu0 %11237  ;;  %v11472_v58 = vsel %vm11461_vm4, %v11427_v38, %v11471_v33 }
 0xc7d   : > { %v11271_v62 = vmul.f32 0.015625, %v11238_v24 }
 0xc7f   : > { %v11658_v23 = vrot.slane %v11271_v62, %v22376_v7  ;;  %v11473_v7 = vsel %vm11463_vm5, %v11436_v18, %v11472_v58 }
 0xc80   : > { %v11142_v16 = vpop.xlane.xlu0 %11141  ;;  %v11474_v57 = vsel %vm11465_vm6, %v11445_v2, %v11473_v7 }
 0xc81   : > { %v11453_v10 = vrot.slane %v11142_v16, %v22420_v17  ;;  %v11659_v51 = vsel %vm11523_vm13, %v11658_v23, %v11654_v4  ;;  %vm12315_vm13 = vcmask 1043456  }
 0xc82   : > { %v11673_v30 = vsel %vm11467_vm7, %v11659_v51, %v11672_v49 }
 0xc83   : > { %v11454_v5 = vsel %vm11318_vm15, %v11453_v10, %v11449_v50  ;;  %vm12343_vm15 = vcmask 1041408   ;;  %v12267_v10 = vstv %s12266_s25 }
 0xc84   : > { %v11475_v47 = vsel %vm11467_vm7, %v11454_v5, %v11474_v57 }
 0xc85   : > { %11480 = vst.msk [vmem:[#allocation4 + $0xb] sm:$0xff] %vm11478_vm8, %v11475_v47 }
 0xc86   : > { %11678 = vst.msk [vmem:[#allocation4 + $0xb] sm:$0xff] %vm11676_vm9, %v11673_v30 }
 0xc8d   : > { %v11680_v17 = vld [vmem:[#allocation4 + $0x8] sm:$0xff]  ;;  %v11681_v46 = vld [vmem:[#allocation4 + $0x10] sm:$0x3f] }
 0xc8e   : > { %v11690_v60 = vsel %vm2305_vm1, %v11680_v17, 0  ;;  %v11693_v61 = vsel %vm2305_vm1, %v11681_v46, 0  ;;  %vm12301_vm1 = vcmask 1044480  }
 0xc8f   : > { %v11774_v48 = vand.u32 4294901760, %v11690_v60  ;;  %v11784_v11 = vand.u32 4294901760, %v11693_v61 }
 0xc91   : > { %v11775_v31 = vsub.f32 %v11690_v60, %v11774_v48  ;;  %v11785_v40 = vsub.f32 %v11693_v61, %v11784_v11 }
 0xc93   : > { %v11776_v27 = vand.u32 4294901760, %v11775_v31  ;;  %v11786_v21 = vand.u32 4294901760, %v11785_v40 }
 0xc95   : > { %v11777_v44 = vsub.f32 %v11775_v31, %v11776_v27  ;;  %v11787_v26 = vsub.f32 %v11785_v40, %v11786_v21 }
 0xc97   : > { %v11778_v52 = vand.u32 4294901760, %v11777_v44  ;;  %v11788_v19 = vand.u32 4294901760, %v11787_v26 }
 0xc99   : > { %14697 = vmatmul.mubr.f32.gmra.mrb[124].mxu1 %v11778_v52 }
 0xc9a   : > { %14699 = vmatprep.mubr.msk.f32.mxu1 %vm16268_vm11, %v24929_v9 }
 0xc9d   : > { %14700 = vmatmul.mubr.f32.gmra.mrb[126].mxu1 %v11788_v19 }
 0xc9e   : > { %14710 = vmatprep.mubr.msk.f32.mxu1 %vm16268_vm11, %v24929_v9 }
 0xca1   : > { %14711 = vmatmul.mubr.f32.vlgmr.msra.gmra.mrb[122].mxu1 %v22527_v6 }
 0xca2   : > { %15353 = vmatpush3.bf16.msra.mxu1 %v24983_v14  ;;  %14713 = vmatprep.mubr.msk.f32.mxu1 %vm16268_vm11, %v24929_v9 }
 0xca3   : > { %15354 = vmatprep.subr.bf16.mxu1 %v24928_v28 }
 0xca5   : > { %14714 = vmatmul.mubr.f32.gmra.mrb[124].mxu1 %v11774_v48 }
 0xca6   : > { %14716 = vmatprep.mubr.msk.f32.mxu1 %vm16268_vm11, %v24929_v9  ;;  %15356 = vmatpush3.bf16.msra.mxu1 %v24984_v42 }
 0xca7   : > { %15357 = vmatprep.subr.bf16.mxu1 %v24928_v28 }
 0xca9   : > { %14717 = vmatmul.mubr.f32.gmra.mrb[126].mxu1 %v11784_v11 }
 0xcaa   : > { %14727 = vmatprep.mubr.msk.f32.mxu1 %vm16268_vm11, %v24929_v9 }
 0xcad   : > { %14728 = vmatmul.mubr.f32.vlgmr.msra.gmra.mrb[122].mxu1 %v22530_v20 }
 0xcae   : > { %15359 = vmatpush3.bf16.msra.mxu1 %v22298_v22  ;;  %14730 = vmatprep.mubr.msk.f32.mxu1 %vm16268_vm11, %v24929_v9 }
 0xcaf   : > { %15360 = vmatprep.subr.bf16.mxu1 %v24928_v28 }
 0xcb1   : > { %14731 = vmatmul.mubr.f32.gmra.mrb[124].mxu1 %v11775_v31 }
 0xcb2   : > { %14733 = vmatprep.mubr.msk.f32.mxu1 %vm16268_vm11, %v24929_v9  ;;  %15362 = vmatpush3.bf16.msra.mxu1 %v22308_v32 }
 0xcb3   : > { %15363 = vmatprep.subr.bf16.mxu1 %v24928_v28 }
 0xcb5   : > { %14734 = vmatmul.mubr.f32.gmra.mrb[126].mxu1 %v11785_v40 }
 0xcb6   : > { %14744 = vmatprep.mubr.msk.f32.mxu1 %vm16268_vm11, %v24929_v9 }
 0xcb9   : > { %14745 = vmatmul.mubr.f32.vlgmr.msra.gmra.mrb[122].mxu1 %v11766_v43 }
 0xcba   : > { %15365 = vmatpush3.bf16.msra.mxu1 %v22393_v36  ;;  %14747 = vmatprep.mubr.msk.f32.mxu1 %vm16268_vm11, %v24929_v9 }
 0xcbb   : > { %15366 = vmatprep.subr.bf16.mxu1 %v24928_v28 }
 0xcbd   : > { %14748 = vmatmul.mubr.f32.gmra.mrb[124].mxu1 %v11776_v27 }
 0xcbe   : > { %14750 = vmatprep.mubr.msk.f32.mxu1 %vm16268_vm11, %v24929_v9  ;;  %15368 = vmatpush3.bf16.msra.mxu1 %v22402_v54 }
 0xcbf   : > { %15369 = vmatprep.subr.bf16.mxu1 %v24928_v28 }
 0xcc1   : > { %14751 = vmatmul.mubr.f32.gmra.mrb[126].mxu1 %v11786_v21 }
 0xcc2   : > { %14761 = vmatprep.mubr.msk.f32.mxu1 %vm16268_vm11, %v24929_v9 }
 0xcc5   : > { %14762 = vmatmul.mubr.f32.vlgmr.msra.gmra.mrb[122].mxu1 %v22527_v6 }
 0xcc6   : > { %15371 = vmatpush3.bf16.msra.mxu1 %v22298_v22  ;;  %14764 = vmatprep.mubr.msk.f32.mxu1 %vm16268_vm11, %v24929_v9 }
 0xcc7   : > { %15372 = vmatprep.subr.bf16.mxu1 %v24928_v28 }
 0xcc9   : > { %14765 = vmatmul.mubr.f32.gmra.mrb[124].mxu1 %v11774_v48 }
 0xcca   : > { %14767 = vmatprep.mubr.msk.f32.mxu1 %vm16268_vm11, %v24929_v9  ;;  %15374 = vmatpush3.bf16.msra.mxu1 %v22308_v32 }
 0xccd   : > { %14768 = vmatmul.mubr.f32.gmra.mrb[126].mxu1 %v11784_v11 }
 0xcce   : > { %14778 = vmatprep.mubr.msk.f32.mxu1 %vm16268_vm11, %v24929_v9 }
 0xcd1   : > { %14779 = vmatmul.mubr.f32.vlgmr.msra.gmra.mrb[122].mxu1 %v22527_v6 }
 0xcd2   : > { %14781 = vmatprep.mubr.msk.f32.mxu1 %vm16268_vm11, %v24929_v9 }
 0xcd5   : > { %14782 = vmatmul.mubr.f32.gmra.mrb[124].mxu1 %v11774_v48 }
 0xcd6   : > { %14784 = vmatprep.mubr.msk.f32.mxu1 %vm16268_vm11, %v24929_v9 }
 0xcd9   : > { %14785 = vmatmul.mubr.f32.gmra.mrb[126].mxu1 %v11784_v11 }
 0xda4   : > { %v12250_v28 = vpop.f32.mrb[122].mxu1 }
 0xda5   : > { %v14780_v22 = vpop.f32.mrb[123].mxu1  ;;  %v12302_v37 = vrot.slane %v12250_v28, 3  ;;  %v12274_v53 = vrot.slane %v12250_v28, 1  ;;  %v12288_v32 = vrot.slane %v12250_v28, 2  ;;  %v12316_v45 = vrot.slane %v12250_v28, 4 }
 0xda6   : > { %v12330_v43 = vrot.slane %v12250_v28, 5  ;;  %v12344_v24 = vrot.slane %v12250_v28, 6  ;;  %v12268_v51 = vadd.f32 %v12267_v10, %v12250_v28 }
 0xda8   : > { %v22676_v0 = vpop.f32.mrb[124].mxu1 }
 0xda9   : > { %v14783_v36 = vpop.f32.mrb[125].mxu1  ;;  %v12303_v54 = vrot.slane %v22676_v0, 3  ;;  %v12275_v9 = vrot.slane %v22676_v0, 1  ;;  %v12289_v6 = vrot.slane %v22676_v0, 2  ;;  %v12317_v20 = vrot.slane %v22676_v0, 4 }
 0xdaa   : > { %v12331_v34 = vrot.slane %v22676_v0, 5  ;;  %v12345_v35 = vrot.slane %v22676_v0, 6  ;;  %v12269_v21 = vadd.f32 %v12267_v10, %v22676_v0  ;;  %v16130_v10 = vld [vmem:[%s16428_s18 + $0x8] sm:$0xff] }
 0xdab   : > { %v12304_v25 = vsel %vm12301_vm1, %v12302_v37, %v12303_v54  ;;  %v12276_v12 = vsel %vm12273_vm10, %v12274_v53, %v12275_v9  ;;  %v12290_v62 = vsel %vm12287_vm12, %v12288_v32, %v12289_v6  ;;  %v12318_v15 = vsel %vm12315_vm13, %v12316_v45, %v12317_v20 }
 0xdac   : > { %12307 = vrot.lane.b32.xlu0 %v12304_v25, %s16269_s21  ;;  %12279 = vrot.lane.b32.xlu1 %v12276_v12, %s16270_s23  ;;  %v12262_v13 = vpop.f32.mrb[126].mxu1  ;;  %v12332_v38 = vsel %vm12329_vm14, %v12330_v43, %v12331_v34  ;;  %v12346_v39 = vsel %vm12343_vm15, %v12344_v24, %v12345_v35  ;;  %v12415_v24 = vsub.s32 4, %v22054_v1  ;;  %v12426_v12 = vsub.s32 5, %v22054_v1 }
 0xdad   : > { %v14786_v55 = vpop.f32.mrb[127].mxu1  ;;  %v12277_v29 = vrot.slane %v12262_v13, 1  ;;  %v12291_v41 = vrot.slane %v12262_v13, 2  ;;  %v12305_v18 = vrot.slane %v12262_v13, 3  ;;  %v12319_v23 = vrot.slane %v12262_v13, 4 }
 0xdae   : > { %v12333_v33 = vrot.slane %v12262_v13, 5  ;;  %v12347_v56 = vrot.slane %v12262_v13, 6 }
 0xdaf   : > { %v12278_v4 = vsel %vm12273_vm10, %v12275_v9, %v12277_v29  ;;  %v12292_v2 = vsel %vm12287_vm12, %v12289_v6, %v12291_v41  ;;  %v12306_v16 = vsel %vm12301_vm1, %v12303_v54, %v12305_v18  ;;  %v12320_v58 = vsel %vm12315_vm13, %v12317_v20, %v12319_v23 }
 0xdb0   : > { %12293 = vrot.lane.b32.xlu1 %v12290_v62, %s16266_s20  ;;  %12281 = vrot.lane.b32.xlu0 %v12278_v4, %s16270_s23  ;;  %v12334_v3 = vsel %vm12329_vm14, %v12331_v34, %v12333_v33  ;;  %v12348_v50 = vsel %vm12343_vm15, %v12345_v35, %v12347_v56  ;;  %v12382_v54 = vsub.s32 1, %v22054_v1  ;;  %v12393_v9 = vsub.s32 2, %v22054_v1 }
 0xdb1   : > { %v12404_v20 = vsub.s32 3, %v22054_v1 }
 0xdb4   : > { %12295 = vrot.lane.b32.xlu1 %v12292_v2, %s16266_s20  ;;  %12321 = vrot.lane.b32.xlu0 %v12318_v15, %s16264_s16  ;;  %v12437_v15 = vsub.s32 6, %v22054_v1 }
 0xdb8   : > { %12309 = vrot.lane.b32.xlu1 %v12306_v16, %s16269_s21  ;;  %12335 = vrot.lane.b32.xlu0 %v12332_v38, %s16271_s24  ;;  %v12448_v38 = vsub.s32 7, %v22054_v1  ;;  %v24985_v16 = vld [vmem:[#allocation41_spill] sm:$0xff]  ;;  %s16198_s21 = scalar_lea.vmem %s16197_s17, 8192 }
 0xdbc   : > { %12323 = vrot.lane.b32.xlu1 %v12320_v58, %s16264_s16  ;;  %12349 = vrot.lane.b32.xlu0 %v12346_v39, %s16265_s19  ;;  %s22718_s16 = scalar_lea.vmem [#allocation9], %s12735_s12  ;;  %s12746_s12 = sshll.u32 %s16339_s6, 12 }
 0xdbd   : > { %s22843_s13 = scalar_lea.hbm %s22902_s7, %s12746_s12  ;;  %s12642_s6 = scalar_lea.sflag [#allocation8], %s16422_s10 }
 0xdc0   : > { %12337 = vrot.lane.b32.xlu1 %v12334_v3, %s16271_s24  ;;  %v24986_v3 = vld [vmem:[#allocation72_spill] sm:$0xff] }
 0xdc4   : > { %12351 = vrot.lane.b32.xlu1 %v12348_v50, %s16265_s19  ;;  %s12655_s19 = sshll.u32 %s22718_s16, 4  ;;  %s22845_s19 = int_to_ptr.vmem [resolvable:$true] %s12655_s19 }
 0xdc5   : > { %s16192_s30 = scalar_lea.vmem %s22845_s19, 4096  ;;  %p16199_p8 = scmp.lt.s32.totalorder %s22845_s19, %s16197_s17 }
 0xdc6   : > { %p16193_p6 = scmp.ne.s32.totalorder %s22845_s19, %s16192_s30  ;;  %p16200_p10 = scmp.lt.s32.totalorder %s16198_s21, %s16192_s30 }
 0xdc8   : > { %p16194_p12 = pnand %p16193_p6, %p25017_p11  ;;  %p16201_p0 = por %p16200_p10, %p16199_p8 }
 0xdca   : > { %p16195_p13 = pneg %p16194_p12 }
 0xdcc   : > { %p16202_p2 = pnand %p16201_p0, %p16195_p13 }
 0xe1e   : > { %v12308_v8 = vpop.permute.xlu0 %12307  ;;  %v12280_v7 = vpop.permute.xlu1 %12279 }
 0xe1f   : > { %v12285_v59 = vadd.f32 %v12280_v7, %v12268_v51  ;;  %v16131_v7 = vld [vmem:[%s16428_s18] sm:$0xff] }
 0xe22   : > { %v12294_v57 = vpop.permute.xlu1 %12293  ;;  %v12282_v5 = vpop.permute.xlu0 %12281 }
 0xe23   : > { %v12299_v49 = vadd.f32 %v12294_v57, %v12285_v59  ;;  %v12286_v44 = vadd.f32 %v12282_v5, %v12269_v21  ;;  %v24987_v5 = vld [vmem:[#allocation188_spill] sm:$0xff] }
 0xe25   : > { %v12313_v30 = vadd.f32 %v12308_v8, %v12299_v49 }
 0xe26   : > { %v12322_v47 = vpop.permute.xlu0 %12321  ;;  %v12296_v17 = vpop.permute.xlu1 %12295 }
 0xe27   : > { %v12327_v60 = vadd.f32 %v12322_v47, %v12313_v30  ;;  %v12300_v19 = vadd.f32 %v12296_v17, %v12286_v44  ;;  %v24988_v47 = vld [vmem:[#allocation85_spill] sm:$0xff]  ;;  %v16132_v17 = vld [vmem:[%s16428_s18 + $0x18] sm:$0xff] }
 0xe28   : > { %v16134_v44 = vld [vmem:[%s16428_s18 + $0x28] sm:$0xff] }
 0xe2a   : > { %v12336_v46 = vpop.permute.xlu0 %12335  ;;  %v12310_v31 = vpop.permute.xlu1 %12309 }
 0xe2b   : > { %v12341_v61 = vadd.f32 %v12336_v46, %v12327_v60  ;;  %v12314_v42 = vadd.f32 %v12310_v31, %v12300_v19  ;;  %v16133_v60 = vld [vmem:[%s16428_s18 + $0x10] sm:$0xff]  ;;  %v24989_v31 = vld [vmem:[#allocation59_spill] sm:$0xff] }
 0xe2e   : > { %v12350_v48 = vpop.permute.xlu0 %12349  ;;  %v12324_v27 = vpop.permute.xlu1 %12323 }
 0xe2f   : > { %v12355_v11 = vadd.f32 %v12350_v48, %v12341_v61  ;;  %v12328_v28 = vadd.f32 %v12324_v27, %v12314_v42  ;;  %v24990_v27 = vld [vmem:[#allocation195_spill] sm:$0xff] }
 0xe31   : > { %v12738_v40 = vmul.f32 -1.442695, %v12355_v11 }
 0xe32   : > { %v12338_v52 = vpop.permute.xlu1 %12337 }
 0xe33   : > { %16122 = vpow2.f32 %v12738_v40  ;;  %v12342_v37 = vadd.f32 %v12338_v52, %v12328_v28  ;;  %v24991_v28 = vld [vmem:[#allocation200_spill] sm:$0xff] }
 0xe36   : > { %v12352_v22 = vpop.permute.xlu1 %12351 }
 0xe37   : > { %v12356_v53 = vadd.f32 %v12352_v22, %v12342_v37  ;;  %v24992_v37 = vld [vmem:[#allocation205_spill] sm:$0xff] }
 0xe39   : > { %v12739_v32 = vmul.f32 -1.442695, %v12356_v53 }
 0xe3d   : > { %v16123_v26 = vpop.eup %16122 }
 0xe3e   : > { %v12363_v14 = vadd.f32 1.0, %v16123_v26  ;;  %v16135_v26 = vld [vmem:[%s16428_s18 + $0x20] sm:$0xff] }
 0xe40   : > { %16124 = vrcp.f32 %v12363_v14 }
 0xe41   : > { %16126 = vpow2.f32 %v12739_v32  ;;  %v16136_v32 = vld [vmem:[%s16428_s18 + $0x38] sm:$0xff] }
 0xe4a   : > { %v16125_v45 = vpop.eup %16124 }
 0xe4b   : > { %v12372_v36 = vrot.slane %v16125_v45, %v22057_v63  ;;  %v12383_v0 = vrot.slane %v16125_v45, %v12382_v54  ;;  %v12394_v6 = vrot.slane %v16125_v45, %v12393_v9  ;;  %v16127_v43 = vpop.eup %16126  ;;  %v12405_v34 = vrot.slane %v16125_v45, %v12404_v20 }
 0xe4c   : > { %v12364_v35 = vadd.f32 1.0, %v16127_v43  ;;  %v12416_v25 = vrot.slane %v16125_v45, %v12415_v24  ;;  %v12427_v62 = vrot.slane %v16125_v45, %v12426_v12  ;;  %v12438_v13 = vrot.slane %v16125_v45, %v12437_v15  ;;  %v24994_v43 = vld [vmem:[#allocation210_spill] sm:$0xff] }
 0xe4d   : > { %12378 = vbcast.lane.b32.xlu1 %v12372_v36, 264  ;;  %12374 = vbcast.lane.b32.xlu0 %v12372_v36, 256  ;;  %v12449_v39 = vrot.slane %v16125_v45, %v12448_v38  ;;  %v16137_v36 = vld [vmem:[%s16428_s18 + $0x30] sm:$0xff] }
 0xe4e   : > { %16128 = vrcp.f32 %v12364_v35 }
 0xe51   : > { %12389 = vbcast.lane.b32.xlu1 %v12383_v0, 264  ;;  %12385 = vbcast.lane.b32.xlu0 %v12383_v0, 256 }
 0xe55   : > { %12400 = vbcast.lane.b32.xlu1 %v12394_v6, 264  ;;  %12396 = vbcast.lane.b32.xlu0 %v12394_v6, 256  ;;  %v24993_v6 = vld [vmem:[#allocation206_spill] sm:$0xff] }
 0xe58   : > { %v16129_v55 = vpop.eup %16128 }
 0xe59   : > { %12411 = vbcast.lane.b32.xlu1 %v12405_v34, 264  ;;  %12407 = vbcast.lane.b32.xlu0 %v12405_v34, 256  ;;  %v12460_v29 = vrot.slane %v16129_v55, %v22057_v63  ;;  %v12471_v41 = vrot.slane %v16129_v55, %v12382_v54  ;;  %v12482_v18 = vrot.slane %v16129_v55, %v12393_v9 }
 0xe5a   : > { %v12493_v23 = vrot.slane %v16129_v55, %v12404_v20  ;;  %v12504_v1 = vrot.slane %v16129_v55, %v12415_v24  ;;  %v12515_v33 = vrot.slane %v16129_v55, %v12426_v12  ;;  %v12526_v63 = vrot.slane %v16129_v55, %v12437_v15  ;;  %v16138_v24 = vld [vmem:[%s16428_s18 + $0x48] sm:$0xff] }
 0xe5b   : > { %v12537_v56 = vrot.slane %v16129_v55, %v12448_v38 }
 0xe5d   : > { %12422 = vbcast.lane.b32.xlu1 %v12416_v25, 264  ;;  %12418 = vbcast.lane.b32.xlu0 %v12416_v25, 256  ;;  %v16139_v25 = vld [vmem:[%s16428_s18 + $0x40] sm:$0xff] }
 0xe61   : > { %12433 = vbcast.lane.b32.xlu1 %v12427_v62, 264  ;;  %12429 = vbcast.lane.b32.xlu0 %v12427_v62, 256 }
 0xe65   : > { %12444 = vbcast.lane.b32.xlu1 %v12438_v13, 264  ;;  %12440 = vbcast.lane.b32.xlu0 %v12438_v13, 256  ;;  %v24995_v13 = vld [vmem:[#allocation220_spill] sm:$0xff] }
 0xe69   : > { %12455 = vbcast.lane.b32.xlu1 %v12449_v39, 264  ;;  %12451 = vbcast.lane.b32.xlu0 %v12449_v39, 256  ;;  %v24996_v39 = vld [vmem:[#allocation225_spill] sm:$0xff] }
 0xe6d   : > { %12466 = vbcast.lane.b32.xlu1 %v12460_v29, 264  ;;  %12462 = vbcast.lane.b32.xlu0 %v12460_v29, 256  ;;  %v16140_v29 = vld [vmem:[%s16428_s18 + $0x58] sm:$0xff] }
 0xe71   : > { %12477 = vbcast.lane.b32.xlu1 %v12471_v41, 264  ;;  %12473 = vbcast.lane.b32.xlu0 %v12471_v41, 256 }
 0xe75   : > { %12488 = vbcast.lane.b32.xlu1 %v12482_v18, 264  ;;  %12484 = vbcast.lane.b32.xlu0 %v12482_v18, 256  ;;  %v16141_v18 = vld [vmem:[%s16428_s18 + $0x50] sm:$0xff] }
 0xe79   : > { %12499 = vbcast.lane.b32.xlu1 %v12493_v23, 264  ;;  %12495 = vbcast.lane.b32.xlu0 %v12493_v23, 256 }
 0xe7d   : > { %12510 = vbcast.lane.b32.xlu1 %v12504_v1, 264  ;;  %12506 = vbcast.lane.b32.xlu0 %v12504_v1, 256 }
 0xe81   : > { %12521 = vbcast.lane.b32.xlu1 %v12515_v33, 264  ;;  %12517 = vbcast.lane.b32.xlu0 %v12515_v33, 256 }
 0xe85   : > { %12532 = vbcast.lane.b32.xlu1 %v12526_v63, 264  ;;  %12528 = vbcast.lane.b32.xlu0 %v12526_v63, 256  ;;  %v24997_v63 = vld [vmem:[#allocation226_spill] sm:$0xff] }
 0xe89   : > { %12543 = vbcast.lane.b32.xlu1 %v12537_v56, 264  ;;  %12539 = vbcast.lane.b32.xlu0 %v12537_v56, 256 }
 0xebf   : > { %v12379_v4 = vpop.permute.xlu1 %12378  ;;  %v12375_v2 = vpop.permute.xlu0 %12374 }
 0xec0   : > { %v12546_v58 = vmul.f32 %v12379_v4, %v24985_v16  ;;  %v12545_v50 = vmul.f32 %v12375_v2, %v24986_v3  ;;  %v24998_v4 = vld [vmem:[#allocation230_spill] sm:$0xff]  ;;  %v16142_v16 = vld [vmem:[%s16428_s18 + $0x68] sm:$0xff]  ;;  %v16143_v3 = vld [vmem:[%s16428_s18 + $0x60] sm:$0xff] }
 0xec2   : > { %v12578_v8 = vadd.f32 %v16130_v10, %v12546_v58  ;;  %v12577_v51 = vadd.f32 %v16131_v7, %v12545_v50  ;;  %v24999_v7 = vld [vmem:[#allocation240_spill] sm:$0xff] }
 0xec3   : > { %v12390_v59 = vpop.permute.xlu1 %12389  ;;  %v12386_v57 = vpop.permute.xlu0 %12385 }
 0xec4   : > { %12610 = vst.msk [vmem:[%s22718_s16 + $0x8] sm:$0xff] %vm338_vm0, %v12578_v8  ;;  %12609 = vst.msk [vmem:[%s22718_s16] sm:$0xff] %vm338_vm0, %v12577_v51  ;;  %v12548_v49 = vmul.f32 %v12390_v59, %v24987_v5  ;;  %v12547_v30 = vmul.f32 %v12386_v57, %v24988_v47  ;;  %v25000_v59 = vld [vmem:[#allocation245_spill] sm:$0xff]  ;;  %v16144_v5 = vld [vmem:[%s16428_s18 + $0x78] sm:$0xff] }
 0xec5   : > { %v16145_v47 = vld [vmem:[%s16428_s18 + $0x70] sm:$0xff] }
 0xec6   : > { %v12580_v46 = vadd.f32 %v16132_v17, %v12548_v49  ;;  %v12579_v61 = vadd.f32 %v16133_v60, %v12547_v30  ;;  %v25001_v60 = vld [vmem:[#allocation246_spill] sm:$0xff] }
 0xec7   : > { %v12401_v48 = vpop.permute.xlu1 %12400  ;;  %v12397_v11 = vpop.permute.xlu0 %12396 }
 0xec8   : > { %12612 = vst.msk [vmem:[%s22718_s16 + $0x18] sm:$0xff] %vm338_vm0, %v12580_v46  ;;  %12611 = vst.msk [vmem:[%s22718_s16 + $0x10] sm:$0xff] %vm338_vm0, %v12579_v61  ;;  %v12550_v40 = vmul.f32 %v12401_v48, %v24989_v31  ;;  %v12549_v21 = vmul.f32 %v12397_v11, %v24990_v27  ;;  %v25002_v48 = vld [vmem:[#allocation250_spill] sm:$0xff]  ;;  %v16146_v31 = vld [vmem:[%s16428_s18 + $0x88] sm:$0xff] }
 0xec9   : > { %v16147_v27 = vld [vmem:[%s16428_s18 + $0x80] sm:$0xff] }
 0xeca   : > { %v12582_v52 = vadd.f32 %v16134_v44, %v12550_v40  ;;  %v12581_v19 = vadd.f32 %v16135_v26, %v12549_v21  ;;  %v25003_v26 = vld [vmem:[#allocation260_spill] sm:$0xff] }
 0xecb   : > { %v12412_v14 = vpop.permute.xlu1 %12411  ;;  %v12408_v42 = vpop.permute.xlu0 %12407 }
 0xecc   : > { %12614 = vst.msk [vmem:[%s22718_s16 + $0x28] sm:$0xff] %vm338_vm0, %v12582_v52  ;;  %12613 = vst.msk [vmem:[%s22718_s16 + $0x20] sm:$0xff] %vm338_vm0, %v12581_v19  ;;  %v12552_v22 = vmul.f32 %v12412_v14, %v24991_v28  ;;  %v12551_v53 = vmul.f32 %v12408_v42, %v24992_v37  ;;  %v25004_v14 = vld [vmem:[#allocation265_spill] sm:$0xff]  ;;  %v16148_v28 = vld [vmem:[%s16428_s18 + $0x98] sm:$0xff] }
 0xecd   : > { %v16149_v37 = vld [vmem:[%s16428_s18 + $0x90] sm:$0xff] }
 0xece   : > { %v12584_v45 = vadd.f32 %v16136_v32, %v12552_v22  ;;  %v12583_v54 = vadd.f32 %v16137_v36, %v12551_v53  ;;  %v25005_v36 = vld [vmem:[#allocation290_spill] sm:$0xff] }
 0xecf   : > { %v12423_v0 = vpop.permute.xlu1 %12422  ;;  %v12419_v9 = vpop.permute.xlu0 %12418 }
 0xed0   : > { %12616 = vst.msk [vmem:[%s22718_s16 + $0x38] sm:$0xff] %vm338_vm0, %v12584_v45  ;;  %12615 = vst.msk [vmem:[%s22718_s16 + $0x30] sm:$0xff] %vm338_vm0, %v12583_v54  ;;  %v12554_v20 = vmul.f32 %v12423_v0, %v24993_v6  ;;  %v12553_v34 = vmul.f32 %v12419_v9, %v24994_v43  ;;  %v25006_v0 = vld [vmem:[#allocation285_spill] sm:$0xff]  ;;  %v16151_v43 = vld [vmem:[%s16428_s18 + $0xa0] sm:$0xff] }
 0xed1   : > { %v16150_v6 = vld [vmem:[%s16428_s18 + $0xa8] sm:$0xff] }
 0xed2   : > { %v12586_v35 = vadd.f32 %v16138_v24, %v12554_v20  ;;  %v12585_v12 = vadd.f32 %v16139_v25, %v12553_v34  ;;  %v25007_v25 = vld [vmem:[#allocation27_spill] sm:$0xff] }
 0xed3   : > { %v12434_v62 = vpop.permute.xlu1 %12433  ;;  %v12430_v15 = vpop.permute.xlu0 %12429 }
 0xed4   : > { %12618 = vst.msk [vmem:[%s22718_s16 + $0x48] sm:$0xff] %vm338_vm0, %v12586_v35  ;;  %12617 = vst.msk [vmem:[%s22718_s16 + $0x40] sm:$0xff] %vm338_vm0, %v12585_v12  ;;  %v12556_v38 = vmul.f32 %v12434_v62, %v24995_v13  ;;  %v12555_v55 = vmul.f32 %v12430_v15, %v24996_v39  ;;  %v25008_v62 = vld [vmem:[#allocation286_spill] sm:$0xff]  ;;  %v16152_v13 = vld [vmem:[%s16428_s18 + $0xb8] sm:$0xff] }
 0xed5   : > { %v16153_v39 = vld [vmem:[%s16428_s18 + $0xb0] sm:$0xff] }
 0xed6   : > { %v12588_v41 = vadd.f32 %v16140_v29, %v12556_v38  ;;  %v12587_v23 = vadd.f32 %v16141_v18, %v12555_v55  ;;  %v25009_v18 = vld [vmem:[#allocation308_spill] sm:$0xff] }
 0xed7   : > { %v12445_v1 = vpop.permute.xlu1 %12444  ;;  %v12441_v33 = vpop.permute.xlu0 %12440 }
 0xed8   : > { %12620 = vst.msk [vmem:[%s22718_s16 + $0x58] sm:$0xff] %vm338_vm0, %v12588_v41  ;;  %12619 = vst.msk [vmem:[%s22718_s16 + $0x50] sm:$0xff] %vm338_vm0, %v12587_v23  ;;  %v12558_v56 = vmul.f32 %v12445_v1, %v24997_v63  ;;  %v12557_v2 = vmul.f32 %v12441_v33, %v24998_v4  ;;  %v25010_v1 = vld [vmem:[#allocation300_spill] sm:$0xff]  ;;  %v16154_v63 = vld [vmem:[%s16428_s18 + $0xc8] sm:$0xff] }
 0xed9   : > { %v16155_v4 = vld [vmem:[%s16428_s18 + $0xc0] sm:$0xff] }
 0xeda   : > { %v12590_v58 = vadd.f32 %v16142_v16, %v12558_v56  ;;  %v12589_v50 = vadd.f32 %v16143_v3, %v12557_v2  ;;  %v25011_v3 = vld [vmem:[#allocation316_spill] sm:$0xff] }
 0xedb   : > { %v12456_v10 = vpop.permute.xlu1 %12455  ;;  %v12452_v8 = vpop.permute.xlu0 %12451 }
 0xedc   : > { %12622 = vst.msk [vmem:[%s22718_s16 + $0x68] sm:$0xff] %vm338_vm0, %v12590_v58  ;;  %12621 = vst.msk [vmem:[%s22718_s16 + $0x60] sm:$0xff] %vm338_vm0, %v12589_v50  ;;  %v12560_v51 = vmul.f32 %v12456_v10, %v24999_v7  ;;  %v12559_v57 = vmul.f32 %v12452_v8, %v25000_v59  ;;  %v25012_v10 = vld [vmem:[#allocation304_spill] sm:$0xff]  ;;  %v16156_v7 = vld [vmem:[%s16428_s18 + $0xd8] sm:$0xff] }
 0xedd   : > { %v16157_v59 = vld [vmem:[%s16428_s18 + $0xd0] sm:$0xff] }
 0xede   : > { %v12592_v49 = vadd.f32 %v16144_v5, %v12560_v51  ;;  %v12591_v30 = vadd.f32 %v16145_v47, %v12559_v57  ;;  %v25013_v47 = vld [vmem:[#allocation321_spill] sm:$0xff] }
 0xedf   : > { %v12467_v17 = vpop.permute.xlu1 %12466  ;;  %v12463_v46 = vpop.permute.xlu0 %12462 }
 0xee0   : > { %12624 = vst.msk [vmem:[%s22718_s16 + $0x78] sm:$0xff] %vm338_vm0, %v12592_v49  ;;  %12623 = vst.msk [vmem:[%s22718_s16 + $0x70] sm:$0xff] %vm338_vm0, %v12591_v30  ;;  %v12562_v61 = vmul.f32 %v12467_v17, %v25001_v60  ;;  %v12561_v11 = vmul.f32 %v12463_v46, %v25002_v48  ;;  %v25014_v17 = vld [vmem:[#allocation322_spill] sm:$0xff]  ;;  %v16158_v60 = vld [vmem:[%s16428_s18 + $0xe8] sm:$0xff] }
 0xee1   : > { %v16159_v48 = vld [vmem:[%s16428_s18 + $0xe0] sm:$0xff] }
 0xee2   : > { %v12594_v40 = vadd.f32 %v16146_v31, %v12562_v61  ;;  %v12593_v21 = vadd.f32 %v16147_v27, %v12561_v11  ;;  %v25015_v27 = vld [vmem:[#allocation124_spill] sm:$0xff] }
 0xee3   : > { %v12478_v44 = vpop.permute.xlu1 %12477  ;;  %v12474_v52 = vpop.permute.xlu0 %12473 }
 0xee4   : > { %12626 = vst.msk [vmem:[%s22718_s16 + $0x88] sm:$0xff] %vm338_vm0, %v12594_v40  ;;  %12625 = vst.msk [vmem:[%s22718_s16 + $0x80] sm:$0xff] %vm338_vm0, %v12593_v21  ;;  %v12564_v19 = vmul.f32 %v12478_v44, %v25003_v26  ;;  %v12563_v42 = vmul.f32 %v12474_v52, %v25004_v14  ;;  %v25016_v44 = vld [vmem:[#allocation131_spill] sm:$0xff]  ;;  %v16161_v14 = vld [vmem:[%s16428_s18 + $0xf0] sm:$0xff] }
 0xee5   : > { %v16160_v26 = vld [vmem:[%s16428_s18 + $0xf8] sm:$0xff] }
 0xee6   : > { %v12596_v22 = vadd.f32 %v16148_v28, %v12564_v19  ;;  %v12595_v53 = vadd.f32 %v16149_v37, %v12563_v42 }
 0xee7   : > { %v12489_v32 = vpop.permute.xlu1 %12488  ;;  %v12485_v45 = vpop.permute.xlu0 %12484 }
 0xee8   : > { %12628 = vst.msk [vmem:[%s22718_s16 + $0x98] sm:$0xff] %vm338_vm0, %v12596_v22  ;;  %12627 = vst.msk [vmem:[%s22718_s16 + $0x90] sm:$0xff] %vm338_vm0, %v12595_v53  ;;  %v12566_v54 = vmul.f32 %v12489_v32, %v25005_v36  ;;  %v12565_v9 = vmul.f32 %v12485_v45, %v25006_v0 }
 0xeea   : > { %v12598_v20 = vadd.f32 %v16150_v6, %v12566_v54  ;;  %v12597_v34 = vadd.f32 %v16151_v43, %v12565_v9 }
 0xeeb   : > { %v12500_v24 = vpop.permute.xlu1 %12499  ;;  %v12496_v35 = vpop.permute.xlu0 %12495 }
 0xeec   : > { %12630 = vst.msk [vmem:[%s22718_s16 + $0xa8] sm:$0xff] %vm338_vm0, %v12598_v20  ;;  %12629 = vst.msk [vmem:[%s22718_s16 + $0xa0] sm:$0xff] %vm338_vm0, %v12597_v34  ;;  %v12568_v12 = vmul.f32 %v12500_v24, %v25007_v25  ;;  %v12567_v15 = vmul.f32 %v12496_v35, %v25008_v62 }
 0xeee   : > { %v12600_v38 = vadd.f32 %v16152_v13, %v12568_v12  ;;  %v12599_v55 = vadd.f32 %v16153_v39, %v12567_v15 }
 0xeef   : > { %v12511_v29 = vpop.permute.xlu1 %12510  ;;  %v12507_v41 = vpop.permute.xlu0 %12506 }
 0xef0   : > { %12632 = vst.msk [vmem:[%s22718_s16 + $0xb8] sm:$0xff] %vm338_vm0, %v12600_v38  ;;  %12631 = vst.msk [vmem:[%s22718_s16 + $0xb0] sm:$0xff] %vm338_vm0, %v12599_v55  ;;  %v12570_v23 = vmul.f32 %v12511_v29, %v25009_v18  ;;  %v12569_v33 = vmul.f32 %v12507_v41, %v25010_v1 }
 0xef2   : > { %v12602_v56 = vadd.f32 %v16154_v63, %v12570_v23  ;;  %v12601_v2 = vadd.f32 %v16155_v4, %v12569_v33 }
 0xef3   : > { %v12522_v16 = vpop.permute.xlu1 %12521  ;;  %v12518_v58 = vpop.permute.xlu0 %12517 }
 0xef4   : > { %12634 = vst.msk [vmem:[%s22718_s16 + $0xc8] sm:$0xff] %vm338_vm0, %v12602_v56  ;;  %12633 = vst.msk [vmem:[%s22718_s16 + $0xc0] sm:$0xff] %vm338_vm0, %v12601_v2  ;;  %v12572_v50 = vmul.f32 %v12522_v16, %v25011_v3  ;;  %v12571_v8 = vmul.f32 %v12518_v58, %v25012_v10 }
 0xef6   : > { %v12604_v51 = vadd.f32 %v16156_v7, %v12572_v50  ;;  %v12603_v57 = vadd.f32 %v16157_v59, %v12571_v8 }
 0xef7   : > { %v12533_v5 = vpop.permute.xlu1 %12532  ;;  %v12529_v49 = vpop.permute.xlu0 %12528 }
 0xef8   : > { %12636 = vst.msk [vmem:[%s22718_s16 + $0xd8] sm:$0xff] %vm338_vm0, %v12604_v51  ;;  %12635 = vst.msk [vmem:[%s22718_s16 + $0xd0] sm:$0xff] %vm338_vm0, %v12603_v57  ;;  %v12574_v30 = vmul.f32 %v12533_v5, %v25013_v47  ;;  %v12573_v46 = vmul.f32 %v12529_v49, %v25014_v17 }
 0xefa   : > { %v12606_v61 = vadd.f32 %v16158_v60, %v12574_v30  ;;  %v12605_v11 = vadd.f32 %v16159_v48, %v12573_v46 }
 0xefb   : > { %v12544_v31 = vpop.permute.xlu1 %12543  ;;  %v12540_v40 = vpop.permute.xlu0 %12539 }
 0xefc   : > { %12638 = vst.msk [vmem:[%s22718_s16 + $0xe8] sm:$0xff] %vm338_vm0, %v12606_v61  ;;  %12637 = vst.msk [vmem:[%s22718_s16 + $0xe0] sm:$0xff] %vm338_vm0, %v12605_v11  ;;  %v12576_v21 = vmul.f32 %v12544_v31, %v25015_v27  ;;  %v12575_v52 = vmul.f32 %v12540_v40, %v25016_v44 }
 0xefe   : > { %v12608_v19 = vadd.f32 %v16160_v26, %v12576_v21  ;;  %v12607_v42 = vadd.f32 %v16161_v14, %v12575_v52 }
 0xf00   : > { %12640 = vst.msk [vmem:[%s22718_s16 + $0xf8] sm:$0xff] %vm338_vm0, %v12608_v19  ;;  %12639 = vst.msk [vmem:[%s22718_s16 + $0xf0] sm:$0xff] %vm338_vm0, %v12607_v42 }
 0xf01   : > { %16205 = shalt.err (!%p16202_p2)
}
 0xf02   : > { %s16206_s18 = scalar_lea.hbm %s22843_s13, 4096  ;;  %s16210_s25 = scalar_lea.hbm %s22902_s7, 8192 }
 0xf03   : > { %p16207_p4 = scmp.ne.s32.totalorder %s22843_s13, %s16206_s18  ;;  %p16211_p9 = scmp.lt.u32.totalorder %s22843_s13, %s22902_s7 }
 0xf04   : > { %p16212_p1 = scmp.lt.u32.totalorder %s16210_s25, %s16206_s18  ;;  %p16214_p6 = scmp.lt.u32.totalorder %s16206_s18, %s22843_s13 }
 0xf05   : > { %p16208_p5 = pnand %p16207_p4, %p25017_p11 }
 0xf06   : > { %p16213_p3 = por %p16212_p1, %p16211_p9 }
 0xf07   : > { %p16209_p7 = pneg %p16208_p5 }
 0xf08   : > { %p16215_p12 = por %p16214_p6, %p16213_p3 }
 0xf0a   : > { %p16216_p13 = pnand %p16215_p12, %p16209_p7 }
 0xf0c   : > { %16219 = shalt.err (!%p16216_p13)
}
 0xf0d   : > { %s16273_s20 = smov 128   ;;  %s16274_s22 = smov 8  }
 0xf0e   : > { %16061 = dma.vmem_to_hbm [thread:$0]  (%p25017_p11), %s22845_s19, 4096, %s22843_s13, %s12642_s6, %s16273_s20, %s16273_s20, %s16274_s22  }
 0xf0f PF: > { %s12670_s30 = sand.u32 1, %s16246_s26   ;;  %p25018_p8 = scmp.ne.s32.totalorder %s23666_s15, 0 }
 0xf10   : > { %p25019_p10 = scmp.ge.s32.totalorder %s16258_s29, 2  ;;  %s12671_s9 = scalar_lea.sflag [#allocation8], %s12670_s30 }
 0xf12   : > { %p16068_p0 = pnand %p25019_p10, %p25018_p8 }
 0xf14   : > { %16241 = dma.done.wait (!%p16068_p0), %s12671_s9, 4096  }
 0xf15   : > { %16243 = vsyncadd (!%p16068_p0), %s12671_s9, 4294963200  ;;  %p21_p2 = scmp.ge.s32.totalorder %s16343_s8, 4   ;;  %s25020_s26 = smov %s16250_s27 }
 0xf16   : > { %s25021_s27 = smov %s16254_s28  ;;  %s25022_s28 = smov %s16355_s11 }
 0xf17   : > { %s25023_s29 = smov %s16343_s8  ;;  %23 = sbr.rel (!%p21_p2) target bundleno = 7 (0x7), region = 96 }
 0xf1e   :  { %12676 = vsyncpa [#allocation7], 1 }
 0xf1f   :  { %12678 = vsyncpa [#allocation7 + $0x1], 1 }
 0xf20   :  { %12679 = vsyncpa [#allocation8], 1 }
 0xf21   :  { %12681 = vsyncpa [#allocation8 + $0x1], 1 }

</bundles_post_ra>
